<compile_context>
chip_gen: v5e
topology: v5e:2x2
jax: 0.10.0
libtpu: 0.0.40
codegen_flags: <defaults>
</compile_context>

<pallas_src>
import jax
import jax.numpy as jnp
import numpy as np
from jax.experimental import pallas as pl
from jax.experimental.pallas import tpu as pltpu

K = 5  # conv kernel size


def image_encoder_forward(params, x_nchw):
    B, C, H, W = x_nchw.shape                     # (2, 3, 32, 32)
    HO1, WO1 = H - (K - 1), W - (K - 1)           # 28, 28
    HP1, WP1 = HO1 // 2, WO1 // 2                 # 14, 14
    HO2, WO2 = HP1 - (K - 1), WP1 - (K - 1)       # 10, 10
    HP2, WP2 = HO2 // 2, WO2 // 2                 # 5, 5
    C1, C2 = 6, 16
    F1, F2, F3 = 120, 84, 10
    NPOS = HP2 * WP2                              # 25 spatial positions after pool2

    R1 = B * HO1 * WO1                            # 1568 conv1 output rows (b,ho,wo)
    RP1 = B * HP1 * WP1                           # 392  pool1 rows (= conv2 grid rows)
    P_ROWS = RP1 + (K - 1) * WP1                  # 448  kw-packed pool1 rows
    POOL1_ROWS = -(-(P_ROWS + K - 1) // 8) * 8    # 456  pool1 rows incl. zero pad
    FEAT_ROWS = -(-(B * NPOS) // 8) * 8           # 56

    f32 = jnp.float32

    # ---------------- wrapper-side layout plumbing (plain XLA) ----------------
    # Full conv1 im2col: X1[b*784 + ho*28 + wo, (kh*5+kw)*3 + ci] = x[b,ho+kh,wo+kw,ci]
    x = jnp.transpose(x_nchw, (0, 2, 3, 1))                           # NHWC
    patches = [x[:, kh:kh + HO1, kw:kw + WO1, :]
               for kh in range(K) for kw in range(K)]                 # each (B,28,28,C)
    x1 = jnp.stack(patches, axis=3).reshape(R1, K * K * C)            # (1568, 75)

    # conv weights: PyTorch (Cout, Cin, KH, KW) -> matmul slabs
    w1 = jnp.transpose(params["conv1_w"], (2, 3, 1, 0)).reshape(K * K * C, C1)   # (75, 6)
    b1 = params["conv1_b"].reshape(1, C1)
    w2k = jnp.transpose(params["conv2_w"], (2, 3, 1, 0)).reshape(K, K * C1, C2)  # (5, 30, 16)
    b2 = params["conv2_b"].reshape(1, C2)

    # fc1 weight permuted so row index = pos*C2 + c (pos = hp2*WP2 + wp2), matching
    # the in-kernel flat layout; torch.flatten's NCHW order (c*NPOS + pos) is folded in.
    wf1 = jnp.transpose(params["fc1_w"].reshape(F1, C2, NPOS), (2, 1, 0)).reshape(NPOS * C2, F1)
    bf1 = params["fc1_b"].reshape(1, F1)
    wf2 = params["fc2_w"].T
    bf2 = params["fc2_b"].reshape(1, F2)
    wf3 = params["fc3_w"].T
    bf3 = params["fc3_b"].reshape(1, F3)

    # ------------------------------- fused kernel -----------------------------
    def kernel(x1_ref, w1_ref, b1_ref, w2k_ref, b2_ref,
               wf1_ref, bf1_ref, wf2_ref, bf2_ref, wf3_ref, bf3_ref,
               o_ref, acc1, hm1, pool1, pk, acc2, hm2, feat, fflat):
        # conv1: ONE matmul over the fully im2col'd input (75-wide contraction).
        acc1[...] = jnp.dot(x1_ref[...], w1_ref[...],
                            preferred_element_type=f32) + b1_ref[...]

        # pool1 stage A: horizontal (w-neighbour) max as one contiguous pass.
        hm1[pl.ds(0, R1 - 1), :] = jnp.maximum(acc1[pl.ds(0, R1 - 1), :],
                                               acc1[pl.ds(1, R1 - 1), :])

        # pool1 stage B: vertical max + stride-2 downsample + ReLU (2 strided
        # gathers per (b, hp) instead of 4).
        for b in range(B):
            for hp in range(HP1):
                src = b * HO1 * WO1 + (2 * hp) * WO1
                v = jnp.maximum(hm1[pl.ds(src, WP1, stride=2), :],
                                hm1[pl.ds(src + WO1, WP1, stride=2), :])
                pool1[pl.ds(b * HP1 * WP1 + hp * WP1, WP1), :] = jnp.maximum(v, 0.0)

        # Zero only the pad rows read by the kw-shifted packing below.
        pool1[pl.ds(RP1, POOL1_ROWS - RP1), :] = jnp.zeros((POOL1_ROWS - RP1, C1), f32)

        # kw-lane-pack pool1: pk[r, kw*C1 + c] = pool1[r + kw, c]
        for kw in range(K):
            pk[:, pl.ds(kw * C1, C1)] = pool1[pl.ds(kw, P_ROWS), :]

        # conv2: K matmuls (one per kh) with a 30-wide contraction, accumulated
        # in a single VMEM scratch (5 RMW passes instead of 25).
        for kh in range(K):
            t = jnp.dot(pk[pl.ds(kh * WP1, RP1), :], w2k_ref[kh],
                        preferred_element_type=f32)
            if kh == 0:
                acc2[...] = t + b2_ref[...]
            else:
                acc2[...] += t

        # pool2 stage A: horizontal max, contiguous.
        hm2[pl.ds(0, RP1 - 1), :] = jnp.maximum(acc2[pl.ds(0, RP1 - 1), :],
                                                acc2[pl.ds(1, RP1 - 1), :])
        # pool2 stage B: vertical max + downsample + ReLU.
        for b in range(B):
            for hp in range(HP2):
                src = b * HP1 * WP1 + (2 * hp) * WP1
                v = jnp.maximum(hm2[pl.ds(src, WP2, stride=2), :],
                                hm2[pl.ds(src + WP1, WP2, stride=2), :])
                feat[pl.ds(b * NPOS + hp * WP2, WP2), :] = jnp.maximum(v, 0.0)

        # flatten: (B*25, 16) rows -> (B, 400) lanes via 25 tiny lane-slice copies
        # (removes the 25-deep serial MXU chain of per-position fc1 matmuls).
        for pos in range(NPOS):
            fflat[pl.ds(0, B), pl.ds(pos * C2, C2)] = feat[pl.ds(pos, B, stride=NPOS), :]

        # fc1 / fc2 / fc3: three dense matmuls, only (B, 10) logits leave VMEM.
        h1 = jnp.maximum(jnp.dot(fflat[pl.ds(0, B), :], wf1_ref[...],
                                 preferred_element_type=f32) + bf1_ref[...], 0.0)
        h2 = jnp.maximum(jnp.dot(h1, wf2_ref[...],
                                 preferred_element_type=f32) + bf2_ref[...], 0.0)
        o_ref[...] = jnp.dot(h2, wf3_ref[...],
                             preferred_element_type=f32) + bf3_ref[...]

    args = (x1, w1, b1, w2k, b2, wf1, bf1, wf2, bf2, wf3, bf3)

    def full_spec(a):
        nd = a.ndim
        return pl.BlockSpec(a.shape, lambda i, nd=nd: (0,) * nd)

    return pl.pallas_call(
        kernel,
        out_shape=jax.ShapeDtypeStruct((B, F3), f32),
        grid=(1,),
        in_specs=[full_spec(a) for a in args],
        out_specs=pl.BlockSpec((B, F3), lambda i: (0, 0)),
        scratch_shapes=[
            pltpu.VMEM((R1, C1), f32),             # acc1: conv1 output
            pltpu.VMEM((R1, C1), f32),             # hm1: horizontal-max temp
            pltpu.VMEM((POOL1_ROWS, C1), f32),     # pool1 (+ zero pad rows)
            pltpu.VMEM((P_ROWS, K * C1), f32),     # pk: kw-lane-packed pool1
            pltpu.VMEM((RP1, C2), f32),            # acc2: conv2 output
            pltpu.VMEM((RP1, C2), f32),            # hm2: horizontal-max temp
            pltpu.VMEM((FEAT_ROWS, C2), f32),      # feat: pooled conv2 features
            pltpu.VMEM((8, NPOS * C2), f32),       # fflat: (B, 400) flattened features
        ],
        compiler_params=pltpu.CompilerParams(
            dimension_semantics=("arbitrary",)),
    )(*args)


# ------------------------- params + pure-JAX reference ------------------------

def init_params(key):
    ks = jax.random.split(key, 10)

    def u(k, shape, fan_in):
        bound = 1.0 / np.sqrt(fan_in)
        return jax.random.uniform(k, shape, jnp.float32, -bound, bound)

    return dict(
        conv1_w=u(ks[0], (6, 3, K, K), 3 * K * K),
        conv1_b=u(ks[1], (6,), 3 * K * K),
        conv2_w=u(ks[2], (16, 6, K, K), 6 * K * K),
        conv2_b=u(ks[3], (16,), 6 * K * K),
        fc1_w=u(ks[4], (120, 400), 400),
        fc1_b=u(ks[5], (120,), 400),
        fc2_w=u(ks[6], (84, 120), 120),
        fc2_b=u(ks[7], (84,), 120),
        fc3_w=u(ks[8], (10, 84), 84),
        fc3_b=u(ks[9], (10,), 84),
    )


def reference_forward(params, x):
    hi = jax.lax.Precision.HIGHEST

    def conv(x, w, b):
        y = jax.lax.conv_general_dilated(
            x, w, (1, 1), "VALID",
            dimension_numbers=("NCHW", "OIHW", "NCHW"), precision=hi)
        return y + b[None, :, None, None]

    def pool(x):
        return jax.lax.reduce_window(
            x, -jnp.inf, jax.lax.max, (1, 1, 2, 2), (1, 1, 2, 2), "VALID")

    y = pool(jax.nn.relu(conv(x, params["conv1_w"], params["conv1_b"])))
    y = pool(jax.nn.relu(conv(y, params["conv2_w"], params["conv2_b"])))
    y = y.reshape(y.shape[0], -1)
    y = jax.nn.relu(jnp.dot(y, params["fc1_w"].T, precision=hi) + params["fc1_b"])
    y = jax.nn.relu(jnp.dot(y, params["fc2_w"].T, precision=hi) + params["fc2_b"])
    return jnp.dot(y, params["fc3_w"].T, precision=hi) + params["fc3_b"]


if __name__ == "__main__":
    key = jax.random.PRNGKey(0)
    pkey, xkey = jax.random.split(key)
    params = init_params(pkey)
    x = jax.random.normal(xkey, (2, 3, 32, 32), jnp.float32)

    out = jax.jit(image_encoder_forward)(params, x)
    out = jax.block_until_ready(out)
    assert out.shape == (2, 10), out.shape

    ref = reference_forward(params, x)
    err = float(jnp.max(jnp.abs(out - ref)))
    # Tightened vs previous version (was 1e-2): all-f32 pipeline, so layout or
    # permutation bugs cannot hide behind the tolerance.
    assert err < 5e-3, f"mismatch vs reference: max abs err = {err}"

    print("KERNEL_OK")
</pallas_src>

<mosaic_0001>
module attributes {stable_mosaic.version = 11 : i64} {
  func.func @kernel(%arg0: i32, %arg1: memref<1568x75xf32, #tpu.memory_space<vmem>>, %arg2: memref<75x6xf32, #tpu.memory_space<vmem>>, %arg3: memref<1x6xf32, #tpu.memory_space<vmem>>, %arg4: memref<5x30x16xf32, #tpu.memory_space<vmem>>, %arg5: memref<1x16xf32, #tpu.memory_space<vmem>>, %arg6: memref<400x120xf32, #tpu.memory_space<vmem>>, %arg7: memref<1x120xf32, #tpu.memory_space<vmem>>, %arg8: memref<120x84xf32, #tpu.memory_space<vmem>>, %arg9: memref<1x84xf32, #tpu.memory_space<vmem>>, %arg10: memref<84x10xf32, #tpu.memory_space<vmem>>, %arg11: memref<1x10xf32, #tpu.memory_space<vmem>>, %arg12: memref<2x10xf32, #tpu.memory_space<vmem>>, %arg13: memref<1568x6xf32, #tpu.memory_space<vmem>>, %arg14: memref<1568x6xf32, #tpu.memory_space<vmem>>, %arg15: memref<456x6xf32, #tpu.memory_space<vmem>>, %arg16: memref<448x30xf32, #tpu.memory_space<vmem>>, %arg17: memref<392x16xf32, #tpu.memory_space<vmem>>, %arg18: memref<392x16xf32, #tpu.memory_space<vmem>>, %arg19: memref<56x16xf32, #tpu.memory_space<vmem>>, %arg20: memref<8x400xf32, #tpu.memory_space<vmem>>) attributes {dimension_semantics = [#tpu.dimension_semantics<arbitrary>], iteration_bounds = array<i64: 1>, scalar_prefetch = 0 : i64, scratch_operands = 8 : i64, tpu.core_type = #tpu.core_type<tc>, window_params = [{pipeline_mode = #tpu.pipeline_mode<synchronous>, transform_indices = @transform_0, window_bounds = array<i64: 1568, 75>}, {pipeline_mode = #tpu.pipeline_mode<synchronous>, transform_indices = @transform_1, window_bounds = array<i64: 75, 6>}, {pipeline_mode = #tpu.pipeline_mode<synchronous>, transform_indices = @transform_2, window_bounds = array<i64: 1, 6>}, {pipeline_mode = #tpu.pipeline_mode<synchronous>, transform_indices = @transform_3, window_bounds = array<i64: 5, 30, 16>}, {pipeline_mode = #tpu.pipeline_mode<synchronous>, transform_indices = @transform_4, window_bounds = array<i64: 1, 16>}, {pipeline_mode = #tpu.pipeline_mode<synchronous>, transform_indices = @transform_5, window_bounds = array<i64: 400, 120>}, {pipeline_mode = #tpu.pipeline_mode<synchronous>, transform_indices = @transform_6, window_bounds = array<i64: 1, 120>}, {pipeline_mode = #tpu.pipeline_mode<synchronous>, transform_indices = @transform_7, window_bounds = array<i64: 120, 84>}, {pipeline_mode = #tpu.pipeline_mode<synchronous>, transform_indices = @transform_8, window_bounds = array<i64: 1, 84>}, {pipeline_mode = #tpu.pipeline_mode<synchronous>, transform_indices = @transform_9, window_bounds = array<i64: 84, 10>}, {pipeline_mode = #tpu.pipeline_mode<synchronous>, transform_indices = @transform_10, window_bounds = array<i64: 1, 10>}, {pipeline_mode = #tpu.pipeline_mode<synchronous>, transform_indices = @transform_11, window_bounds = array<i64: 2, 10>}]} {
    %c0 = arith.constant 0 : index
    %c0_0 = arith.constant 0 : index
    %0 = vector.load %arg1[%c0, %c0_0] : memref<1568x75xf32, #tpu.memory_space<vmem>>, vector<1568x75xf32>
    %c0_1 = arith.constant 0 : index
    %c0_2 = arith.constant 0 : index
    %1 = vector.load %arg2[%c0_1, %c0_2] : memref<75x6xf32, #tpu.memory_space<vmem>>, vector<75x6xf32>
    %cst = arith.constant dense<0.000000e+00> : vector<1568x6xf32>
    %2 = tpu.matmul %0, %1, %cst {dimension_numbers = #tpu.dot_dimension_numbers<[1], [0], [0], [1], [0, 0, 1, 1], [], []>} : vector<1568x75xf32>, vector<75x6xf32>, vector<1568x6xf32> -> vector<1568x6xf32>
    %c0_3 = arith.constant 0 : index
    %c0_4 = arith.constant 0 : index
    %3 = vector.load %arg3[%c0_3, %c0_4] : memref<1x6xf32, #tpu.memory_space<vmem>>, vector<1x6xf32>
    %4 = vector.broadcast %3 : vector<1x6xf32> to vector<1568x6xf32>
    %5 = arith.addf %2, %4 : vector<1568x6xf32>
    %c0_5 = arith.constant 0 : index
    %c0_6 = arith.constant 0 : index
    %6 = vector.load %arg13[%c0_5, %c0_6] : memref<1568x6xf32, #tpu.memory_space<vmem>>, vector<1568x6xf32>
    tpu.vector_store %arg13[%c0_5, %c0_6], %5 {strides = array<i32>} : memref<1568x6xf32, #tpu.memory_space<vmem>>, vector<1568x6xf32>,
    %c0_7 = arith.constant 0 : index
    %c0_8 = arith.constant 0 : index
    %7 = vector.load %arg13[%c0_7, %c0_8] : memref<1568x6xf32, #tpu.memory_space<vmem>>, vector<1567x6xf32>
    %c1 = arith.constant 1 : index
    %c0_9 = arith.constant 0 : index
    %8 = vector.load %arg13[%c1, %c0_9] : memref<1568x6xf32, #tpu.memory_space<vmem>>, vector<1567x6xf32>
    %9 = arith.maximumf %7, %8 : vector<1567x6xf32>
    %c0_10 = arith.constant 0 : index
    %c0_11 = arith.constant 0 : index
    %10 = vector.load %arg14[%c0_10, %c0_11] : memref<1568x6xf32, #tpu.memory_space<vmem>>, vector<1567x6xf32>
    tpu.vector_store %arg14[%c0_10, %c0_11], %9 {strides = array<i32>} : memref<1568x6xf32, #tpu.memory_space<vmem>>, vector<1567x6xf32>,
    %c0_12 = arith.constant 0 : index
    %c0_13 = arith.constant 0 : index
    %11 = tpu.strided_load %arg14[%c0_12, %c0_13] {strides = array<i32: 2, 1>} : memref<1568x6xf32, #tpu.memory_space<vmem>>, vector<14x6xf32>
    %c28 = arith.constant 28 : index
    %c0_14 = arith.constant 0 : index
    %12 = tpu.strided_load %arg14[%c28, %c0_14] {strides = array<i32: 2, 1>} : memref<1568x6xf32, #tpu.memory_space<vmem>>, vector<14x6xf32>
    %13 = arith.maximumf %11, %12 : vector<14x6xf32>
    %cst_15 = arith.constant 0.000000e+00 : f32
    %14 = vector.broadcast %cst_15 : f32 to vector<14x6xf32>
    %15 = arith.maximumf %13, %14 : vector<14x6xf32>
    %c0_16 = arith.constant 0 : index
    %c0_17 = arith.constant 0 : index
    %16 = vector.load %arg15[%c0_16, %c0_17] : memref<456x6xf32, #tpu.memory_space<vmem>>, vector<14x6xf32>
    tpu.vector_store %arg15[%c0_16, %c0_17], %15 {strides = array<i32>} : memref<456x6xf32, #tpu.memory_space<vmem>>, vector<14x6xf32>,
    %c56 = arith.constant 56 : index
    %c0_18 = arith.constant 0 : index
    %17 = tpu.strided_load %arg14[%c56, %c0_18] {strides = array<i32: 2, 1>} : memref<1568x6xf32, #tpu.memory_space<vmem>>, vector<14x6xf32>
    %c84 = arith.constant 84 : index
    %c0_19 = arith.constant 0 : index
    %18 = tpu.strided_load %arg14[%c84, %c0_19] {strides = array<i32: 2, 1>} : memref<1568x6xf32, #tpu.memory_space<vmem>>, vector<14x6xf32>
    %19 = arith.maximumf %17, %18 : vector<14x6xf32>
    %cst_20 = arith.constant 0.000000e+00 : f32
    %20 = vector.broadcast %cst_20 : f32 to vector<14x6xf32>
    %21 = arith.maximumf %19, %20 : vector<14x6xf32>
    %c14 = arith.constant 14 : index
    %c0_21 = arith.constant 0 : index
    %22 = vector.load %arg15[%c14, %c0_21] : memref<456x6xf32, #tpu.memory_space<vmem>>, vector<14x6xf32>
    tpu.vector_store %arg15[%c14, %c0_21], %21 {strides = array<i32>} : memref<456x6xf32, #tpu.memory_space<vmem>>, vector<14x6xf32>,
    %c112 = arith.constant 112 : index
    %c0_22 = arith.constant 0 : index
    %23 = tpu.strided_load %arg14[%c112, %c0_22] {strides = array<i32: 2, 1>} : memref<1568x6xf32, #tpu.memory_space<vmem>>, vector<14x6xf32>
    %c140 = arith.constant 140 : index
    %c0_23 = arith.constant 0 : index
    %24 = tpu.strided_load %arg14[%c140, %c0_23] {strides = array<i32: 2, 1>} : memref<1568x6xf32, #tpu.memory_space<vmem>>, vector<14x6xf32>
    %25 = arith.maximumf %23, %24 : vector<14x6xf32>
    %cst_24 = arith.constant 0.000000e+00 : f32
    %26 = vector.broadcast %cst_24 : f32 to vector<14x6xf32>
    %27 = arith.maximumf %25, %26 : vector<14x6xf32>
    %c28_25 = arith.constant 28 : index
    %c0_26 = arith.constant 0 : index
    %28 = vector.load %arg15[%c28_25, %c0_26] : memref<456x6xf32, #tpu.memory_space<vmem>>, vector<14x6xf32>
    tpu.vector_store %arg15[%c28_25, %c0_26], %27 {strides = array<i32>} : memref<456x6xf32, #tpu.memory_space<vmem>>, vector<14x6xf32>,
    %c168 = arith.constant 168 : index
    %c0_27 = arith.constant 0 : index
    %29 = tpu.strided_load %arg14[%c168, %c0_27] {strides = array<i32: 2, 1>} : memref<1568x6xf32, #tpu.memory_space<vmem>>, vector<14x6xf32>
    %c196 = arith.constant 196 : index
    %c0_28 = arith.constant 0 : index
    %30 = tpu.strided_load %arg14[%c196, %c0_28] {strides = array<i32: 2, 1>} : memref<1568x6xf32, #tpu.memory_space<vmem>>, vector<14x6xf32>
    %31 = arith.maximumf %29, %30 : vector<14x6xf32>
    %cst_29 = arith.constant 0.000000e+00 : f32
    %32 = vector.broadcast %cst_29 : f32 to vector<14x6xf32>
    %33 = arith.maximumf %31, %32 : vector<14x6xf32>
    %c42 = arith.constant 42 : index
    %c0_30 = arith.constant 0 : index
    %34 = vector.load %arg15[%c42, %c0_30] : memref<456x6xf32, #tpu.memory_space<vmem>>, vector<14x6xf32>
    tpu.vector_store %arg15[%c42, %c0_30], %33 {strides = array<i32>} : memref<456x6xf32, #tpu.memory_space<vmem>>, vector<14x6xf32>,
    %c224 = arith.constant 224 : index
    %c0_31 = arith.constant 0 : index
    %35 = tpu.strided_load %arg14[%c224, %c0_31] {strides = array<i32: 2, 1>} : memref<1568x6xf32, #tpu.memory_space<vmem>>, vector<14x6xf32>
    %c252 = arith.constant 252 : index
    %c0_32 = arith.constant 0 : index
    %36 = tpu.strided_load %arg14[%c252, %c0_32] {strides = array<i32: 2, 1>} : memref<1568x6xf32, #tpu.memory_space<vmem>>, vector<14x6xf32>
    %37 = arith.maximumf %35, %36 : vector<14x6xf32>
    %cst_33 = arith.constant 0.000000e+00 : f32
    %38 = vector.broadcast %cst_33 : f32 to vector<14x6xf32>
    %39 = arith.maximumf %37, %38 : vector<14x6xf32>
    %c56_34 = arith.constant 56 : index
    %c0_35 = arith.constant 0 : index
    %40 = vector.load %arg15[%c56_34, %c0_35] : memref<456x6xf32, #tpu.memory_space<vmem>>, vector<14x6xf32>
    tpu.vector_store %arg15[%c56_34, %c0_35], %39 {strides = array<i32>} : memref<456x6xf32, #tpu.memory_space<vmem>>, vector<14x6xf32>,
    %c280 = arith.constant 280 : index
    %c0_36 = arith.constant 0 : index
    %41 = tpu.strided_load %arg14[%c280, %c0_36] {strides = array<i32: 2, 1>} : memref<1568x6xf32, #tpu.memory_space<vmem>>, vector<14x6xf32>
    %c308 = arith.constant 308 : index
    %c0_37 = arith.constant 0 : index
    %42 = tpu.strided_load %arg14[%c308, %c0_37] {strides = array<i32: 2, 1>} : memref<1568x6xf32, #tpu.memory_space<vmem>>, vector<14x6xf32>
    %43 = arith.maximumf %41, %42 : vector<14x6xf32>
    %cst_38 = arith.constant 0.000000e+00 : f32
    %44 = vector.broadcast %cst_38 : f32 to vector<14x6xf32>
    %45 = arith.maximumf %43, %44 : vector<14x6xf32>
    %c70 = arith.constant 70 : index
    %c0_39 = arith.constant 0 : index
    %46 = vector.load %arg15[%c70, %c0_39] : memref<456x6xf32, #tpu.memory_space<vmem>>, vector<14x6xf32>
    tpu.vector_store %arg15[%c70, %c0_39], %45 {strides = array<i32>} : memref<456x6xf32, #tpu.memory_space<vmem>>, vector<14x6xf32>,
    %c336 = arith.constant 336 : index
    %c0_40 = arith.constant 0 : index
    %47 = tpu.strided_load %arg14[%c336, %c0_40] {strides = array<i32: 2, 1>} : memref<1568x6xf32, #tpu.memory_space<vmem>>, vector<14x6xf32>
    %c364 = arith.constant 364 : index
    %c0_41 = arith.constant 0 : index
    %48 = tpu.strided_load %arg14[%c364, %c0_41] {strides = array<i32: 2, 1>} : memref<1568x6xf32, #tpu.memory_space<vmem>>, vector<14x6xf32>
    %49 = arith.maximumf %47, %48 : vector<14x6xf32>
    %cst_42 = arith.constant 0.000000e+00 : f32
    %50 = vector.broadcast %cst_42 : f32 to vector<14x6xf32>
    %51 = arith.maximumf %49, %50 : vector<14x6xf32>
    %c84_43 = arith.constant 84 : index
    %c0_44 = arith.constant 0 : index
    %52 = vector.load %arg15[%c84_43, %c0_44] : memref<456x6xf32, #tpu.memory_space<vmem>>, vector<14x6xf32>
    tpu.vector_store %arg15[%c84_43, %c0_44], %51 {strides = array<i32>} : memref<456x6xf32, #tpu.memory_space<vmem>>, vector<14x6xf32>,
    %c392 = arith.constant 392 : index
    %c0_45 = arith.constant 0 : index
    %53 = tpu.strided_load %arg14[%c392, %c0_45] {strides = array<i32: 2, 1>} : memref<1568x6xf32, #tpu.memory_space<vmem>>, vector<14x6xf32>
    %c420 = arith.constant 420 : index
    %c0_46 = arith.constant 0 : index
    %54 = tpu.strided_load %arg14[%c420, %c0_46] {strides = array<i32: 2, 1>} : memref<1568x6xf32, #tpu.memory_space<vmem>>, vector<14x6xf32>
    %55 = arith.maximumf %53, %54 : vector<14x6xf32>
    %cst_47 = arith.constant 0.000000e+00 : f32
    %56 = vector.broadcast %cst_47 : f32 to vector<14x6xf32>
    %57 = arith.maximumf %55, %56 : vector<14x6xf32>
    %c98 = arith.constant 98 : index
    %c0_48 = arith.constant 0 : index
    %58 = vector.load %arg15[%c98, %c0_48] : memref<456x6xf32, #tpu.memory_space<vmem>>, vector<14x6xf32>
    tpu.vector_store %arg15[%c98, %c0_48], %57 {strides = array<i32>} : memref<456x6xf32, #tpu.memory_space<vmem>>, vector<14x6xf32>,
    %c448 = arith.constant 448 : index
    %c0_49 = arith.constant 0 : index
    %59 = tpu.strided_load %arg14[%c448, %c0_49] {strides = array<i32: 2, 1>} : memref<1568x6xf32, #tpu.memory_space<vmem>>, vector<14x6xf32>
    %c476 = arith.constant 476 : index
    %c0_50 = arith.constant 0 : index
    %60 = tpu.strided_load %arg14[%c476, %c0_50] {strides = array<i32: 2, 1>} : memref<1568x6xf32, #tpu.memory_space<vmem>>, vector<14x6xf32>
    %61 = arith.maximumf %59, %60 : vector<14x6xf32>
    %cst_51 = arith.constant 0.000000e+00 : f32
    %62 = vector.broadcast %cst_51 : f32 to vector<14x6xf32>
    %63 = arith.maximumf %61, %62 : vector<14x6xf32>
    %c112_52 = arith.constant 112 : index
    %c0_53 = arith.constant 0 : index
    %64 = vector.load %arg15[%c112_52, %c0_53] : memref<456x6xf32, #tpu.memory_space<vmem>>, vector<14x6xf32>
    tpu.vector_store %arg15[%c112_52, %c0_53], %63 {strides = array<i32>} : memref<456x6xf32, #tpu.memory_space<vmem>>, vector<14x6xf32>,
    %c504 = arith.constant 504 : index
    %c0_54 = arith.constant 0 : index
    %65 = tpu.strided_load %arg14[%c504, %c0_54] {strides = array<i32: 2, 1>} : memref<1568x6xf32, #tpu.memory_space<vmem>>, vector<14x6xf32>
    %c532 = arith.constant 532 : index
    %c0_55 = arith.constant 0 : index
    %66 = tpu.strided_load %arg14[%c532, %c0_55] {strides = array<i32: 2, 1>} : memref<1568x6xf32, #tpu.memory_space<vmem>>, vector<14x6xf32>
    %67 = arith.maximumf %65, %66 : vector<14x6xf32>
    %cst_56 = arith.constant 0.000000e+00 : f32
    %68 = vector.broadcast %cst_56 : f32 to vector<14x6xf32>
    %69 = arith.maximumf %67, %68 : vector<14x6xf32>
    %c126 = arith.constant 126 : index
    %c0_57 = arith.constant 0 : index
    %70 = vector.load %arg15[%c126, %c0_57] : memref<456x6xf32, #tpu.memory_space<vmem>>, vector<14x6xf32>
    tpu.vector_store %arg15[%c126, %c0_57], %69 {strides = array<i32>} : memref<456x6xf32, #tpu.memory_space<vmem>>, vector<14x6xf32>,
    %c560 = arith.constant 560 : index
    %c0_58 = arith.constant 0 : index
    %71 = tpu.strided_load %arg14[%c560, %c0_58] {strides = array<i32: 2, 1>} : memref<1568x6xf32, #tpu.memory_space<vmem>>, vector<14x6xf32>
    %c588 = arith.constant 588 : index
    %c0_59 = arith.constant 0 : index
    %72 = tpu.strided_load %arg14[%c588, %c0_59] {strides = array<i32: 2, 1>} : memref<1568x6xf32, #tpu.memory_space<vmem>>, vector<14x6xf32>
    %73 = arith.maximumf %71, %72 : vector<14x6xf32>
    %cst_60 = arith.constant 0.000000e+00 : f32
    %74 = vector.broadcast %cst_60 : f32 to vector<14x6xf32>
    %75 = arith.maximumf %73, %74 : vector<14x6xf32>
    %c140_61 = arith.constant 140 : index
    %c0_62 = arith.constant 0 : index
    %76 = vector.load %arg15[%c140_61, %c0_62] : memref<456x6xf32, #tpu.memory_space<vmem>>, vector<14x6xf32>
    tpu.vector_store %arg15[%c140_61, %c0_62], %75 {strides = array<i32>} : memref<456x6xf32, #tpu.memory_space<vmem>>, vector<14x6xf32>,
    %c616 = arith.constant 616 : index
    %c0_63 = arith.constant 0 : index
    %77 = tpu.strided_load %arg14[%c616, %c0_63] {strides = array<i32: 2, 1>} : memref<1568x6xf32, #tpu.memory_space<vmem>>, vector<14x6xf32>
    %c644 = arith.constant 644 : index
    %c0_64 = arith.constant 0 : index
    %78 = tpu.strided_load %arg14[%c644, %c0_64] {strides = array<i32: 2, 1>} : memref<1568x6xf32, #tpu.memory_space<vmem>>, vector<14x6xf32>
    %79 = arith.maximumf %77, %78 : vector<14x6xf32>
    %cst_65 = arith.constant 0.000000e+00 : f32
    %80 = vector.broadcast %cst_65 : f32 to vector<14x6xf32>
    %81 = arith.maximumf %79, %80 : vector<14x6xf32>
    %c154 = arith.constant 154 : index
    %c0_66 = arith.constant 0 : index
    %82 = vector.load %arg15[%c154, %c0_66] : memref<456x6xf32, #tpu.memory_space<vmem>>, vector<14x6xf32>
    tpu.vector_store %arg15[%c154, %c0_66], %81 {strides = array<i32>} : memref<456x6xf32, #tpu.memory_space<vmem>>, vector<14x6xf32>,
    %c672 = arith.constant 672 : index
    %c0_67 = arith.constant 0 : index
    %83 = tpu.strided_load %arg14[%c672, %c0_67] {strides = array<i32: 2, 1>} : memref<1568x6xf32, #tpu.memory_space<vmem>>, vector<14x6xf32>
    %c700 = arith.constant 700 : index
    %c0_68 = arith.constant 0 : index
    %84 = tpu.strided_load %arg14[%c700, %c0_68] {strides = array<i32: 2, 1>} : memref<1568x6xf32, #tpu.memory_space<vmem>>, vector<14x6xf32>
    %85 = arith.maximumf %83, %84 : vector<14x6xf32>
    %cst_69 = arith.constant 0.000000e+00 : f32
    %86 = vector.broadcast %cst_69 : f32 to vector<14x6xf32>
    %87 = arith.maximumf %85, %86 : vector<14x6xf32>
    %c168_70 = arith.constant 168 : index
    %c0_71 = arith.constant 0 : index
    %88 = vector.load %arg15[%c168_70, %c0_71] : memref<456x6xf32, #tpu.memory_space<vmem>>, vector<14x6xf32>
    tpu.vector_store %arg15[%c168_70, %c0_71], %87 {strides = array<i32>} : memref<456x6xf32, #tpu.memory_space<vmem>>, vector<14x6xf32>,
    %c728 = arith.constant 728 : index
    %c0_72 = arith.constant 0 : index
    %89 = tpu.strided_load %arg14[%c728, %c0_72] {strides = array<i32: 2, 1>} : memref<1568x6xf32, #tpu.memory_space<vmem>>, vector<14x6xf32>
    %c756 = arith.constant 756 : index
    %c0_73 = arith.constant 0 : index
    %90 = tpu.strided_load %arg14[%c756, %c0_73] {strides = array<i32: 2, 1>} : memref<1568x6xf32, #tpu.memory_space<vmem>>, vector<14x6xf32>
    %91 = arith.maximumf %89, %90 : vector<14x6xf32>
    %cst_74 = arith.constant 0.000000e+00 : f32
    %92 = vector.broadcast %cst_74 : f32 to vector<14x6xf32>
    %93 = arith.maximumf %91, %92 : vector<14x6xf32>
    %c182 = arith.constant 182 : index
    %c0_75 = arith.constant 0 : index
    %94 = vector.load %arg15[%c182, %c0_75] : memref<456x6xf32, #tpu.memory_space<vmem>>, vector<14x6xf32>
    tpu.vector_store %arg15[%c182, %c0_75], %93 {strides = array<i32>} : memref<456x6xf32, #tpu.memory_space<vmem>>, vector<14x6xf32>,
    %c784 = arith.constant 784 : index
    %c0_76 = arith.constant 0 : index
    %95 = tpu.strided_load %arg14[%c784, %c0_76] {strides = array<i32: 2, 1>} : memref<1568x6xf32, #tpu.memory_space<vmem>>, vector<14x6xf32>
    %c812 = arith.constant 812 : index
    %c0_77 = arith.constant 0 : index
    %96 = tpu.strided_load %arg14[%c812, %c0_77] {strides = array<i32: 2, 1>} : memref<1568x6xf32, #tpu.memory_space<vmem>>, vector<14x6xf32>
    %97 = arith.maximumf %95, %96 : vector<14x6xf32>
    %cst_78 = arith.constant 0.000000e+00 : f32
    %98 = vector.broadcast %cst_78 : f32 to vector<14x6xf32>
    %99 = arith.maximumf %97, %98 : vector<14x6xf32>
    %c196_79 = arith.constant 196 : index
    %c0_80 = arith.constant 0 : index
    %100 = vector.load %arg15[%c196_79, %c0_80] : memref<456x6xf32, #tpu.memory_space<vmem>>, vector<14x6xf32>
    tpu.vector_store %arg15[%c196_79, %c0_80], %99 {strides = array<i32>} : memref<456x6xf32, #tpu.memory_space<vmem>>, vector<14x6xf32>,
    %c840 = arith.constant 840 : index
    %c0_81 = arith.constant 0 : index
    %101 = tpu.strided_load %arg14[%c840, %c0_81] {strides = array<i32: 2, 1>} : memref<1568x6xf32, #tpu.memory_space<vmem>>, vector<14x6xf32>
    %c868 = arith.constant 868 : index
    %c0_82 = arith.constant 0 : index
    %102 = tpu.strided_load %arg14[%c868, %c0_82] {strides = array<i32: 2, 1>} : memref<1568x6xf32, #tpu.memory_space<vmem>>, vector<14x6xf32>
    %103 = arith.maximumf %101, %102 : vector<14x6xf32>
    %cst_83 = arith.constant 0.000000e+00 : f32
    %104 = vector.broadcast %cst_83 : f32 to vector<14x6xf32>
    %105 = arith.maximumf %103, %104 : vector<14x6xf32>
    %c210 = arith.constant 210 : index
    %c0_84 = arith.constant 0 : index
    %106 = vector.load %arg15[%c210, %c0_84] : memref<456x6xf32, #tpu.memory_space<vmem>>, vector<14x6xf32>
    tpu.vector_store %arg15[%c210, %c0_84], %105 {strides = array<i32>} : memref<456x6xf32, #tpu.memory_space<vmem>>, vector<14x6xf32>,
    %c896 = arith.constant 896 : index
    %c0_85 = arith.constant 0 : index
    %107 = tpu.strided_load %arg14[%c896, %c0_85] {strides = array<i32: 2, 1>} : memref<1568x6xf32, #tpu.memory_space<vmem>>, vector<14x6xf32>
    %c924 = arith.constant 924 : index
    %c0_86 = arith.constant 0 : index
    %108 = tpu.strided_load %arg14[%c924, %c0_86] {strides = array<i32: 2, 1>} : memref<1568x6xf32, #tpu.memory_space<vmem>>, vector<14x6xf32>
    %109 = arith.maximumf %107, %108 : vector<14x6xf32>
    %cst_87 = arith.constant 0.000000e+00 : f32
    %110 = vector.broadcast %cst_87 : f32 to vector<14x6xf32>
    %111 = arith.maximumf %109, %110 : vector<14x6xf32>
    %c224_88 = arith.constant 224 : index
    %c0_89 = arith.constant 0 : index
    %112 = vector.load %arg15[%c224_88, %c0_89] : memref<456x6xf32, #tpu.memory_space<vmem>>, vector<14x6xf32>
    tpu.vector_store %arg15[%c224_88, %c0_89], %111 {strides = array<i32>} : memref<456x6xf32, #tpu.memory_space<vmem>>, vector<14x6xf32>,
    %c952 = arith.constant 952 : index
    %c0_90 = arith.constant 0 : index
    %113 = tpu.strided_load %arg14[%c952, %c0_90] {strides = array<i32: 2, 1>} : memref<1568x6xf32, #tpu.memory_space<vmem>>, vector<14x6xf32>
    %c980 = arith.constant 980 : index
    %c0_91 = arith.constant 0 : index
    %114 = tpu.strided_load %arg14[%c980, %c0_91] {strides = array<i32: 2, 1>} : memref<1568x6xf32, #tpu.memory_space<vmem>>, vector<14x6xf32>
    %115 = arith.maximumf %113, %114 : vector<14x6xf32>
    %cst_92 = arith.constant 0.000000e+00 : f32
    %116 = vector.broadcast %cst_92 : f32 to vector<14x6xf32>
    %117 = arith.maximumf %115, %116 : vector<14x6xf32>
    %c238 = arith.constant 238 : index
    %c0_93 = arith.constant 0 : index
    %118 = vector.load %arg15[%c238, %c0_93] : memref<456x6xf32, #tpu.memory_space<vmem>>, vector<14x6xf32>
    tpu.vector_store %arg15[%c238, %c0_93], %117 {strides = array<i32>} : memref<456x6xf32, #tpu.memory_space<vmem>>, vector<14x6xf32>,
    %c1008 = arith.constant 1008 : index
    %c0_94 = arith.constant 0 : index
    %119 = tpu.strided_load %arg14[%c1008, %c0_94] {strides = array<i32: 2, 1>} : memref<1568x6xf32, #tpu.memory_space<vmem>>, vector<14x6xf32>
    %c1036 = arith.constant 1036 : index
    %c0_95 = arith.constant 0 : index
    %120 = tpu.strided_load %arg14[%c1036, %c0_95] {strides = array<i32: 2, 1>} : memref<1568x6xf32, #tpu.memory_space<vmem>>, vector<14x6xf32>
    %121 = arith.maximumf %119, %120 : vector<14x6xf32>
    %cst_96 = arith.constant 0.000000e+00 : f32
    %122 = vector.broadcast %cst_96 : f32 to vector<14x6xf32>
    %123 = arith.maximumf %121, %122 : vector<14x6xf32>
    %c252_97 = arith.constant 252 : index
    %c0_98 = arith.constant 0 : index
    %124 = vector.load %arg15[%c252_97, %c0_98] : memref<456x6xf32, #tpu.memory_space<vmem>>, vector<14x6xf32>
    tpu.vector_store %arg15[%c252_97, %c0_98], %123 {strides = array<i32>} : memref<456x6xf32, #tpu.memory_space<vmem>>, vector<14x6xf32>,
    %c1064 = arith.constant 1064 : index
    %c0_99 = arith.constant 0 : index
    %125 = tpu.strided_load %arg14[%c1064, %c0_99] {strides = array<i32: 2, 1>} : memref<1568x6xf32, #tpu.memory_space<vmem>>, vector<14x6xf32>
    %c1092 = arith.constant 1092 : index
    %c0_100 = arith.constant 0 : index
    %126 = tpu.strided_load %arg14[%c1092, %c0_100] {strides = array<i32: 2, 1>} : memref<1568x6xf32, #tpu.memory_space<vmem>>, vector<14x6xf32>
    %127 = arith.maximumf %125, %126 : vector<14x6xf32>
    %cst_101 = arith.constant 0.000000e+00 : f32
    %128 = vector.broadcast %cst_101 : f32 to vector<14x6xf32>
    %129 = arith.maximumf %127, %128 : vector<14x6xf32>
    %c266 = arith.constant 266 : index
    %c0_102 = arith.constant 0 : index
    %130 = vector.load %arg15[%c266, %c0_102] : memref<456x6xf32, #tpu.memory_space<vmem>>, vector<14x6xf32>
    tpu.vector_store %arg15[%c266, %c0_102], %129 {strides = array<i32>} : memref<456x6xf32, #tpu.memory_space<vmem>>, vector<14x6xf32>,
    %c1120 = arith.constant 1120 : index
    %c0_103 = arith.constant 0 : index
    %131 = tpu.strided_load %arg14[%c1120, %c0_103] {strides = array<i32: 2, 1>} : memref<1568x6xf32, #tpu.memory_space<vmem>>, vector<14x6xf32>
    %c1148 = arith.constant 1148 : index
    %c0_104 = arith.constant 0 : index
    %132 = tpu.strided_load %arg14[%c1148, %c0_104] {strides = array<i32: 2, 1>} : memref<1568x6xf32, #tpu.memory_space<vmem>>, vector<14x6xf32>
    %133 = arith.maximumf %131, %132 : vector<14x6xf32>
    %cst_105 = arith.constant 0.000000e+00 : f32
    %134 = vector.broadcast %cst_105 : f32 to vector<14x6xf32>
    %135 = arith.maximumf %133, %134 : vector<14x6xf32>
    %c280_106 = arith.constant 280 : index
    %c0_107 = arith.constant 0 : index
    %136 = vector.load %arg15[%c280_106, %c0_107] : memref<456x6xf32, #tpu.memory_space<vmem>>, vector<14x6xf32>
    tpu.vector_store %arg15[%c280_106, %c0_107], %135 {strides = array<i32>} : memref<456x6xf32, #tpu.memory_space<vmem>>, vector<14x6xf32>,
    %c1176 = arith.constant 1176 : index
    %c0_108 = arith.constant 0 : index
    %137 = tpu.strided_load %arg14[%c1176, %c0_108] {strides = array<i32: 2, 1>} : memref<1568x6xf32, #tpu.memory_space<vmem>>, vector<14x6xf32>
    %c1204 = arith.constant 1204 : index
    %c0_109 = arith.constant 0 : index
    %138 = tpu.strided_load %arg14[%c1204, %c0_109] {strides = array<i32: 2, 1>} : memref<1568x6xf32, #tpu.memory_space<vmem>>, vector<14x6xf32>
    %139 = arith.maximumf %137, %138 : vector<14x6xf32>
    %cst_110 = arith.constant 0.000000e+00 : f32
    %140 = vector.broadcast %cst_110 : f32 to vector<14x6xf32>
    %141 = arith.maximumf %139, %140 : vector<14x6xf32>
    %c294 = arith.constant 294 : index
    %c0_111 = arith.constant 0 : index
    %142 = vector.load %arg15[%c294, %c0_111] : memref<456x6xf32, #tpu.memory_space<vmem>>, vector<14x6xf32>
    tpu.vector_store %arg15[%c294, %c0_111], %141 {strides = array<i32>} : memref<456x6xf32, #tpu.memory_space<vmem>>, vector<14x6xf32>,
    %c1232 = arith.constant 1232 : index
    %c0_112 = arith.constant 0 : index
    %143 = tpu.strided_load %arg14[%c1232, %c0_112] {strides = array<i32: 2, 1>} : memref<1568x6xf32, #tpu.memory_space<vmem>>, vector<14x6xf32>
    %c1260 = arith.constant 1260 : index
    %c0_113 = arith.constant 0 : index
    %144 = tpu.strided_load %arg14[%c1260, %c0_113] {strides = array<i32: 2, 1>} : memref<1568x6xf32, #tpu.memory_space<vmem>>, vector<14x6xf32>
    %145 = arith.maximumf %143, %144 : vector<14x6xf32>
    %cst_114 = arith.constant 0.000000e+00 : f32
    %146 = vector.broadcast %cst_114 : f32 to vector<14x6xf32>
    %147 = arith.maximumf %145, %146 : vector<14x6xf32>
    %c308_115 = arith.constant 308 : index
    %c0_116 = arith.constant 0 : index
    %148 = vector.load %arg15[%c308_115, %c0_116] : memref<456x6xf32, #tpu.memory_space<vmem>>, vector<14x6xf32>
    tpu.vector_store %arg15[%c308_115, %c0_116], %147 {strides = array<i32>} : memref<456x6xf32, #tpu.memory_space<vmem>>, vector<14x6xf32>,
    %c1288 = arith.constant 1288 : index
    %c0_117 = arith.constant 0 : index
    %149 = tpu.strided_load %arg14[%c1288, %c0_117] {strides = array<i32: 2, 1>} : memref<1568x6xf32, #tpu.memory_space<vmem>>, vector<14x6xf32>
    %c1316 = arith.constant 1316 : index
    %c0_118 = arith.constant 0 : index
    %150 = tpu.strided_load %arg14[%c1316, %c0_118] {strides = array<i32: 2, 1>} : memref<1568x6xf32, #tpu.memory_space<vmem>>, vector<14x6xf32>
    %151 = arith.maximumf %149, %150 : vector<14x6xf32>
    %cst_119 = arith.constant 0.000000e+00 : f32
    %152 = vector.broadcast %cst_119 : f32 to vector<14x6xf32>
    %153 = arith.maximumf %151, %152 : vector<14x6xf32>
    %c322 = arith.constant 322 : index
    %c0_120 = arith.constant 0 : index
    %154 = vector.load %arg15[%c322, %c0_120] : memref<456x6xf32, #tpu.memory_space<vmem>>, vector<14x6xf32>
    tpu.vector_store %arg15[%c322, %c0_120], %153 {strides = array<i32>} : memref<456x6xf32, #tpu.memory_space<vmem>>, vector<14x6xf32>,
    %c1344 = arith.constant 1344 : index
    %c0_121 = arith.constant 0 : index
    %155 = tpu.strided_load %arg14[%c1344, %c0_121] {strides = array<i32: 2, 1>} : memref<1568x6xf32, #tpu.memory_space<vmem>>, vector<14x6xf32>
    %c1372 = arith.constant 1372 : index
    %c0_122 = arith.constant 0 : index
    %156 = tpu.strided_load %arg14[%c1372, %c0_122] {strides = array<i32: 2, 1>} : memref<1568x6xf32, #tpu.memory_space<vmem>>, vector<14x6xf32>
    %157 = arith.maximumf %155, %156 : vector<14x6xf32>
    %cst_123 = arith.constant 0.000000e+00 : f32
    %158 = vector.broadcast %cst_123 : f32 to vector<14x6xf32>
    %159 = arith.maximumf %157, %158 : vector<14x6xf32>
    %c336_124 = arith.constant 336 : index
    %c0_125 = arith.constant 0 : index
    %160 = vector.load %arg15[%c336_124, %c0_125] : memref<456x6xf32, #tpu.memory_space<vmem>>, vector<14x6xf32>
    tpu.vector_store %arg15[%c336_124, %c0_125], %159 {strides = array<i32>} : memref<456x6xf32, #tpu.memory_space<vmem>>, vector<14x6xf32>,
    %c1400 = arith.constant 1400 : index
    %c0_126 = arith.constant 0 : index
    %161 = tpu.strided_load %arg14[%c1400, %c0_126] {strides = array<i32: 2, 1>} : memref<1568x6xf32, #tpu.memory_space<vmem>>, vector<14x6xf32>
    %c1428 = arith.constant 1428 : index
    %c0_127 = arith.constant 0 : index
    %162 = tpu.strided_load %arg14[%c1428, %c0_127] {strides = array<i32: 2, 1>} : memref<1568x6xf32, #tpu.memory_space<vmem>>, vector<14x6xf32>
    %163 = arith.maximumf %161, %162 : vector<14x6xf32>
    %cst_128 = arith.constant 0.000000e+00 : f32
    %164 = vector.broadcast %cst_128 : f32 to vector<14x6xf32>
    %165 = arith.maximumf %163, %164 : vector<14x6xf32>
    %c350 = arith.constant 350 : index
    %c0_129 = arith.constant 0 : index
    %166 = vector.load %arg15[%c350, %c0_129] : memref<456x6xf32, #tpu.memory_space<vmem>>, vector<14x6xf32>
    tpu.vector_store %arg15[%c350, %c0_129], %165 {strides = array<i32>} : memref<456x6xf32, #tpu.memory_space<vmem>>, vector<14x6xf32>,
    %c1456 = arith.constant 1456 : index
    %c0_130 = arith.constant 0 : index
    %167 = tpu.strided_load %arg14[%c1456, %c0_130] {strides = array<i32: 2, 1>} : memref<1568x6xf32, #tpu.memory_space<vmem>>, vector<14x6xf32>
    %c1484 = arith.constant 1484 : index
    %c0_131 = arith.constant 0 : index
    %168 = tpu.strided_load %arg14[%c1484, %c0_131] {strides = array<i32: 2, 1>} : memref<1568x6xf32, #tpu.memory_space<vmem>>, vector<14x6xf32>
    %169 = arith.maximumf %167, %168 : vector<14x6xf32>
    %cst_132 = arith.constant 0.000000e+00 : f32
    %170 = vector.broadcast %cst_132 : f32 to vector<14x6xf32>
    %171 = arith.maximumf %169, %170 : vector<14x6xf32>
    %c364_133 = arith.constant 364 : index
    %c0_134 = arith.constant 0 : index
    %172 = vector.load %arg15[%c364_133, %c0_134] : memref<456x6xf32, #tpu.memory_space<vmem>>, vector<14x6xf32>
    tpu.vector_store %arg15[%c364_133, %c0_134], %171 {strides = array<i32>} : memref<456x6xf32, #tpu.memory_space<vmem>>, vector<14x6xf32>,
    %c1512 = arith.constant 1512 : index
    %c0_135 = arith.constant 0 : index
    %173 = tpu.strided_load %arg14[%c1512, %c0_135] {strides = array<i32: 2, 1>} : memref<1568x6xf32, #tpu.memory_space<vmem>>, vector<14x6xf32>
    %c1540 = arith.constant 1540 : index
    %c0_136 = arith.constant 0 : index
    %174 = tpu.strided_load %arg14[%c1540, %c0_136] {strides = array<i32: 2, 1>} : memref<1568x6xf32, #tpu.memory_space<vmem>>, vector<14x6xf32>
    %175 = arith.maximumf %173, %174 : vector<14x6xf32>
    %cst_137 = arith.constant 0.000000e+00 : f32
    %176 = vector.broadcast %cst_137 : f32 to vector<14x6xf32>
    %177 = arith.maximumf %175, %176 : vector<14x6xf32>
    %c378 = arith.constant 378 : index
    %c0_138 = arith.constant 0 : index
    %178 = vector.load %arg15[%c378, %c0_138] : memref<456x6xf32, #tpu.memory_space<vmem>>, vector<14x6xf32>
    tpu.vector_store %arg15[%c378, %c0_138], %177 {strides = array<i32>} : memref<456x6xf32, #tpu.memory_space<vmem>>, vector<14x6xf32>,
    %cst_139 = arith.constant 0.000000e+00 : f32
    %179 = vector.broadcast %cst_139 : f32 to vector<64x6xf32>
    %c392_140 = arith.constant 392 : index
    %c0_141 = arith.constant 0 : index
    %180 = vector.load %arg15[%c392_140, %c0_141] : memref<456x6xf32, #tpu.memory_space<vmem>>, vector<64x6xf32>
    tpu.vector_store %arg15[%c392_140, %c0_141], %179 {strides = array<i32>} : memref<456x6xf32, #tpu.memory_space<vmem>>, vector<64x6xf32>,
    %c0_142 = arith.constant 0 : index
    %c0_143 = arith.constant 0 : index
    %181 = vector.load %arg15[%c0_142, %c0_143] : memref<456x6xf32, #tpu.memory_space<vmem>>, vector<448x6xf32>
    %c0_144 = arith.constant 0 : index
    %c0_145 = arith.constant 0 : index
    %182 = vector.load %arg16[%c0_144, %c0_145] : memref<448x30xf32, #tpu.memory_space<vmem>>, vector<448x6xf32>
    tpu.vector_store %arg16[%c0_144, %c0_145], %181 {strides = array<i32>} : memref<448x30xf32, #tpu.memory_space<vmem>>, vector<448x6xf32>,
    %c1_146 = arith.constant 1 : index
    %c0_147 = arith.constant 0 : index
    %183 = vector.load %arg15[%c1_146, %c0_147] : memref<456x6xf32, #tpu.memory_space<vmem>>, vector<448x6xf32>
    %c0_148 = arith.constant 0 : index
    %c6 = arith.constant 6 : index
    %184 = vector.load %arg16[%c0_148, %c6] : memref<448x30xf32, #tpu.memory_space<vmem>>, vector<448x6xf32>
    tpu.vector_store %arg16[%c0_148, %c6], %183 {strides = array<i32>} : memref<448x30xf32, #tpu.memory_space<vmem>>, vector<448x6xf32>,
    %c2 = arith.constant 2 : index
    %c0_149 = arith.constant 0 : index
    %185 = vector.load %arg15[%c2, %c0_149] : memref<456x6xf32, #tpu.memory_space<vmem>>, vector<448x6xf32>
    %c0_150 = arith.constant 0 : index
    %c12 = arith.constant 12 : index
    %186 = vector.load %arg16[%c0_150, %c12] : memref<448x30xf32, #tpu.memory_space<vmem>>, vector<448x6xf32>
    tpu.vector_store %arg16[%c0_150, %c12], %185 {strides = array<i32>} : memref<448x30xf32, #tpu.memory_space<vmem>>, vector<448x6xf32>,
    %c3 = arith.constant 3 : index
    %c0_151 = arith.constant 0 : index
    %187 = vector.load %arg15[%c3, %c0_151] : memref<456x6xf32, #tpu.memory_space<vmem>>, vector<448x6xf32>
    %c0_152 = arith.constant 0 : index
    %c18 = arith.constant 18 : index
    %188 = vector.load %arg16[%c0_152, %c18] : memref<448x30xf32, #tpu.memory_space<vmem>>, vector<448x6xf32>
    tpu.vector_store %arg16[%c0_152, %c18], %187 {strides = array<i32>} : memref<448x30xf32, #tpu.memory_space<vmem>>, vector<448x6xf32>,
    %c4 = arith.constant 4 : index
    %c0_153 = arith.constant 0 : index
    %189 = vector.load %arg15[%c4, %c0_153] : memref<456x6xf32, #tpu.memory_space<vmem>>, vector<448x6xf32>
    %c0_154 = arith.constant 0 : index
    %c24 = arith.constant 24 : index
    %190 = vector.load %arg16[%c0_154, %c24] : memref<448x30xf32, #tpu.memory_space<vmem>>, vector<448x6xf32>
    tpu.vector_store %arg16[%c0_154, %c24], %189 {strides = array<i32>} : memref<448x30xf32, #tpu.memory_space<vmem>>, vector<448x6xf32>,
    %c0_155 = arith.constant 0 : index
    %c0_156 = arith.constant 0 : index
    %191 = vector.load %arg16[%c0_155, %c0_156] : memref<448x30xf32, #tpu.memory_space<vmem>>, vector<392x30xf32>
    %c0_157 = arith.constant 0 : index
    %c0_158 = arith.constant 0 : index
    %c0_159 = arith.constant 0 : index
    %192 = vector.load %arg4[%c0_157, %c0_158, %c0_159] : memref<5x30x16xf32, #tpu.memory_space<vmem>>, vector<1x30x16xf32>
    %193 = vector.shape_cast %192 : vector<1x30x16xf32> to vector<30x16xf32>
    %cst_160 = arith.constant dense<0.000000e+00> : vector<392x16xf32>
    %194 = tpu.matmul %191, %193, %cst_160 {dimension_numbers = #tpu.dot_dimension_numbers<[1], [0], [0], [1], [0, 0, 1, 1], [], []>} : vector<392x30xf32>, vector<30x16xf32>, vector<392x16xf32> -> vector<392x16xf32>
    %c0_161 = arith.constant 0 : index
    %c0_162 = arith.constant 0 : index
    %195 = vector.load %arg5[%c0_161, %c0_162] : memref<1x16xf32, #tpu.memory_space<vmem>>, vector<1x16xf32>
    %196 = vector.broadcast %195 : vector<1x16xf32> to vector<392x16xf32>
    %197 = arith.addf %194, %196 : vector<392x16xf32>
    %c0_163 = arith.constant 0 : index
    %c0_164 = arith.constant 0 : index
    %198 = vector.load %arg17[%c0_163, %c0_164] : memref<392x16xf32, #tpu.memory_space<vmem>>, vector<392x16xf32>
    tpu.vector_store %arg17[%c0_163, %c0_164], %197 {strides = array<i32>} : memref<392x16xf32, #tpu.memory_space<vmem>>, vector<392x16xf32>,
    %c14_165 = arith.constant 14 : index
    %c0_166 = arith.constant 0 : index
    %199 = vector.load %arg16[%c14_165, %c0_166] : memref<448x30xf32, #tpu.memory_space<vmem>>, vector<392x30xf32>
    %c1_167 = arith.constant 1 : index
    %c0_168 = arith.constant 0 : index
    %c0_169 = arith.constant 0 : index
    %200 = vector.load %arg4[%c1_167, %c0_168, %c0_169] : memref<5x30x16xf32, #tpu.memory_space<vmem>>, vector<1x30x16xf32>
    %201 = vector.shape_cast %200 : vector<1x30x16xf32> to vector<30x16xf32>
    %cst_170 = arith.constant dense<0.000000e+00> : vector<392x16xf32>
    %202 = tpu.matmul %199, %201, %cst_170 {dimension_numbers = #tpu.dot_dimension_numbers<[1], [0], [0], [1], [0, 0, 1, 1], [], []>} : vector<392x30xf32>, vector<30x16xf32>, vector<392x16xf32> -> vector<392x16xf32>
    %c0_171 = arith.constant 0 : index
    %c0_172 = arith.constant 0 : index
    %203 = vector.load %arg17[%c0_171, %c0_172] : memref<392x16xf32, #tpu.memory_space<vmem>>, vector<392x16xf32>
    %204 = arith.addf %203, %202 : vector<392x16xf32>
    %c0_173 = arith.constant 0 : index
    %c0_174 = arith.constant 0 : index
    %205 = vector.load %arg17[%c0_173, %c0_174] : memref<392x16xf32, #tpu.memory_space<vmem>>, vector<392x16xf32>
    tpu.vector_store %arg17[%c0_173, %c0_174], %204 {strides = array<i32>} : memref<392x16xf32, #tpu.memory_space<vmem>>, vector<392x16xf32>,
    %c28_175 = arith.constant 28 : index
    %c0_176 = arith.constant 0 : index
    %206 = vector.load %arg16[%c28_175, %c0_176] : memref<448x30xf32, #tpu.memory_space<vmem>>, vector<392x30xf32>
    %c2_177 = arith.constant 2 : index
    %c0_178 = arith.constant 0 : index
    %c0_179 = arith.constant 0 : index
    %207 = vector.load %arg4[%c2_177, %c0_178, %c0_179] : memref<5x30x16xf32, #tpu.memory_space<vmem>>, vector<1x30x16xf32>
    %208 = vector.shape_cast %207 : vector<1x30x16xf32> to vector<30x16xf32>
    %cst_180 = arith.constant dense<0.000000e+00> : vector<392x16xf32>
    %209 = tpu.matmul %206, %208, %cst_180 {dimension_numbers = #tpu.dot_dimension_numbers<[1], [0], [0], [1], [0, 0, 1, 1], [], []>} : vector<392x30xf32>, vector<30x16xf32>, vector<392x16xf32> -> vector<392x16xf32>
    %c0_181 = arith.constant 0 : index
    %c0_182 = arith.constant 0 : index
    %210 = vector.load %arg17[%c0_181, %c0_182] : memref<392x16xf32, #tpu.memory_space<vmem>>, vector<392x16xf32>
    %211 = arith.addf %210, %209 : vector<392x16xf32>
    %c0_183 = arith.constant 0 : index
    %c0_184 = arith.constant 0 : index
    %212 = vector.load %arg17[%c0_183, %c0_184] : memref<392x16xf32, #tpu.memory_space<vmem>>, vector<392x16xf32>
    tpu.vector_store %arg17[%c0_183, %c0_184], %211 {strides = array<i32>} : memref<392x16xf32, #tpu.memory_space<vmem>>, vector<392x16xf32>,
    %c42_185 = arith.constant 42 : index
    %c0_186 = arith.constant 0 : index
    %213 = vector.load %arg16[%c42_185, %c0_186] : memref<448x30xf32, #tpu.memory_space<vmem>>, vector<392x30xf32>
    %c3_187 = arith.constant 3 : index
    %c0_188 = arith.constant 0 : index
    %c0_189 = arith.constant 0 : index
    %214 = vector.load %arg4[%c3_187, %c0_188, %c0_189] : memref<5x30x16xf32, #tpu.memory_space<vmem>>, vector<1x30x16xf32>
    %215 = vector.shape_cast %214 : vector<1x30x16xf32> to vector<30x16xf32>
    %cst_190 = arith.constant dense<0.000000e+00> : vector<392x16xf32>
    %216 = tpu.matmul %213, %215, %cst_190 {dimension_numbers = #tpu.dot_dimension_numbers<[1], [0], [0], [1], [0, 0, 1, 1], [], []>} : vector<392x30xf32>, vector<30x16xf32>, vector<392x16xf32> -> vector<392x16xf32>
    %c0_191 = arith.constant 0 : index
    %c0_192 = arith.constant 0 : index
    %217 = vector.load %arg17[%c0_191, %c0_192] : memref<392x16xf32, #tpu.memory_space<vmem>>, vector<392x16xf32>
    %218 = arith.addf %217, %216 : vector<392x16xf32>
    %c0_193 = arith.constant 0 : index
    %c0_194 = arith.constant 0 : index
    %219 = vector.load %arg17[%c0_193, %c0_194] : memref<392x16xf32, #tpu.memory_space<vmem>>, vector<392x16xf32>
    tpu.vector_store %arg17[%c0_193, %c0_194], %218 {strides = array<i32>} : memref<392x16xf32, #tpu.memory_space<vmem>>, vector<392x16xf32>,
    %c56_195 = arith.constant 56 : index
    %c0_196 = arith.constant 0 : index
    %220 = vector.load %arg16[%c56_195, %c0_196] : memref<448x30xf32, #tpu.memory_space<vmem>>, vector<392x30xf32>
    %c4_197 = arith.constant 4 : index
    %c0_198 = arith.constant 0 : index
    %c0_199 = arith.constant 0 : index
    %221 = vector.load %arg4[%c4_197, %c0_198, %c0_199] : memref<5x30x16xf32, #tpu.memory_space<vmem>>, vector<1x30x16xf32>
    %222 = vector.shape_cast %221 : vector<1x30x16xf32> to vector<30x16xf32>
    %cst_200 = arith.constant dense<0.000000e+00> : vector<392x16xf32>
    %223 = tpu.matmul %220, %222, %cst_200 {dimension_numbers = #tpu.dot_dimension_numbers<[1], [0], [0], [1], [0, 0, 1, 1], [], []>} : vector<392x30xf32>, vector<30x16xf32>, vector<392x16xf32> -> vector<392x16xf32>
    %c0_201 = arith.constant 0 : index
    %c0_202 = arith.constant 0 : index
    %224 = vector.load %arg17[%c0_201, %c0_202] : memref<392x16xf32, #tpu.memory_space<vmem>>, vector<392x16xf32>
    %225 = arith.addf %224, %223 : vector<392x16xf32>
    %c0_203 = arith.constant 0 : index
    %c0_204 = arith.constant 0 : index
    %226 = vector.load %arg17[%c0_203, %c0_204] : memref<392x16xf32, #tpu.memory_space<vmem>>, vector<392x16xf32>
    tpu.vector_store %arg17[%c0_203, %c0_204], %225 {strides = array<i32>} : memref<392x16xf32, #tpu.memory_space<vmem>>, vector<392x16xf32>,
    %c0_205 = arith.constant 0 : index
    %c0_206 = arith.constant 0 : index
    %227 = vector.load %arg17[%c0_205, %c0_206] : memref<392x16xf32, #tpu.memory_space<vmem>>, vector<391x16xf32>
    %c1_207 = arith.constant 1 : index
    %c0_208 = arith.constant 0 : index
    %228 = vector.load %arg17[%c1_207, %c0_208] : memref<392x16xf32, #tpu.memory_space<vmem>>, vector<391x16xf32>
    %229 = arith.maximumf %227, %228 : vector<391x16xf32>
    %c0_209 = arith.constant 0 : index
    %c0_210 = arith.constant 0 : index
    %230 = vector.load %arg18[%c0_209, %c0_210] : memref<392x16xf32, #tpu.memory_space<vmem>>, vector<391x16xf32>
    tpu.vector_store %arg18[%c0_209, %c0_210], %229 {strides = array<i32>} : memref<392x16xf32, #tpu.memory_space<vmem>>, vector<391x16xf32>,
    %c0_211 = arith.constant 0 : index
    %c0_212 = arith.constant 0 : index
    %231 = tpu.strided_load %arg18[%c0_211, %c0_212] {strides = array<i32: 2, 1>} : memref<392x16xf32, #tpu.memory_space<vmem>>, vector<5x16xf32>
    %c14_213 = arith.constant 14 : index
    %c0_214 = arith.constant 0 : index
    %232 = tpu.strided_load %arg18[%c14_213, %c0_214] {strides = array<i32: 2, 1>} : memref<392x16xf32, #tpu.memory_space<vmem>>, vector<5x16xf32>
    %233 = arith.maximumf %231, %232 : vector<5x16xf32>
    %cst_215 = arith.constant 0.000000e+00 : f32
    %234 = vector.broadcast %cst_215 : f32 to vector<5x16xf32>
    %235 = arith.maximumf %233, %234 : vector<5x16xf32>
    %c0_216 = arith.constant 0 : index
    %c0_217 = arith.constant 0 : index
    %236 = vector.load %arg19[%c0_216, %c0_217] : memref<56x16xf32, #tpu.memory_space<vmem>>, vector<5x16xf32>
    tpu.vector_store %arg19[%c0_216, %c0_217], %235 {strides = array<i32>} : memref<56x16xf32, #tpu.memory_space<vmem>>, vector<5x16xf32>,
    %c28_218 = arith.constant 28 : index
    %c0_219 = arith.constant 0 : index
    %237 = tpu.strided_load %arg18[%c28_218, %c0_219] {strides = array<i32: 2, 1>} : memref<392x16xf32, #tpu.memory_space<vmem>>, vector<5x16xf32>
    %c42_220 = arith.constant 42 : index
    %c0_221 = arith.constant 0 : index
    %238 = tpu.strided_load %arg18[%c42_220, %c0_221] {strides = array<i32: 2, 1>} : memref<392x16xf32, #tpu.memory_space<vmem>>, vector<5x16xf32>
    %239 = arith.maximumf %237, %238 : vector<5x16xf32>
    %cst_222 = arith.constant 0.000000e+00 : f32
    %240 = vector.broadcast %cst_222 : f32 to vector<5x16xf32>
    %241 = arith.maximumf %239, %240 : vector<5x16xf32>
    %c5 = arith.constant 5 : index
    %c0_223 = arith.constant 0 : index
    %242 = vector.load %arg19[%c5, %c0_223] : memref<56x16xf32, #tpu.memory_space<vmem>>, vector<5x16xf32>
    tpu.vector_store %arg19[%c5, %c0_223], %241 {strides = array<i32>} : memref<56x16xf32, #tpu.memory_space<vmem>>, vector<5x16xf32>,
    %c56_224 = arith.constant 56 : index
    %c0_225 = arith.constant 0 : index
    %243 = tpu.strided_load %arg18[%c56_224, %c0_225] {strides = array<i32: 2, 1>} : memref<392x16xf32, #tpu.memory_space<vmem>>, vector<5x16xf32>
    %c70_226 = arith.constant 70 : index
    %c0_227 = arith.constant 0 : index
    %244 = tpu.strided_load %arg18[%c70_226, %c0_227] {strides = array<i32: 2, 1>} : memref<392x16xf32, #tpu.memory_space<vmem>>, vector<5x16xf32>
    %245 = arith.maximumf %243, %244 : vector<5x16xf32>
    %cst_228 = arith.constant 0.000000e+00 : f32
    %246 = vector.broadcast %cst_228 : f32 to vector<5x16xf32>
    %247 = arith.maximumf %245, %246 : vector<5x16xf32>
    %c10 = arith.constant 10 : index
    %c0_229 = arith.constant 0 : index
    %248 = vector.load %arg19[%c10, %c0_229] : memref<56x16xf32, #tpu.memory_space<vmem>>, vector<5x16xf32>
    tpu.vector_store %arg19[%c10, %c0_229], %247 {strides = array<i32>} : memref<56x16xf32, #tpu.memory_space<vmem>>, vector<5x16xf32>,
    %c84_230 = arith.constant 84 : index
    %c0_231 = arith.constant 0 : index
    %249 = tpu.strided_load %arg18[%c84_230, %c0_231] {strides = array<i32: 2, 1>} : memref<392x16xf32, #tpu.memory_space<vmem>>, vector<5x16xf32>
    %c98_232 = arith.constant 98 : index
    %c0_233 = arith.constant 0 : index
    %250 = tpu.strided_load %arg18[%c98_232, %c0_233] {strides = array<i32: 2, 1>} : memref<392x16xf32, #tpu.memory_space<vmem>>, vector<5x16xf32>
    %251 = arith.maximumf %249, %250 : vector<5x16xf32>
    %cst_234 = arith.constant 0.000000e+00 : f32
    %252 = vector.broadcast %cst_234 : f32 to vector<5x16xf32>
    %253 = arith.maximumf %251, %252 : vector<5x16xf32>
    %c15 = arith.constant 15 : index
    %c0_235 = arith.constant 0 : index
    %254 = vector.load %arg19[%c15, %c0_235] : memref<56x16xf32, #tpu.memory_space<vmem>>, vector<5x16xf32>
    tpu.vector_store %arg19[%c15, %c0_235], %253 {strides = array<i32>} : memref<56x16xf32, #tpu.memory_space<vmem>>, vector<5x16xf32>,
    %c112_236 = arith.constant 112 : index
    %c0_237 = arith.constant 0 : index
    %255 = tpu.strided_load %arg18[%c112_236, %c0_237] {strides = array<i32: 2, 1>} : memref<392x16xf32, #tpu.memory_space<vmem>>, vector<5x16xf32>
    %c126_238 = arith.constant 126 : index
    %c0_239 = arith.constant 0 : index
    %256 = tpu.strided_load %arg18[%c126_238, %c0_239] {strides = array<i32: 2, 1>} : memref<392x16xf32, #tpu.memory_space<vmem>>, vector<5x16xf32>
    %257 = arith.maximumf %255, %256 : vector<5x16xf32>
    %cst_240 = arith.constant 0.000000e+00 : f32
    %258 = vector.broadcast %cst_240 : f32 to vector<5x16xf32>
    %259 = arith.maximumf %257, %258 : vector<5x16xf32>
    %c20 = arith.constant 20 : index
    %c0_241 = arith.constant 0 : index
    %260 = vector.load %arg19[%c20, %c0_241] : memref<56x16xf32, #tpu.memory_space<vmem>>, vector<5x16xf32>
    tpu.vector_store %arg19[%c20, %c0_241], %259 {strides = array<i32>} : memref<56x16xf32, #tpu.memory_space<vmem>>, vector<5x16xf32>,
    %c196_242 = arith.constant 196 : index
    %c0_243 = arith.constant 0 : index
    %261 = tpu.strided_load %arg18[%c196_242, %c0_243] {strides = array<i32: 2, 1>} : memref<392x16xf32, #tpu.memory_space<vmem>>, vector<5x16xf32>
    %c210_244 = arith.constant 210 : index
    %c0_245 = arith.constant 0 : index
    %262 = tpu.strided_load %arg18[%c210_244, %c0_245] {strides = array<i32: 2, 1>} : memref<392x16xf32, #tpu.memory_space<vmem>>, vector<5x16xf32>
    %263 = arith.maximumf %261, %262 : vector<5x16xf32>
    %cst_246 = arith.constant 0.000000e+00 : f32
    %264 = vector.broadcast %cst_246 : f32 to vector<5x16xf32>
    %265 = arith.maximumf %263, %264 : vector<5x16xf32>
    %c25 = arith.constant 25 : index
    %c0_247 = arith.constant 0 : index
    %266 = vector.load %arg19[%c25, %c0_247] : memref<56x16xf32, #tpu.memory_space<vmem>>, vector<5x16xf32>
    tpu.vector_store %arg19[%c25, %c0_247], %265 {strides = array<i32>} : memref<56x16xf32, #tpu.memory_space<vmem>>, vector<5x16xf32>,
    %c224_248 = arith.constant 224 : index
    %c0_249 = arith.constant 0 : index
    %267 = tpu.strided_load %arg18[%c224_248, %c0_249] {strides = array<i32: 2, 1>} : memref<392x16xf32, #tpu.memory_space<vmem>>, vector<5x16xf32>
    %c238_250 = arith.constant 238 : index
    %c0_251 = arith.constant 0 : index
    %268 = tpu.strided_load %arg18[%c238_250, %c0_251] {strides = array<i32: 2, 1>} : memref<392x16xf32, #tpu.memory_space<vmem>>, vector<5x16xf32>
    %269 = arith.maximumf %267, %268 : vector<5x16xf32>
    %cst_252 = arith.constant 0.000000e+00 : f32
    %270 = vector.broadcast %cst_252 : f32 to vector<5x16xf32>
    %271 = arith.maximumf %269, %270 : vector<5x16xf32>
    %c30 = arith.constant 30 : index
    %c0_253 = arith.constant 0 : index
    %272 = vector.load %arg19[%c30, %c0_253] : memref<56x16xf32, #tpu.memory_space<vmem>>, vector<5x16xf32>
    tpu.vector_store %arg19[%c30, %c0_253], %271 {strides = array<i32>} : memref<56x16xf32, #tpu.memory_space<vmem>>, vector<5x16xf32>,
    %c252_254 = arith.constant 252 : index
    %c0_255 = arith.constant 0 : index
    %273 = tpu.strided_load %arg18[%c252_254, %c0_255] {strides = array<i32: 2, 1>} : memref<392x16xf32, #tpu.memory_space<vmem>>, vector<5x16xf32>
    %c266_256 = arith.constant 266 : index
    %c0_257 = arith.constant 0 : index
    %274 = tpu.strided_load %arg18[%c266_256, %c0_257] {strides = array<i32: 2, 1>} : memref<392x16xf32, #tpu.memory_space<vmem>>, vector<5x16xf32>
    %275 = arith.maximumf %273, %274 : vector<5x16xf32>
    %cst_258 = arith.constant 0.000000e+00 : f32
    %276 = vector.broadcast %cst_258 : f32 to vector<5x16xf32>
    %277 = arith.maximumf %275, %276 : vector<5x16xf32>
    %c35 = arith.constant 35 : index
    %c0_259 = arith.constant 0 : index
    %278 = vector.load %arg19[%c35, %c0_259] : memref<56x16xf32, #tpu.memory_space<vmem>>, vector<5x16xf32>
    tpu.vector_store %arg19[%c35, %c0_259], %277 {strides = array<i32>} : memref<56x16xf32, #tpu.memory_space<vmem>>, vector<5x16xf32>,
    %c280_260 = arith.constant 280 : index
    %c0_261 = arith.constant 0 : index
    %279 = tpu.strided_load %arg18[%c280_260, %c0_261] {strides = array<i32: 2, 1>} : memref<392x16xf32, #tpu.memory_space<vmem>>, vector<5x16xf32>
    %c294_262 = arith.constant 294 : index
    %c0_263 = arith.constant 0 : index
    %280 = tpu.strided_load %arg18[%c294_262, %c0_263] {strides = array<i32: 2, 1>} : memref<392x16xf32, #tpu.memory_space<vmem>>, vector<5x16xf32>
    %281 = arith.maximumf %279, %280 : vector<5x16xf32>
    %cst_264 = arith.constant 0.000000e+00 : f32
    %282 = vector.broadcast %cst_264 : f32 to vector<5x16xf32>
    %283 = arith.maximumf %281, %282 : vector<5x16xf32>
    %c40 = arith.constant 40 : index
    %c0_265 = arith.constant 0 : index
    %284 = vector.load %arg19[%c40, %c0_265] : memref<56x16xf32, #tpu.memory_space<vmem>>, vector<5x16xf32>
    tpu.vector_store %arg19[%c40, %c0_265], %283 {strides = array<i32>} : memref<56x16xf32, #tpu.memory_space<vmem>>, vector<5x16xf32>,
    %c308_266 = arith.constant 308 : index
    %c0_267 = arith.constant 0 : index
    %285 = tpu.strided_load %arg18[%c308_266, %c0_267] {strides = array<i32: 2, 1>} : memref<392x16xf32, #tpu.memory_space<vmem>>, vector<5x16xf32>
    %c322_268 = arith.constant 322 : index
    %c0_269 = arith.constant 0 : index
    %286 = tpu.strided_load %arg18[%c322_268, %c0_269] {strides = array<i32: 2, 1>} : memref<392x16xf32, #tpu.memory_space<vmem>>, vector<5x16xf32>
    %287 = arith.maximumf %285, %286 : vector<5x16xf32>
    %cst_270 = arith.constant 0.000000e+00 : f32
    %288 = vector.broadcast %cst_270 : f32 to vector<5x16xf32>
    %289 = arith.maximumf %287, %288 : vector<5x16xf32>
    %c45 = arith.constant 45 : index
    %c0_271 = arith.constant 0 : index
    %290 = vector.load %arg19[%c45, %c0_271] : memref<56x16xf32, #tpu.memory_space<vmem>>, vector<5x16xf32>
    tpu.vector_store %arg19[%c45, %c0_271], %289 {strides = array<i32>} : memref<56x16xf32, #tpu.memory_space<vmem>>, vector<5x16xf32>,
    %c0_272 = arith.constant 0 : index
    %c0_273 = arith.constant 0 : index
    %291 = tpu.strided_load %arg19[%c0_272, %c0_273] {strides = array<i32: 25, 1>} : memref<56x16xf32, #tpu.memory_space<vmem>>, vector<2x16xf32>
    %c0_274 = arith.constant 0 : index
    %c0_275 = arith.constant 0 : index
    %292 = vector.load %arg20[%c0_274, %c0_275] : memref<8x400xf32, #tpu.memory_space<vmem>>, vector<2x16xf32>
    tpu.vector_store %arg20[%c0_274, %c0_275], %291 {strides = array<i32>} : memref<8x400xf32, #tpu.memory_space<vmem>>, vector<2x16xf32>,
    %c1_276 = arith.constant 1 : index
    %c0_277 = arith.constant 0 : index
    %293 = tpu.strided_load %arg19[%c1_276, %c0_277] {strides = array<i32: 25, 1>} : memref<56x16xf32, #tpu.memory_space<vmem>>, vector<2x16xf32>
    %c0_278 = arith.constant 0 : index
    %c16 = arith.constant 16 : index
    %294 = vector.load %arg20[%c0_278, %c16] : memref<8x400xf32, #tpu.memory_space<vmem>>, vector<2x16xf32>
    tpu.vector_store %arg20[%c0_278, %c16], %293 {strides = array<i32>} : memref<8x400xf32, #tpu.memory_space<vmem>>, vector<2x16xf32>,
    %c2_279 = arith.constant 2 : index
    %c0_280 = arith.constant 0 : index
    %295 = tpu.strided_load %arg19[%c2_279, %c0_280] {strides = array<i32: 25, 1>} : memref<56x16xf32, #tpu.memory_space<vmem>>, vector<2x16xf32>
    %c0_281 = arith.constant 0 : index
    %c32 = arith.constant 32 : index
    %296 = vector.load %arg20[%c0_281, %c32] : memref<8x400xf32, #tpu.memory_space<vmem>>, vector<2x16xf32>
    tpu.vector_store %arg20[%c0_281, %c32], %295 {strides = array<i32>} : memref<8x400xf32, #tpu.memory_space<vmem>>, vector<2x16xf32>,
    %c3_282 = arith.constant 3 : index
    %c0_283 = arith.constant 0 : index
    %297 = tpu.strided_load %arg19[%c3_282, %c0_283] {strides = array<i32: 25, 1>} : memref<56x16xf32, #tpu.memory_space<vmem>>, vector<2x16xf32>
    %c0_284 = arith.constant 0 : index
    %c48 = arith.constant 48 : index
    %298 = vector.load %arg20[%c0_284, %c48] : memref<8x400xf32, #tpu.memory_space<vmem>>, vector<2x16xf32>
    tpu.vector_store %arg20[%c0_284, %c48], %297 {strides = array<i32>} : memref<8x400xf32, #tpu.memory_space<vmem>>, vector<2x16xf32>,
    %c4_285 = arith.constant 4 : index
    %c0_286 = arith.constant 0 : index
    %299 = tpu.strided_load %arg19[%c4_285, %c0_286] {strides = array<i32: 25, 1>} : memref<56x16xf32, #tpu.memory_space<vmem>>, vector<2x16xf32>
    %c0_287 = arith.constant 0 : index
    %c64 = arith.constant 64 : index
    %300 = vector.load %arg20[%c0_287, %c64] : memref<8x400xf32, #tpu.memory_space<vmem>>, vector<2x16xf32>
    tpu.vector_store %arg20[%c0_287, %c64], %299 {strides = array<i32>} : memref<8x400xf32, #tpu.memory_space<vmem>>, vector<2x16xf32>,
    %c5_288 = arith.constant 5 : index
    %c0_289 = arith.constant 0 : index
    %301 = tpu.strided_load %arg19[%c5_288, %c0_289] {strides = array<i32: 25, 1>} : memref<56x16xf32, #tpu.memory_space<vmem>>, vector<2x16xf32>
    %c0_290 = arith.constant 0 : index
    %c80 = arith.constant 80 : index
    %302 = vector.load %arg20[%c0_290, %c80] : memref<8x400xf32, #tpu.memory_space<vmem>>, vector<2x16xf32>
    tpu.vector_store %arg20[%c0_290, %c80], %301 {strides = array<i32>} : memref<8x400xf32, #tpu.memory_space<vmem>>, vector<2x16xf32>,
    %c6_291 = arith.constant 6 : index
    %c0_292 = arith.constant 0 : index
    %303 = tpu.strided_load %arg19[%c6_291, %c0_292] {strides = array<i32: 25, 1>} : memref<56x16xf32, #tpu.memory_space<vmem>>, vector<2x16xf32>
    %c0_293 = arith.constant 0 : index
    %c96 = arith.constant 96 : index
    %304 = vector.load %arg20[%c0_293, %c96] : memref<8x400xf32, #tpu.memory_space<vmem>>, vector<2x16xf32>
    tpu.vector_store %arg20[%c0_293, %c96], %303 {strides = array<i32>} : memref<8x400xf32, #tpu.memory_space<vmem>>, vector<2x16xf32>,
    %c7 = arith.constant 7 : index
    %c0_294 = arith.constant 0 : index
    %305 = tpu.strided_load %arg19[%c7, %c0_294] {strides = array<i32: 25, 1>} : memref<56x16xf32, #tpu.memory_space<vmem>>, vector<2x16xf32>
    %c0_295 = arith.constant 0 : index
    %c112_296 = arith.constant 112 : index
    %306 = vector.load %arg20[%c0_295, %c112_296] : memref<8x400xf32, #tpu.memory_space<vmem>>, vector<2x16xf32>
    tpu.vector_store %arg20[%c0_295, %c112_296], %305 {strides = array<i32>} : memref<8x400xf32, #tpu.memory_space<vmem>>, vector<2x16xf32>,
    %c8 = arith.constant 8 : index
    %c0_297 = arith.constant 0 : index
    %307 = tpu.strided_load %arg19[%c8, %c0_297] {strides = array<i32: 25, 1>} : memref<56x16xf32, #tpu.memory_space<vmem>>, vector<2x16xf32>
    %c0_298 = arith.constant 0 : index
    %c128 = arith.constant 128 : index
    %308 = vector.load %arg20[%c0_298, %c128] : memref<8x400xf32, #tpu.memory_space<vmem>>, vector<2x16xf32>
    tpu.vector_store %arg20[%c0_298, %c128], %307 {strides = array<i32>} : memref<8x400xf32, #tpu.memory_space<vmem>>, vector<2x16xf32>,
    %c9 = arith.constant 9 : index
    %c0_299 = arith.constant 0 : index
    %309 = tpu.strided_load %arg19[%c9, %c0_299] {strides = array<i32: 25, 1>} : memref<56x16xf32, #tpu.memory_space<vmem>>, vector<2x16xf32>
    %c0_300 = arith.constant 0 : index
    %c144 = arith.constant 144 : index
    %310 = vector.load %arg20[%c0_300, %c144] : memref<8x400xf32, #tpu.memory_space<vmem>>, vector<2x16xf32>
    tpu.vector_store %arg20[%c0_300, %c144], %309 {strides = array<i32>} : memref<8x400xf32, #tpu.memory_space<vmem>>, vector<2x16xf32>,
    %c10_301 = arith.constant 10 : index
    %c0_302 = arith.constant 0 : index
    %311 = tpu.strided_load %arg19[%c10_301, %c0_302] {strides = array<i32: 25, 1>} : memref<56x16xf32, #tpu.memory_space<vmem>>, vector<2x16xf32>
    %c0_303 = arith.constant 0 : index
    %c160 = arith.constant 160 : index
    %312 = vector.load %arg20[%c0_303, %c160] : memref<8x400xf32, #tpu.memory_space<vmem>>, vector<2x16xf32>
    tpu.vector_store %arg20[%c0_303, %c160], %311 {strides = array<i32>} : memref<8x400xf32, #tpu.memory_space<vmem>>, vector<2x16xf32>,
    %c11 = arith.constant 11 : index
    %c0_304 = arith.constant 0 : index
    %313 = tpu.strided_load %arg19[%c11, %c0_304] {strides = array<i32: 25, 1>} : memref<56x16xf32, #tpu.memory_space<vmem>>, vector<2x16xf32>
    %c0_305 = arith.constant 0 : index
    %c176 = arith.constant 176 : index
    %314 = vector.load %arg20[%c0_305, %c176] : memref<8x400xf32, #tpu.memory_space<vmem>>, vector<2x16xf32>
    tpu.vector_store %arg20[%c0_305, %c176], %313 {strides = array<i32>} : memref<8x400xf32, #tpu.memory_space<vmem>>, vector<2x16xf32>,
    %c12_306 = arith.constant 12 : index
    %c0_307 = arith.constant 0 : index
    %315 = tpu.strided_load %arg19[%c12_306, %c0_307] {strides = array<i32: 25, 1>} : memref<56x16xf32, #tpu.memory_space<vmem>>, vector<2x16xf32>
    %c0_308 = arith.constant 0 : index
    %c192 = arith.constant 192 : index
    %316 = vector.load %arg20[%c0_308, %c192] : memref<8x400xf32, #tpu.memory_space<vmem>>, vector<2x16xf32>
    tpu.vector_store %arg20[%c0_308, %c192], %315 {strides = array<i32>} : memref<8x400xf32, #tpu.memory_space<vmem>>, vector<2x16xf32>,
    %c13 = arith.constant 13 : index
    %c0_309 = arith.constant 0 : index
    %317 = tpu.strided_load %arg19[%c13, %c0_309] {strides = array<i32: 25, 1>} : memref<56x16xf32, #tpu.memory_space<vmem>>, vector<2x16xf32>
    %c0_310 = arith.constant 0 : index
    %c208 = arith.constant 208 : index
    %318 = vector.load %arg20[%c0_310, %c208] : memref<8x400xf32, #tpu.memory_space<vmem>>, vector<2x16xf32>
    tpu.vector_store %arg20[%c0_310, %c208], %317 {strides = array<i32>} : memref<8x400xf32, #tpu.memory_space<vmem>>, vector<2x16xf32>,
    %c14_311 = arith.constant 14 : index
    %c0_312 = arith.constant 0 : index
    %319 = tpu.strided_load %arg19[%c14_311, %c0_312] {strides = array<i32: 25, 1>} : memref<56x16xf32, #tpu.memory_space<vmem>>, vector<2x16xf32>
    %c0_313 = arith.constant 0 : index
    %c224_314 = arith.constant 224 : index
    %320 = vector.load %arg20[%c0_313, %c224_314] : memref<8x400xf32, #tpu.memory_space<vmem>>, vector<2x16xf32>
    tpu.vector_store %arg20[%c0_313, %c224_314], %319 {strides = array<i32>} : memref<8x400xf32, #tpu.memory_space<vmem>>, vector<2x16xf32>,
    %c15_315 = arith.constant 15 : index
    %c0_316 = arith.constant 0 : index
    %321 = tpu.strided_load %arg19[%c15_315, %c0_316] {strides = array<i32: 25, 1>} : memref<56x16xf32, #tpu.memory_space<vmem>>, vector<2x16xf32>
    %c0_317 = arith.constant 0 : index
    %c240 = arith.constant 240 : index
    %322 = vector.load %arg20[%c0_317, %c240] : memref<8x400xf32, #tpu.memory_space<vmem>>, vector<2x16xf32>
    tpu.vector_store %arg20[%c0_317, %c240], %321 {strides = array<i32>} : memref<8x400xf32, #tpu.memory_space<vmem>>, vector<2x16xf32>,
    %c16_318 = arith.constant 16 : index
    %c0_319 = arith.constant 0 : index
    %323 = tpu.strided_load %arg19[%c16_318, %c0_319] {strides = array<i32: 25, 1>} : memref<56x16xf32, #tpu.memory_space<vmem>>, vector<2x16xf32>
    %c0_320 = arith.constant 0 : index
    %c256 = arith.constant 256 : index
    %324 = vector.load %arg20[%c0_320, %c256] : memref<8x400xf32, #tpu.memory_space<vmem>>, vector<2x16xf32>
    tpu.vector_store %arg20[%c0_320, %c256], %323 {strides = array<i32>} : memref<8x400xf32, #tpu.memory_space<vmem>>, vector<2x16xf32>,
    %c17 = arith.constant 17 : index
    %c0_321 = arith.constant 0 : index
    %325 = tpu.strided_load %arg19[%c17, %c0_321] {strides = array<i32: 25, 1>} : memref<56x16xf32, #tpu.memory_space<vmem>>, vector<2x16xf32>
    %c0_322 = arith.constant 0 : index
    %c272 = arith.constant 272 : index
    %326 = vector.load %arg20[%c0_322, %c272] : memref<8x400xf32, #tpu.memory_space<vmem>>, vector<2x16xf32>
    tpu.vector_store %arg20[%c0_322, %c272], %325 {strides = array<i32>} : memref<8x400xf32, #tpu.memory_space<vmem>>, vector<2x16xf32>,
    %c18_323 = arith.constant 18 : index
    %c0_324 = arith.constant 0 : index
    %327 = tpu.strided_load %arg19[%c18_323, %c0_324] {strides = array<i32: 25, 1>} : memref<56x16xf32, #tpu.memory_space<vmem>>, vector<2x16xf32>
    %c0_325 = arith.constant 0 : index
    %c288 = arith.constant 288 : index
    %328 = vector.load %arg20[%c0_325, %c288] : memref<8x400xf32, #tpu.memory_space<vmem>>, vector<2x16xf32>
    tpu.vector_store %arg20[%c0_325, %c288], %327 {strides = array<i32>} : memref<8x400xf32, #tpu.memory_space<vmem>>, vector<2x16xf32>,
    %c19 = arith.constant 19 : index
    %c0_326 = arith.constant 0 : index
    %329 = tpu.strided_load %arg19[%c19, %c0_326] {strides = array<i32: 25, 1>} : memref<56x16xf32, #tpu.memory_space<vmem>>, vector<2x16xf32>
    %c0_327 = arith.constant 0 : index
    %c304 = arith.constant 304 : index
    %330 = vector.load %arg20[%c0_327, %c304] : memref<8x400xf32, #tpu.memory_space<vmem>>, vector<2x16xf32>
    tpu.vector_store %arg20[%c0_327, %c304], %329 {strides = array<i32>} : memref<8x400xf32, #tpu.memory_space<vmem>>, vector<2x16xf32>,
    %c20_328 = arith.constant 20 : index
    %c0_329 = arith.constant 0 : index
    %331 = tpu.strided_load %arg19[%c20_328, %c0_329] {strides = array<i32: 25, 1>} : memref<56x16xf32, #tpu.memory_space<vmem>>, vector<2x16xf32>
    %c0_330 = arith.constant 0 : index
    %c320 = arith.constant 320 : index
    %332 = vector.load %arg20[%c0_330, %c320] : memref<8x400xf32, #tpu.memory_space<vmem>>, vector<2x16xf32>
    tpu.vector_store %arg20[%c0_330, %c320], %331 {strides = array<i32>} : memref<8x400xf32, #tpu.memory_space<vmem>>, vector<2x16xf32>,
    %c21 = arith.constant 21 : index
    %c0_331 = arith.constant 0 : index
    %333 = tpu.strided_load %arg19[%c21, %c0_331] {strides = array<i32: 25, 1>} : memref<56x16xf32, #tpu.memory_space<vmem>>, vector<2x16xf32>
    %c0_332 = arith.constant 0 : index
    %c336_333 = arith.constant 336 : index
    %334 = vector.load %arg20[%c0_332, %c336_333] : memref<8x400xf32, #tpu.memory_space<vmem>>, vector<2x16xf32>
    tpu.vector_store %arg20[%c0_332, %c336_333], %333 {strides = array<i32>} : memref<8x400xf32, #tpu.memory_space<vmem>>, vector<2x16xf32>,
    %c22 = arith.constant 22 : index
    %c0_334 = arith.constant 0 : index
    %335 = tpu.strided_load %arg19[%c22, %c0_334] {strides = array<i32: 25, 1>} : memref<56x16xf32, #tpu.memory_space<vmem>>, vector<2x16xf32>
    %c0_335 = arith.constant 0 : index
    %c352 = arith.constant 352 : index
    %336 = vector.load %arg20[%c0_335, %c352] : memref<8x400xf32, #tpu.memory_space<vmem>>, vector<2x16xf32>
    tpu.vector_store %arg20[%c0_335, %c352], %335 {strides = array<i32>} : memref<8x400xf32, #tpu.memory_space<vmem>>, vector<2x16xf32>,
    %c23 = arith.constant 23 : index
    %c0_336 = arith.constant 0 : index
    %337 = tpu.strided_load %arg19[%c23, %c0_336] {strides = array<i32: 25, 1>} : memref<56x16xf32, #tpu.memory_space<vmem>>, vector<2x16xf32>
    %c0_337 = arith.constant 0 : index
    %c368 = arith.constant 368 : index
    %338 = vector.load %arg20[%c0_337, %c368] : memref<8x400xf32, #tpu.memory_space<vmem>>, vector<2x16xf32>
    tpu.vector_store %arg20[%c0_337, %c368], %337 {strides = array<i32>} : memref<8x400xf32, #tpu.memory_space<vmem>>, vector<2x16xf32>,
    %c24_338 = arith.constant 24 : index
    %c0_339 = arith.constant 0 : index
    %339 = tpu.strided_load %arg19[%c24_338, %c0_339] {strides = array<i32: 25, 1>} : memref<56x16xf32, #tpu.memory_space<vmem>>, vector<2x16xf32>
    %c0_340 = arith.constant 0 : index
    %c384 = arith.constant 384 : index
    %340 = vector.load %arg20[%c0_340, %c384] : memref<8x400xf32, #tpu.memory_space<vmem>>, vector<2x16xf32>
    tpu.vector_store %arg20[%c0_340, %c384], %339 {strides = array<i32>} : memref<8x400xf32, #tpu.memory_space<vmem>>, vector<2x16xf32>,
    %c0_341 = arith.constant 0 : index
    %c0_342 = arith.constant 0 : index
    %341 = vector.load %arg20[%c0_341, %c0_342] : memref<8x400xf32, #tpu.memory_space<vmem>>, vector<2x400xf32>
    %c0_343 = arith.constant 0 : index
    %c0_344 = arith.constant 0 : index
    %342 = vector.load %arg6[%c0_343, %c0_344] : memref<400x120xf32, #tpu.memory_space<vmem>>, vector<400x120xf32>
    %cst_345 = arith.constant dense<0.000000e+00> : vector<2x120xf32>
    %343 = tpu.matmul %341, %342, %cst_345 {dimension_numbers = #tpu.dot_dimension_numbers<[1], [0], [0], [1], [0, 0, 1, 1], [], []>} : vector<2x400xf32>, vector<400x120xf32>, vector<2x120xf32> -> vector<2x120xf32>
    %c0_346 = arith.constant 0 : index
    %c0_347 = arith.constant 0 : index
    %344 = vector.load %arg7[%c0_346, %c0_347] : memref<1x120xf32, #tpu.memory_space<vmem>>, vector<1x120xf32>
    %345 = vector.broadcast %344 : vector<1x120xf32> to vector<2x120xf32>
    %346 = arith.addf %343, %345 : vector<2x120xf32>
    %cst_348 = arith.constant 0.000000e+00 : f32
    %347 = vector.broadcast %cst_348 : f32 to vector<2x120xf32>
    %348 = arith.maximumf %346, %347 : vector<2x120xf32>
    %c0_349 = arith.constant 0 : index
    %c0_350 = arith.constant 0 : index
    %349 = vector.load %arg8[%c0_349, %c0_350] : memref<120x84xf32, #tpu.memory_space<vmem>>, vector<120x84xf32>
    %cst_351 = arith.constant dense<0.000000e+00> : vector<2x84xf32>
    %350 = tpu.matmul %348, %349, %cst_351 {dimension_numbers = #tpu.dot_dimension_numbers<[1], [0], [0], [1], [0, 0, 1, 1], [], []>} : vector<2x120xf32>, vector<120x84xf32>, vector<2x84xf32> -> vector<2x84xf32>
    %c0_352 = arith.constant 0 : index
    %c0_353 = arith.constant 0 : index
    %351 = vector.load %arg9[%c0_352, %c0_353] : memref<1x84xf32, #tpu.memory_space<vmem>>, vector<1x84xf32>
    %352 = vector.broadcast %351 : vector<1x84xf32> to vector<2x84xf32>
    %353 = arith.addf %350, %352 : vector<2x84xf32>
    %cst_354 = arith.constant 0.000000e+00 : f32
    %354 = vector.broadcast %cst_354 : f32 to vector<2x84xf32>
    %355 = arith.maximumf %353, %354 : vector<2x84xf32>
    %c0_355 = arith.constant 0 : index
    %c0_356 = arith.constant 0 : index
    %356 = vector.load %arg10[%c0_355, %c0_356] : memref<84x10xf32, #tpu.memory_space<vmem>>, vector<84x10xf32>
    %cst_357 = arith.constant dense<0.000000e+00> : vector<2x10xf32>
    %357 = tpu.matmul %355, %356, %cst_357 {dimension_numbers = #tpu.dot_dimension_numbers<[1], [0], [0], [1], [0, 0, 1, 1], [], []>} : vector<2x84xf32>, vector<84x10xf32>, vector<2x10xf32> -> vector<2x10xf32>
    %c0_358 = arith.constant 0 : index
    %c0_359 = arith.constant 0 : index
    %358 = vector.load %arg11[%c0_358, %c0_359] : memref<1x10xf32, #tpu.memory_space<vmem>>, vector<1x10xf32>
    %359 = vector.broadcast %358 : vector<1x10xf32> to vector<2x10xf32>
    %360 = arith.addf %357, %359 : vector<2x10xf32>
    %c0_360 = arith.constant 0 : index
    %c0_361 = arith.constant 0 : index
    %361 = vector.load %arg12[%c0_360, %c0_361] : memref<2x10xf32, #tpu.memory_space<vmem>>, vector<2x10xf32>
    tpu.vector_store %arg12[%c0_360, %c0_361], %360 {strides = array<i32>} : memref<2x10xf32, #tpu.memory_space<vmem>>, vector<2x10xf32>,
    return
  }
  func.func @transform_0(%arg0: i32) -> (i32, i32) {
    %c0_i32 = arith.constant 0 : i32
    %c0_i32_0 = arith.constant 0 : i32
    %c0_i32_1 = arith.constant 0 : i32
    return %c0_i32, %c0_i32_0 : i32, i32
  }
  func.func @transform_1(%arg0: i32) -> (i32, i32) {
    %c0_i32 = arith.constant 0 : i32
    %c0_i32_0 = arith.constant 0 : i32
    %c0_i32_1 = arith.constant 0 : i32
    return %c0_i32, %c0_i32_0 : i32, i32
  }
  func.func @transform_2(%arg0: i32) -> (i32, i32) {
    %c0_i32 = arith.constant 0 : i32
    %c0_i32_0 = arith.constant 0 : i32
    %c0_i32_1 = arith.constant 0 : i32
    return %c0_i32, %c0_i32_0 : i32, i32
  }
  func.func @transform_3(%arg0: i32) -> (i32, i32, i32) {
    %c0_i32 = arith.constant 0 : i32
    %c0_i32_0 = arith.constant 0 : i32
    %c0_i32_1 = arith.constant 0 : i32
    %c0_i32_2 = arith.constant 0 : i32
    return %c0_i32, %c0_i32_0, %c0_i32_1 : i32, i32, i32
  }
  func.func @transform_4(%arg0: i32) -> (i32, i32) {
    %c0_i32 = arith.constant 0 : i32
    %c0_i32_0 = arith.constant 0 : i32
    %c0_i32_1 = arith.constant 0 : i32
    return %c0_i32, %c0_i32_0 : i32, i32
  }
  func.func @transform_5(%arg0: i32) -> (i32, i32) {
    %c0_i32 = arith.constant 0 : i32
    %c0_i32_0 = arith.constant 0 : i32
    %c0_i32_1 = arith.constant 0 : i32
    return %c0_i32, %c0_i32_0 : i32, i32
  }
  func.func @transform_6(%arg0: i32) -> (i32, i32) {
    %c0_i32 = arith.constant 0 : i32
    %c0_i32_0 = arith.constant 0 : i32
    %c0_i32_1 = arith.constant 0 : i32
    return %c0_i32, %c0_i32_0 : i32, i32
  }
  func.func @transform_7(%arg0: i32) -> (i32, i32) {
    %c0_i32 = arith.constant 0 : i32
    %c0_i32_0 = arith.constant 0 : i32
    %c0_i32_1 = arith.constant 0 : i32
    return %c0_i32, %c0_i32_0 : i32, i32
  }
  func.func @transform_8(%arg0: i32) -> (i32, i32) {
    %c0_i32 = arith.constant 0 : i32
    %c0_i32_0 = arith.constant 0 : i32
    %c0_i32_1 = arith.constant 0 : i32
    return %c0_i32, %c0_i32_0 : i32, i32
  }
  func.func @transform_9(%arg0: i32) -> (i32, i32) {
    %c0_i32 = arith.constant 0 : i32
    %c0_i32_0 = arith.constant 0 : i32
    %c0_i32_1 = arith.constant 0 : i32
    return %c0_i32, %c0_i32_0 : i32, i32
  }
  func.func @transform_10(%arg0: i32) -> (i32, i32) {
    %c0_i32 = arith.constant 0 : i32
    %c0_i32_0 = arith.constant 0 : i32
    %c0_i32_1 = arith.constant 0 : i32
    return %c0_i32, %c0_i32_0 : i32, i32
  }
  func.func @transform_11(%arg0: i32) -> (i32, i32) {
    %c0_i32 = arith.constant 0 : i32
    %c0_i32_0 = arith.constant 0 : i32
    %c0_i32_1 = arith.constant 0 : i32
    return %c0_i32, %c0_i32_0 : i32, i32
  }
}

</mosaic_0001>

<bundles_post_ra>
// kernel: image_encoder_forward.1
= control target key start
LH: loop header
LB: loop body
LE: loop exit
PB: predicated region body
PF: predicated region fallthrough
CT: control target
= control target key end

     0   :  { %vm838_vm0 = vcmask 1042432   ;;  %s11145_s0 = inlined_call_operand.vmem [shape: f32[1568,75], index: 0, kind: input, shape index: {}]   ;;  %s11146_s1 = inlined_call_operand.vmem [shape: f32[75,6], index: 1, kind: input, shape index: {}]   ;;  %s11147_s2 = inlined_call_operand.vmem [shape: f32[1,6], index: 2, kind: input, shape index: {}]   ;;  %s11148_s3 = inlined_call_operand.vmem [shape: f32[5,30,16], index: 3, kind: input, shape index: {}]   ;;  %s11149_s4 = inlined_call_operand.vmem [shape: f32[1,16], index: 4, kind: input, shape index: {}]   ;;  %s11150_s5 = inlined_call_operand.vmem [shape: f32[400,120], index: 5, kind: input, shape index: {}]   ;;  %s11151_s6 = inlined_call_operand.vmem [shape: f32[1,120], index: 6, kind: input, shape index: {}]   ;;  %s11152_s7 = inlined_call_operand.vmem [shape: f32[120,84], index: 7, kind: input, shape index: {}]   ;;  %s11153_s8 = inlined_call_operand.vmem [shape: f32[1,84], index: 8, kind: input, shape index: {}]   ;;  %s11154_s9 = inlined_call_operand.vmem [shape: f32[84,10], index: 9, kind: input, shape index: {}]   ;;  %s11155_s10 = inlined_call_operand.vmem [shape: f32[1,10], index: 10, kind: input, shape index: {}]   ;;  %s11156_s11 = inlined_call_operand.hbm [shape: f32[2,10], index: 11, kind: output, shape index: {}]  }
   0x1   :  { %v244_v0 = vld [vmem:[%s11146_s1 + $0x48] sm:$0x7]  ;;  %v243_v1 = vld [vmem:[%s11146_s1 + $0x40] sm:$0xff]  ;;  %v242_v2 = vld [vmem:[%s11146_s1 + $0x38] sm:$0xff] }
   0x2   :  { %7452 = vmatpush.msk.msra.mxu0 %vm838_vm0, %v244_v0  ;;  %7919 = vmatpush.msk.msra.mxu3 %vm838_vm0, %v244_v0  ;;  %v241_v3 = vld [vmem:[%s11146_s1 + $0x30] sm:$0xff]  ;;  %v240_v4 = vld [vmem:[%s11146_s1 + $0x28] sm:$0xff] }
   0x4   :  { %849 = vmatpush.msra.mxu0 %v243_v1  ;;  %7920 = vmatpush.msra.mxu3 %v243_v1 }
   0x6   :  { %850 = vmatpush.msra.mxu0 %v242_v2  ;;  %7921 = vmatpush.msra.mxu3 %v242_v2 }
   0x8   :  { %851 = vmatpush.msra.mxu0 %v241_v3  ;;  %7922 = vmatpush.msra.mxu3 %v241_v3 }
   0x9   :  { %16 = vsyncpa [#allocation11], 0  ;;  %v239_v5 = vld [vmem:[%s11146_s1 + $0x20] sm:$0xff]  ;;  %v238_v6 = vld [vmem:[%s11146_s1 + $0x18] sm:$0xff]  ;;  %vm249_vm1 = vcmask 613376   ;;  %vm1447_vm2 = vcmask 48128  }
   0xa   :  { %852 = vmatpush.msra.mxu0 %v240_v4  ;;  %7923 = vmatpush.msra.mxu3 %v240_v4  ;;  %v237_v7 = vld [vmem:[%s11146_s1 + $0x10] sm:$0xff]  ;;  %v236_v8 = vld [vmem:[%s11146_s1 + $0x8] sm:$0xff]  ;;  %v235_v9 = vld [vmem:[%s11146_s1] sm:$0xff]  ;;  %vm2441_vm3 = vcmask 46080   ;;  %s7990_s12 = smov 18   ;;  %s7991_s13 = smov 6  }
   0xb   :  { %v39_v10 = vld [vmem:[%s11145_s0] sm:$0xff]  ;;  %v153_v11 = vld [vmem:[%s11145_s0 + $0x390] sm:$0xff]  ;;  %v40_v12 = vld [vmem:[%s11145_s0 + $0x8] sm:$0xff]  ;;  %s7992_s18 = smov 24   ;;  %s7993_s19 = smov 12   ;;  %vm4494_vm4 = vcmask 1045504  }
   0xc   :  { %853 = vmatpush.msra.mxu0 %v239_v5  ;;  %7924 = vmatpush.msra.mxu3 %v239_v5  ;;  %v154_v13 = vld [vmem:[%s11145_s0 + $0x398] sm:$0xff]  ;;  %v41_v14 = vld [vmem:[%s11145_s0 + $0x10] sm:$0xff]  ;;  %v155_v15 = vld [vmem:[%s11145_s0 + $0x3a0] sm:$0xff]  ;;  %vm3221_vm5 = vcmask 97328   ;;  %vm3558_vm6 = vcmask 146528   ;;  %vm3895_vm7 = vcmask 195728  }
   0xd   :  { %v42_v16 = vld [vmem:[%s11145_s0 + $0x18] sm:$0xff]  ;;  %v156_v17 = vld [vmem:[%s11145_s0 + $0x3a8] sm:$0xff]  ;;  %v43_v18 = vld [vmem:[%s11145_s0 + $0x20] sm:$0xff]  ;;  %vm4232_vm8 = vcmask 244928   ;;  %vm4346_vm9 = vcmask 244736   ;;  %vm4662_vm10 = vcmask 130048  }
   0xe   :  { %854 = vmatpush.msra.mxu0 %v238_v6  ;;  %7925 = vmatpush.msra.mxu3 %v238_v6  ;;  %v157_v19 = vld [vmem:[%s11145_s0 + $0x3b0] sm:$0xff]  ;;  %v44_v20 = vld [vmem:[%s11145_s0 + $0x28] sm:$0xff]  ;;  %v158_v21 = vld [vmem:[%s11145_s0 + $0x3b8] sm:$0xff]  ;;  %vm2427_vm11 = vcmask 47104   ;;  %vm6974_vm12 = vcmask 126976   ;;  %s7996_s30 = smov 32  }
   0xf   :  { %v45_v22 = vld [vmem:[%s11145_s0 + $0x30] sm:$0xff]  ;;  %v159_v23 = vld [vmem:[%s11145_s0 + $0x3c0] sm:$0xff]  ;;  %v46_v24 = vld [vmem:[%s11145_s0 + $0x38] sm:$0xff]  ;;  %s7997_s14 = smov 16   ;;  %vm7040_vm13 = vcmask 123904   ;;  %s7998_s15 = smov 64  }
  0x10   :  { %855 = vmatpush.msra.mxu0 %v237_v7  ;;  %7926 = vmatpush.msra.mxu3 %v237_v7  ;;  %v160_v25 = vld [vmem:[%s11145_s0 + $0x3c8] sm:$0xff]  ;;  %v47_v26 = vld [vmem:[%s11145_s0 + $0x40] sm:$0xff]  ;;  %v161_v27 = vld [vmem:[%s11145_s0 + $0x3d0] sm:$0xff]  ;;  %s7999_s16 = smov 96   ;;  %s8000_s17 = smov 80   ;;  %vm7048_vm14 = vcmask 255104  }
  0x11   :  { %v48_v28 = vld [vmem:[%s11145_s0 + $0x48] sm:$0xff]  ;;  %v162_v29 = vld [vmem:[%s11145_s0 + $0x3d8] sm:$0xff]  ;;  %v49_v30 = vld [vmem:[%s11145_s0 + $0x50] sm:$0xff]  ;;  %s8001_s20 = smov 112   ;;  %vm7056_vm15 = vcmask 386304   ;;  %vm7064_vm0 = vcmask 517504  }
  0x12   :  { %856 = vmatpush.msra.mxu0 %v236_v8  ;;  %7927 = vmatpush.msra.mxu3 %v236_v8  ;;  %v163_v31 = vld [vmem:[%s11145_s0 + $0x3e0] sm:$0xff]  ;;  %v50_v32 = vld [vmem:[%s11145_s0 + $0x58] sm:$0xff]  ;;  %v164_v33 = vld [vmem:[%s11145_s0 + $0x3e8] sm:$0xff] }
  0x13   :  { %v51_v34 = vld [vmem:[%s11145_s0 + $0x60] sm:$0xff]  ;;  %v165_v35 = vld [vmem:[%s11145_s0 + $0x3f0] sm:$0xff]  ;;  %v52_v36 = vld [vmem:[%s11145_s0 + $0x68] sm:$0xff] }
  0x14   :  { %857 = vmatpush.msra.mxu0 %v235_v9  ;;  %7928 = vmatpush.msra.mxu3 %v235_v9  ;;  %v166_v37 = vld [vmem:[%s11145_s0 + $0x3f8] sm:$0xff]  ;;  %v53_v38 = vld [vmem:[%s11145_s0 + $0x70] sm:$0xff]  ;;  %v167_v39 = vld [vmem:[%s11145_s0 + $0x400] sm:$0xff] }
  0x15   :  { %7453 = vmatmul.msk.f32.vlgmr.msra.gmra.mxu0 %vm249_vm1, %v39_v10  ;;  %7567 = vmatmul.msk.f32.vlgmr.msra.gmra.mxu3 %vm249_vm1, %v153_v11  ;;  %v54_v40 = vld [vmem:[%s11145_s0 + $0x78] sm:$0xff]  ;;  %v168_v41 = vld [vmem:[%s11145_s0 + $0x408] sm:$0xff]  ;;  %v8224_v42 = vld [vmem:[%s11147_s2] ss:$0 sm:$0xff] }
  0x16   :  { %v55_v44 = vld [vmem:[%s11145_s0 + $0x80] sm:$0xff]  ;;  %v169_v45 = vld [vmem:[%s11145_s0 + $0x410] sm:$0xff]  ;;  %v56_v50 = vld [vmem:[%s11145_s0 + $0x88] sm:$0xff] }
  0x17   :  { %v170_v51 = vld [vmem:[%s11145_s0 + $0x418] sm:$0xff]  ;;  %v57_v56 = vld [vmem:[%s11145_s0 + $0x90] sm:$0xff]  ;;  %v171_v57 = vld [vmem:[%s11145_s0 + $0x420] sm:$0xff] }
  0x18   :  { %v58_v3 = vld [vmem:[%s11145_s0 + $0x98] sm:$0xff]  ;;  %v172_v4 = vld [vmem:[%s11145_s0 + $0x428] sm:$0xff] }
  0x1d   :  { %7454 = vmatmul.msk.f32.gmra.mxu0 %vm249_vm1, %v40_v12  ;;  %7568 = vmatmul.msk.f32.gmra.mxu3 %vm249_vm1, %v154_v13 }
  0x25   :  { %7455 = vmatmul.msk.f32.gmra.mxu0 %vm249_vm1, %v41_v14  ;;  %7569 = vmatmul.msk.f32.gmra.mxu3 %vm249_vm1, %v155_v15  ;;  %v59_v15 = vld [vmem:[%s11145_s0 + $0xa0] sm:$0xff] }
  0x2d   :  { %7456 = vmatmul.msk.f32.gmra.mxu0 %vm249_vm1, %v42_v16  ;;  %7570 = vmatmul.msk.f32.gmra.mxu3 %vm249_vm1, %v156_v17  ;;  %v173_v16 = vld [vmem:[%s11145_s0 + $0x430] sm:$0xff] }
  0x35   :  { %7457 = vmatmul.msk.f32.gmra.mxu0 %vm249_vm1, %v43_v18  ;;  %7571 = vmatmul.msk.f32.gmra.mxu3 %vm249_vm1, %v157_v19 }
  0x3d   :  { %7458 = vmatmul.msk.f32.gmra.mxu0 %vm249_vm1, %v44_v20  ;;  %7572 = vmatmul.msk.f32.gmra.mxu3 %vm249_vm1, %v158_v21 }
  0x45   :  { %7459 = vmatmul.msk.f32.gmra.mxu0 %vm249_vm1, %v45_v22  ;;  %7573 = vmatmul.msk.f32.gmra.mxu3 %vm249_vm1, %v159_v23 }
  0x4d   :  { %7460 = vmatmul.msk.f32.gmra.mxu0 %vm249_vm1, %v46_v24  ;;  %7574 = vmatmul.msk.f32.gmra.mxu3 %vm249_vm1, %v160_v25 }
  0x55   :  { %7461 = vmatmul.msk.f32.gmra.mxu0 %vm249_vm1, %v47_v26  ;;  %7575 = vmatmul.msk.f32.gmra.mxu3 %vm249_vm1, %v161_v27  ;;  %v60_v27 = vld [vmem:[%s11145_s0 + $0xa8] sm:$0xff] }
  0x5d   :  { %7462 = vmatmul.msk.f32.gmra.mxu0 %vm249_vm1, %v48_v28  ;;  %7576 = vmatmul.msk.f32.gmra.mxu3 %vm249_vm1, %v162_v29  ;;  %v174_v28 = vld [vmem:[%s11145_s0 + $0x438] sm:$0xff] }
  0x65   :  { %7463 = vmatmul.msk.f32.gmra.mxu0 %vm249_vm1, %v49_v30  ;;  %7577 = vmatmul.msk.f32.gmra.mxu3 %vm249_vm1, %v163_v31 }
  0x6d   :  { %7464 = vmatmul.msk.f32.gmra.mxu0 %vm249_vm1, %v50_v32  ;;  %7578 = vmatmul.msk.f32.gmra.mxu3 %vm249_vm1, %v164_v33 }
  0x75   :  { %7465 = vmatmul.msk.f32.gmra.mxu0 %vm249_vm1, %v51_v34  ;;  %7579 = vmatmul.msk.f32.gmra.mxu3 %vm249_vm1, %v165_v35 }
  0x7d   :  { %7466 = vmatmul.msk.f32.gmra.mxu0 %vm249_vm1, %v52_v36  ;;  %7580 = vmatmul.msk.f32.gmra.mxu3 %vm249_vm1, %v166_v37 }
  0x85   :  { %7467 = vmatmul.msk.f32.gmra.mxu0 %vm249_vm1, %v53_v38  ;;  %7581 = vmatmul.msk.f32.gmra.mxu3 %vm249_vm1, %v167_v39  ;;  %v61_v39 = vld [vmem:[%s11145_s0 + $0xb0] sm:$0xff] }
  0x8d   :  { %7468 = vmatmul.msk.f32.gmra.mxu0 %vm249_vm1, %v54_v40  ;;  %7582 = vmatmul.msk.f32.gmra.mxu3 %vm249_vm1, %v168_v41  ;;  %v175_v40 = vld [vmem:[%s11145_s0 + $0x440] sm:$0xff] }
  0x92   :  { %v859_v43 = vpop.f32.mrf.mxu0 }
  0x93   :  { %v860_v46 = vadd.f32 %v8224_v42, %v859_v43 }
  0x95   :  { %1448 = vst.msk [vmem:[#allocation2] sm:$0xff] %vm1447_vm2, %v860_v46  ;;  %7469 = vmatmul.msk.f32.gmra.mxu0 %vm249_vm1, %v55_v44  ;;  %7583 = vmatmul.msk.f32.gmra.mxu3 %vm249_vm1, %v169_v45 }
  0x98   :  { %v1201_v47 = vpop.f32.mrf.mxu3 }
  0x99   :  { %v1202_v48 = vadd.f32 %v8224_v42, %v1201_v47 }
  0x9a   :  { %v862_v49 = vpop.f32.mrf.mxu0 }
  0x9b   :  { %1562 = vst.msk [vmem:[#allocation2 + $0x390] sm:$0xff] %vm1447_vm2, %v1202_v48  ;;  %v863_v52 = vadd.f32 %v8224_v42, %v862_v49 }
  0x9c   :  { %v1644_v59 = vld [vmem:[#allocation2] sm:$0xff] }
  0x9d   :  { %1449 = vst.msk [vmem:[#allocation2 + $0x8] sm:$0xff] %vm1447_vm2, %v863_v52  ;;  %7470 = vmatmul.msk.f32.gmra.mxu0 %vm249_vm1, %v56_v50  ;;  %7584 = vmatmul.msk.f32.gmra.mxu3 %vm249_vm1, %v170_v51  ;;  %v62_v52 = vld [vmem:[%s11145_s0 + $0xb8] sm:$0xff] }
  0xa0   :  { %v1204_v53 = vpop.f32.mrf.mxu3 }
  0xa1   :  { %v1205_v54 = vadd.f32 %v8224_v42, %v1204_v53  ;;  %v176_v53 = vld [vmem:[%s11145_s0 + $0x448] sm:$0xff] }
  0xa2   :  { %v865_v55 = vpop.f32.mrf.mxu0  ;;  %v1758_v62 = vld [vmem:[#allocation2 + $0x390] sm:$0xff] }
  0xa3   :  { %1563 = vst.msk [vmem:[#allocation2 + $0x398] sm:$0xff] %vm1447_vm2, %v1205_v54  ;;  %v866_v58 = vadd.f32 %v8224_v42, %v865_v55 }
  0xa4   :  { %v1840_v60 = vld [vmem:[#allocation2 + $0x1] sm:$0xff] }
  0xa5   :  { %v2036_v61 = vmax.f32 %v1644_v59, %v1840_v60  ;;  %1450 = vst.msk [vmem:[#allocation2 + $0x10] sm:$0xff] %vm1447_vm2, %v866_v58  ;;  %7471 = vmatmul.msk.f32.gmra.mxu0 %vm249_vm1, %v57_v56  ;;  %7585 = vmatmul.msk.f32.gmra.mxu3 %vm249_vm1, %v171_v57  ;;  %v1645_v7 = vld [vmem:[#allocation2 + $0x8] sm:$0xff] }
  0xa7   :  { %2232 = vst.msk [vmem:[#allocation3] sm:$0xff] %vm1447_vm2, %v2036_v61 }
  0xa8   :  { %v1207_v63 = vpop.f32.mrf.mxu3 }
  0xa9   :  { %v1208_v0 = vadd.f32 %v8224_v42, %v1207_v63 }
  0xaa   :  { %v1954_v1 = vld [vmem:[#allocation2 + $0x391] sm:$0xff]  ;;  %v868_v2 = vpop.f32.mrf.mxu0 }
  0xab   :  { %v2150_v5 = vmax.f32 %v1758_v62, %v1954_v1  ;;  %1564 = vst.msk [vmem:[#allocation2 + $0x3a0] sm:$0xff] %vm1447_vm2, %v1208_v0  ;;  %v869_v6 = vadd.f32 %v8224_v42, %v868_v2  ;;  %v1759_v10 = vld [vmem:[#allocation2 + $0x398] sm:$0xff]  ;;  %v63_v0 = vld [vmem:[%s11145_s0 + $0xc0] sm:$0xff]  ;;  %v177_v1 = vld [vmem:[%s11145_s0 + $0x450] sm:$0xff] }
  0xac   :  { %v1841_v8 = vld [vmem:[#allocation2 + $0x9] sm:$0xff] }
  0xad   :  { %2346 = vst.msk [vmem:[#allocation3 + $0x390] sm:$0xff] %vm1447_vm2, %v2150_v5  ;;  %v2037_v9 = vmax.f32 %v1645_v7, %v1841_v8  ;;  %7472 = vmatmul.msk.f32.gmra.mxu0 %vm249_vm1, %v58_v3  ;;  %7586 = vmatmul.msk.f32.gmra.mxu3 %vm249_vm1, %v172_v4  ;;  %v1646_v19 = vld [vmem:[#allocation2 + $0x10] sm:$0xff] }
  0xae   :  { %1451 = vst.msk [vmem:[#allocation2 + $0x18] sm:$0xff] %vm1447_vm2, %v869_v6 }
  0xaf   :  { %2233 = vst.msk [vmem:[#allocation3 + $0x8] sm:$0xff] %vm1447_vm2, %v2037_v9 }
  0xb0   :  { %v1210_v11 = vpop.f32.mrf.mxu3 }
  0xb1   :  { %v1211_v12 = vadd.f32 %v8224_v42, %v1210_v11 }
  0xb2   :  { %v1955_v13 = vld [vmem:[#allocation2 + $0x399] sm:$0xff]  ;;  %v871_v14 = vpop.f32.mrf.mxu0 }
  0xb3   :  { %v2151_v17 = vmax.f32 %v1759_v10, %v1955_v13  ;;  %1565 = vst.msk [vmem:[#allocation2 + $0x3a8] sm:$0xff] %vm1447_vm2, %v1211_v12  ;;  %v872_v18 = vadd.f32 %v8224_v42, %v871_v14  ;;  %v1760_v22 = vld [vmem:[#allocation2 + $0x3a0] sm:$0xff] }
  0xb5   :  { %2347 = vst.msk [vmem:[#allocation3 + $0x398] sm:$0xff] %vm1447_vm2, %v2151_v17  ;;  %v1842_v20 = vld [vmem:[#allocation2 + $0x11] sm:$0xff]  ;;  %7473 = vmatmul.msk.f32.gmra.mxu0 %vm249_vm1, %v59_v15  ;;  %7587 = vmatmul.msk.f32.gmra.mxu3 %vm249_vm1, %v173_v16  ;;  %v64_v15 = vld [vmem:[%s11145_s0 + $0xc8] sm:$0xff] }
  0xb6   :  { %v2038_v21 = vmax.f32 %v1646_v19, %v1842_v20  ;;  %1452 = vst.msk [vmem:[#allocation2 + $0x20] sm:$0xff] %vm1447_vm2, %v872_v18  ;;  %v1647_v31 = vld [vmem:[#allocation2 + $0x18] sm:$0xff]  ;;  %v2429_v7 = vld [vmem:[#allocation3] ss:$2 sm:$0xff] }
  0xb7   :  { %v178_v16 = vld [vmem:[%s11145_s0 + $0x458] sm:$0xff] }
  0xb8   :  { %2234 = vst.msk [vmem:[#allocation3 + $0x10] sm:$0xff] %vm1447_vm2, %v2038_v21  ;;  %v1213_v23 = vpop.f32.mrf.mxu3 }
  0xb9   :  { %v1214_v24 = vadd.f32 %v8224_v42, %v1213_v23 }
  0xba   :  { %v1956_v25 = vld [vmem:[#allocation2 + $0x3a1] sm:$0xff]  ;;  %v874_v26 = vpop.f32.mrf.mxu0 }
  0xbb   :  { %v2152_v29 = vmax.f32 %v1760_v22, %v1956_v25  ;;  %1566 = vst.msk [vmem:[#allocation2 + $0x3b0] sm:$0xff] %vm1447_vm2, %v1214_v24  ;;  %v875_v30 = vadd.f32 %v8224_v42, %v874_v26  ;;  %v1761_v34 = vld [vmem:[#allocation2 + $0x3a8] sm:$0xff] }
  0xbd   :  { %2348 = vst.msk [vmem:[#allocation3 + $0x3a0] sm:$0xff] %vm1447_vm2, %v2152_v29  ;;  %v1843_v32 = vld [vmem:[#allocation2 + $0x19] sm:$0xff]  ;;  %7474 = vmatmul.msk.f32.gmra.mxu0 %vm249_vm1, %v60_v27  ;;  %7588 = vmatmul.msk.f32.gmra.mxu3 %vm249_vm1, %v174_v28 }
  0xbe   :  { %v2039_v33 = vmax.f32 %v1647_v31, %v1843_v32  ;;  %1453 = vst.msk [vmem:[#allocation2 + $0x28] sm:$0xff] %vm1447_vm2, %v875_v30  ;;  %v1648_v44 = vld [vmem:[#allocation2 + $0x20] sm:$0xff]  ;;  %v65_v31 = vld [vmem:[%s11145_s0 + $0xd0] sm:$0xff] }
  0xbf   :  { %v179_v32 = vld [vmem:[%s11145_s0 + $0x460] sm:$0xff] }
  0xc0   :  { %2235 = vst.msk [vmem:[#allocation3 + $0x18] sm:$0xff] %vm1447_vm2, %v2039_v33  ;;  %v1216_v35 = vpop.f32.mrf.mxu3 }
  0xc1   :  { %v1217_v36 = vadd.f32 %v8224_v42, %v1216_v35 }
  0xc2   :  { %v1957_v37 = vld [vmem:[#allocation2 + $0x3a9] sm:$0xff]  ;;  %v877_v38 = vpop.f32.mrf.mxu0 }
  0xc3   :  { %v2153_v41 = vmax.f32 %v1761_v34, %v1957_v37  ;;  %1567 = vst.msk [vmem:[#allocation2 + $0x3b8] sm:$0xff] %vm1447_vm2, %v1217_v36  ;;  %v878_v43 = vadd.f32 %v8224_v42, %v877_v38  ;;  %v1762_v47 = vld [vmem:[#allocation2 + $0x3b0] sm:$0xff] }
  0xc5   :  { %2349 = vst.msk [vmem:[#allocation3 + $0x3a8] sm:$0xff] %vm1447_vm2, %v2153_v41  ;;  %v1844_v45 = vld [vmem:[#allocation2 + $0x21] sm:$0xff]  ;;  %7475 = vmatmul.msk.f32.gmra.mxu0 %vm249_vm1, %v61_v39  ;;  %7589 = vmatmul.msk.f32.gmra.mxu3 %vm249_vm1, %v175_v40 }
  0xc6   :  { %v2040_v46 = vmax.f32 %v1648_v44, %v1844_v45  ;;  %1454 = vst.msk [vmem:[#allocation2 + $0x30] sm:$0xff] %vm1447_vm2, %v878_v43  ;;  %v1649_v56 = vld [vmem:[#allocation2 + $0x28] sm:$0xff]  ;;  %v2656_v43 = vld [vmem:[#allocation3 + $0x390] ss:$2 sm:$0x3f] }
  0xc7   :  { %v2431_v23 = vld [vmem:[#allocation3 + $0x10] ss:$2 sm:$0x3f] }
  0xc8   :  { %2236 = vst.msk [vmem:[#allocation3 + $0x20] sm:$0xff] %vm1447_vm2, %v2040_v46  ;;  %v1219_v48 = vpop.f32.mrf.mxu3 }
  0xc9   :  { %v1220_v49 = vadd.f32 %v8224_v42, %v1219_v48  ;;  %v66_v48 = vld [vmem:[%s11145_s0 + $0xd8] sm:$0xff] }
  0xca   :  { %v1958_v50 = vld [vmem:[#allocation2 + $0x3b1] sm:$0xff]  ;;  %v880_v51 = vpop.f32.mrf.mxu0 }
  0xcb   :  { %v2154_v54 = vmax.f32 %v1762_v47, %v1958_v50  ;;  %1568 = vst.msk [vmem:[#allocation2 + $0x3c0] sm:$0xff] %vm1447_vm2, %v1220_v49  ;;  %v881_v55 = vadd.f32 %v8224_v42, %v880_v51  ;;  %v1763_v59 = vld [vmem:[#allocation2 + $0x3b8] sm:$0xff]  ;;  %v180_v49 = vld [vmem:[%s11145_s0 + $0x468] sm:$0xff] }
  0xcd   :  { %2350 = vst.msk [vmem:[#allocation3 + $0x3b0] sm:$0xff] %vm1447_vm2, %v2154_v54  ;;  %v1845_v57 = vld [vmem:[#allocation2 + $0x29] sm:$0xff]  ;;  %7476 = vmatmul.msk.f32.gmra.mxu0 %vm249_vm1, %v62_v52  ;;  %7590 = vmatmul.msk.f32.gmra.mxu3 %vm249_vm1, %v176_v53 }
  0xce   :  { %v2041_v58 = vmax.f32 %v1649_v56, %v1845_v57  ;;  %1455 = vst.msk [vmem:[#allocation2 + $0x38] sm:$0xff] %vm1447_vm2, %v881_v55  ;;  %v1650_v4 = vld [vmem:[#allocation2 + $0x30] sm:$0xff] }
  0xd0   :  { %2237 = vst.msk [vmem:[#allocation3 + $0x28] sm:$0xff] %vm1447_vm2, %v2041_v58  ;;  %v1222_v60 = vpop.f32.mrf.mxu3 }
  0xd1   :  { %v1223_v61 = vadd.f32 %v8224_v42, %v1222_v60 }
  0xd2   :  { %v1959_v62 = vld [vmem:[#allocation2 + $0x3b9] sm:$0xff]  ;;  %v883_v63 = vpop.f32.mrf.mxu0 }
  0xd3   :  { %v2155_v2 = vmax.f32 %v1763_v59, %v1959_v62  ;;  %1569 = vst.msk [vmem:[#allocation2 + $0x3c8] sm:$0xff] %vm1447_vm2, %v1223_v61  ;;  %v884_v3 = vadd.f32 %v8224_v42, %v883_v63  ;;  %v1764_v9 = vld [vmem:[#allocation2 + $0x3c0] sm:$0xff] }
  0xd4   :  { %v2660_v45 = vld [vmem:[#allocation3 + $0x3ac] ss:$2 sm:$0x3f] }
  0xd5   :  { %2351 = vst.msk [vmem:[#allocation3 + $0x3b8] sm:$0xff] %vm1447_vm2, %v2155_v2  ;;  %v1846_v5 = vld [vmem:[#allocation2 + $0x31] sm:$0xff]  ;;  %7477 = vmatmul.msk.f32.gmra.mxu0 %vm249_vm1, %v63_v0  ;;  %7591 = vmatmul.msk.f32.gmra.mxu3 %vm249_vm1, %v177_v1  ;;  %v2662_v50 = vmax.f32 %v2656_v43, %v2660_v45  ;;  %v67_v0 = vld [vmem:[%s11145_s0 + $0xe0] sm:$0xff] }
  0xd6   :  { %v2042_v6 = vmax.f32 %v1650_v4, %v1846_v5  ;;  %1456 = vst.msk [vmem:[#allocation2 + $0x40] sm:$0xff] %vm1447_vm2, %v884_v3  ;;  %v1651_v20 = vld [vmem:[#allocation2 + $0x38] sm:$0xff]  ;;  %v181_v1 = vld [vmem:[%s11145_s0 + $0x470] sm:$0xff] }
  0xd7   :  { %v2433_v8 = vld [vmem:[#allocation3 + $0x1c] ss:$2 sm:$0xff]  ;;  %v2664_v55 = vmax.f32 %v2662_v50, 0.0 }
  0xd8   :  { %2238 = vst.msk [vmem:[#allocation3 + $0x30] sm:$0xff] %vm1447_vm2, %v2042_v6  ;;  %v1225_v10 = vpop.f32.mrf.mxu3  ;;  %v2436_v11 = vmax.f32 %v2429_v7, %v2433_v8  ;;  %v70_v43 = vld [vmem:[%s11145_s0 + $0xf8] sm:$0xff] }
  0xd9   :  { %v1226_v12 = vadd.f32 %v8224_v42, %v1225_v10  ;;  %2666 = vst.msk [vmem:[#allocation4 + $0xe8] sm:$0x3f] %vm2441_vm3, %v2664_v55 }
  0xda   :  { %v1960_v13 = vld [vmem:[#allocation2 + $0x3c1] sm:$0xff]  ;;  %v886_v14 = vpop.f32.mrf.mxu0  ;;  %v2438_v17 = vmax.f32 %v2436_v11, 0.0 }
  0xdb   :  { %v2156_v18 = vmax.f32 %v1764_v9, %v1960_v13  ;;  %1570 = vst.msk [vmem:[#allocation2 + $0x3d0] sm:$0xff] %vm1447_vm2, %v1226_v12  ;;  %v887_v19 = vadd.f32 %v8224_v42, %v886_v14  ;;  %v1765_v25 = vld [vmem:[#allocation2 + $0x3c8] sm:$0xff] }
  0xdc   :  { %2440 = vst.msk [vmem:[#allocation4] sm:$0xff] %vm1447_vm2, %v2438_v17  ;;  %v68_v14 = vld [vmem:[%s11145_s0 + $0xe8] sm:$0xff] }
  0xdd   :  { %2352 = vst.msk [vmem:[#allocation3 + $0x3c0] sm:$0xff] %vm1447_vm2, %v2156_v18  ;;  %v1847_v21 = vld [vmem:[#allocation2 + $0x39] sm:$0xff]  ;;  %7478 = vmatmul.msk.f32.gmra.mxu0 %vm249_vm1, %v64_v15  ;;  %7592 = vmatmul.msk.f32.gmra.mxu3 %vm249_vm1, %v178_v16 }
  0xde   :  { %v2043_v22 = vmax.f32 %v1651_v20, %v1847_v21  ;;  %1457 = vst.msk [vmem:[#allocation2 + $0x48] sm:$0xff] %vm1447_vm2, %v887_v19  ;;  %v1652_v37 = vld [vmem:[#allocation2 + $0x40] sm:$0xff]  ;;  %v182_v15 = vld [vmem:[%s11145_s0 + $0x478] sm:$0xff] }
  0xdf   :  { %v2435_v24 = vld [vmem:[#allocation3 + $0x2c] ss:$2 sm:$0x3f] }
  0xe0   :  { %2239 = vst.msk [vmem:[#allocation3 + $0x38] sm:$0xff] %vm1447_vm2, %v2043_v22  ;;  %v1228_v26 = vpop.f32.mrf.mxu3  ;;  %v2437_v27 = vmax.f32 %v2431_v23, %v2435_v24  ;;  %v69_v24 = vld [vmem:[%s11145_s0 + $0xf0] sm:$0xff] }
  0xe1   :  { %v1229_v28 = vadd.f32 %v8224_v42, %v1228_v26 }
  0xe2   :  { %v1961_v29 = vld [vmem:[#allocation2 + $0x3c9] sm:$0xff]  ;;  %v889_v30 = vpop.f32.mrf.mxu0  ;;  %v2439_v33 = vmax.f32 %v2437_v27, 0.0  ;;  %v183_v27 = vld [vmem:[%s11145_s0 + $0x480] sm:$0xff] }
  0xe3   :  { %v2157_v34 = vmax.f32 %v1765_v25, %v1961_v29  ;;  %1571 = vst.msk [vmem:[#allocation2 + $0x3d8] sm:$0xff] %vm1447_vm2, %v1229_v28  ;;  %v890_v35 = vadd.f32 %v8224_v42, %v889_v30  ;;  %v2829_v36 = vld [vmem:[#allocation4] sm:$0xff]  ;;  %v1766_v40 = vld [vmem:[#allocation2 + $0x3d0] sm:$0xff] }
  0xe4   :  { %2442 = vst.msk [vmem:[#allocation4 + $0x8] sm:$0x3f] %vm2441_vm3, %v2439_v33  ;;  %v2668_v28 = vld [vmem:[#allocation3 + $0x3b8] ss:$2 sm:$0xff] }
  0xe5   :  { %2353 = vst.msk [vmem:[#allocation3 + $0x3c8] sm:$0xff] %vm1447_vm2, %v2157_v34  ;;  %v1848_v38 = vld [vmem:[#allocation2 + $0x41] sm:$0xff]  ;;  %7479 = vmatmul.msk.f32.gmra.mxu0 %vm249_vm1, %v65_v31  ;;  %7593 = vmatmul.msk.f32.gmra.mxu3 %vm249_vm1, %v179_v32 }
  0xe6   :  { %v2044_v39 = vmax.f32 %v1652_v37, %v1848_v38  ;;  %1458 = vst.msk [vmem:[#allocation2 + $0x50] sm:$0xff] %vm1447_vm2, %v890_v35  ;;  %v1653_v56 = vld [vmem:[#allocation2 + $0x48] sm:$0xff] }
  0xe7   :  { %2885 = vst.msk [vmem:[#allocation5] sm:$0xff] %vm1447_vm2, %v2829_v36 }
  0xe8   :  { %2240 = vst.msk [vmem:[#allocation3 + $0x40] sm:$0xff] %vm1447_vm2, %v2044_v39  ;;  %v1231_v41 = vpop.f32.mrf.mxu3 }
  0xe9   :  { %v1232_v44 = vadd.f32 %v8224_v42, %v1231_v41 }
  0xea   :  { %v1962_v46 = vld [vmem:[#allocation2 + $0x3d1] sm:$0xff]  ;;  %v892_v47 = vpop.f32.mrf.mxu0 }
  0xeb   :  { %v2158_v51 = vmax.f32 %v1766_v40, %v1962_v46  ;;  %1572 = vst.msk [vmem:[#allocation2 + $0x3e0] sm:$0xff] %vm1447_vm2, %v1232_v44  ;;  %v893_v52 = vadd.f32 %v8224_v42, %v892_v47  ;;  %v3615_v53 = vld [vmem:[#allocation4 + $0x3] sm:$0xff]  ;;  %v1767_v59 = vld [vmem:[#allocation2 + $0x3d8] sm:$0xff] }
  0xec   :  { %v2941_v54 = vld [vmem:[#allocation4 + $0x1] sm:$0xff]  ;;  %3727 = vrot.lane.b32.xlu1 %v3615_v53, %s7990_s12 }
  0xed   :  { %3053 = vrot.lane.b32.xlu0 %v2941_v54, %s7991_s13  ;;  %2354 = vst.msk [vmem:[#allocation3 + $0x3d0] sm:$0xff] %vm1447_vm2, %v2158_v51  ;;  %v1849_v57 = vld [vmem:[#allocation2 + $0x49] sm:$0xff]  ;;  %7480 = vmatmul.msk.f32.gmra.mxu0 %vm249_vm1, %v66_v48 }
  0xee   :  { %7594 = vmatmul.msk.f32.gmra.mxu3 %vm249_vm1, %v180_v49  ;;  %v2045_v58 = vmax.f32 %v1653_v56, %v1849_v57  ;;  %1459 = vst.msk [vmem:[#allocation2 + $0x58] sm:$0xff] %vm1447_vm2, %v893_v52  ;;  %v3952_v4 = vld [vmem:[#allocation4 + $0x4] sm:$0xff]  ;;  %v1654_v6 = vld [vmem:[#allocation2 + $0x50] sm:$0xff] }
  0xef   :  { %v3278_v5 = vld [vmem:[#allocation4 + $0x2] sm:$0xff] }
  0xf0   :  { %2241 = vst.msk [vmem:[#allocation3 + $0x48] sm:$0xff] %vm1447_vm2, %v2045_v58  ;;  %v1234_v60 = vpop.f32.mrf.mxu3  ;;  %v184_v44 = vld [vmem:[%s11145_s0 + $0x488] sm:$0xff]  ;;  %v2444_v51 = vld [vmem:[#allocation3 + $0x38] ss:$2 sm:$0xff] }
  0xf1   :  { %v1235_v61 = vadd.f32 %v8224_v42, %v1234_v60 }
  0xf2   :  { %v1963_v62 = vld [vmem:[#allocation2 + $0x3d9] sm:$0xff]  ;;  %v895_v63 = vpop.f32.mrf.mxu0 }
  0xf3   :  { %v2159_v2 = vmax.f32 %v1767_v59, %v1963_v62  ;;  %1573 = vst.msk [vmem:[#allocation2 + $0x3e8] sm:$0xff] %vm1447_vm2, %v1235_v61  ;;  %v896_v3 = vadd.f32 %v8224_v42, %v895_v63  ;;  %v1768_v9 = vld [vmem:[#allocation2 + $0x3e0] sm:$0xff]  ;;  %v185_v62 = vld [vmem:[%s11145_s0 + $0x490] sm:$0xff] }
  0xf4   :  { %4064 = vrot.lane.b32.xlu1 %v3952_v4, %s7992_s18  ;;  %v71_v61 = vld [vmem:[%s11145_s0 + $0x100] sm:$0xff] }
  0xf5   :  { %3390 = vrot.lane.b32.xlu0 %v3278_v5, %s7993_s19  ;;  %2355 = vst.msk [vmem:[#allocation3 + $0x3d8] sm:$0xff] %vm1447_vm2, %v2159_v2  ;;  %v1850_v7 = vld [vmem:[#allocation2 + $0x51] sm:$0xff]  ;;  %7481 = vmatmul.msk.f32.gmra.mxu0 %vm249_vm1, %v67_v0 }
  0xf6   :  { %7595 = vmatmul.msk.f32.gmra.mxu3 %vm249_vm1, %v181_v1  ;;  %v2046_v8 = vmax.f32 %v1654_v6, %v1850_v7  ;;  %1460 = vst.msk [vmem:[#allocation2 + $0x60] sm:$0xff] %vm1447_vm2, %v896_v3  ;;  %v1655_v18 = vld [vmem:[#allocation2 + $0x58] sm:$0xff] }
  0xf8   :  { %2242 = vst.msk [vmem:[#allocation3 + $0x50] sm:$0xff] %vm1447_vm2, %v2046_v8  ;;  %v1237_v10 = vpop.f32.mrf.mxu3 }
  0xf9   :  { %v1238_v11 = vadd.f32 %v8224_v42, %v1237_v10 }
  0xfa   :  { %v1964_v12 = vld [vmem:[#allocation2 + $0x3e1] sm:$0xff]  ;;  %v898_v13 = vpop.f32.mrf.mxu0 }
  0xfb   :  { %v2160_v16 = vmax.f32 %v1768_v9, %v1964_v12  ;;  %1574 = vst.msk [vmem:[#allocation2 + $0x3f0] sm:$0xff] %vm1447_vm2, %v1238_v11  ;;  %v899_v17 = vadd.f32 %v8224_v42, %v898_v13  ;;  %v1769_v21 = vld [vmem:[#allocation2 + $0x3e8] sm:$0xff] }
  0xfc   :  { %v72_v13 = vld [vmem:[%s11145_s0 + $0x108] sm:$0xff] }
  0xfd   :  { %2356 = vst.msk [vmem:[#allocation3 + $0x3e0] sm:$0xff] %vm1447_vm2, %v2160_v16  ;;  %v1851_v19 = vld [vmem:[#allocation2 + $0x59] sm:$0xff]  ;;  %7482 = vmatmul.msk.f32.gmra.mxu0 %vm249_vm1, %v68_v14 }
  0xfe   :  { %7596 = vmatmul.msk.f32.gmra.mxu3 %vm249_vm1, %v182_v15  ;;  %v2047_v20 = vmax.f32 %v1655_v18, %v1851_v19  ;;  %1461 = vst.msk [vmem:[#allocation2 + $0x68] sm:$0xff] %vm1447_vm2, %v899_v17  ;;  %v1656_v32 = vld [vmem:[#allocation2 + $0x60] sm:$0xff]  ;;  %v186_v14 = vld [vmem:[%s11145_s0 + $0x498] sm:$0xff] }
  0xff   :  { %v2446_v5 = vld [vmem:[#allocation3 + $0x48] ss:$2 sm:$0x3f] }
 0x100   :  { %2243 = vst.msk [vmem:[#allocation3 + $0x58] sm:$0xff] %vm1447_vm2, %v2047_v20  ;;  %v1240_v22 = vpop.f32.mrf.mxu3 }
 0x101   :  { %v1241_v23 = vadd.f32 %v8224_v42, %v1240_v22 }
 0x102   :  { %v1965_v25 = vld [vmem:[#allocation2 + $0x3e9] sm:$0xff]  ;;  %v901_v26 = vpop.f32.mrf.mxu0 }
 0x103   :  { %v2161_v29 = vmax.f32 %v1769_v21, %v1965_v25  ;;  %1575 = vst.msk [vmem:[#allocation2 + $0x3f8] sm:$0xff] %vm1447_vm2, %v1241_v23  ;;  %v902_v30 = vadd.f32 %v8224_v42, %v901_v26  ;;  %v1770_v37 = vld [vmem:[#allocation2 + $0x3f0] sm:$0xff] }
 0x104   :  { %v2672_v31 = vld [vmem:[#allocation3 + $0x3d4] ss:$2 sm:$0xff] }
 0x105   :  { %2357 = vst.msk [vmem:[#allocation3 + $0x3e8] sm:$0xff] %vm1447_vm2, %v2161_v29  ;;  %v1852_v33 = vld [vmem:[#allocation2 + $0x61] sm:$0xff]  ;;  %7483 = vmatmul.msk.f32.gmra.mxu0 %vm249_vm1, %v69_v24  ;;  %v2675_v34 = vmax.f32 %v2668_v28, %v2672_v31  ;;  %v73_v31 = vld [vmem:[%s11145_s0 + $0x110] sm:$0xff] }
 0x106   :  { %7597 = vmatmul.msk.f32.gmra.mxu3 %vm249_vm1, %v183_v27  ;;  %v2048_v35 = vmax.f32 %v1656_v32, %v1852_v33  ;;  %1462 = vst.msk [vmem:[#allocation2 + $0x70] sm:$0xff] %vm1447_vm2, %v902_v30  ;;  %v1657_v47 = vld [vmem:[#allocation2 + $0x68] sm:$0xff]  ;;  %v187_v32 = vld [vmem:[%s11145_s0 + $0x4a0] sm:$0xff] }
 0x107   :  { %v2677_v36 = vmax.f32 %v2675_v34, 0.0 }
 0x108   :  { %2244 = vst.msk [vmem:[#allocation3 + $0x60] sm:$0xff] %vm1447_vm2, %v2048_v35  ;;  %v1243_v38 = vpop.f32.mrf.mxu3 }
 0x109   :  { %v1244_v39 = vadd.f32 %v8224_v42, %v1243_v38  ;;  %2679 = vst.msk [vmem:[#allocation4 + $0xee] sm:$0xff] %vm1447_vm2, %v2677_v36 }
 0x10a   :  { %v1966_v40 = vld [vmem:[#allocation2 + $0x3f1] sm:$0xff]  ;;  %v904_v41 = vpop.f32.mrf.mxu0 }
 0x10b   :  { %v2162_v45 = vmax.f32 %v1770_v37, %v1966_v40  ;;  %1576 = vst.msk [vmem:[#allocation2 + $0x400] sm:$0xff] %vm1447_vm2, %v1244_v39  ;;  %v905_v46 = vadd.f32 %v8224_v42, %v904_v41  ;;  %v1771_v50 = vld [vmem:[#allocation2 + $0x3f8] sm:$0xff] }
 0x10d   :  { %2358 = vst.msk [vmem:[#allocation3 + $0x3f0] sm:$0xff] %vm1447_vm2, %v2162_v45  ;;  %v1853_v48 = vld [vmem:[#allocation2 + $0x69] sm:$0xff]  ;;  %7484 = vmatmul.msk.f32.gmra.mxu0 %vm249_vm1, %v70_v43 }
 0x10e   :  { %7598 = vmatmul.msk.f32.gmra.mxu3 %vm249_vm1, %v184_v44  ;;  %v2049_v49 = vmax.f32 %v1657_v47, %v1853_v48  ;;  %1463 = vst.msk [vmem:[#allocation2 + $0x78] sm:$0xff] %vm1447_vm2, %v905_v46  ;;  %v1658_v2 = vld [vmem:[#allocation2 + $0x70] sm:$0xff]  ;;  %v74_v48 = vld [vmem:[%s11145_s0 + $0x118] sm:$0xff] }
 0x10f   :  { %v2448_v52 = vld [vmem:[#allocation3 + $0x54] ss:$2 sm:$0xff] }
 0x110   :  { %2245 = vst.msk [vmem:[#allocation3 + $0x68] sm:$0xff] %vm1447_vm2, %v2049_v49  ;;  %v1246_v53 = vpop.f32.mrf.mxu3  ;;  %v2970_v54 = vld [vmem:[#allocation4 + $0xe9] sm:$0xff]  ;;  %v2451_v57 = vmax.f32 %v2444_v51, %v2448_v52 }
 0x111   :  { %v3644_v55 = vld [vmem:[#allocation4 + $0xeb] sm:$0xff]  ;;  %v1247_v58 = vadd.f32 %v8224_v42, %v1246_v53  ;;  %3111 = vrot.lane.b32.xlu2 %v2970_v54, %s7991_s13 }
 0x112   :  { %v3307_v56 = vld [vmem:[#allocation4 + $0xea] sm:$0xff]  ;;  %3785 = vrot.lane.b32.xlu1 %v3644_v55, %s7990_s12  ;;  %v1967_v59 = vld [vmem:[#allocation2 + $0x3f9] sm:$0xff]  ;;  %v907_v60 = vpop.f32.mrf.mxu0  ;;  %v2453_v63 = vmax.f32 %v2451_v57, 0.0 }
 0x113   :  { %3448 = vrot.lane.b32.xlu0 %v3307_v56, %s7993_s19  ;;  %v2163_v0 = vmax.f32 %v1771_v50, %v1967_v59  ;;  %1577 = vst.msk [vmem:[#allocation2 + $0x408] sm:$0xff] %vm1447_vm2, %v1247_v58  ;;  %v908_v1 = vadd.f32 %v8224_v42, %v907_v60  ;;  %v1772_v7 = vld [vmem:[#allocation2 + $0x400] sm:$0xff]  ;;  %v2858_v24 = vld [vmem:[#allocation4 + $0xe8] sm:$0xff] }
 0x114   :  { %2455 = vst.msk [vmem:[#allocation4 + $0xe] sm:$0xff] %vm1447_vm2, %v2453_v63  ;;  %v188_v52 = vld [vmem:[%s11145_s0 + $0x4a8] sm:$0xff] }
 0x115   :  { %2359 = vst.msk [vmem:[#allocation3 + $0x3f8] sm:$0xff] %vm1447_vm2, %v2163_v0  ;;  %v1854_v3 = vld [vmem:[#allocation2 + $0x71] sm:$0xff]  ;;  %7485 = vmatmul.msk.f32.gmra.mxu0 %vm249_vm1, %v71_v61  ;;  %v75_v61 = vld [vmem:[%s11145_s0 + $0x120] sm:$0xff] }
 0x116   :  { %7599 = vmatmul.msk.f32.gmra.mxu3 %vm249_vm1, %v185_v62  ;;  %v2050_v4 = vmax.f32 %v1658_v2, %v1854_v3  ;;  %1464 = vst.msk [vmem:[#allocation2 + $0x80] sm:$0xff] %vm1447_vm2, %v908_v1  ;;  %v1659_v21 = vld [vmem:[#allocation2 + $0x78] sm:$0xff]  ;;  %v189_v1 = vld [vmem:[%s11145_s0 + $0x4b0] sm:$0xff] }
 0x117   :  { %v2450_v6 = vld [vmem:[#allocation3 + $0x64] ss:$2 sm:$0x3f]  ;;  %2914 = vst.msk [vmem:[#allocation5 + $0xe8] sm:$0xff] %vm1447_vm2, %v2858_v24 }
 0x118   :  { %2246 = vst.msk [vmem:[#allocation3 + $0x70] sm:$0xff] %vm1447_vm2, %v2050_v4  ;;  %v1249_v8 = vpop.f32.mrf.mxu3  ;;  %v2452_v9 = vmax.f32 %v2446_v5, %v2450_v6 }
 0x119   :  { %v1250_v10 = vadd.f32 %v8224_v42, %v1249_v8 }
 0x11a   :  { %v1968_v11 = vld [vmem:[#allocation2 + $0x401] sm:$0xff]  ;;  %v910_v12 = vpop.f32.mrf.mxu0  ;;  %v2454_v15 = vmax.f32 %v2452_v9, 0.0 }
 0x11b   :  { %v2164_v16 = vmax.f32 %v1772_v7, %v1968_v11  ;;  %1578 = vst.msk [vmem:[#allocation2 + $0x410] sm:$0xff] %vm1447_vm2, %v1250_v10  ;;  %v911_v17 = vadd.f32 %v8224_v42, %v910_v12  ;;  %v2942_v18 = vld [vmem:[#allocation4 + $0x9] sm:$0xff] }
 0x11c   :  { %v3953_v19 = vld [vmem:[#allocation4 + $0xc] sm:$0xff]  ;;  %3055 = vrot.lane.b32.xlu2 %v2942_v18, %s7991_s13  ;;  %2456 = vst.msk [vmem:[#allocation4 + $0x16] sm:$0x3f] %vm2441_vm3, %v2454_v15 }
 0x11d   :  { %v3616_v20 = vld [vmem:[#allocation4 + $0xb] sm:$0xff]  ;;  %4066 = vrot.lane.b32.xlu1 %v3953_v19, %s7992_s18  ;;  %2360 = vst.msk [vmem:[#allocation3 + $0x400] sm:$0xff] %vm1447_vm2, %v2164_v16  ;;  %v1855_v22 = vld [vmem:[#allocation2 + $0x79] sm:$0xff]  ;;  %7486 = vmatmul.msk.f32.gmra.mxu0 %vm249_vm1, %v72_v13 }
 0x11e   :  { %3729 = vrot.lane.b32.xlu0 %v3616_v20, %s7990_s12  ;;  %v2051_v23 = vmax.f32 %v1659_v21, %v1855_v22  ;;  %1465 = vst.msk [vmem:[#allocation2 + $0x88] sm:$0xff] %vm1447_vm2, %v911_v17  ;;  %7600 = vmatmul.msk.f32.gmra.mxu3 %vm249_vm1, %v186_v14  ;;  %v2830_v25 = vld [vmem:[#allocation4 + $0x8] sm:$0xff]  ;;  %v1660_v39 = vld [vmem:[#allocation2 + $0x80] sm:$0xff]  ;;  %v190_v13 = vld [vmem:[%s11145_s0 + $0x4b8] sm:$0xff] }
 0x11f   :  { %v1773_v26 = vld [vmem:[#allocation2 + $0x408] sm:$0xff]  ;;  %2886 = vst.msk [vmem:[#allocation5 + $0x8] sm:$0xff] %vm1447_vm2, %v2830_v25  ;;  %v77_v22 = vld [vmem:[%s11145_s0 + $0x130] sm:$0xff]  ;;  %v191_v25 = vld [vmem:[%s11145_s0 + $0x4c0] sm:$0xff] }
 0x120   :  { %2247 = vst.msk [vmem:[#allocation3 + $0x78] sm:$0xff] %vm1447_vm2, %v2051_v23  ;;  %v1252_v27 = vpop.f32.mrf.mxu3  ;;  %v3279_v35 = vld [vmem:[#allocation4 + $0xa] sm:$0xff] }
 0x121   :  { %v1253_v28 = vadd.f32 %v8224_v42, %v1252_v27  ;;  %v76_v10 = vld [vmem:[%s11145_s0 + $0x128] sm:$0xff] }
 0x122   :  { %v1969_v29 = vld [vmem:[#allocation2 + $0x409] sm:$0xff]  ;;  %v913_v30 = vpop.f32.mrf.mxu0 }
 0x123   :  { %v2165_v33 = vmax.f32 %v1773_v26, %v1969_v29  ;;  %1579 = vst.msk [vmem:[#allocation2 + $0x418] sm:$0xff] %vm1447_vm2, %v1253_v28  ;;  %v914_v34 = vadd.f32 %v8224_v42, %v913_v30  ;;  %v3617_v36 = vld [vmem:[#allocation4 + $0x13] sm:$0xff] }
 0x124   :  { %v3280_v37 = vld [vmem:[#allocation4 + $0x12] sm:$0xff]  ;;  %3392 = vrot.lane.b32.xlu2 %v3279_v35, %s7993_s19 }
 0x125   :  { %3731 = vrot.lane.b32.xlu1 %v3617_v36, %s7990_s12  ;;  %v2831_v38 = vld [vmem:[#allocation4 + $0x10] sm:$0xff]  ;;  %2361 = vst.msk [vmem:[#allocation3 + $0x408] sm:$0xff] %vm1447_vm2, %v2165_v33  ;;  %v1856_v40 = vld [vmem:[#allocation2 + $0x81] sm:$0xff]  ;;  %7487 = vmatmul.msk.f32.gmra.mxu0 %vm249_vm1, %v73_v31 }
 0x126   :  { %3394 = vrot.lane.b32.xlu0 %v3280_v37, %s7993_s19  ;;  %v2052_v41 = vmax.f32 %v1660_v39, %v1856_v40  ;;  %1466 = vst.msk [vmem:[#allocation2 + $0x90] sm:$0xff] %vm1447_vm2, %v914_v34  ;;  %7601 = vmatmul.msk.f32.gmra.mxu3 %vm249_vm1, %v187_v32  ;;  %v1774_v43 = vld [vmem:[#allocation2 + $0x410] sm:$0xff]  ;;  %v1661_v53 = vld [vmem:[#allocation2 + $0x88] sm:$0xff]  ;;  %v78_v37 = vld [vmem:[%s11145_s0 + $0x138] sm:$0xff] }
 0x127   :  { %2887 = vst.msk [vmem:[#allocation5 + $0x10] sm:$0xff] %vm1447_vm2, %v2831_v38  ;;  %v2943_v51 = vld [vmem:[#allocation4 + $0x11] sm:$0xff] }
 0x128   :  { %2248 = vst.msk [vmem:[#allocation3 + $0x80] sm:$0xff] %vm1447_vm2, %v2052_v41  ;;  %v1255_v44 = vpop.f32.mrf.mxu3  ;;  %v3954_v0 = vld [vmem:[#allocation4 + $0x14] sm:$0xff]  ;;  %v192_v41 = vld [vmem:[%s11145_s0 + $0x4c8] sm:$0xff] }
 0x129   :  { %v1256_v45 = vadd.f32 %v8224_v42, %v1255_v44  ;;  %v2458_v29 = vld [vmem:[#allocation3 + $0x70] ss:$2 sm:$0xff] }
 0x12a   :  { %v1970_v46 = vld [vmem:[#allocation2 + $0x411] sm:$0xff]  ;;  %v916_v47 = vpop.f32.mrf.mxu0 }
 0x12b   :  { %v2166_v49 = vmax.f32 %v1774_v43, %v1970_v46  ;;  %1580 = vst.msk [vmem:[#allocation2 + $0x420] sm:$0xff] %vm1447_vm2, %v1256_v45  ;;  %v917_v50 = vadd.f32 %v8224_v42, %v916_v47  ;;  %v1775_v56 = vld [vmem:[#allocation2 + $0x418] sm:$0xff]  ;;  %v4340_v47 = vld [vmem:[%s11148_s3 + $0x10] sm:$0xff] }
 0x12c   :  { %3057 = vrot.lane.b32.xlu2 %v2943_v51, %s7991_s13  ;;  %v4341_v43 = vld [vmem:[%s11148_s3 + $0x18] sm:$0x3f] }
 0x12d   :  { %2362 = vst.msk [vmem:[#allocation3 + $0x410] sm:$0xff] %vm1447_vm2, %v2166_v49  ;;  %v1857_v54 = vld [vmem:[#allocation2 + $0x89] sm:$0xff]  ;;  %7488 = vmatmul.msk.f32.gmra.mxu0 %vm249_vm1, %v74_v48  ;;  %7649 = vmatpush.msk.msra.mxu1 %vm4494_vm4, %v4341_v43 }
 0x12e   :  { %v2053_v55 = vmax.f32 %v1661_v53, %v1857_v54  ;;  %1467 = vst.msk [vmem:[#allocation2 + $0x98] sm:$0xff] %vm1447_vm2, %v917_v50  ;;  %7602 = vmatmul.msk.f32.gmra.mxu3 %vm249_vm1, %v188_v52  ;;  %v1662_v2 = vld [vmem:[#allocation2 + $0x90] sm:$0xff]  ;;  %7929 = vmatpush.msk.msra.mxu2 %vm4494_vm4, %v4341_v43  ;;  %v4339_v53 = vld [vmem:[%s11148_s3 + $0x8] sm:$0xff] }
 0x12f   :  { %4511 = vmatpush.msra.mxu1 %v4340_v47 }
 0x130   :  { %2249 = vst.msk [vmem:[#allocation3 + $0x88] sm:$0xff] %vm1447_vm2, %v2053_v55  ;;  %v1258_v57 = vpop.f32.mrf.mxu3  ;;  %7930 = vmatpush.msra.mxu2 %v4340_v47  ;;  %v79_v55 = vld [vmem:[%s11145_s0 + $0x140] sm:$0xff] }
 0x131   :  { %v1259_v58 = vadd.f32 %v8224_v42, %v1258_v57  ;;  %4512 = vmatpush.msra.mxu1 %v4339_v53 }
 0x132   :  { %v1971_v59 = vld [vmem:[#allocation2 + $0x419] sm:$0xff]  ;;  %v919_v60 = vpop.f32.mrf.mxu0  ;;  %7931 = vmatpush.msra.mxu2 %v4339_v53 }
 0x133   :  { %v2167_v62 = vmax.f32 %v1775_v56, %v1971_v59  ;;  %1581 = vst.msk [vmem:[#allocation2 + $0x428] sm:$0xff] %vm1447_vm2, %v1259_v58  ;;  %v920_v63 = vadd.f32 %v8224_v42, %v919_v60  ;;  %v1776_v5 = vld [vmem:[#allocation2 + $0x420] sm:$0xff]  ;;  %v193_v58 = vld [vmem:[%s11145_s0 + $0x4d0] sm:$0xff] }
 0x134   :  { %4068 = vrot.lane.b32.xlu2 %v3954_v0, %s7992_s18  ;;  %v4338_v60 = vld [vmem:[%s11148_s3] sm:$0xff] }
 0x135   :  { %2363 = vst.msk [vmem:[#allocation3 + $0x418] sm:$0xff] %vm1447_vm2, %v2167_v62  ;;  %v1858_v3 = vld [vmem:[#allocation2 + $0x91] sm:$0xff]  ;;  %7489 = vmatmul.msk.f32.gmra.mxu0 %vm249_vm1, %v75_v61  ;;  %4513 = vmatpush.msra.mxu1 %v4338_v60 }
 0x136   :  { %v2054_v4 = vmax.f32 %v1662_v2, %v1858_v3  ;;  %1468 = vst.msk [vmem:[#allocation2 + $0xa0] sm:$0xff] %vm1447_vm2, %v920_v63  ;;  %7603 = vmatmul.msk.f32.gmra.mxu3 %vm249_vm1, %v189_v1  ;;  %v1663_v14 = vld [vmem:[#allocation2 + $0x98] sm:$0xff]  ;;  %7932 = vmatpush.msra.mxu2 %v4338_v60 }
 0x137   :  { %v2460_v48 = vld [vmem:[#allocation3 + $0x80] ss:$2 sm:$0x3f] }
 0x138   :  { %2250 = vst.msk [vmem:[#allocation3 + $0x90] sm:$0xff] %vm1447_vm2, %v2054_v4  ;;  %v1261_v6 = vpop.f32.mrf.mxu3 }
 0x139   :  { %v1262_v7 = vadd.f32 %v8224_v42, %v1261_v6 }
 0x13a   :  { %v1972_v8 = vld [vmem:[#allocation2 + $0x421] sm:$0xff]  ;;  %v922_v9 = vpop.f32.mrf.mxu0 }
 0x13b   :  { %v2168_v11 = vmax.f32 %v1776_v5, %v1972_v8  ;;  %1582 = vst.msk [vmem:[#allocation2 + $0x430] sm:$0xff] %vm1447_vm2, %v1262_v7  ;;  %v923_v12 = vadd.f32 %v8224_v42, %v922_v9  ;;  %v1777_v17 = vld [vmem:[#allocation2 + $0x428] sm:$0xff] }
 0x13d   :  { %2364 = vst.msk [vmem:[#allocation3 + $0x420] sm:$0xff] %vm1447_vm2, %v2168_v11  ;;  %v1859_v15 = vld [vmem:[#allocation2 + $0x99] sm:$0xff]  ;;  %7490 = vmatmul.msk.f32.gmra.mxu0 %vm249_vm1, %v76_v10  ;;  %v80_v11 = vld [vmem:[%s11145_s0 + $0x148] sm:$0xff] }
 0x13e   :  { %v2055_v16 = vmax.f32 %v1663_v14, %v1859_v15  ;;  %1469 = vst.msk [vmem:[#allocation2 + $0xa8] sm:$0xff] %vm1447_vm2, %v923_v12  ;;  %7604 = vmatmul.msk.f32.gmra.mxu3 %vm249_vm1, %v190_v13  ;;  %v1664_v26 = vld [vmem:[#allocation2 + $0xa0] sm:$0xff]  ;;  %v194_v15 = vld [vmem:[%s11145_s0 + $0x4d8] sm:$0xff] }
 0x140   :  { %2251 = vst.msk [vmem:[#allocation3 + $0x98] sm:$0xff] %vm1447_vm2, %v2055_v16  ;;  %v1264_v18 = vpop.f32.mrf.mxu3 }
 0x141   :  { %v1265_v19 = vadd.f32 %v8224_v42, %v1264_v18 }
 0x142   :  { %v1973_v20 = vld [vmem:[#allocation2 + $0x429] sm:$0xff]  ;;  %v925_v21 = vpop.f32.mrf.mxu0 }
 0x143   :  { %v2169_v23 = vmax.f32 %v1777_v17, %v1973_v20  ;;  %1583 = vst.msk [vmem:[#allocation2 + $0x438] sm:$0xff] %vm1447_vm2, %v1265_v19  ;;  %v926_v24 = vadd.f32 %v8224_v42, %v925_v21  ;;  %v1778_v31 = vld [vmem:[#allocation2 + $0x430] sm:$0xff] }
 0x145   :  { %2365 = vst.msk [vmem:[#allocation3 + $0x428] sm:$0xff] %vm1447_vm2, %v2169_v23  ;;  %v1860_v27 = vld [vmem:[#allocation2 + $0xa1] sm:$0xff]  ;;  %7491 = vmatmul.msk.f32.gmra.mxu0 %vm249_vm1, %v77_v22 }
 0x146   :  { %v2056_v28 = vmax.f32 %v1664_v26, %v1860_v27  ;;  %1470 = vst.msk [vmem:[#allocation2 + $0xb0] sm:$0xff] %vm1447_vm2, %v926_v24  ;;  %7605 = vmatmul.msk.f32.gmra.mxu3 %vm249_vm1, %v191_v25  ;;  %v1665_v44 = vld [vmem:[#allocation2 + $0xa8] sm:$0xff] }
 0x147   :  { %v2462_v30 = vld [vmem:[#allocation3 + $0x8c] ss:$2 sm:$0xff] }
 0x148   :  { %2252 = vst.msk [vmem:[#allocation3 + $0xa0] sm:$0xff] %vm1447_vm2, %v2056_v28  ;;  %v1267_v32 = vpop.f32.mrf.mxu3  ;;  %v2465_v33 = vmax.f32 %v2458_v29, %v2462_v30  ;;  %v2670_v22 = vld [vmem:[#allocation3 + $0x3c8] ss:$2 sm:$0x3f] }
 0x149   :  { %v1268_v34 = vadd.f32 %v8224_v42, %v1267_v32  ;;  %v2674_v24 = vld [vmem:[#allocation3 + $0x3e4] ss:$2 sm:$0x3f] }
 0x14a   :  { %v1974_v35 = vld [vmem:[#allocation2 + $0x431] sm:$0xff]  ;;  %v928_v36 = vpop.f32.mrf.mxu0  ;;  %v2467_v38 = vmax.f32 %v2465_v33, 0.0  ;;  %v2676_v27 = vmax.f32 %v2670_v22, %v2674_v24 }
 0x14b   :  { %v2170_v39 = vmax.f32 %v1778_v31, %v1974_v35  ;;  %1584 = vst.msk [vmem:[#allocation2 + $0x440] sm:$0xff] %vm1447_vm2, %v1268_v34  ;;  %v929_v40 = vadd.f32 %v8224_v42, %v928_v36  ;;  %v1779_v50 = vld [vmem:[#allocation2 + $0x438] sm:$0xff]  ;;  %v81_v31 = vld [vmem:[%s11145_s0 + $0x150] sm:$0xff]  ;;  %v195_v35 = vld [vmem:[%s11145_s0 + $0x4e0] sm:$0xff] }
 0x14c   :  { %2469 = vst.msk [vmem:[#allocation4 + $0x1c] sm:$0xff] %vm1447_vm2, %v2467_v38  ;;  %v2678_v32 = vmax.f32 %v2676_v27, 0.0 }
 0x14d   :  { %2366 = vst.msk [vmem:[#allocation3 + $0x430] sm:$0xff] %vm1447_vm2, %v2170_v39  ;;  %v1861_v45 = vld [vmem:[#allocation2 + $0xa9] sm:$0xff]  ;;  %7492 = vmatmul.msk.f32.gmra.mxu0 %vm249_vm1, %v78_v37 }
 0x14e   :  { %v2057_v46 = vmax.f32 %v1665_v44, %v1861_v45  ;;  %1471 = vst.msk [vmem:[#allocation2 + $0xb8] sm:$0xff] %vm1447_vm2, %v929_v40  ;;  %7606 = vmatmul.msk.f32.gmra.mxu3 %vm249_vm1, %v192_v41  ;;  %v1666_v3 = vld [vmem:[#allocation2 + $0xb0] sm:$0xff] }
 0x14f   :  { %v2464_v49 = vld [vmem:[#allocation3 + $0x9c] ss:$2 sm:$0x3f]  ;;  %2680 = vst.msk [vmem:[#allocation4 + $0xf6] sm:$0x3f] %vm2441_vm3, %v2678_v32 }
 0x150   :  { %2253 = vst.msk [vmem:[#allocation3 + $0xa8] sm:$0xff] %vm1447_vm2, %v2057_v46  ;;  %v1270_v51 = vpop.f32.mrf.mxu3  ;;  %v2466_v52 = vmax.f32 %v2460_v48, %v2464_v49  ;;  %v82_v48 = vld [vmem:[%s11145_s0 + $0x158] sm:$0xff] }
 0x151   :  { %v1271_v54 = vadd.f32 %v8224_v42, %v1270_v51  ;;  %v8606_v42 = vld [vmem:[%s11147_s2] ss:$0 sm:$0xff]  ;;  %v196_v51 = vld [vmem:[%s11145_s0 + $0x4e8] sm:$0xff] }
 0x152   :  { %v1975_v56 = vld [vmem:[#allocation2 + $0x439] sm:$0xff]  ;;  %v931_v57 = vpop.f32.mrf.mxu0  ;;  %v2468_v59 = vmax.f32 %v2466_v52, 0.0 }
 0x153   :  { %v2171_v61 = vmax.f32 %v1779_v50, %v1975_v56  ;;  %1585 = vst.msk [vmem:[#allocation2 + $0x448] sm:$0xff] %vm1447_vm2, %v1271_v54  ;;  %v932_v62 = vadd.f32 %v8606_v42, %v931_v57  ;;  %v3618_v63 = vld [vmem:[#allocation4 + $0x1b] sm:$0xff] }
 0x154   :  { %v3281_v0 = vld [vmem:[#allocation4 + $0x1a] sm:$0xff]  ;;  %3733 = vrot.lane.b32.xlu2 %v3618_v63, %s7990_s12  ;;  %2470 = vst.msk [vmem:[#allocation4 + $0x24] sm:$0x3f] %vm2441_vm3, %v2468_v59 }
 0x155   :  { %v2944_v1 = vld [vmem:[#allocation4 + $0x19] sm:$0xff]  ;;  %3396 = vrot.lane.b32.xlu1 %v3281_v0, %s7993_s19  ;;  %2367 = vst.msk [vmem:[#allocation3 + $0x438] sm:$0xff] %vm1447_vm2, %v2171_v61  ;;  %v1862_v4 = vld [vmem:[#allocation2 + $0xb1] sm:$0xff]  ;;  %7493 = vmatmul.msk.f32.gmra.mxu0 %vm249_vm1, %v79_v55 }
 0x156   :  { %v2832_v2 = vld [vmem:[#allocation4 + $0x18] sm:$0xff]  ;;  %3059 = vrot.lane.b32.xlu0 %v2944_v1, %s7991_s13  ;;  %v2058_v5 = vmax.f32 %v1666_v3, %v1862_v4  ;;  %1472 = vst.msk [vmem:[#allocation2 + $0xc0] sm:$0xff] %vm1447_vm2, %v932_v62  ;;  %7607 = vmatmul.msk.f32.gmra.mxu3 %vm249_vm1, %v193_v58  ;;  %v1780_v6 = vld [vmem:[#allocation2 + $0x440] sm:$0xff]  ;;  %v2859_v53 = vld [vmem:[#allocation4 + $0xf0] sm:$0xff] }
 0x157   :  { %2888 = vst.msk [vmem:[#allocation5 + $0x18] sm:$0xff] %vm1447_vm2, %v2832_v2  ;;  %v3955_v17 = vld [vmem:[#allocation4 + $0x1c] sm:$0xff]  ;;  %v2686_v58 = vld [vmem:[#allocation3 + $0x40c] ss:$2 sm:$0xff] }
 0x158   :  { %2254 = vst.msk [vmem:[#allocation3 + $0xb0] sm:$0xff] %vm1447_vm2, %v2058_v5  ;;  %v1273_v7 = vpop.f32.mrf.mxu3  ;;  %v1667_v18 = vld [vmem:[#allocation2 + $0xb8] sm:$0xff]  ;;  %v83_v3 = vld [vmem:[%s11145_s0 + $0x160] sm:$0xff] }
 0x159   :  { %v1274_v8 = vadd.f32 %v8606_v42, %v1273_v7  ;;  %v2682_v57 = vld [vmem:[#allocation3 + $0x3f0] ss:$2 sm:$0xff]  ;;  %2915 = vst.msk [vmem:[#allocation5 + $0xf0] sm:$0xff] %vm1447_vm2, %v2859_v53 }
 0x15a   :  { %v1976_v9 = vld [vmem:[#allocation2 + $0x441] sm:$0xff]  ;;  %v934_v10 = vpop.f32.mrf.mxu0  ;;  %v2689_v59 = vmax.f32 %v2682_v57, %v2686_v58  ;;  %v86_v57 = vld [vmem:[%s11145_s0 + $0x178] sm:$0xff] }
 0x15b   :  { %v2172_v12 = vmax.f32 %v1780_v6, %v1976_v9  ;;  %1586 = vst.msk [vmem:[#allocation2 + $0x450] sm:$0xff] %vm1447_vm2, %v1274_v8  ;;  %v935_v13 = vadd.f32 %v8606_v42, %v934_v10  ;;  %v2945_v14 = vld [vmem:[#allocation4 + $0x21] sm:$0xff]  ;;  %v197_v6 = vld [vmem:[%s11145_s0 + $0x4f0] sm:$0xff] }
 0x15c   :  { %v2833_v16 = vld [vmem:[#allocation4 + $0x20] sm:$0xff]  ;;  %3061 = vrot.lane.b32.xlu2 %v2945_v14, %s7991_s13  ;;  %v1781_v25 = vld [vmem:[#allocation2 + $0x448] sm:$0xff]  ;;  %v2691_v0 = vmax.f32 %v2689_v59, 0.0 }
 0x15d   :  { %2889 = vst.msk [vmem:[#allocation5 + $0x20] sm:$0xff] %vm1447_vm2, %v2833_v16  ;;  %v1863_v19 = vld [vmem:[#allocation2 + $0xb9] sm:$0xff]  ;;  %7494 = vmatmul.msk.f32.gmra.mxu0 %vm249_vm1, %v80_v11  ;;  %v3282_v36 = vld [vmem:[#allocation4 + $0x22] sm:$0xff] }
 0x15e   :  { %2368 = vst.msk [vmem:[#allocation3 + $0x440] sm:$0xff] %vm1447_vm2, %v2172_v12  ;;  %4070 = vrot.lane.b32.xlu0 %v3955_v17, %s7992_s18  ;;  %v2059_v20 = vmax.f32 %v1667_v18, %v1863_v19  ;;  %7608 = vmatmul.msk.f32.gmra.mxu3 %vm249_vm1, %v194_v15  ;;  %v3728_v23 = vpop.permute.xlu1 %3727  ;;  %v1668_v37 = vld [vmem:[#allocation2 + $0xc0] sm:$0xff]  ;;  %v2696_v7 = vld [vmem:[#allocation3 + $0x428] ss:$2 sm:$0xff] }
 0x15f   :  { %1473 = vst.msk [vmem:[#allocation2 + $0xc8] sm:$0xff] %vm1447_vm2, %v935_v13  ;;  %v3054_v21 = vpop.permute.xlu0 %3053 }
 0x160   :  { %3222 = vst.msk [vmem:[#allocation5] sm:$0xff] %vm3221_vm5, %v3054_v21  ;;  %v1276_v26 = vpop.f32.mrf.mxu3 }
 0x161   :  { %2255 = vst.msk [vmem:[#allocation3 + $0xb8] sm:$0xff] %vm1447_vm2, %v2059_v20  ;;  %v1277_v28 = vadd.f32 %v8606_v42, %v1276_v26  ;;  %v84_v20 = vld [vmem:[%s11145_s0 + $0x168] sm:$0xff] }
 0x162   :  { %v1977_v29 = vld [vmem:[#allocation2 + $0x449] sm:$0xff]  ;;  %v937_v30 = vpop.f32.mrf.mxu0  ;;  %2693 = vst.msk [vmem:[#allocation4 + $0xfc] sm:$0xff] %vm1447_vm2, %v2691_v0 }
 0x163   :  { %v2173_v33 = vmax.f32 %v1781_v25, %v1977_v29  ;;  %1587 = vst.msk [vmem:[#allocation2 + $0x458] sm:$0xff] %vm1447_vm2, %v1277_v28  ;;  %v938_v34 = vadd.f32 %v8606_v42, %v937_v30  ;;  %v1782_v41 = vld [vmem:[#allocation2 + $0x450] sm:$0xff] }
 0x164   :  { %v2472_v29 = vld [vmem:[#allocation3 + $0xa8] ss:$2 sm:$0xff] }
 0x165   :  { %2369 = vst.msk [vmem:[#allocation3 + $0x448] sm:$0xff] %vm1447_vm2, %v2173_v33  ;;  %7495 = vmatmul.msk.f32.gmra.mxu0 %vm249_vm1, %v81_v31 }
 0x166   :  { %v1864_v38 = vld [vmem:[#allocation2 + $0xc1] sm:$0xff]  ;;  %3398 = vrot.lane.b32.xlu0 %v3282_v36, %s7993_s19  ;;  %1474 = vst.msk [vmem:[#allocation2 + $0xd0] sm:$0xff] %vm1447_vm2, %v938_v34  ;;  %7609 = vmatmul.msk.f32.gmra.mxu3 %vm249_vm1, %v195_v35  ;;  %v4065_v44 = vpop.permute.xlu1 %4064 }
 0x167   :  { %v2060_v39 = vmax.f32 %v1668_v37, %v1864_v38  ;;  %v3391_v40 = vpop.permute.xlu0 %3390  ;;  %v1669_v54 = vld [vmem:[#allocation2 + $0xc8] sm:$0xff]  ;;  %v85_v37 = vld [vmem:[%s11145_s0 + $0x170] sm:$0xff] }
 0x168   :  { %3559 = vst.msk [vmem:[#allocation5] sm:$0xff] %vm3558_vm6, %v3391_v40  ;;  %v1279_v43 = vpop.f32.mrf.mxu3 }
 0x169   :  { %2256 = vst.msk [vmem:[#allocation3 + $0xc0] sm:$0xff] %vm1447_vm2, %v2060_v39  ;;  %v1280_v45 = vadd.f32 %v8606_v42, %v1279_v43  ;;  %v2860_v28 = vld [vmem:[#allocation4 + $0xf8] sm:$0xff] }
 0x16a   :  { %3896 = vst.msk [vmem:[#allocation5] sm:$0xff] %vm3895_vm7, %v3728_v23  ;;  %v1978_v46 = vld [vmem:[#allocation2 + $0x451] sm:$0xff]  ;;  %v940_v47 = vpop.f32.mrf.mxu0 }
 0x16b   :  { %4233 = vst.msk [vmem:[#allocation5] sm:$0xff] %vm4232_vm8, %v4065_v44  ;;  %v2174_v49 = vmax.f32 %v1782_v41, %v1978_v46  ;;  %v941_v50 = vadd.f32 %v8606_v42, %v940_v47  ;;  %v3112_v52 = vpop.permute.xlu2 %3111  ;;  %v1783_v60 = vld [vmem:[#allocation2 + $0x458] sm:$0xff]  ;;  %v199_v41 = vld [vmem:[%s11145_s0 + $0x500] sm:$0xff] }
 0x16c   :  { %1588 = vst.msk [vmem:[#allocation2 + $0x460] sm:$0xff] %vm1447_vm2, %v1280_v45  ;;  %v198_v23 = vld [vmem:[%s11145_s0 + $0x4f8] sm:$0xff] }
 0x16d   :  { %3251 = vst.msk [vmem:[#allocation5 + $0xe8] sm:$0xff] %vm3221_vm5, %v3112_v52  ;;  %v1865_v55 = vld [vmem:[#allocation2 + $0xc9] sm:$0xff]  ;;  %7496 = vmatmul.msk.f32.gmra.mxu0 %vm249_vm1, %v82_v48 }
 0x16e   :  { %2370 = vst.msk [vmem:[#allocation3 + $0x450] sm:$0xff] %vm1447_vm2, %v2174_v49  ;;  %v2061_v56 = vmax.f32 %v1669_v54, %v1865_v55  ;;  %7610 = vmatmul.msk.f32.gmra.mxu3 %vm249_vm1, %v196_v51  ;;  %v1670_v9 = vld [vmem:[#allocation2 + $0xd0] sm:$0xff] }
 0x16f   :  { %1475 = vst.msk [vmem:[#allocation2 + $0xd8] sm:$0xff] %vm1447_vm2, %v941_v50 }
 0x170   :  { %2257 = vst.msk [vmem:[#allocation3 + $0xc8] sm:$0xff] %vm1447_vm2, %v2061_v56  ;;  %v2474_v49 = vld [vmem:[#allocation3 + $0xb8] ss:$2 sm:$0x3f] }
 0x171   :  { %v1282_v61 = vpop.f32.mrf.mxu3  ;;  %2916 = vst.msk [vmem:[#allocation5 + $0xf8] sm:$0xff] %vm1447_vm2, %v2860_v28 }
 0x172   :  { %v1283_v62 = vadd.f32 %v8606_v42, %v1282_v61  ;;  %v4289_v63 = vld [vmem:[#allocation5] sm:$0xff]  ;;  %v943_v2 = vpop.f32.mrf.mxu0 }
 0x173   :  { %v1979_v1 = vld [vmem:[#allocation2 + $0x459] sm:$0xff]  ;;  %7650 = vmatmul.msk.f32.vlgmr.msra.gmra.mxu1 %vm4346_vm9, %v4289_v63  ;;  %v944_v5 = vadd.f32 %v8606_v42, %v943_v2  ;;  %v200_v63 = vld [vmem:[%s11145_s0 + $0x508] sm:$0xff] }
 0x174   :  { %v2175_v4 = vmax.f32 %v1783_v60, %v1979_v1  ;;  %1589 = vst.msk [vmem:[#allocation2 + $0x468] sm:$0xff] %vm1447_vm2, %v1283_v62  ;;  %v1784_v15 = vld [vmem:[#allocation2 + $0x460] sm:$0xff] }
 0x175   :  { %v2700_v8 = vld [vmem:[#allocation3 + $0x444] ss:$2 sm:$0xff]  ;;  %7497 = vmatmul.msk.f32.gmra.mxu0 %vm249_vm1, %v83_v3  ;;  %1476 = vst.msk [vmem:[#allocation2 + $0xe0] sm:$0xff] %vm1447_vm2, %v944_v5 }
 0x176   :  { %2371 = vst.msk [vmem:[#allocation3 + $0x458] sm:$0xff] %vm1447_vm2, %v2175_v4  ;;  %v1866_v10 = vld [vmem:[#allocation2 + $0xd1] sm:$0xff]  ;;  %v2703_v11 = vmax.f32 %v2696_v7, %v2700_v8  ;;  %7611 = vmatmul.msk.f32.gmra.mxu3 %vm249_vm1, %v197_v6  ;;  %v3056_v13 = vpop.permute.xlu2 %3055 }
 0x177   :  { %v2062_v12 = vmax.f32 %v1670_v9, %v1866_v10  ;;  %3223 = vst.msk [vmem:[#allocation5 + $0x8] sm:$0xff] %vm3221_vm5, %v3056_v13  ;;  %v1671_v24 = vld [vmem:[#allocation2 + $0xd8] sm:$0xff] }
 0x178   :  { %v2705_v14 = vmax.f32 %v2703_v11, 0.0  ;;  %v87_v11 = vld [vmem:[%s11145_s0 + $0x180] sm:$0xff] }
 0x179   :  { %2258 = vst.msk [vmem:[#allocation3 + $0xd0] sm:$0xff] %vm1447_vm2, %v2062_v12  ;;  %v1285_v16 = vpop.f32.mrf.mxu3  ;;  %v201_v12 = vld [vmem:[%s11145_s0 + $0x510] sm:$0xff] }
 0x17a   :  { %v1286_v17 = vadd.f32 %v8606_v42, %v1285_v16  ;;  %2707 = vst.msk [vmem:[#allocation4 + $0x10a] sm:$0xff] %vm1447_vm2, %v2705_v14  ;;  %v946_v19 = vpop.f32.mrf.mxu0 }
 0x17b   :  { %v1980_v18 = vld [vmem:[#allocation2 + $0x461] sm:$0xff]  ;;  %v947_v22 = vadd.f32 %v8606_v42, %v946_v19 }
 0x17c   :  { %v2176_v21 = vmax.f32 %v1784_v15, %v1980_v18  ;;  %1590 = vst.msk [vmem:[#allocation2 + $0x470] sm:$0xff] %vm1447_vm2, %v1286_v17  ;;  %v1867_v25 = vld [vmem:[#allocation2 + $0xd9] sm:$0xff]  ;;  %v1785_v31 = vld [vmem:[#allocation2 + $0x468] sm:$0xff] }
 0x17d   :  { %7498 = vmatmul.msk.f32.gmra.mxu0 %vm249_vm1, %v84_v20  ;;  %v2063_v26 = vmax.f32 %v1671_v24, %v1867_v25  ;;  %1477 = vst.msk [vmem:[#allocation2 + $0xe8] sm:$0xff] %vm1447_vm2, %v947_v22  ;;  %v1672_v44 = vld [vmem:[#allocation2 + $0xe0] sm:$0xff]  ;;  %v2702_v19 = vld [vmem:[#allocation3 + $0x454] ss:$2 sm:$0x3f] }
 0x17e   :  { %2372 = vst.msk [vmem:[#allocation3 + $0x460] sm:$0xff] %vm1447_vm2, %v2176_v21  ;;  %7612 = vmatmul.msk.f32.gmra.mxu3 %vm249_vm1, %v198_v23  ;;  %v3393_v27 = vpop.permute.xlu2 %3392  ;;  %v2698_v18 = vld [vmem:[#allocation3 + $0x438] ss:$2 sm:$0x3f] }
 0x17f   :  { %3560 = vst.msk [vmem:[#allocation5 + $0x8] sm:$0xff] %vm3558_vm6, %v3393_v27  ;;  %v2684_v24 = vld [vmem:[#allocation3 + $0x400] ss:$2 sm:$0x3f]  ;;  %v2704_v27 = vmax.f32 %v2698_v18, %v2702_v19 }
 0x180   :  { %v2476_v30 = vld [vmem:[#allocation3 + $0xc4] ss:$2 sm:$0xff]  ;;  %2259 = vst.msk [vmem:[#allocation3 + $0xd8] sm:$0xff] %vm1447_vm2, %v2063_v26 }
 0x181   :  { %v1288_v32 = vpop.f32.mrf.mxu3  ;;  %v2479_v33 = vmax.f32 %v2472_v29, %v2476_v30  ;;  %v2688_v30 = vld [vmem:[#allocation3 + $0x41c] ss:$2 sm:$0x3f] }
 0x182   :  { %v1289_v34 = vadd.f32 %v8606_v42, %v1288_v32  ;;  %v949_v36 = vpop.f32.mrf.mxu0  ;;  %v91_v19 = vld [vmem:[%s11145_s0 + $0x1a0] sm:$0xff] }
 0x183   :  { %v1981_v35 = vld [vmem:[#allocation2 + $0x469] sm:$0xff]  ;;  %v2481_v38 = vmax.f32 %v2479_v33, 0.0  ;;  %v950_v40 = vadd.f32 %v8606_v42, %v949_v36  ;;  %v2690_v33 = vmax.f32 %v2684_v24, %v2688_v30 }
 0x184   :  { %v2177_v39 = vmax.f32 %v1785_v31, %v1981_v35  ;;  %1591 = vst.msk [vmem:[#allocation2 + $0x478] sm:$0xff] %vm1447_vm2, %v1289_v34  ;;  %v3786_v43 = vpop.permute.xlu1 %3785  ;;  %v1868_v45 = vld [vmem:[#allocation2 + $0xe1] sm:$0xff]  ;;  %v1786_v51 = vld [vmem:[#allocation2 + $0x470] sm:$0xff] }
 0x185   :  { %2483 = vst.msk [vmem:[#allocation4 + $0x2a] sm:$0xff] %vm1447_vm2, %v2481_v38  ;;  %7499 = vmatmul.msk.f32.gmra.mxu0 %vm249_vm1, %v85_v37  ;;  %v3449_v46 = vpop.permute.xlu0 %3448  ;;  %v2064_v47 = vmax.f32 %v1672_v44, %v1868_v45  ;;  %v1673_v1 = vld [vmem:[#allocation2 + $0xe8] sm:$0xff] }
 0x186   :  { %2373 = vst.msk [vmem:[#allocation3 + $0x468] sm:$0xff] %vm1447_vm2, %v2177_v39  ;;  %7613 = vmatmul.msk.f32.gmra.mxu3 %vm249_vm1, %v199_v41  ;;  %v3058_v48 = vpop.permute.xlu2 %3057  ;;  %v88_v37 = vld [vmem:[%s11145_s0 + $0x188] sm:$0xff]  ;;  %v202_v41 = vld [vmem:[%s11145_s0 + $0x518] sm:$0xff] }
 0x187   :  { %1478 = vst.msk [vmem:[#allocation2 + $0xf0] sm:$0xff] %vm1447_vm2, %v950_v40  ;;  %v2478_v50 = vld [vmem:[#allocation3 + $0xd4] ss:$2 sm:$0x3f] }
 0x188   :  { %3224 = vst.msk [vmem:[#allocation5 + $0x10] sm:$0xff] %vm3221_vm5, %v3058_v48  ;;  %v2480_v53 = vmax.f32 %v2474_v49, %v2478_v50 }
 0x189   :  { %2260 = vst.msk [vmem:[#allocation3 + $0xe0] sm:$0xff] %vm1447_vm2, %v2064_v47  ;;  %v1291_v52 = vpop.f32.mrf.mxu3 }
 0x18a   :  { %3588 = vst.msk [vmem:[#allocation5 + $0xe8] sm:$0xff] %vm3558_vm6, %v3449_v46  ;;  %v1292_v54 = vadd.f32 %v8606_v42, %v1291_v52  ;;  %v952_v56 = vpop.f32.mrf.mxu0  ;;  %v2482_v58 = vmax.f32 %v2480_v53, 0.0  ;;  %v2692_v46 = vmax.f32 %v2690_v33, 0.0  ;;  %v89_v53 = vld [vmem:[%s11145_s0 + $0x190] sm:$0xff] }
 0x18b   :  { %v1982_v55 = vld [vmem:[#allocation2 + $0x471] sm:$0xff]  ;;  %3925 = vst.msk [vmem:[#allocation5 + $0xe8] sm:$0xff] %vm3895_vm7, %v3786_v43  ;;  %v953_v60 = vadd.f32 %v8606_v42, %v952_v56  ;;  %v2706_v43 = vmax.f32 %v2704_v27, 0.0  ;;  %v203_v56 = vld [vmem:[%s11145_s0 + $0x520] sm:$0xff] }
 0x18c   :  { %v2178_v59 = vmax.f32 %v1786_v51, %v1982_v55  ;;  %1592 = vst.msk [vmem:[#allocation2 + $0x480] sm:$0xff] %vm1447_vm2, %v1292_v54  ;;  %v3956_v61 = vld [vmem:[#allocation4 + $0x24] sm:$0xff]  ;;  %v1787_v6 = vld [vmem:[#allocation2 + $0x478] sm:$0xff] }
 0x18d   :  { %v3619_v62 = vld [vmem:[#allocation4 + $0x23] sm:$0xff]  ;;  %4072 = vrot.lane.b32.xlu2 %v3956_v61, %s7992_s18  ;;  %2484 = vst.msk [vmem:[#allocation4 + $0x32] sm:$0x3f] %vm2441_vm3, %v2482_v58  ;;  %7500 = vmatmul.msk.f32.gmra.mxu0 %vm249_vm1, %v86_v57 }
 0x18e   :  { %3735 = vrot.lane.b32.xlu1 %v3619_v62, %s7990_s12  ;;  %v2834_v0 = vld [vmem:[#allocation4 + $0x28] sm:$0xff]  ;;  %2374 = vst.msk [vmem:[#allocation3 + $0x470] sm:$0xff] %vm1447_vm2, %v2178_v59  ;;  %7614 = vmatmul.msk.f32.gmra.mxu3 %vm249_vm1, %v200_v63  ;;  %v1674_v20 = vld [vmem:[#allocation2 + $0xf0] sm:$0xff]  ;;  %v4069_v34 = vpop.permute.xlu2 %4068 }
 0x18f   :  { %v1869_v2 = vld [vmem:[#allocation2 + $0xe9] sm:$0xff]  ;;  %1479 = vst.msk [vmem:[#allocation2 + $0xf8] sm:$0xff] %vm1447_vm2, %v953_v60  ;;  %v4067_v4 = vpop.permute.xlu1 %4066 }
 0x190   :  { %v2065_v3 = vmax.f32 %v1673_v1, %v1869_v2  ;;  %v3730_v5 = vpop.permute.xlu0 %3729  ;;  %2890 = vst.msk [vmem:[#allocation5 + $0x28] sm:$0xff] %vm1447_vm2, %v2834_v0  ;;  %v3283_v15 = vld [vmem:[#allocation4 + $0x2a] sm:$0xff]  ;;  %v90_v2 = vld [vmem:[%s11145_s0 + $0x198] sm:$0xff] }
 0x191   :  { %v1294_v7 = vpop.f32.mrf.mxu3  ;;  %3897 = vst.msk [vmem:[#allocation5 + $0x8] sm:$0xff] %vm3895_vm7, %v3730_v5  ;;  %v2946_v16 = vld [vmem:[#allocation4 + $0x29] sm:$0xff] }
 0x192   :  { %2261 = vst.msk [vmem:[#allocation3 + $0xe8] sm:$0xff] %vm1447_vm2, %v2065_v3  ;;  %v1295_v8 = vadd.f32 %v8606_v42, %v1294_v7  ;;  %v955_v10 = vpop.f32.mrf.mxu0  ;;  %v204_v5 = vld [vmem:[%s11145_s0 + $0x528] sm:$0xff] }
 0x193   :  { %v1983_v9 = vld [vmem:[#allocation2 + $0x479] sm:$0xff]  ;;  %4234 = vst.msk [vmem:[#allocation5 + $0x8] sm:$0xff] %vm4232_vm8, %v4067_v4  ;;  %v956_v14 = vadd.f32 %v8606_v42, %v955_v10 }
 0x194   :  { %v2179_v13 = vmax.f32 %v1787_v6, %v1983_v9  ;;  %1593 = vst.msk [vmem:[#allocation2 + $0x488] sm:$0xff] %vm1447_vm2, %v1295_v8  ;;  %v3620_v17 = vld [vmem:[#allocation4 + $0x2b] sm:$0xff]  ;;  %v1788_v28 = vld [vmem:[#allocation2 + $0x480] sm:$0xff] }
 0x195   :  { %3400 = vrot.lane.b32.xlu2 %v3283_v15, %s7993_s19  ;;  %3737 = vrot.lane.b32.xlu0 %v3620_v17, %s7990_s12  ;;  %1480 = vst.msk [vmem:[#allocation2 + $0x100] sm:$0xff] %vm1447_vm2, %v956_v14  ;;  %v2835_v23 = vld [vmem:[#allocation4 + $0x30] sm:$0xff]  ;;  %v2710_v6 = vld [vmem:[#allocation3 + $0x460] ss:$2 sm:$0xff] }
 0x196   :  { %3063 = vrot.lane.b32.xlu1 %v2946_v16, %s7991_s13  ;;  %2375 = vst.msk [vmem:[#allocation3 + $0x478] sm:$0xff] %vm1447_vm2, %v2179_v13  ;;  %v1870_v21 = vld [vmem:[#allocation2 + $0xf1] sm:$0xff]  ;;  %7501 = vmatmul.msk.f32.gmra.mxu0 %vm249_vm1, %v87_v11 }
 0x197   :  { %v2066_v22 = vmax.f32 %v1674_v20, %v1870_v21  ;;  %7615 = vmatmul.msk.f32.gmra.mxu3 %vm249_vm1, %v201_v12  ;;  %v3732_v25 = vpop.permute.xlu1 %3731  ;;  %2891 = vst.msk [vmem:[#allocation5 + $0x30] sm:$0xff] %vm1447_vm2, %v2835_v23  ;;  %v3957_v40 = vld [vmem:[#allocation4 + $0x2c] sm:$0xff]  ;;  %v1675_v44 = vld [vmem:[#allocation2 + $0xf8] sm:$0xff] }
 0x198   :  { %v3395_v26 = vpop.permute.xlu0 %3394  ;;  %2708 = vst.msk [vmem:[#allocation4 + $0x112] sm:$0x3f] %vm2441_vm3, %v2706_v43 }
 0x199   :  { %2262 = vst.msk [vmem:[#allocation3 + $0xf0] sm:$0xff] %vm1447_vm2, %v2066_v22  ;;  %v1297_v29 = vpop.f32.mrf.mxu3  ;;  %v205_v22 = vld [vmem:[%s11145_s0 + $0x530] sm:$0xff] }
 0x19a   :  { %3561 = vst.msk [vmem:[#allocation5 + $0x10] sm:$0xff] %vm3558_vm6, %v3395_v26  ;;  %v4290_v31 = vld [vmem:[#allocation5 + $0x8] sm:$0xff]  ;;  %v1298_v32 = vadd.f32 %v8606_v42, %v1297_v29  ;;  %v958_v36 = vpop.f32.mrf.mxu0 }
 0x19b   :  { %v1984_v35 = vld [vmem:[#allocation2 + $0x481] sm:$0xff]  ;;  %3898 = vst.msk [vmem:[#allocation5 + $0x10] sm:$0xff] %vm3895_vm7, %v3732_v25  ;;  %7651 = vmatmul.msk.f32.gmra.mxu1 %vm4346_vm9, %v4290_v31  ;;  %v959_v39 = vadd.f32 %v8606_v42, %v958_v36 }
 0x19c   :  { %v2180_v38 = vmax.f32 %v1788_v28, %v1984_v35  ;;  %4235 = vst.msk [vmem:[#allocation5 + $0x10] sm:$0xff] %vm4232_vm8, %v4069_v34  ;;  %v1871_v45 = vld [vmem:[#allocation2 + $0xf9] sm:$0xff]  ;;  %v1789_v48 = vld [vmem:[#allocation2 + $0x488] sm:$0xff] }
 0x19d   :  { %1594 = vst.msk [vmem:[#allocation2 + $0x490] sm:$0xff] %vm1447_vm2, %v1298_v32  ;;  %v2067_v47 = vmax.f32 %v1675_v44, %v1871_v45  ;;  %v1676_v58 = vld [vmem:[#allocation2 + $0x100] sm:$0xff]  ;;  %v2712_v23 = vld [vmem:[#allocation3 + $0x470] ss:$2 sm:$0x3f]  ;;  %v92_v45 = vld [vmem:[%s11145_s0 + $0x1a8] sm:$0xff] }
 0x19e   :  { %4074 = vrot.lane.b32.xlu1 %v3957_v40, %s7992_s18  ;;  %2376 = vst.msk [vmem:[#allocation3 + $0x480] sm:$0xff] %vm1447_vm2, %v2180_v38  ;;  %7502 = vmatmul.msk.f32.gmra.mxu0 %vm249_vm1, %v88_v37  ;;  %v2486_v31 = vld [vmem:[#allocation3 + $0xe0] ss:$2 sm:$0xff] }
 0x19f   :  { %1481 = vst.msk [vmem:[#allocation2 + $0x108] sm:$0xff] %vm1447_vm2, %v959_v39  ;;  %7616 = vmatmul.msk.f32.gmra.mxu3 %vm249_vm1, %v202_v41 }
 0x1a0   :  { %2263 = vst.msk [vmem:[#allocation3 + $0xf8] sm:$0xff] %vm1447_vm2, %v2067_v47 }
 0x1a1   :  { %v1300_v49 = vpop.f32.mrf.mxu3  ;;  %2694 = vst.msk [vmem:[#allocation4 + $0x104] sm:$0x3f] %vm2441_vm3, %v2692_v46 }
 0x1a2   :  { %v1301_v50 = vadd.f32 %v8606_v42, %v1300_v49  ;;  %v961_v52 = vpop.f32.mrf.mxu0 }
 0x1a3   :  { %v4291_v51 = vld [vmem:[#allocation5 + $0x10] sm:$0xff]  ;;  %v962_v55 = vadd.f32 %v8606_v42, %v961_v52 }
 0x1a4   :  { %v1985_v54 = vld [vmem:[#allocation2 + $0x489] sm:$0xff]  ;;  %7652 = vmatmul.msk.f32.gmra.mxu1 %vm4346_vm9, %v4291_v51  ;;  %1595 = vst.msk [vmem:[#allocation2 + $0x498] sm:$0xff] %vm1447_vm2, %v1301_v50 }
 0x1a5   :  { %v2181_v57 = vmax.f32 %v1789_v48, %v1985_v54  ;;  %1482 = vst.msk [vmem:[#allocation2 + $0x110] sm:$0xff] %vm1447_vm2, %v962_v55  ;;  %v1790_v61 = vld [vmem:[#allocation2 + $0x490] sm:$0xff]  ;;  %v206_v48 = vld [vmem:[%s11145_s0 + $0x538] sm:$0xff] }
 0x1a6   :  { %v1872_v59 = vld [vmem:[#allocation2 + $0x101] sm:$0xff]  ;;  %7503 = vmatmul.msk.f32.gmra.mxu0 %vm249_vm1, %v89_v53  ;;  %v2863_v54 = vld [vmem:[#allocation4 + $0x110] sm:$0xff] }
 0x1a7   :  { %2377 = vst.msk [vmem:[#allocation3 + $0x488] sm:$0xff] %vm1447_vm2, %v2181_v57  ;;  %v2068_v60 = vmax.f32 %v1676_v58, %v1872_v59  ;;  %7617 = vmatmul.msk.f32.gmra.mxu3 %vm249_vm1, %v203_v56  ;;  %v1677_v7 = vld [vmem:[#allocation2 + $0x108] sm:$0xff]  ;;  %v2488_v53 = vld [vmem:[#allocation3 + $0xf0] ss:$2 sm:$0x3f] }
 0x1a8   :  { %v2861_v63 = vld [vmem:[#allocation4 + $0x100] sm:$0xff]  ;;  %v2862_v33 = vld [vmem:[#allocation4 + $0x108] sm:$0xff]  ;;  %2919 = vst.msk [vmem:[#allocation5 + $0x110] sm:$0xff] %vm1447_vm2, %v2863_v54 }
 0x1a9   :  { %2264 = vst.msk [vmem:[#allocation3 + $0x100] sm:$0xff] %vm1447_vm2, %v2068_v60  ;;  %v1303_v62 = vpop.f32.mrf.mxu3 }
 0x1aa   :  { %v1304_v0 = vadd.f32 %v8606_v42, %v1303_v62  ;;  %v964_v1 = vpop.f32.mrf.mxu0  ;;  %2917 = vst.msk [vmem:[#allocation5 + $0x100] sm:$0xff] %vm1447_vm2, %v2861_v63 }
 0x1ab   :  { %v1986_v3 = vld [vmem:[#allocation2 + $0x491] sm:$0xff]  ;;  %v965_v4 = vadd.f32 %v8606_v42, %v964_v1  ;;  %2918 = vst.msk [vmem:[#allocation5 + $0x108] sm:$0xff] %vm1447_vm2, %v2862_v33 }
 0x1ac   :  { %v2182_v8 = vmax.f32 %v1790_v61, %v1986_v3  ;;  %v1873_v9 = vld [vmem:[#allocation2 + $0x109] sm:$0xff]  ;;  %1596 = vst.msk [vmem:[#allocation2 + $0x4a0] sm:$0xff] %vm1447_vm2, %v1304_v0  ;;  %v1791_v15 = vld [vmem:[#allocation2 + $0x498] sm:$0xff] }
 0x1ad   :  { %v2069_v10 = vmax.f32 %v1677_v7, %v1873_v9  ;;  %1483 = vst.msk [vmem:[#allocation2 + $0x118] sm:$0xff] %vm1447_vm2, %v965_v4  ;;  %v1678_v24 = vld [vmem:[#allocation2 + $0x110] sm:$0xff]  ;;  %v207_v4 = vld [vmem:[%s11145_s0 + $0x540] sm:$0xff] }
 0x1ae   :  { %7504 = vmatmul.msk.f32.gmra.mxu0 %vm249_vm1, %v90_v2  ;;  %v2714_v11 = vld [vmem:[#allocation3 + $0x47c] ss:$2 sm:$0xff]  ;;  %2378 = vst.msk [vmem:[#allocation3 + $0x490] sm:$0xff] %vm1447_vm2, %v2182_v8  ;;  %v8812_v12 = vpop.permute.xlu2 %3733  ;;  %v93_v1 = vld [vmem:[%s11145_s0 + $0x1b0] sm:$0xff] }
 0x1af   :  { %7618 = vmatmul.msk.f32.gmra.mxu3 %vm249_vm1, %v204_v5  ;;  %v2717_v13 = vmax.f32 %v2710_v6, %v2714_v11  ;;  %2265 = vst.msk [vmem:[#allocation3 + $0x108] sm:$0xff] %vm1447_vm2, %v2069_v10 }
 0x1b1   :  { %v2719_v14 = vmax.f32 %v2717_v13, 0.0  ;;  %v1306_v16 = vpop.f32.mrf.mxu3 }
 0x1b2   :  { %v1307_v17 = vadd.f32 %v8606_v42, %v1306_v16  ;;  %v967_v18 = vpop.f32.mrf.mxu0 }
 0x1b3   :  { %2721 = vst.msk [vmem:[#allocation4 + $0x118] sm:$0xff] %vm1447_vm2, %v2719_v14  ;;  %v1987_v20 = vld [vmem:[#allocation2 + $0x499] sm:$0xff]  ;;  %v968_v21 = vadd.f32 %v8606_v42, %v967_v18 }
 0x1b4   :  { %v2183_v25 = vmax.f32 %v1791_v15, %v1987_v20  ;;  %v1874_v26 = vld [vmem:[#allocation2 + $0x111] sm:$0xff]  ;;  %1597 = vst.msk [vmem:[#allocation2 + $0x4a8] sm:$0xff] %vm1447_vm2, %v1307_v17  ;;  %v1792_v35 = vld [vmem:[#allocation2 + $0x4a0] sm:$0xff] }
 0x1b5   :  { %v2070_v27 = vmax.f32 %v1678_v24, %v1874_v26  ;;  %1484 = vst.msk [vmem:[#allocation2 + $0x120] sm:$0xff] %vm1447_vm2, %v968_v21  ;;  %v2716_v28 = vld [vmem:[#allocation3 + $0x48c] ss:$2 sm:$0x3f]  ;;  %v1679_v49 = vld [vmem:[#allocation2 + $0x118] sm:$0xff] }
 0x1b6   :  { %7505 = vmatmul.msk.f32.gmra.mxu0 %vm249_vm1, %v91_v19  ;;  %2379 = vst.msk [vmem:[#allocation3 + $0x498] sm:$0xff] %vm1447_vm2, %v2183_v25  ;;  %v3062_v29 = vpop.permute.xlu2 %3061  ;;  %v2718_v30 = vmax.f32 %v2712_v23, %v2716_v28  ;;  %v2490_v32 = vld [vmem:[#allocation3 + $0xfc] ss:$2 sm:$0xff] }
 0x1b7   :  { %7619 = vmatmul.msk.f32.gmra.mxu3 %vm249_vm1, %v205_v22  ;;  %2266 = vst.msk [vmem:[#allocation3 + $0x110] sm:$0xff] %vm1447_vm2, %v2070_v27  ;;  %v2493_v34 = vmax.f32 %v2486_v31, %v2490_v32  ;;  %v94_v20 = vld [vmem:[%s11145_s0 + $0x1b8] sm:$0xff] }
 0x1b8   :  { %3226 = vst.msk [vmem:[#allocation5 + $0x20] sm:$0xff] %vm3221_vm5, %v3062_v29  ;;  %v2720_v36 = vmax.f32 %v2718_v30, 0.0 }
 0x1b9   :  { %v1309_v37 = vpop.f32.mrf.mxu3  ;;  %v2495_v41 = vmax.f32 %v2493_v34, 0.0 }
 0x1ba   :  { %v3312_v38 = vld [vmem:[#allocation4 + $0x112] sm:$0xff]  ;;  %v1310_v43 = vadd.f32 %v8606_v42, %v1309_v37  ;;  %v970_v44 = vpop.f32.mrf.mxu0  ;;  %2722 = vst.msk [vmem:[#allocation4 + $0x120] sm:$0x3f] %vm2441_vm3, %v2720_v36 }
 0x1bb   :  { %v2975_v39 = vld [vmem:[#allocation4 + $0x111] sm:$0xff]  ;;  %3458 = vrot.lane.b32.xlu2 %v3312_v38, %s7993_s19  ;;  %v1988_v46 = vld [vmem:[#allocation2 + $0x4a1] sm:$0xff]  ;;  %v971_v47 = vadd.f32 %v8606_v42, %v970_v44  ;;  %2497 = vst.msk [vmem:[#allocation4 + $0x38] sm:$0xff] %vm1447_vm2, %v2495_v41 }
 0x1bc   :  { %v3649_v40 = vld [vmem:[#allocation4 + $0x113] sm:$0xff]  ;;  %3121 = vrot.lane.b32.xlu1 %v2975_v39, %s7991_s13  ;;  %v2184_v50 = vmax.f32 %v1792_v35, %v1988_v46  ;;  %1598 = vst.msk [vmem:[#allocation2 + $0x4b0] sm:$0xff] %vm1447_vm2, %v1310_v43  ;;  %v1793_v58 = vld [vmem:[#allocation2 + $0x4a8] sm:$0xff]  ;;  %v1680_v5 = vld [vmem:[#allocation2 + $0x120] sm:$0xff] }
 0x1bd   :  { %3795 = vrot.lane.b32.xlu0 %v3649_v40, %s7990_s12  ;;  %v1875_v51 = vld [vmem:[#allocation2 + $0x119] sm:$0xff]  ;;  %1485 = vst.msk [vmem:[#allocation2 + $0x128] sm:$0xff] %vm1447_vm2, %v971_v47  ;;  %v209_v38 = vld [vmem:[%s11145_s0 + $0x550] sm:$0xff] }
 0x1be   :  { %v2071_v52 = vmax.f32 %v1679_v49, %v1875_v51  ;;  %7506 = vmatmul.msk.f32.gmra.mxu0 %vm249_vm1, %v92_v45  ;;  %2380 = vst.msk [vmem:[#allocation3 + $0x4a0] sm:$0xff] %vm1447_vm2, %v2184_v50  ;;  %v2492_v55 = vld [vmem:[#allocation3 + $0x10c] ss:$2 sm:$0x3f]  ;;  %v95_v35 = vld [vmem:[%s11145_s0 + $0x1c0] sm:$0xff] }
 0x1bf   :  { %7620 = vmatmul.msk.f32.gmra.mxu3 %vm249_vm1, %v206_v48  ;;  %v3986_v56 = vld [vmem:[#allocation4 + $0x114] sm:$0xff]  ;;  %v2494_v57 = vmax.f32 %v2488_v53, %v2492_v55  ;;  %v96_v53 = vld [vmem:[%s11145_s0 + $0x1c8] sm:$0xff] }
 0x1c0   :  { %2267 = vst.msk [vmem:[#allocation3 + $0x118] sm:$0xff] %vm1447_vm2, %v2071_v52 }
 0x1c1   :  { %v1312_v59 = vpop.f32.mrf.mxu3  ;;  %v3650_v60 = vld [vmem:[#allocation4 + $0x11b] sm:$0xff]  ;;  %v2496_v62 = vmax.f32 %v2494_v57, 0.0 }
 0x1c2   :  { %v2976_v61 = vld [vmem:[#allocation4 + $0x119] sm:$0xff]  ;;  %v1313_v63 = vadd.f32 %v8606_v42, %v1312_v59  ;;  %v973_v0 = vpop.f32.mrf.mxu0  ;;  %v2947_v33 = vld [vmem:[#allocation4 + $0x31] sm:$0xff] }
 0x1c3   :  { %3797 = vrot.lane.b32.xlu2 %v3650_v60, %s7990_s12  ;;  %v1989_v2 = vld [vmem:[#allocation2 + $0x4a9] sm:$0xff]  ;;  %v974_v3 = vadd.f32 %v8606_v42, %v973_v0  ;;  %2498 = vst.msk [vmem:[#allocation4 + $0x40] sm:$0x3f] %vm2441_vm3, %v2496_v62  ;;  %v3313_v11 = vld [vmem:[#allocation4 + $0x11a] sm:$0xff]  ;;  %v3284_v31 = vld [vmem:[#allocation4 + $0x32] sm:$0xff] }
 0x1c4   :  { %4132 = vrot.lane.b32.xlu1 %v3986_v56, %s7992_s18  ;;  %v2185_v6 = vmax.f32 %v1793_v58, %v1989_v2  ;;  %v1876_v7 = vld [vmem:[#allocation2 + $0x121] sm:$0xff]  ;;  %1599 = vst.msk [vmem:[#allocation2 + $0x4b8] sm:$0xff] %vm1447_vm2, %v1313_v63  ;;  %v2836_v14 = vld [vmem:[#allocation4 + $0x38] sm:$0xff]  ;;  %v1794_v15 = vld [vmem:[#allocation2 + $0x4b0] sm:$0xff] }
 0x1c5   :  { %3123 = vrot.lane.b32.xlu0 %v2976_v61, %s7991_s13  ;;  %v2072_v8 = vmax.f32 %v1680_v5, %v1876_v7  ;;  %1486 = vst.msk [vmem:[#allocation2 + $0x130] sm:$0xff] %vm1447_vm2, %v974_v3  ;;  %v3987_v13 = vld [vmem:[#allocation4 + $0x11c] sm:$0xff]  ;;  %v3621_v17 = vld [vmem:[#allocation4 + $0x33] sm:$0xff]  ;;  %v1681_v23 = vld [vmem:[#allocation2 + $0x128] sm:$0xff] }
 0x1c6   :  { %7507 = vmatmul.msk.f32.gmra.mxu0 %vm249_vm1, %v93_v1  ;;  %2381 = vst.msk [vmem:[#allocation3 + $0x4a8] sm:$0xff] %vm1447_vm2, %v2185_v6  ;;  %v3958_v51 = vld [vmem:[#allocation4 + $0x34] sm:$0xff]  ;;  %v211_v5 = vld [vmem:[%s11145_s0 + $0x560] sm:$0xff] }
 0x1c7   :  { %7621 = vmatmul.msk.f32.gmra.mxu3 %vm249_vm1, %v207_v4  ;;  %v3397_v9 = vpop.permute.xlu1 %3396  ;;  %2268 = vst.msk [vmem:[#allocation3 + $0x120] sm:$0xff] %vm1447_vm2, %v2072_v8  ;;  %v210_v56 = vld [vmem:[%s11145_s0 + $0x558] sm:$0xff]  ;;  %v97_v2 = vld [vmem:[%s11145_s0 + $0x1d0] sm:$0xff] }
 0x1c8   :  { %v3060_v10 = vpop.permute.xlu0 %3059  ;;  %2892 = vst.msk [vmem:[#allocation5 + $0x38] sm:$0xff] %vm1447_vm2, %v2836_v14  ;;  %v2724_v6 = vld [vmem:[#allocation3 + $0x498] ss:$2 sm:$0xff] }
 0x1c9   :  { %3225 = vst.msk [vmem:[#allocation5 + $0x18] sm:$0xff] %vm3221_vm5, %v3060_v10  ;;  %v1315_v16 = vpop.f32.mrf.mxu3 }
 0x1ca   :  { %3562 = vst.msk [vmem:[#allocation5 + $0x18] sm:$0xff] %vm3558_vm6, %v3397_v9  ;;  %v1316_v18 = vadd.f32 %v8606_v42, %v1315_v16  ;;  %v976_v19 = vpop.f32.mrf.mxu0  ;;  %v2948_v30 = vld [vmem:[#allocation4 + $0x39] sm:$0xff] }
 0x1cb   :  { %3899 = vst.msk [vmem:[#allocation5 + $0x18] sm:$0xff] %vm3895_vm7, %v8812_v12  ;;  %3739 = vrot.lane.b32.xlu2 %v3621_v17, %s7990_s12  ;;  %v1990_v21 = vld [vmem:[#allocation2 + $0x4b1] sm:$0xff]  ;;  %v977_v22 = vadd.f32 %v8606_v42, %v976_v19  ;;  %v208_v12 = vld [vmem:[%s11145_s0 + $0x548] sm:$0xff]  ;;  %v3959_v48 = vld [vmem:[#allocation4 + $0x3c] sm:$0xff] }
 0x1cc   :  { %3460 = vrot.lane.b32.xlu1 %v3313_v11, %s7993_s19  ;;  %v2186_v24 = vmax.f32 %v1794_v15, %v1990_v21  ;;  %v1877_v25 = vld [vmem:[#allocation2 + $0x129] sm:$0xff]  ;;  %1600 = vst.msk [vmem:[#allocation2 + $0x4c0] sm:$0xff] %vm1447_vm2, %v1316_v18  ;;  %v1795_v28 = vld [vmem:[#allocation2 + $0x4b8] sm:$0xff]  ;;  %v8947_v16 = vld [vmem:[%s11147_s2] ss:$0 sm:$0xff] }
 0x1cd   :  { %4134 = vrot.lane.b32.xlu0 %v3987_v13, %s7992_s18  ;;  %v2073_v26 = vmax.f32 %v1681_v23, %v1877_v25  ;;  %1487 = vst.msk [vmem:[#allocation2 + $0x138] sm:$0xff] %vm1447_vm2, %v977_v22  ;;  %v1682_v39 = vld [vmem:[#allocation2 + $0x130] sm:$0xff]  ;;  %v3622_v49 = vld [vmem:[#allocation4 + $0x3b] sm:$0xff]  ;;  %v212_v22 = vld [vmem:[%s11145_s0 + $0x568] sm:$0xff] }
 0x1ce   :  { %7508 = vmatmul.msk.f32.gmra.mxu0 %vm249_vm1, %v94_v20  ;;  %2382 = vst.msk [vmem:[#allocation3 + $0x4b0] sm:$0xff] %vm1447_vm2, %v2186_v24  ;;  %v3285_v0 = vld [vmem:[#allocation4 + $0x3a] sm:$0xff] }
 0x1cf   :  { %7622 = vmatmul.msk.f32.gmra.mxu3 %vm249_vm1, %v208_v12  ;;  %2269 = vst.msk [vmem:[#allocation3 + $0x128] sm:$0xff] %vm1447_vm2, %v2073_v26  ;;  %v98_v19 = vld [vmem:[%s11145_s0 + $0x1d8] sm:$0xff]  ;;  %v8962_v26 = vld [vmem:[%s11149_s4] ss:$0 sm:$0xff] }
 0x1d0   :  { %v4071_v27 = vpop.permute.xlu0 %4070 }
 0x1d1   :  { %4236 = vst.msk [vmem:[#allocation5 + $0x18] sm:$0xff] %vm4232_vm8, %v4071_v27  ;;  %v1318_v29 = vpop.f32.mrf.mxu3 }
 0x1d2   :  { %v1319_v32 = vadd.f32 %v8606_v42, %v1318_v29  ;;  %v979_v34 = vpop.f32.mrf.mxu0 }
 0x1d3   :  { %3067 = vrot.lane.b32.xlu2 %v2948_v30, %s7991_s13  ;;  %v1991_v36 = vld [vmem:[#allocation2 + $0x4b9] sm:$0xff]  ;;  %v980_v37 = vadd.f32 %v8606_v42, %v979_v34 }
 0x1d4   :  { %3402 = vrot.lane.b32.xlu1 %v3284_v31, %s7993_s19  ;;  %v2187_v40 = vmax.f32 %v1795_v28, %v1991_v36  ;;  %v1878_v41 = vld [vmem:[#allocation2 + $0x131] sm:$0xff]  ;;  %1601 = vst.msk [vmem:[#allocation2 + $0x4c8] sm:$0xff] %vm1447_vm2, %v1319_v32  ;;  %v1796_v46 = vld [vmem:[#allocation2 + $0x4c0] sm:$0xff] }
 0x1d5   :  { %3065 = vrot.lane.b32.xlu0 %v2947_v33, %s7991_s13  ;;  %v2074_v43 = vmax.f32 %v1682_v39, %v1878_v41  ;;  %1488 = vst.msk [vmem:[#allocation2 + $0x140] sm:$0xff] %vm1447_vm2, %v980_v37  ;;  %v1683_v57 = vld [vmem:[#allocation2 + $0x138] sm:$0xff]  ;;  %v2726_v12 = vld [vmem:[#allocation3 + $0x4a8] ss:$2 sm:$0x3f] }
 0x1d6   :  { %7509 = vmatmul.msk.f32.gmra.mxu0 %vm249_vm1, %v95_v35  ;;  %2383 = vst.msk [vmem:[#allocation3 + $0x4b8] sm:$0xff] %vm1447_vm2, %v2187_v40  ;;  %v2500_v32 = vld [vmem:[#allocation3 + $0x118] ss:$2 sm:$0xff] }
 0x1d7   :  { %7623 = vmatmul.msk.f32.gmra.mxu3 %vm249_vm1, %v209_v38  ;;  %2270 = vst.msk [vmem:[#allocation3 + $0x130] sm:$0xff] %vm1447_vm2, %v2074_v43 }
 0x1d8   :  { %v3399_v44 = vpop.permute.xlu0 %3398  ;;  %v4292_v45 = vld [vmem:[#allocation5 + $0x18] sm:$0xff] }
 0x1d9   :  { %3563 = vst.msk [vmem:[#allocation5 + $0x20] sm:$0xff] %vm3558_vm6, %v3399_v44  ;;  %7653 = vmatmul.msk.f32.gmra.mxu1 %vm4346_vm9, %v4292_v45  ;;  %v1321_v47 = vpop.f32.mrf.mxu3  ;;  %v99_v44 = vld [vmem:[%s11145_s0 + $0x1e0] sm:$0xff] }
 0x1da   :  { %v1322_v50 = vadd.f32 %v8606_v42, %v1321_v47  ;;  %v982_v52 = vpop.f32.mrf.mxu0  ;;  %v213_v47 = vld [vmem:[%s11145_s0 + $0x570] sm:$0xff] }
 0x1db   :  { %4078 = vrot.lane.b32.xlu2 %v3959_v48, %s7992_s18  ;;  %v1992_v54 = vld [vmem:[#allocation2 + $0x4c1] sm:$0xff]  ;;  %v983_v55 = vadd.f32 %v8606_v42, %v982_v52 }
 0x1dc   :  { %3741 = vrot.lane.b32.xlu1 %v3622_v49, %s7990_s12  ;;  %v2188_v58 = vmax.f32 %v1796_v46, %v1992_v54  ;;  %v1879_v59 = vld [vmem:[#allocation2 + $0x139] sm:$0xff]  ;;  %1602 = vst.msk [vmem:[#allocation2 + $0x4d0] sm:$0xff] %vm1447_vm2, %v1322_v50  ;;  %v1797_v61 = vld [vmem:[#allocation2 + $0x4c8] sm:$0xff] }
 0x1dd   :  { %4076 = vrot.lane.b32.xlu0 %v3958_v51, %s7992_s18  ;;  %v2075_v60 = vmax.f32 %v1683_v57, %v1879_v59  ;;  %1489 = vst.msk [vmem:[#allocation2 + $0x148] sm:$0xff] %vm1447_vm2, %v983_v55  ;;  %v1684_v7 = vld [vmem:[#allocation2 + $0x140] sm:$0xff]  ;;  %v2864_v55 = vld [vmem:[#allocation4 + $0x118] sm:$0xff] }
 0x1de   :  { %7510 = vmatmul.msk.f32.gmra.mxu0 %vm249_vm1, %v96_v53  ;;  %2384 = vst.msk [vmem:[#allocation3 + $0x4c0] sm:$0xff] %vm1447_vm2, %v2188_v58  ;;  %v2502_v53 = vld [vmem:[#allocation3 + $0x128] ss:$2 sm:$0x3f] }
 0x1df   :  { %7624 = vmatmul.msk.f32.gmra.mxu3 %vm249_vm1, %v210_v56  ;;  %2271 = vst.msk [vmem:[#allocation3 + $0x138] sm:$0xff] %vm1447_vm2, %v2075_v60 }
 0x1e0   :  { %2920 = vst.msk [vmem:[#allocation5 + $0x118] sm:$0xff] %vm1447_vm2, %v2864_v55 }
 0x1e1   :  { %v1324_v62 = vpop.f32.mrf.mxu3 }
 0x1e2   :  { %v1325_v63 = vadd.f32 %v8606_v42, %v1324_v62  ;;  %v985_v1 = vpop.f32.mrf.mxu0 }
 0x1e3   :  { %v1993_v3 = vld [vmem:[#allocation2 + $0x4c9] sm:$0xff]  ;;  %v986_v4 = vadd.f32 %v8606_v42, %v985_v1 }
 0x1e4   :  { %v2189_v8 = vmax.f32 %v1797_v61, %v1993_v3  ;;  %v1880_v9 = vld [vmem:[#allocation2 + $0x141] sm:$0xff]  ;;  %1603 = vst.msk [vmem:[#allocation2 + $0x4d8] sm:$0xff] %vm1447_vm2, %v1325_v63  ;;  %v1798_v14 = vld [vmem:[#allocation2 + $0x4d0] sm:$0xff] }
 0x1e5   :  { %3404 = vrot.lane.b32.xlu0 %v3285_v0, %s7993_s19  ;;  %v2076_v10 = vmax.f32 %v1684_v7, %v1880_v9  ;;  %1490 = vst.msk [vmem:[#allocation2 + $0x150] sm:$0xff] %vm1447_vm2, %v986_v4  ;;  %v2728_v11 = vld [vmem:[#allocation3 + $0x4b4] ss:$2 sm:$0xff]  ;;  %v1685_v23 = vld [vmem:[#allocation2 + $0x148] sm:$0xff] }
 0x1e6   :  { %7511 = vmatmul.msk.f32.gmra.mxu0 %vm249_vm1, %v97_v2  ;;  %2385 = vst.msk [vmem:[#allocation3 + $0x4c8] sm:$0xff] %vm1447_vm2, %v2189_v8  ;;  %v2731_v42 = vmax.f32 %v2724_v6, %v2728_v11  ;;  %v100_v1 = vld [vmem:[%s11145_s0 + $0x1e8] sm:$0xff]  ;;  %v214_v4 = vld [vmem:[%s11145_s0 + $0x578] sm:$0xff] }
 0x1e7   :  { %7625 = vmatmul.msk.f32.gmra.mxu3 %vm249_vm1, %v211_v5  ;;  %2272 = vst.msk [vmem:[#allocation3 + $0x140] sm:$0xff] %vm1447_vm2, %v2076_v10  ;;  %v4073_v9 = vpop.permute.xlu2 %4072 }
 0x1e8   :  { %v2733_v13 = vmax.f32 %v2731_v42, 0.0 }
 0x1e9   :  { %v1327_v15 = vpop.f32.mrf.mxu3 }
 0x1ea   :  { %v1328_v17 = vadd.f32 %v8947_v16, %v1327_v15  ;;  %v988_v18 = vpop.f32.mrf.mxu0  ;;  %2735 = vst.msk [vmem:[#allocation4 + $0x126] sm:$0xff] %vm1447_vm2, %v2733_v13 }
 0x1eb   :  { %v1994_v20 = vld [vmem:[#allocation2 + $0x4d1] sm:$0xff]  ;;  %v989_v21 = vadd.f32 %v8947_v16, %v988_v18 }
 0x1ec   :  { %v2190_v24 = vmax.f32 %v1798_v14, %v1994_v20  ;;  %v1881_v25 = vld [vmem:[#allocation2 + $0x149] sm:$0xff]  ;;  %1604 = vst.msk [vmem:[#allocation2 + $0x4e0] sm:$0xff] %vm1447_vm2, %v1328_v17  ;;  %v1799_v33 = vld [vmem:[#allocation2 + $0x4d8] sm:$0xff] }
 0x1ed   :  { %v2077_v27 = vmax.f32 %v1685_v23, %v1881_v25  ;;  %1491 = vst.msk [vmem:[#allocation2 + $0x158] sm:$0xff] %vm1447_vm2, %v989_v21  ;;  %v2730_v28 = vld [vmem:[#allocation3 + $0x4c4] ss:$2 sm:$0x3f]  ;;  %v1686_v48 = vld [vmem:[#allocation2 + $0x150] sm:$0xff] }
 0x1ee   :  { %7512 = vmatmul.msk.f32.gmra.mxu0 %vm249_vm1, %v98_v19  ;;  %2386 = vst.msk [vmem:[#allocation3 + $0x4d0] sm:$0xff] %vm1447_vm2, %v2190_v24  ;;  %v2732_v29 = vmax.f32 %v2726_v12, %v2730_v28  ;;  %v2504_v30 = vld [vmem:[#allocation3 + $0x134] ss:$2 sm:$0xff] }
 0x1ef   :  { %7626 = vmatmul.msk.f32.gmra.mxu3 %vm249_vm1, %v212_v22  ;;  %2273 = vst.msk [vmem:[#allocation3 + $0x148] sm:$0xff] %vm1447_vm2, %v2077_v27  ;;  %v2507_v36 = vmax.f32 %v2500_v32, %v2504_v30  ;;  %v101_v20 = vld [vmem:[%s11145_s0 + $0x1f0] sm:$0xff]  ;;  %v215_v12 = vld [vmem:[%s11145_s0 + $0x580] sm:$0xff] }
 0x1f0   :  { %v4515_v31 = vpop.f32.mrf.mxu1  ;;  %v2734_v35 = vmax.f32 %v2732_v29, 0.0  ;;  %v3401_v29 = vpop.permute.xlu2 %3400 }
 0x1f1   :  { %v4516_v34 = vadd.f32 %v8962_v26, %v4515_v31  ;;  %v1330_v37 = vpop.f32.mrf.mxu3  ;;  %v2977_v38 = vld [vmem:[#allocation4 + $0x121] sm:$0xff]  ;;  %v2509_v51 = vmax.f32 %v2507_v36, 0.0 }
 0x1f2   :  { %v3651_v39 = vld [vmem:[#allocation4 + $0x123] sm:$0xff]  ;;  %v1331_v41 = vadd.f32 %v8947_v16, %v1330_v37  ;;  %3125 = vrot.lane.b32.xlu2 %v2977_v38, %s7991_s13  ;;  %v991_v43 = vpop.f32.mrf.mxu0  ;;  %2736 = vst.msk [vmem:[#allocation4 + $0x12e] sm:$0x3f] %vm2441_vm3, %v2734_v35 }
 0x1f3   :  { %v3314_v40 = vld [vmem:[#allocation4 + $0x122] sm:$0xff]  ;;  %4663 = vst.msk [vmem:[#allocation6] sm:$0xff] %vm4662_vm10, %v4516_v34  ;;  %3799 = vrot.lane.b32.xlu1 %v3651_v39, %s7990_s12  ;;  %v1995_v45 = vld [vmem:[#allocation2 + $0x4d9] sm:$0xff]  ;;  %v992_v46 = vadd.f32 %v8947_v16, %v991_v43 }
 0x1f4   :  { %3462 = vrot.lane.b32.xlu0 %v3314_v40, %s7993_s19  ;;  %v2191_v49 = vmax.f32 %v1799_v33, %v1995_v45  ;;  %v1882_v50 = vld [vmem:[#allocation2 + $0x151] sm:$0xff]  ;;  %1605 = vst.msk [vmem:[#allocation2 + $0x4e8] sm:$0xff] %vm1447_vm2, %v1331_v41  ;;  %v3988_v56 = vld [vmem:[#allocation4 + $0x124] sm:$0xff] }
 0x1f5   :  { %v2078_v52 = vmax.f32 %v1686_v48, %v1882_v50  ;;  %1492 = vst.msk [vmem:[#allocation2 + $0x160] sm:$0xff] %vm1447_vm2, %v992_v46  ;;  %v1800_v58 = vld [vmem:[#allocation2 + $0x4e0] sm:$0xff]  ;;  %v1687_v5 = vld [vmem:[#allocation2 + $0x158] sm:$0xff] }
 0x1f6   :  { %7513 = vmatmul.msk.f32.gmra.mxu0 %vm249_vm1, %v99_v44  ;;  %2387 = vst.msk [vmem:[#allocation3 + $0x4d8] sm:$0xff] %vm1447_vm2, %v2191_v49  ;;  %v2506_v54 = vld [vmem:[#allocation3 + $0x144] ss:$2 sm:$0x3f]  ;;  %v102_v40 = vld [vmem:[%s11145_s0 + $0x1f8] sm:$0xff] }
 0x1f7   :  { %7627 = vmatmul.msk.f32.gmra.mxu3 %vm249_vm1, %v213_v47  ;;  %2274 = vst.msk [vmem:[#allocation3 + $0x150] sm:$0xff] %vm1447_vm2, %v2078_v52  ;;  %v2508_v57 = vmax.f32 %v2502_v53, %v2506_v54  ;;  %v2865_v31 = vld [vmem:[#allocation4 + $0x120] sm:$0xff]  ;;  %v216_v44 = vld [vmem:[%s11145_s0 + $0x588] sm:$0xff] }
 0x1f8   :  { %2511 = vst.msk [vmem:[#allocation4 + $0x46] sm:$0xff] %vm1447_vm2, %v2509_v51 }
 0x1f9   :  { %v1333_v59 = vpop.f32.mrf.mxu3  ;;  %v2510_v60 = vmax.f32 %v2508_v57, 0.0  ;;  %v2978_v62 = vld [vmem:[#allocation4 + $0x129] sm:$0xff]  ;;  %2921 = vst.msk [vmem:[#allocation5 + $0x120] sm:$0xff] %vm1447_vm2, %v2865_v31 }
 0x1fa   :  { %v1334_v61 = vadd.f32 %v8947_v16, %v1333_v59  ;;  %4136 = vrot.lane.b32.xlu2 %v3988_v56, %s7992_s18  ;;  %v3652_v63 = vld [vmem:[#allocation4 + $0x12b] sm:$0xff]  ;;  %v994_v0 = vpop.f32.mrf.mxu0 }
 0x1fb   :  { %v1996_v2 = vld [vmem:[#allocation2 + $0x4e1] sm:$0xff]  ;;  %3127 = vrot.lane.b32.xlu1 %v2978_v62, %s7991_s13  ;;  %v995_v3 = vadd.f32 %v8947_v16, %v994_v0  ;;  %2512 = vst.msk [vmem:[#allocation4 + $0x4e] sm:$0x3f] %vm2441_vm3, %v2510_v60  ;;  %v3315_v11 = vld [vmem:[#allocation4 + $0x12a] sm:$0xff] }
 0x1fc   :  { %3801 = vrot.lane.b32.xlu0 %v3652_v63, %s7990_s12  ;;  %v2192_v6 = vmax.f32 %v1800_v58, %v1996_v2  ;;  %v1883_v7 = vld [vmem:[#allocation2 + $0x159] sm:$0xff]  ;;  %1606 = vst.msk [vmem:[#allocation2 + $0x4f0] sm:$0xff] %vm1447_vm2, %v1334_v61  ;;  %v3989_v42 = vld [vmem:[#allocation4 + $0x12c] sm:$0xff] }
 0x1fd   :  { %v2079_v8 = vmax.f32 %v1687_v5, %v1883_v7  ;;  %1493 = vst.msk [vmem:[#allocation2 + $0x168] sm:$0xff] %vm1447_vm2, %v995_v3  ;;  %v1801_v14 = vld [vmem:[#allocation2 + $0x4e8] sm:$0xff]  ;;  %v1688_v23 = vld [vmem:[#allocation2 + $0x160] sm:$0xff]  ;;  %v217_v61 = vld [vmem:[%s11145_s0 + $0x590] sm:$0xff] }
 0x1fe   :  { %7514 = vmatmul.msk.f32.gmra.mxu0 %vm249_vm1, %v100_v1  ;;  %2388 = vst.msk [vmem:[#allocation3 + $0x4e0] sm:$0xff] %vm1447_vm2, %v2192_v6  ;;  %v103_v58 = vld [vmem:[%s11145_s0 + $0x200] sm:$0xff]  ;;  %v105_v31 = vld [vmem:[%s11145_s0 + $0x210] sm:$0xff] }
 0x1ff   :  { %7628 = vmatmul.msk.f32.gmra.mxu3 %vm249_vm1, %v214_v4  ;;  %2275 = vst.msk [vmem:[#allocation3 + $0x158] sm:$0xff] %vm1447_vm2, %v2079_v8  ;;  %v2837_v13 = vld [vmem:[#allocation4 + $0x40] sm:$0xff] }
 0x200   :  { %v3736_v10 = vpop.permute.xlu1 %3735  ;;  %v3623_v18 = vld [vmem:[#allocation4 + $0x43] sm:$0xff]  ;;  %2893 = vst.msk [vmem:[#allocation5 + $0x40] sm:$0xff] %vm1447_vm2, %v2837_v13 }
 0x201   :  { %3900 = vst.msk [vmem:[#allocation5 + $0x20] sm:$0xff] %vm3895_vm7, %v3736_v10  ;;  %v1336_v15 = vpop.f32.mrf.mxu3  ;;  %v3286_v35 = vld [vmem:[#allocation4 + $0x42] sm:$0xff] }
 0x202   :  { %4237 = vst.msk [vmem:[#allocation5 + $0x20] sm:$0xff] %vm4232_vm8, %v4073_v9  ;;  %v1337_v17 = vadd.f32 %v8947_v16, %v1336_v15  ;;  %3464 = vrot.lane.b32.xlu2 %v3315_v11, %s7993_s19  ;;  %v997_v19 = vpop.f32.mrf.mxu0  ;;  %v2949_v37 = vld [vmem:[#allocation4 + $0x41] sm:$0xff]  ;;  %v2950_v38 = vld [vmem:[#allocation4 + $0x49] sm:$0xff] }
 0x203   :  { %v1997_v21 = vld [vmem:[#allocation2 + $0x4e9] sm:$0xff]  ;;  %4138 = vrot.lane.b32.xlu1 %v3989_v42, %s7992_s18  ;;  %v998_v22 = vadd.f32 %v8947_v16, %v997_v19 }
 0x204   :  { %3743 = vrot.lane.b32.xlu0 %v3623_v18, %s7990_s12  ;;  %v2193_v24 = vmax.f32 %v1801_v14, %v1997_v21  ;;  %v1884_v25 = vld [vmem:[#allocation2 + $0x161] sm:$0xff]  ;;  %1607 = vst.msk [vmem:[#allocation2 + $0x4f8] sm:$0xff] %vm1447_vm2, %v1337_v17  ;;  %v1802_v32 = vld [vmem:[#allocation2 + $0x4f0] sm:$0xff]  ;;  %v218_v14 = vld [vmem:[%s11145_s0 + $0x598] sm:$0xff] }
 0x205   :  { %v2080_v27 = vmax.f32 %v1688_v23, %v1884_v25  ;;  %1494 = vst.msk [vmem:[#allocation2 + $0x170] sm:$0xff] %vm1447_vm2, %v998_v22  ;;  %v1689_v45 = vld [vmem:[#allocation2 + $0x168] sm:$0xff]  ;;  %v2738_v15 = vld [vmem:[#allocation3 + $0x4d0] ss:$2 sm:$0xff] }
 0x206   :  { %7515 = vmatmul.msk.f32.gmra.mxu0 %vm249_vm1, %v101_v20  ;;  %2389 = vst.msk [vmem:[#allocation3 + $0x4e8] sm:$0xff] %vm1447_vm2, %v2193_v24  ;;  %v2838_v50 = vld [vmem:[#allocation4 + $0x48] sm:$0xff] }
 0x207   :  { %7629 = vmatmul.msk.f32.gmra.mxu3 %vm249_vm1, %v215_v12  ;;  %2276 = vst.msk [vmem:[#allocation3 + $0x160] sm:$0xff] %vm1447_vm2, %v2080_v27  ;;  %v3738_v33 = vpop.permute.xlu0 %3737  ;;  %v3624_v53 = vld [vmem:[#allocation4 + $0x4b] sm:$0xff] }
 0x208   :  { %v3064_v28 = vpop.permute.xlu1 %3063  ;;  %2894 = vst.msk [vmem:[#allocation5 + $0x48] sm:$0xff] %vm1447_vm2, %v2838_v50  ;;  %v3960_v55 = vld [vmem:[#allocation4 + $0x44] sm:$0xff]  ;;  %v3961_v56 = vld [vmem:[#allocation4 + $0x4c] sm:$0xff] }
 0x209   :  { %3227 = vst.msk [vmem:[#allocation5 + $0x28] sm:$0xff] %vm3221_vm5, %v3064_v28  ;;  %v4293_v30 = vld [vmem:[#allocation5 + $0x20] sm:$0xff]  ;;  %v1339_v34 = vpop.f32.mrf.mxu3 }
 0x20a   :  { %3564 = vst.msk [vmem:[#allocation5 + $0x28] sm:$0xff] %vm3558_vm6, %v3401_v29  ;;  %7654 = vmatmul.msk.f32.gmra.mxu1 %vm4346_vm9, %v4293_v30  ;;  %v1340_v36 = vadd.f32 %v8947_v16, %v1339_v34  ;;  %3406 = vrot.lane.b32.xlu2 %v3286_v35, %s7993_s19  ;;  %v1000_v39 = vpop.f32.mrf.mxu0  ;;  %v3287_v9 = vld [vmem:[#allocation4 + $0x4a] sm:$0xff]  ;;  %v219_v34 = vld [vmem:[%s11145_s0 + $0x5a0] sm:$0xff] }
 0x20b   :  { %3901 = vst.msk [vmem:[#allocation5 + $0x28] sm:$0xff] %vm3895_vm7, %v3738_v33  ;;  %v1998_v41 = vld [vmem:[#allocation2 + $0x4f1] sm:$0xff]  ;;  %3069 = vrot.lane.b32.xlu1 %v2949_v37, %s7991_s13  ;;  %v1001_v43 = vadd.f32 %v8947_v16, %v1000_v39  ;;  %v104_v11 = vld [vmem:[%s11145_s0 + $0x208] sm:$0xff] }
 0x20c   :  { %3071 = vrot.lane.b32.xlu0 %v2950_v38, %s7991_s13  ;;  %v2194_v46 = vmax.f32 %v1802_v32, %v1998_v41  ;;  %v1885_v47 = vld [vmem:[#allocation2 + $0x169] sm:$0xff]  ;;  %1608 = vst.msk [vmem:[#allocation2 + $0x500] sm:$0xff] %vm1447_vm2, %v1340_v36  ;;  %v1803_v51 = vld [vmem:[#allocation2 + $0x4f8] sm:$0xff] }
 0x20d   :  { %v2081_v48 = vmax.f32 %v1689_v45, %v1885_v47  ;;  %1495 = vst.msk [vmem:[#allocation2 + $0x178] sm:$0xff] %vm1447_vm2, %v1001_v43  ;;  %v1690_v62 = vld [vmem:[#allocation2 + $0x170] sm:$0xff]  ;;  %v2740_v35 = vld [vmem:[#allocation3 + $0x4e0] ss:$2 sm:$0x3f] }
 0x20e   :  { %7516 = vmatmul.msk.f32.gmra.mxu0 %vm249_vm1, %v102_v40  ;;  %2390 = vst.msk [vmem:[#allocation3 + $0x4f0] sm:$0xff] %vm1447_vm2, %v2194_v46 }
 0x20f   :  { %7630 = vmatmul.msk.f32.gmra.mxu3 %vm249_vm1, %v216_v44  ;;  %2277 = vst.msk [vmem:[#allocation3 + $0x168] sm:$0xff] %vm1447_vm2, %v2081_v48  ;;  %v2514_v44 = vld [vmem:[#allocation3 + $0x150] ss:$2 sm:$0xff] }
 0x210   :  { %v4075_v49 = vpop.permute.xlu1 %4074 }
 0x211   :  { %4238 = vst.msk [vmem:[#allocation5 + $0x28] sm:$0xff] %vm4232_vm8, %v4075_v49  ;;  %v1342_v52 = vpop.f32.mrf.mxu3 }
 0x212   :  { %v1343_v54 = vadd.f32 %v8947_v16, %v1342_v52  ;;  %3745 = vrot.lane.b32.xlu2 %v3624_v53, %s7990_s12 }
 0x213   :  { %v1003_v57 = vpop.f32.mrf.mxu0  ;;  %v1999_v59 = vld [vmem:[#allocation2 + $0x4f9] sm:$0xff]  ;;  %4080 = vrot.lane.b32.xlu1 %v3960_v55, %s7992_s18 }
 0x214   :  { %4082 = vrot.lane.b32.xlu0 %v3961_v56, %s7992_s18  ;;  %v1004_v60 = vadd.f32 %v8947_v16, %v1003_v57  ;;  %v2195_v63 = vmax.f32 %v1803_v51, %v1999_v59  ;;  %v1886_v0 = vld [vmem:[#allocation2 + $0x171] sm:$0xff]  ;;  %1609 = vst.msk [vmem:[#allocation2 + $0x508] sm:$0xff] %vm1447_vm2, %v1343_v54  ;;  %v1804_v6 = vld [vmem:[#allocation2 + $0x500] sm:$0xff]  ;;  %v220_v59 = vld [vmem:[%s11145_s0 + $0x5a8] sm:$0xff] }
 0x215   :  { %v9065_v1 = vpop.permute.xlu2 %3458  ;;  %v2082_v2 = vmax.f32 %v1690_v62, %v1886_v0  ;;  %v1691_v17 = vld [vmem:[#allocation2 + $0x178] sm:$0xff] }
 0x216   :  { %1496 = vst.msk [vmem:[#allocation2 + $0x180] sm:$0xff] %vm1447_vm2, %v1004_v60  ;;  %7517 = vmatmul.msk.f32.gmra.mxu0 %vm249_vm1, %v103_v58  ;;  %v106_v56 = vld [vmem:[%s11145_s0 + $0x218] sm:$0xff] }
 0x217   :  { %2391 = vst.msk [vmem:[#allocation3 + $0x4f8] sm:$0xff] %vm1447_vm2, %v2195_v63  ;;  %7631 = vmatmul.msk.f32.gmra.mxu3 %vm249_vm1, %v217_v61 }
 0x218   :  { %2278 = vst.msk [vmem:[#allocation3 + $0x170] sm:$0xff] %vm1447_vm2, %v2082_v2  ;;  %v4518_v3 = vpop.f32.mrf.mxu1  ;;  %v4294_v4 = vld [vmem:[#allocation5 + $0x28] sm:$0xff] }
 0x219   :  { %v4519_v5 = vadd.f32 %v8962_v26, %v4518_v3  ;;  %7655 = vmatmul.msk.f32.gmra.mxu1 %vm4346_vm9, %v4294_v4 }
 0x21a   :  { %v1345_v7 = vpop.f32.mrf.mxu3 }
 0x21b   :  { %4664 = vst.msk [vmem:[#allocation6 + $0x8] sm:$0xff] %vm4662_vm10, %v4519_v5  ;;  %v1346_v8 = vadd.f32 %v8947_v16, %v1345_v7  ;;  %v1006_v10 = vpop.f32.mrf.mxu0  ;;  %v2000_v42 = vld [vmem:[#allocation2 + $0x501] sm:$0xff]  ;;  %3408 = vrot.lane.b32.xlu1 %v3287_v9, %s7993_s19 }
 0x21c   :  { %v1007_v13 = vadd.f32 %v8947_v16, %v1006_v10  ;;  %v2196_v18 = vmax.f32 %v1804_v6, %v2000_v42  ;;  %v1805_v25 = vld [vmem:[#allocation2 + $0x508] sm:$0xff] }
 0x21d   :  { %v1887_v19 = vld [vmem:[#allocation2 + $0x179] sm:$0xff]  ;;  %1610 = vst.msk [vmem:[#allocation2 + $0x510] sm:$0xff] %vm1447_vm2, %v1346_v8  ;;  %v9085_v20 = vpop.permute.xlu2 %3797 }
 0x21e   :  { %v2083_v21 = vmax.f32 %v1691_v17, %v1887_v19  ;;  %1497 = vst.msk [vmem:[#allocation2 + $0x188] sm:$0xff] %vm1447_vm2, %v1007_v13  ;;  %7518 = vmatmul.msk.f32.gmra.mxu0 %vm249_vm1, %v104_v11  ;;  %v2742_v22 = vld [vmem:[#allocation3 + $0x4ec] ss:$2 sm:$0xff]  ;;  %v1692_v36 = vld [vmem:[#allocation2 + $0x180] sm:$0xff] }
 0x21f   :  { %2392 = vst.msk [vmem:[#allocation3 + $0x500] sm:$0xff] %vm1447_vm2, %v2196_v18  ;;  %7632 = vmatmul.msk.f32.gmra.mxu3 %vm249_vm1, %v218_v14  ;;  %v2745_v12 = vmax.f32 %v2738_v15, %v2742_v22  ;;  %v2516_v9 = vld [vmem:[#allocation3 + $0x160] ss:$2 sm:$0x3f] }
 0x220   :  { %2279 = vst.msk [vmem:[#allocation3 + $0x178] sm:$0xff] %vm1447_vm2, %v2083_v21  ;;  %v107_v13 = vld [vmem:[%s11145_s0 + $0x220] sm:$0xff] }
 0x221   :  { %v4521_v23 = vpop.f32.mrf.mxu1  ;;  %v2747_v24 = vmax.f32 %v2745_v12, 0.0 }
 0x222   :  { %v4522_v27 = vadd.f32 %v8962_v26, %v4521_v23  ;;  %v1348_v28 = vpop.f32.mrf.mxu3 }
 0x223   :  { %v1349_v29 = vadd.f32 %v8947_v16, %v1348_v28  ;;  %v1009_v30 = vpop.f32.mrf.mxu0  ;;  %2749 = vst.msk [vmem:[#allocation4 + $0x134] sm:$0xff] %vm1447_vm2, %v2747_v24 }
 0x224   :  { %v2001_v32 = vld [vmem:[#allocation2 + $0x509] sm:$0xff]  ;;  %4665 = vst.msk [vmem:[#allocation6 + $0x10] sm:$0xff] %vm4662_vm10, %v4522_v27  ;;  %v1010_v33 = vadd.f32 %v8947_v16, %v1009_v30 }
 0x225   :  { %v2197_v37 = vmax.f32 %v1805_v25, %v2001_v32  ;;  %v1888_v38 = vld [vmem:[#allocation2 + $0x181] sm:$0xff]  ;;  %1611 = vst.msk [vmem:[#allocation2 + $0x518] sm:$0xff] %vm1447_vm2, %v1349_v29  ;;  %v9104_v39 = vpop.permute.xlu2 %3739  ;;  %v1806_v47 = vld [vmem:[#allocation2 + $0x510] sm:$0xff] }
 0x226   :  { %v2084_v40 = vmax.f32 %v1692_v36, %v1888_v38  ;;  %1498 = vst.msk [vmem:[#allocation2 + $0x190] sm:$0xff] %vm1447_vm2, %v1010_v33  ;;  %7519 = vmatmul.msk.f32.gmra.mxu0 %vm249_vm1, %v105_v31  ;;  %v2744_v41 = vld [vmem:[#allocation3 + $0x4fc] ss:$2 sm:$0x3f]  ;;  %v1693_v60 = vld [vmem:[#allocation2 + $0x188] sm:$0xff] }
 0x227   :  { %2393 = vst.msk [vmem:[#allocation3 + $0x508] sm:$0xff] %vm1447_vm2, %v2197_v37  ;;  %7633 = vmatmul.msk.f32.gmra.mxu3 %vm249_vm1, %v219_v34  ;;  %v2746_v43 = vmax.f32 %v2740_v35, %v2744_v41  ;;  %v2518_v45 = vld [vmem:[#allocation3 + $0x16c] ss:$2 sm:$0xff] }
 0x228   :  { %2280 = vst.msk [vmem:[#allocation3 + $0x180] sm:$0xff] %vm1447_vm2, %v2084_v40  ;;  %v2521_v46 = vmax.f32 %v2514_v44, %v2518_v45  ;;  %v2866_v27 = vld [vmem:[#allocation4 + $0x128] sm:$0xff]  ;;  %v222_v36 = vld [vmem:[%s11145_s0 + $0x5b8] sm:$0xff] }
 0x229   :  { %v2748_v48 = vmax.f32 %v2746_v43, 0.0  ;;  %v108_v33 = vld [vmem:[%s11145_s0 + $0x228] sm:$0xff]  ;;  %2922 = vst.msk [vmem:[#allocation5 + $0x128] sm:$0xff] %vm1447_vm2, %v2866_v27 }
 0x22a   :  { %v1351_v49 = vpop.f32.mrf.mxu3  ;;  %v3653_v50 = vld [vmem:[#allocation4 + $0x133] sm:$0xff]  ;;  %v2523_v53 = vmax.f32 %v2521_v46, 0.0 }
 0x22b   :  { %v2979_v51 = vld [vmem:[#allocation4 + $0x131] sm:$0xff]  ;;  %v1352_v54 = vadd.f32 %v8947_v16, %v1351_v49  ;;  %3803 = vrot.lane.b32.xlu2 %v3653_v50, %s7990_s12  ;;  %v1012_v55 = vpop.f32.mrf.mxu0  ;;  %2750 = vst.msk [vmem:[#allocation4 + $0x13c] sm:$0x3f] %vm2441_vm3, %v2748_v48 }
 0x22c   :  { %v3316_v52 = vld [vmem:[#allocation4 + $0x132] sm:$0xff]  ;;  %3129 = vrot.lane.b32.xlu0 %v2979_v51, %s7991_s13  ;;  %v1013_v58 = vadd.f32 %v8947_v16, %v1012_v55  ;;  %2525 = vst.msk [vmem:[#allocation4 + $0x54] sm:$0xff] %vm1447_vm2, %v2523_v53  ;;  %v223_v55 = vld [vmem:[%s11145_s0 + $0x5c0] sm:$0xff] }
 0x22d   :  { %v2002_v57 = vld [vmem:[#allocation2 + $0x511] sm:$0xff]  ;;  %3466 = vrot.lane.b32.xlu1 %v3316_v52, %s7993_s19  ;;  %v1889_v62 = vld [vmem:[#allocation2 + $0x189] sm:$0xff]  ;;  %1612 = vst.msk [vmem:[#allocation2 + $0x520] sm:$0xff] %vm1447_vm2, %v1352_v54  ;;  %v3068_v2 = vpop.permute.xlu2 %3067 }
 0x22e   :  { %v2198_v61 = vmax.f32 %v1806_v47, %v2002_v57  ;;  %v3122_v63 = vpop.permute.xlu1 %3121  ;;  %v2085_v0 = vmax.f32 %v1693_v60, %v1889_v62  ;;  %1499 = vst.msk [vmem:[#allocation2 + $0x198] sm:$0xff] %vm1447_vm2, %v1013_v58  ;;  %7520 = vmatmul.msk.f32.gmra.mxu0 %vm249_vm1, %v106_v56  ;;  %v3990_v4 = vld [vmem:[#allocation4 + $0x134] sm:$0xff] }
 0x22f   :  { %v3796_v3 = vpop.permute.xlu0 %3795  ;;  %7634 = vmatmul.msk.f32.gmra.mxu3 %vm249_vm1, %v220_v59  ;;  %v2520_v5 = vld [vmem:[#allocation3 + $0x17c] ss:$2 sm:$0x3f]  ;;  %3229 = vst.msk [vmem:[#allocation5 + $0x38] sm:$0xff] %vm3221_vm5, %v3068_v2  ;;  %v1694_v18 = vld [vmem:[#allocation2 + $0x190] sm:$0xff] }
 0x230   :  { %2394 = vst.msk [vmem:[#allocation3 + $0x510] sm:$0xff] %vm1447_vm2, %v2198_v61  ;;  %v1807_v6 = vld [vmem:[#allocation2 + $0x518] sm:$0xff]  ;;  %v2522_v14 = vmax.f32 %v2516_v9, %v2520_v5  ;;  %v109_v53 = vld [vmem:[%s11145_s0 + $0x230] sm:$0xff] }
 0x231   :  { %2281 = vst.msk [vmem:[#allocation3 + $0x188] sm:$0xff] %vm1447_vm2, %v2085_v0  ;;  %v2867_v0 = vld [vmem:[#allocation4 + $0x130] sm:$0xff] }
 0x232   :  { %3256 = vst.msk [vmem:[#allocation5 + $0x110] sm:$0xff] %vm3221_vm5, %v3122_v63  ;;  %v1354_v7 = vpop.f32.mrf.mxu3  ;;  %v2980_v8 = vld [vmem:[#allocation4 + $0x139] sm:$0xff]  ;;  %v2524_v24 = vmax.f32 %v2522_v14, 0.0 }
 0x233   :  { %3593 = vst.msk [vmem:[#allocation5 + $0x110] sm:$0xff] %vm3558_vm6, %v9065_v1  ;;  %v1355_v10 = vadd.f32 %v8947_v16, %v1354_v7  ;;  %3131 = vrot.lane.b32.xlu2 %v2980_v8, %s7991_s13  ;;  %v1015_v11 = vpop.f32.mrf.mxu0  ;;  %v3625_v42 = vld [vmem:[#allocation4 + $0x53] sm:$0xff] }
 0x234   :  { %4140 = vrot.lane.b32.xlu0 %v3990_v4, %s7992_s18  ;;  %v2003_v15 = vld [vmem:[#allocation2 + $0x519] sm:$0xff]  ;;  %3930 = vst.msk [vmem:[#allocation5 + $0x110] sm:$0xff] %vm3895_vm7, %v3796_v3  ;;  %v1016_v17 = vadd.f32 %v8947_v16, %v1015_v11  ;;  %v221_v1 = vld [vmem:[%s11145_s0 + $0x5b0] sm:$0xff] }
 0x235   :  { %3747 = vrot.lane.b32.xlu1 %v3625_v42, %s7990_s12  ;;  %v2199_v19 = vmax.f32 %v1807_v6, %v2003_v15  ;;  %v1890_v21 = vld [vmem:[#allocation2 + $0x191] sm:$0xff]  ;;  %1613 = vst.msk [vmem:[#allocation2 + $0x528] sm:$0xff] %vm1447_vm2, %v1355_v10  ;;  %v3317_v25 = vld [vmem:[#allocation4 + $0x13a] sm:$0xff]  ;;  %v9194_v63 = vpop.permute.xlu2 %4078  ;;  %v224_v10 = vld [vmem:[%s11145_s0 + $0x5c8] sm:$0xff] }
 0x236   :  { %v4133_v22 = vpop.permute.xlu1 %4132  ;;  %v2086_v12 = vmax.f32 %v1694_v18, %v1890_v21  ;;  %1500 = vst.msk [vmem:[#allocation2 + $0x1a0] sm:$0xff] %vm1447_vm2, %v1016_v17  ;;  %7521 = vmatmul.msk.f32.gmra.mxu0 %vm249_vm1, %v107_v13  ;;  %v1808_v28 = vld [vmem:[#allocation2 + $0x520] sm:$0xff]  ;;  %v2951_v30 = vld [vmem:[#allocation4 + $0x51] sm:$0xff] }
 0x237   :  { %v3124_v23 = vpop.permute.xlu0 %3123  ;;  %2395 = vst.msk [vmem:[#allocation3 + $0x518] sm:$0xff] %vm1447_vm2, %v2199_v19  ;;  %7635 = vmatmul.msk.f32.gmra.mxu3 %vm249_vm1, %v221_v1  ;;  %v1695_v37 = vld [vmem:[#allocation2 + $0x198] sm:$0xff]  ;;  %v2839_v45 = vld [vmem:[#allocation4 + $0x50] sm:$0xff] }
 0x238   :  { %2282 = vst.msk [vmem:[#allocation3 + $0x190] sm:$0xff] %vm1447_vm2, %v2086_v12  ;;  %v3962_v49 = vld [vmem:[#allocation4 + $0x54] sm:$0xff] }
 0x239   :  { %4267 = vst.msk [vmem:[#allocation5 + $0x110] sm:$0xff] %vm4232_vm8, %v4133_v22  ;;  %v3288_v51 = vld [vmem:[#allocation4 + $0x52] sm:$0xff]  ;;  %v111_v22 = vld [vmem:[%s11145_s0 + $0x240] sm:$0xff] }
 0x23a   :  { %3257 = vst.msk [vmem:[#allocation5 + $0x118] sm:$0xff] %vm3221_vm5, %v3124_v23  ;;  %v1357_v29 = vpop.f32.mrf.mxu3  ;;  %v110_v7 = vld [vmem:[%s11145_s0 + $0x238] sm:$0xff] }
 0x23b   :  { %v1358_v31 = vadd.f32 %v8947_v16, %v1357_v29  ;;  %3073 = vrot.lane.b32.xlu2 %v2951_v30, %s7991_s13  ;;  %v1018_v32 = vpop.f32.mrf.mxu0  ;;  %2526 = vst.msk [vmem:[#allocation4 + $0x5c] sm:$0x3f] %vm2441_vm3, %v2524_v24  ;;  %v225_v24 = vld [vmem:[%s11145_s0 + $0x5d0] sm:$0xff] }
 0x23c   :  { %3468 = vrot.lane.b32.xlu0 %v3317_v25, %s7993_s19  ;;  %v2004_v34 = vld [vmem:[#allocation2 + $0x521] sm:$0xff]  ;;  %v1019_v35 = vadd.f32 %v8947_v16, %v1018_v32  ;;  %2895 = vst.msk [vmem:[#allocation5 + $0x50] sm:$0xff] %vm1447_vm2, %v2839_v45 }
 0x23d   :  { %v2200_v38 = vmax.f32 %v1808_v28, %v2004_v34  ;;  %v1891_v40 = vld [vmem:[#allocation2 + $0x199] sm:$0xff]  ;;  %1614 = vst.msk [vmem:[#allocation2 + $0x530] sm:$0xff] %vm1447_vm2, %v1358_v31  ;;  %v1809_v46 = vld [vmem:[#allocation2 + $0x528] sm:$0xff] }
 0x23e   :  { %v3461_v41 = vpop.permute.xlu1 %3460  ;;  %v2087_v43 = vmax.f32 %v1695_v37, %v1891_v40  ;;  %1501 = vst.msk [vmem:[#allocation2 + $0x1a8] sm:$0xff] %vm1447_vm2, %v1019_v35  ;;  %7522 = vmatmul.msk.f32.gmra.mxu0 %vm249_vm1, %v108_v33  ;;  %v1696_v56 = vld [vmem:[#allocation2 + $0x1a0] sm:$0xff]  ;;  %v2752_v32 = vld [vmem:[#allocation3 + $0x508] ss:$2 sm:$0xff] }
 0x23f   :  { %v4135_v44 = vpop.permute.xlu0 %4134  ;;  %2396 = vst.msk [vmem:[#allocation3 + $0x520] sm:$0xff] %vm1447_vm2, %v2200_v38  ;;  %7636 = vmatmul.msk.f32.gmra.mxu3 %vm249_vm1, %v222_v36 }
 0x240   :  { %2283 = vst.msk [vmem:[#allocation3 + $0x198] sm:$0xff] %vm1447_vm2, %v2087_v43  ;;  %v4323_v61 = vld [vmem:[#allocation5 + $0x110] sm:$0xff] }
 0x241   :  { %3594 = vst.msk [vmem:[#allocation5 + $0x118] sm:$0xff] %vm3558_vm6, %v3461_v41  ;;  %7684 = vmatmul.msk.f32.vlgmr.msra.gmra.mxu2 %vm4346_vm9, %v4323_v61 }
 0x242   :  { %v2952_v47 = vld [vmem:[#allocation4 + $0x59] sm:$0xff]  ;;  %3931 = vst.msk [vmem:[#allocation5 + $0x118] sm:$0xff] %vm3895_vm7, %v9085_v20  ;;  %v1360_v48 = vpop.f32.mrf.mxu3 }
 0x243   :  { %3075 = vrot.lane.b32.xlu1 %v2952_v47, %s7991_s13  ;;  %4268 = vst.msk [vmem:[#allocation5 + $0x118] sm:$0xff] %vm4232_vm8, %v4135_v44  ;;  %v1361_v50 = vadd.f32 %v8947_v16, %v1360_v48  ;;  %4084 = vrot.lane.b32.xlu2 %v3962_v49, %s7992_s18  ;;  %v1021_v52 = vpop.f32.mrf.mxu0  ;;  %v3289_v4 = vld [vmem:[#allocation4 + $0x5a] sm:$0xff] }
 0x244   :  { %v2005_v54 = vld [vmem:[#allocation2 + $0x529] sm:$0xff]  ;;  %3410 = vrot.lane.b32.xlu0 %v3288_v51, %s7993_s19  ;;  %v1022_v20 = vadd.f32 %v8947_v16, %v1021_v52  ;;  %2923 = vst.msk [vmem:[#allocation5 + $0x130] sm:$0xff] %vm1447_vm2, %v2867_v0  ;;  %v2840_v17 = vld [vmem:[#allocation4 + $0x58] sm:$0xff] }
 0x245   :  { %v2201_v57 = vmax.f32 %v1809_v46, %v2005_v54  ;;  %v1892_v58 = vld [vmem:[#allocation2 + $0x1a1] sm:$0xff]  ;;  %1615 = vst.msk [vmem:[#allocation2 + $0x538] sm:$0xff] %vm1447_vm2, %v1361_v50  ;;  %v1810_v2 = vld [vmem:[#allocation2 + $0x530] sm:$0xff]  ;;  %v226_v46 = vld [vmem:[%s11145_s0 + $0x5d8] sm:$0xff] }
 0x246   :  { %v2088_v59 = vmax.f32 %v1696_v56, %v1892_v58  ;;  %1502 = vst.msk [vmem:[#allocation2 + $0x1b0] sm:$0xff] %vm1447_vm2, %v1022_v20  ;;  %7523 = vmatmul.msk.f32.gmra.mxu0 %vm249_vm1, %v109_v53  ;;  %v3403_v62 = vpop.permute.xlu1 %3402  ;;  %v1697_v11 = vld [vmem:[#allocation2 + $0x1a8] sm:$0xff]  ;;  %v2754_v47 = vld [vmem:[#allocation3 + $0x518] ss:$2 sm:$0x3f] }
 0x247   :  { %v3066_v60 = vpop.permute.xlu0 %3065  ;;  %2397 = vst.msk [vmem:[#allocation3 + $0x528] sm:$0xff] %vm1447_vm2, %v2201_v57  ;;  %7637 = vmatmul.msk.f32.gmra.mxu3 %vm249_vm1, %v223_v55  ;;  %v2528_v56 = vld [vmem:[#allocation3 + $0x188] ss:$2 sm:$0xff] }
 0x248   :  { %2284 = vst.msk [vmem:[#allocation3 + $0x1a0] sm:$0xff] %vm1447_vm2, %v2088_v59 }
 0x249   :  { %3228 = vst.msk [vmem:[#allocation5 + $0x30] sm:$0xff] %vm3221_vm5, %v3066_v60 }
 0x24a   :  { %3565 = vst.msk [vmem:[#allocation5 + $0x30] sm:$0xff] %vm3558_vm6, %v3403_v62  ;;  %v1363_v3 = vpop.f32.mrf.mxu3  ;;  %v4324_v54 = vld [vmem:[#allocation5 + $0x118] sm:$0xff] }
 0x24b   :  { %3902 = vst.msk [vmem:[#allocation5 + $0x30] sm:$0xff] %vm3895_vm7, %v9104_v39  ;;  %v1364_v5 = vadd.f32 %v8947_v16, %v1363_v3  ;;  %3412 = vrot.lane.b32.xlu2 %v3289_v4, %s7993_s19  ;;  %v1024_v6 = vpop.f32.mrf.mxu0  ;;  %7685 = vmatmul.msk.f32.gmra.mxu2 %vm4346_vm9, %v4324_v54  ;;  %v113_v3 = vld [vmem:[%s11145_s0 + $0x250] sm:$0xff] }
 0x24c   :  { %v2006_v8 = vld [vmem:[#allocation2 + $0x531] sm:$0xff]  ;;  %v1025_v9 = vadd.f32 %v8947_v16, %v1024_v6  ;;  %v3126_v15 = vpop.permute.xlu2 %3125  ;;  %2896 = vst.msk [vmem:[#allocation5 + $0x58] sm:$0xff] %vm1447_vm2, %v2840_v17  ;;  %v227_v6 = vld [vmem:[%s11145_s0 + $0x5e0] sm:$0xff] }
 0x24d   :  { %v2202_v39 = vmax.f32 %v1810_v2, %v2006_v8  ;;  %v1893_v42 = vld [vmem:[#allocation2 + $0x1a9] sm:$0xff]  ;;  %1616 = vst.msk [vmem:[#allocation2 + $0x540] sm:$0xff] %vm1447_vm2, %v1364_v5  ;;  %v1811_v1 = vld [vmem:[#allocation2 + $0x538] sm:$0xff] }
 0x24e   :  { %v2089_v13 = vmax.f32 %v1697_v11, %v1893_v42  ;;  %1503 = vst.msk [vmem:[#allocation2 + $0x1b8] sm:$0xff] %vm1447_vm2, %v1025_v9  ;;  %7524 = vmatmul.msk.f32.gmra.mxu0 %vm249_vm1, %v110_v7  ;;  %v1698_v25 = vld [vmem:[#allocation2 + $0x1b0] sm:$0xff]  ;;  %v3742_v35 = vpop.permute.xlu1 %3741 }
 0x24f   :  { %v4077_v14 = vpop.permute.xlu0 %4076  ;;  %2398 = vst.msk [vmem:[#allocation3 + $0x530] sm:$0xff] %vm1447_vm2, %v2202_v39  ;;  %7638 = vmatmul.msk.f32.gmra.mxu3 %vm249_vm1, %v224_v10  ;;  %v2530_v42 = vld [vmem:[#allocation3 + $0x198] ss:$2 sm:$0x3f] }
 0x250   :  { %2285 = vst.msk [vmem:[#allocation3 + $0x1a8] sm:$0xff] %vm1447_vm2, %v2089_v13 }
 0x251   :  { %3258 = vst.msk [vmem:[#allocation5 + $0x120] sm:$0xff] %vm3221_vm5, %v3126_v15 }
 0x252   :  { %4239 = vst.msk [vmem:[#allocation5 + $0x30] sm:$0xff] %vm4232_vm8, %v4077_v14  ;;  %v1366_v18 = vpop.f32.mrf.mxu3 }
 0x253   :  { %v1367_v19 = vadd.f32 %v8947_v16, %v1366_v18  ;;  %v1027_v21 = vpop.f32.mrf.mxu0 }
 0x254   :  { %v2007_v12 = vld [vmem:[#allocation2 + $0x539] sm:$0xff]  ;;  %v1028_v23 = vadd.f32 %v8947_v16, %v1027_v21  ;;  %v4137_v20 = vpop.permute.xlu2 %4136 }
 0x255   :  { %v2203_v27 = vmax.f32 %v1811_v1, %v2007_v12  ;;  %v1894_v28 = vld [vmem:[#allocation2 + $0x1b1] sm:$0xff]  ;;  %1617 = vst.msk [vmem:[#allocation2 + $0x548] sm:$0xff] %vm1447_vm2, %v1367_v19  ;;  %v1812_v38 = vld [vmem:[#allocation2 + $0x540] sm:$0xff] }
 0x256   :  { %v2090_v29 = vmax.f32 %v1698_v25, %v1894_v28  ;;  %1504 = vst.msk [vmem:[#allocation2 + $0x1c0] sm:$0xff] %vm1447_vm2, %v1028_v23  ;;  %v4524_v31 = vpop.f32.mrf.mxu1  ;;  %7525 = vmatmul.msk.f32.gmra.mxu0 %vm249_vm1, %v111_v22  ;;  %v2756_v33 = vld [vmem:[#allocation3 + $0x524] ss:$2 sm:$0xff]  ;;  %v1699_v48 = vld [vmem:[#allocation2 + $0x1b8] sm:$0xff] }
 0x257   :  { %v3405_v30 = vpop.permute.xlu0 %3404  ;;  %2399 = vst.msk [vmem:[#allocation3 + $0x538] sm:$0xff] %vm1447_vm2, %v2203_v27  ;;  %7639 = vmatmul.msk.f32.gmra.mxu3 %vm249_vm1, %v225_v24  ;;  %v4525_v34 = vadd.f32 %v8962_v26, %v4524_v31  ;;  %v2759_v37 = vmax.f32 %v2752_v32, %v2756_v33  ;;  %v112_v26 = vld [vmem:[%s11145_s0 + $0x248] sm:$0xff]  ;;  %v114_v24 = vld [vmem:[%s11145_s0 + $0x258] sm:$0xff] }
 0x258   :  { %2286 = vst.msk [vmem:[#allocation3 + $0x1b0] sm:$0xff] %vm1447_vm2, %v2090_v29  ;;  %v228_v28 = vld [vmem:[%s11145_s0 + $0x5e8] sm:$0xff] }
 0x259   :  { %3566 = vst.msk [vmem:[#allocation5 + $0x38] sm:$0xff] %vm3558_vm6, %v3405_v30  ;;  %v4295_v36 = vld [vmem:[#allocation5 + $0x30] sm:$0xff]  ;;  %v2761_v51 = vmax.f32 %v2759_v37, 0.0 }
 0x25a   :  { %3903 = vst.msk [vmem:[#allocation5 + $0x38] sm:$0xff] %vm3895_vm7, %v3742_v35  ;;  %7656 = vmatmul.msk.f32.gmra.mxu1 %vm4346_vm9, %v4295_v36  ;;  %v1369_v40 = vpop.f32.mrf.mxu3 }
 0x25b   :  { %4240 = vst.msk [vmem:[#allocation5 + $0x38] sm:$0xff] %vm4232_vm8, %v9194_v63  ;;  %v1370_v41 = vadd.f32 %v8947_v16, %v1369_v40  ;;  %v1030_v43 = vpop.f32.mrf.mxu0 }
 0x25c   :  { %v2008_v44 = vld [vmem:[#allocation2 + $0x541] sm:$0xff]  ;;  %4666 = vst.msk [vmem:[#allocation6 + $0x18] sm:$0xff] %vm4662_vm10, %v4525_v34  ;;  %v1031_v45 = vadd.f32 %v8947_v16, %v1030_v43  ;;  %v3465_v1 = vpop.permute.xlu2 %3464 }
 0x25d   :  { %v2204_v49 = vmax.f32 %v1812_v38, %v2008_v44  ;;  %v1895_v50 = vld [vmem:[#allocation2 + $0x1b9] sm:$0xff]  ;;  %1618 = vst.msk [vmem:[#allocation2 + $0x550] sm:$0xff] %vm1447_vm2, %v1370_v41  ;;  %v1813_v60 = vld [vmem:[#allocation2 + $0x548] sm:$0xff] }
 0x25e   :  { %v2091_v52 = vmax.f32 %v1699_v48, %v1895_v50  ;;  %1505 = vst.msk [vmem:[#allocation2 + $0x1c8] sm:$0xff] %vm1447_vm2, %v1031_v45  ;;  %7526 = vmatmul.msk.f32.gmra.mxu0 %vm249_vm1, %v112_v26  ;;  %v2758_v53 = vld [vmem:[#allocation3 + $0x534] ss:$2 sm:$0x3f]  ;;  %v1700_v7 = vld [vmem:[#allocation2 + $0x1c0] sm:$0xff] }
 0x25f   :  { %2400 = vst.msk [vmem:[#allocation3 + $0x540] sm:$0xff] %vm1447_vm2, %v2204_v49  ;;  %7640 = vmatmul.msk.f32.gmra.mxu3 %vm249_vm1, %v226_v46  ;;  %v2760_v55 = vmax.f32 %v2754_v47, %v2758_v53  ;;  %v2532_v57 = vld [vmem:[#allocation3 + $0x1a4] ss:$2 sm:$0xff]  ;;  %v9303_v26 = vld [vmem:[%s11147_s2] ss:$0 sm:$0xff] }
 0x260   :  { %2287 = vst.msk [vmem:[#allocation3 + $0x1b8] sm:$0xff] %vm1447_vm2, %v2091_v52  ;;  %v2535_v58 = vmax.f32 %v2528_v56, %v2532_v57  ;;  %v115_v46 = vld [vmem:[%s11145_s0 + $0x260] sm:$0xff]  ;;  %v229_v49 = vld [vmem:[%s11145_s0 + $0x5f0] sm:$0xff] }
 0x261   :  { %2763 = vst.msk [vmem:[#allocation4 + $0x142] sm:$0xff] %vm1447_vm2, %v2761_v51  ;;  %v2762_v59 = vmax.f32 %v2760_v55, 0.0 }
 0x262   :  { %v4296_v61 = vld [vmem:[#allocation5 + $0x38] sm:$0xff]  ;;  %v1372_v62 = vpop.f32.mrf.mxu3  ;;  %v2537_v63 = vmax.f32 %v2535_v58, 0.0 }
 0x263   :  { %7657 = vmatmul.msk.f32.gmra.mxu1 %vm4346_vm9, %v4296_v61  ;;  %v1373_v0 = vadd.f32 %v8947_v16, %v1372_v62  ;;  %v1033_v2 = vpop.f32.mrf.mxu0  ;;  %2764 = vst.msk [vmem:[#allocation4 + $0x14a] sm:$0x3f] %vm2441_vm3, %v2762_v59 }
 0x264   :  { %v2009_v4 = vld [vmem:[#allocation2 + $0x549] sm:$0xff]  ;;  %v1034_v5 = vadd.f32 %v8947_v16, %v1033_v2  ;;  %2539 = vst.msk [vmem:[#allocation4 + $0x62] sm:$0xff] %vm1447_vm2, %v2537_v63  ;;  %v3407_v43 = vpop.permute.xlu2 %3406 }
 0x265   :  { %v2205_v8 = vmax.f32 %v1813_v60, %v2009_v4  ;;  %v1896_v9 = vld [vmem:[#allocation2 + $0x1c1] sm:$0xff]  ;;  %1619 = vst.msk [vmem:[#allocation2 + $0x558] sm:$0xff] %vm1447_vm2, %v1373_v0  ;;  %v3800_v10 = vpop.permute.xlu1 %3799  ;;  %v1814_v18 = vld [vmem:[#allocation2 + $0x550] sm:$0xff]  ;;  %v230_v4 = vld [vmem:[%s11145_s0 + $0x5f8] sm:$0xff] }
 0x266   :  { %v2092_v11 = vmax.f32 %v1700_v7, %v1896_v9  ;;  %1506 = vst.msk [vmem:[#allocation2 + $0x1d0] sm:$0xff] %vm1447_vm2, %v1034_v5  ;;  %v3463_v39 = vpop.permute.xlu0 %3462  ;;  %7527 = vmatmul.msk.f32.gmra.mxu0 %vm249_vm1, %v113_v3  ;;  %v1701_v29 = vld [vmem:[#allocation2 + $0x1c8] sm:$0xff] }
 0x267   :  { %2401 = vst.msk [vmem:[#allocation3 + $0x548] sm:$0xff] %vm1447_vm2, %v2205_v8  ;;  %7641 = vmatmul.msk.f32.gmra.mxu3 %vm249_vm1, %v227_v6  ;;  %v2534_v13 = vld [vmem:[#allocation3 + $0x1b4] ss:$2 sm:$0x3f]  ;;  %v116_v0 = vld [vmem:[%s11145_s0 + $0x268] sm:$0xff] }
 0x268   :  { %2288 = vst.msk [vmem:[#allocation3 + $0x1c0] sm:$0xff] %vm1447_vm2, %v2092_v11  ;;  %v3654_v14 = vld [vmem:[#allocation4 + $0x13b] sm:$0xff]  ;;  %v2536_v17 = vmax.f32 %v2530_v42, %v2534_v13 }
 0x269   :  { %v3991_v15 = vld [vmem:[#allocation4 + $0x13c] sm:$0xff]  ;;  %3805 = vrot.lane.b32.xlu1 %v3654_v14, %s7990_s12  ;;  %3595 = vst.msk [vmem:[#allocation5 + $0x120] sm:$0xff] %vm3558_vm6, %v3463_v39 }
 0x26a   :  { %4142 = vrot.lane.b32.xlu2 %v3991_v15, %s7992_s18  ;;  %3932 = vst.msk [vmem:[#allocation5 + $0x120] sm:$0xff] %vm3895_vm7, %v3800_v10  ;;  %v1375_v19 = vpop.f32.mrf.mxu3  ;;  %v3655_v21 = vld [vmem:[#allocation4 + $0x143] sm:$0xff]  ;;  %v2538_v22 = vmax.f32 %v2536_v17, 0.0 }
 0x26b   :  { %4269 = vst.msk [vmem:[#allocation5 + $0x120] sm:$0xff] %vm4232_vm8, %v4137_v20  ;;  %v1376_v12 = vadd.f32 %v8947_v16, %v1375_v19  ;;  %3807 = vrot.lane.b32.xlu0 %v3655_v21, %s7990_s12  ;;  %v1036_v23 = vpop.f32.mrf.mxu0  ;;  %v2981_v33 = vld [vmem:[#allocation4 + $0x141] sm:$0xff] }
 0x26c   :  { %v2010_v25 = vld [vmem:[#allocation2 + $0x551] sm:$0xff]  ;;  %v1037_v27 = vadd.f32 %v8947_v16, %v1036_v23  ;;  %2540 = vst.msk [vmem:[#allocation4 + $0x6a] sm:$0x3f] %vm2441_vm3, %v2538_v22  ;;  %v3318_v34 = vld [vmem:[#allocation4 + $0x142] sm:$0xff]  ;;  %v9336_v6 = vpop.permute.xlu2 %3745 }
 0x26d   :  { %v2206_v30 = vmax.f32 %v1814_v18, %v2010_v25  ;;  %v1897_v31 = vld [vmem:[#allocation2 + $0x1c9] sm:$0xff]  ;;  %1620 = vst.msk [vmem:[#allocation2 + $0x560] sm:$0xff] %vm1447_vm2, %v1376_v12  ;;  %v3128_v35 = vpop.permute.xlu1 %3127  ;;  %v2868_v16 = vld [vmem:[#allocation4 + $0x138] sm:$0xff]  ;;  %v2841_v57 = vld [vmem:[#allocation4 + $0x60] sm:$0xff] }
 0x26e   :  { %v2093_v32 = vmax.f32 %v1701_v29, %v1897_v31  ;;  %1507 = vst.msk [vmem:[#allocation2 + $0x1d8] sm:$0xff] %vm1447_vm2, %v1037_v27  ;;  %v3802_v36 = vpop.permute.xlu0 %3801  ;;  %7528 = vmatmul.msk.f32.gmra.mxu0 %vm249_vm1, %v114_v24  ;;  %v1815_v37 = vld [vmem:[#allocation2 + $0x558] sm:$0xff]  ;;  %v1702_v50 = vld [vmem:[#allocation2 + $0x1d0] sm:$0xff]  ;;  %v3992_v54 = vld [vmem:[#allocation4 + $0x144] sm:$0xff] }
 0x26f   :  { %2402 = vst.msk [vmem:[#allocation3 + $0x550] sm:$0xff] %vm1447_vm2, %v2206_v30  ;;  %7642 = vmatmul.msk.f32.gmra.mxu3 %vm249_vm1, %v228_v28  ;;  %v3626_v40 = vld [vmem:[#allocation4 + $0x5b] sm:$0xff] }
 0x270   :  { %2289 = vst.msk [vmem:[#allocation3 + $0x1c8] sm:$0xff] %vm1447_vm2, %v2093_v32  ;;  %v2953_v61 = vld [vmem:[#allocation4 + $0x61] sm:$0xff]  ;;  %v9369_v30 = vld [vmem:[%s11149_s4] ss:$0 sm:$0xff]  ;;  %v7756_v32 = vld [vmem:[%s11148_s3 + $0x58] sm:$0x3f] }
 0x271   :  { %3133 = vrot.lane.b32.xlu1 %v2981_v33, %s7991_s13  ;;  %3259 = vst.msk [vmem:[#allocation5 + $0x128] sm:$0xff] %vm3221_vm5, %v3128_v35  ;;  %v3963_v11 = vld [vmem:[#allocation4 + $0x5c] sm:$0xff]  ;;  %7933 = vmatpush.msk.msrb.mxu3 %vm4494_vm4, %v7756_v32 }
 0x272   :  { %3470 = vrot.lane.b32.xlu2 %v3318_v34, %s7993_s19  ;;  %3596 = vst.msk [vmem:[#allocation5 + $0x128] sm:$0xff] %vm3558_vm6, %v3465_v1  ;;  %v1378_v38 = vpop.f32.mrf.mxu3  ;;  %v4325_v41 = vld [vmem:[#allocation5 + $0x120] sm:$0xff]  ;;  %v117_v1 = vld [vmem:[%s11145_s0 + $0x270] sm:$0xff]  ;;  %v231_v21 = vld [vmem:[%s11145_s0 + $0x600] sm:$0xff]  ;;  %7757 = vmatpush.msk.msrb.mxu1 %vm4494_vm4, %v7756_v32 }
 0x273   :  { %3933 = vst.msk [vmem:[#allocation5 + $0x128] sm:$0xff] %vm3895_vm7, %v3802_v36  ;;  %v1379_v44 = vadd.f32 %v9303_v26, %v1378_v38  ;;  %3749 = vrot.lane.b32.xlu0 %v3626_v40, %s7990_s12  ;;  %v1039_v45 = vpop.f32.mrf.mxu0  ;;  %7686 = vmatmul.msk.f32.gmra.mxu2 %vm4346_vm9, %v4325_v41  ;;  %v3627_v20 = vld [vmem:[#allocation4 + $0x63] sm:$0xff] }
 0x274   :  { %v2011_v47 = vld [vmem:[#allocation2 + $0x559] sm:$0xff]  ;;  %v1040_v48 = vadd.f32 %v9303_v26, %v1039_v45  ;;  %2924 = vst.msk [vmem:[#allocation5 + $0x138] sm:$0xff] %vm1447_vm2, %v2868_v16  ;;  %v2842_v58 = vld [vmem:[#allocation4 + $0x68] sm:$0xff] }
 0x275   :  { %v2207_v51 = vmax.f32 %v1815_v37, %v2011_v47  ;;  %v1898_v52 = vld [vmem:[#allocation2 + $0x1d1] sm:$0xff]  ;;  %1621 = vst.msk [vmem:[#allocation2 + $0x568] sm:$0xff] %vm1447_vm2, %v1379_v44  ;;  %v4139_v55 = vpop.permute.xlu1 %4138  ;;  %v1816_v59 = vld [vmem:[#allocation2 + $0x560] sm:$0xff]  ;;  %v232_v41 = vld [vmem:[%s11145_s0 + $0x608] sm:$0xff] }
 0x276   :  { %v2094_v53 = vmax.f32 %v1702_v50, %v1898_v52  ;;  %1508 = vst.msk [vmem:[#allocation2 + $0x1e0] sm:$0xff] %vm1447_vm2, %v1040_v48  ;;  %7529 = vmatmul.msk.f32.gmra.mxu0 %vm249_vm1, %v115_v46  ;;  %v3744_v56 = vpop.permute.xlu0 %3743  ;;  %v1703_v5 = vld [vmem:[#allocation2 + $0x1d8] sm:$0xff]  ;;  %v3964_v14 = vld [vmem:[#allocation4 + $0x64] sm:$0xff]  ;;  %v7755_v50 = vld [vmem:[%s11148_s3 + $0x50] sm:$0xff] }
 0x277   :  { %2403 = vst.msk [vmem:[#allocation3 + $0x558] sm:$0xff] %vm1447_vm2, %v2207_v51  ;;  %7643 = vmatmul.msk.f32.gmra.mxu3 %vm249_vm1, %v229_v49  ;;  %v3290_v29 = vld [vmem:[#allocation4 + $0x62] sm:$0xff]  ;;  %v118_v37 = vld [vmem:[%s11145_s0 + $0x278] sm:$0xff]  ;;  %5444 = vmatpush.msrb.mxu1 %v7755_v50 }
 0x278   :  { %2290 = vst.msk [vmem:[#allocation3 + $0x1d0] sm:$0xff] %vm1447_vm2, %v2094_v53  ;;  %v2869_v33 = vld [vmem:[#allocation4 + $0x140] sm:$0xff]  ;;  %7934 = vmatpush.msrb.mxu3 %v7755_v50  ;;  %v7754_v53 = vld [vmem:[%s11148_s3 + $0x48] sm:$0xff] }
 0x279   :  { %4144 = vrot.lane.b32.xlu1 %v3992_v54, %s7992_s18  ;;  %4270 = vst.msk [vmem:[#allocation5 + $0x128] sm:$0xff] %vm4232_vm8, %v4139_v55  ;;  %v2766_v49 = vld [vmem:[#allocation3 + $0x540] ss:$2 sm:$0xff]  ;;  %5445 = vmatpush.msrb.mxu1 %v7754_v53 }
 0x27a   :  { %3751 = vrot.lane.b32.xlu2 %v3627_v20, %s7990_s12  ;;  %v1381_v60 = vpop.f32.mrf.mxu3  ;;  %2897 = vst.msk [vmem:[#allocation5 + $0x60] sm:$0xff] %vm1447_vm2, %v2841_v57  ;;  %v7753_v54 = vld [vmem:[%s11148_s3 + $0x40] sm:$0xff]  ;;  %7935 = vmatpush.msrb.mxu3 %v7754_v53 }
 0x27b   :  { %v1382_v62 = vadd.f32 %v9303_v26, %v1381_v60  ;;  %3077 = vrot.lane.b32.xlu0 %v2953_v61, %s7991_s13  ;;  %v1042_v63 = vpop.f32.mrf.mxu0  ;;  %2898 = vst.msk [vmem:[#allocation5 + $0x68] sm:$0xff] %vm1447_vm2, %v2842_v58  ;;  %5446 = vmatpush.msrb.mxu1 %v7753_v54 }
 0x27c   :  { %v2012_v2 = vld [vmem:[#allocation2 + $0x561] sm:$0xff]  ;;  %v1043_v3 = vadd.f32 %v9303_v26, %v1042_v63  ;;  %2925 = vst.msk [vmem:[#allocation5 + $0x140] sm:$0xff] %vm1447_vm2, %v2869_v33  ;;  %v233_v63 = vld [vmem:[%s11145_s0 + $0x610] sm:$0xff]  ;;  %7936 = vmatpush.msrb.mxu3 %v7753_v54 }
 0x27d   :  { %v2208_v7 = vmax.f32 %v1816_v59, %v2012_v2  ;;  %v1899_v8 = vld [vmem:[#allocation2 + $0x1d9] sm:$0xff]  ;;  %1622 = vst.msk [vmem:[#allocation2 + $0x570] sm:$0xff] %vm1447_vm2, %v1382_v62  ;;  %v3070_v10 = vpop.permute.xlu1 %3069  ;;  %v1817_v42 = vld [vmem:[#allocation2 + $0x568] sm:$0xff] }
 0x27e   :  { %v2095_v9 = vmax.f32 %v1703_v5, %v1899_v8  ;;  %1509 = vst.msk [vmem:[#allocation2 + $0x1e8] sm:$0xff] %vm1447_vm2, %v1043_v3  ;;  %7530 = vmatmul.msk.f32.gmra.mxu0 %vm249_vm1, %v116_v0  ;;  %v3072_v39 = vpop.permute.xlu0 %3071  ;;  %v1704_v22 = vld [vmem:[#allocation2 + $0x1e0] sm:$0xff]  ;;  %v2768_v0 = vld [vmem:[#allocation3 + $0x550] ss:$2 sm:$0x3f] }
 0x27f   :  { %2404 = vst.msk [vmem:[#allocation3 + $0x560] sm:$0xff] %vm1447_vm2, %v2208_v7  ;;  %7644 = vmatmul.msk.f32.gmra.mxu3 %vm249_vm1, %v230_v4  ;;  %v119_v59 = vld [vmem:[%s11145_s0 + $0x280] sm:$0xff] }
 0x280   :  { %2291 = vst.msk [vmem:[#allocation3 + $0x1d8] sm:$0xff] %vm1447_vm2, %v2095_v9 }
 0x281   :  { %4086 = vrot.lane.b32.xlu1 %v3963_v11, %s7992_s18  ;;  %3230 = vst.msk [vmem:[#allocation5 + $0x40] sm:$0xff] %vm3221_vm5, %v3070_v10 }
 0x282   :  { %3567 = vst.msk [vmem:[#allocation5 + $0x40] sm:$0xff] %vm3558_vm6, %v3407_v43  ;;  %v1384_v13 = vpop.f32.mrf.mxu3 }
 0x283   :  { %3904 = vst.msk [vmem:[#allocation5 + $0x40] sm:$0xff] %vm3895_vm7, %v3744_v56  ;;  %v1385_v15 = vadd.f32 %v9303_v26, %v1384_v13  ;;  %4088 = vrot.lane.b32.xlu0 %v3964_v14, %s7992_s18  ;;  %v1045_v17 = vpop.f32.mrf.mxu0 }
 0x284   :  { %v2013_v18 = vld [vmem:[#allocation2 + $0x569] sm:$0xff]  ;;  %3231 = vst.msk [vmem:[#allocation5 + $0x48] sm:$0xff] %vm3221_vm5, %v3072_v39  ;;  %v1046_v19 = vadd.f32 %v9303_v26, %v1045_v17 }
 0x285   :  { %v2209_v12 = vmax.f32 %v1817_v42, %v2013_v18  ;;  %v1900_v23 = vld [vmem:[#allocation2 + $0x1e1] sm:$0xff]  ;;  %1623 = vst.msk [vmem:[#allocation2 + $0x578] sm:$0xff] %vm1447_vm2, %v1385_v15  ;;  %v9359_v24 = vpop.permute.xlu2 %3803  ;;  %v4081_v27 = vpop.permute.xlu1 %4080  ;;  %v1818_v34 = vld [vmem:[#allocation2 + $0x570] sm:$0xff] }
 0x286   :  { %v2096_v25 = vmax.f32 %v1704_v22, %v1900_v23  ;;  %1510 = vst.msk [vmem:[#allocation2 + $0x1f0] sm:$0xff] %vm1447_vm2, %v1046_v19  ;;  %7531 = vmatmul.msk.f32.gmra.mxu0 %vm249_vm1, %v117_v1  ;;  %v1705_v43 = vld [vmem:[#allocation2 + $0x1e8] sm:$0xff]  ;;  %v4083_v56 = vpop.permute.xlu0 %4082 }
 0x287   :  { %2405 = vst.msk [vmem:[#allocation3 + $0x568] sm:$0xff] %vm1447_vm2, %v2209_v12  ;;  %v4527_v28 = vpop.f32.mrf.mxu1  ;;  %7645 = vmatmul.msk.f32.gmra.mxu3 %vm249_vm1, %v231_v21  ;;  %v120_v18 = vld [vmem:[%s11145_s0 + $0x288] sm:$0xff]  ;;  %v234_v12 = vld [vmem:[%s11145_s0 + $0x618] sm:$0xff] }
 0x288   :  { %2292 = vst.msk [vmem:[#allocation3 + $0x1e0] sm:$0xff] %vm1447_vm2, %v2096_v25  ;;  %v4528_v31 = vadd.f32 %v9369_v30, %v4527_v28  ;;  %v2542_v19 = vld [vmem:[#allocation3 + $0x1c0] ss:$2 sm:$0xff] }
 0x289   :  { %3414 = vrot.lane.b32.xlu1 %v3290_v29, %s7993_s19  ;;  %4241 = vst.msk [vmem:[#allocation5 + $0x40] sm:$0xff] %vm4232_vm8, %v4081_v27 }
 0x28a   :  { %4667 = vst.msk [vmem:[#allocation6 + $0x20] sm:$0xff] %vm4662_vm10, %v4528_v31  ;;  %v1387_v35 = vpop.f32.mrf.mxu3 }
 0x28b   :  { %v1388_v36 = vadd.f32 %v9303_v26, %v1387_v35  ;;  %v1048_v16 = vpop.f32.mrf.mxu0 }
 0x28c   :  { %v2014_v38 = vld [vmem:[#allocation2 + $0x571] sm:$0xff]  ;;  %v1049_v40 = vadd.f32 %v9303_v26, %v1048_v16 }
 0x28d   :  { %v2210_v44 = vmax.f32 %v1818_v34, %v2014_v38  ;;  %v1901_v45 = vld [vmem:[#allocation2 + $0x1e9] sm:$0xff]  ;;  %1624 = vst.msk [vmem:[#allocation2 + $0x580] sm:$0xff] %vm1447_vm2, %v1388_v36  ;;  %v3132_v46 = vpop.permute.xlu2 %3131  ;;  %v3409_v48 = vpop.permute.xlu1 %3408  ;;  %v1819_v20 = vld [vmem:[#allocation2 + $0x578] sm:$0xff] }
 0x28e   :  { %v2097_v47 = vmax.f32 %v1705_v43, %v1901_v45  ;;  %1511 = vst.msk [vmem:[#allocation2 + $0x1f8] sm:$0xff] %vm1447_vm2, %v1049_v40  ;;  %7532 = vmatmul.msk.f32.gmra.mxu0 %vm249_vm1, %v118_v37  ;;  %v2770_v52 = vld [vmem:[#allocation3 + $0x55c] ss:$2 sm:$0xff]  ;;  %v1706_v2 = vld [vmem:[#allocation2 + $0x1f0] sm:$0xff] }
 0x28f   :  { %2406 = vst.msk [vmem:[#allocation3 + $0x570] sm:$0xff] %vm1447_vm2, %v2210_v44  ;;  %7646 = vmatmul.msk.f32.gmra.mxu3 %vm249_vm1, %v232_v41  ;;  %v2773_v60 = vmax.f32 %v2766_v49, %v2770_v52  ;;  %v2544_v36 = vld [vmem:[#allocation3 + $0x1d0] ss:$2 sm:$0x3f] }
 0x290   :  { %2293 = vst.msk [vmem:[#allocation3 + $0x1e8] sm:$0xff] %vm1447_vm2, %v2097_v47  ;;  %v4297_v51 = vld [vmem:[#allocation5 + $0x40] sm:$0xff]  ;;  %v121_v45 = vld [vmem:[%s11145_s0 + $0x290] sm:$0xff] }
 0x291   :  { %3261 = vst.msk [vmem:[#allocation5 + $0x138] sm:$0xff] %vm3221_vm5, %v3132_v46  ;;  %7658 = vmatmul.msk.f32.gmra.mxu1 %vm4346_vm9, %v4297_v51  ;;  %v2775_v10 = vmax.f32 %v2773_v60, 0.0  ;;  %v5260_v52 = vld [vmem:[#allocation5 + $0x124] sm:$0xff] }
 0x292   :  { %3568 = vst.msk [vmem:[#allocation5 + $0x48] sm:$0xff] %vm3558_vm6, %v3409_v48  ;;  %v1390_v55 = vpop.f32.mrf.mxu3 }
 0x293   :  { %3905 = vst.msk [vmem:[#allocation5 + $0x48] sm:$0xff] %vm3895_vm7, %v9336_v6  ;;  %v1391_v57 = vadd.f32 %v9303_v26, %v1390_v55  ;;  %v1051_v58 = vpop.f32.mrf.mxu0 }
 0x294   :  { %v2015_v61 = vld [vmem:[#allocation2 + $0x579] sm:$0xff]  ;;  %4242 = vst.msk [vmem:[#allocation5 + $0x48] sm:$0xff] %vm4232_vm8, %v4083_v56  ;;  %v1052_v62 = vadd.f32 %v9303_v26, %v1051_v58  ;;  %v4326_v58 = vld [vmem:[#allocation5 + $0x128] sm:$0xff] }
 0x295   :  { %v2211_v3 = vmax.f32 %v1819_v20, %v2015_v61  ;;  %v1902_v4 = vld [vmem:[#allocation2 + $0x1f1] sm:$0xff]  ;;  %1625 = vst.msk [vmem:[#allocation2 + $0x588] sm:$0xff] %vm1447_vm2, %v1391_v57  ;;  %v3074_v6 = vpop.permute.xlu2 %3073  ;;  %v1820_v13 = vld [vmem:[#allocation2 + $0x580] sm:$0xff]  ;;  %7687 = vmatmul.msk.f32.gmra.mxu2 %vm4346_vm9, %v4326_v58 }
 0x296   :  { %v2098_v5 = vmax.f32 %v1706_v2, %v1902_v4  ;;  %1512 = vst.msk [vmem:[#allocation2 + $0x200] sm:$0xff] %vm1447_vm2, %v1052_v62  ;;  %v4530_v7 = vpop.f32.mrf.mxu1  ;;  %7533 = vmatmul.msk.f32.gmra.mxu0 %vm249_vm1, %v119_v59  ;;  %v2772_v8 = vld [vmem:[#allocation3 + $0x56c] ss:$2 sm:$0x3f]  ;;  %v1707_v25 = vld [vmem:[#allocation2 + $0x1f8] sm:$0xff] }
 0x297   :  { %2407 = vst.msk [vmem:[#allocation3 + $0x578] sm:$0xff] %vm1447_vm2, %v2211_v3  ;;  %v4531_v9 = vadd.f32 %v9369_v30, %v4530_v7  ;;  %7647 = vmatmul.msk.f32.gmra.mxu3 %vm249_vm1, %v233_v63  ;;  %v2774_v11 = vmax.f32 %v2768_v0, %v2772_v8  ;;  %v2546_v42 = vld [vmem:[#allocation3 + $0x1dc] ss:$2 sm:$0xff] }
 0x298   :  { %2294 = vst.msk [vmem:[#allocation3 + $0x1f0] sm:$0xff] %vm1447_vm2, %v2098_v5  ;;  %v2549_v23 = vmax.f32 %v2542_v19, %v2546_v42  ;;  %v2870_v59 = vld [vmem:[#allocation4 + $0x148] sm:$0xff]  ;;  %v122_v63 = vld [vmem:[%s11145_s0 + $0x298] sm:$0xff] }
 0x299   :  { %3232 = vst.msk [vmem:[#allocation5 + $0x50] sm:$0xff] %vm3221_vm5, %v3074_v6  ;;  %v2776_v39 = vmax.f32 %v2774_v11, 0.0 }
 0x29a   :  { %4668 = vst.msk [vmem:[#allocation6 + $0x28] sm:$0xff] %vm4662_vm10, %v4531_v9  ;;  %v1393_v14 = vpop.f32.mrf.mxu3  ;;  %v2551_v33 = vmax.f32 %v2549_v23, 0.0 }
 0x29b   :  { %v4298_v15 = vld [vmem:[#allocation5 + $0x48] sm:$0xff]  ;;  %v1394_v17 = vadd.f32 %v9303_v26, %v1393_v14  ;;  %2777 = vst.msk [vmem:[#allocation4 + $0x150] sm:$0xff] %vm1447_vm2, %v2775_v10  ;;  %v1054_v1 = vpop.f32.mrf.mxu0 }
 0x29c   :  { %v2016_v21 = vld [vmem:[#allocation2 + $0x581] sm:$0xff]  ;;  %7659 = vmatmul.msk.f32.gmra.mxu1 %vm4346_vm9, %v4298_v15  ;;  %v1055_v22 = vadd.f32 %v9303_v26, %v1054_v1  ;;  %2778 = vst.msk [vmem:[#allocation4 + $0x158] sm:$0x3f] %vm2441_vm3, %v2776_v39 }
 0x29d   :  { %v2212_v27 = vmax.f32 %v1820_v13, %v2016_v21  ;;  %v1903_v28 = vld [vmem:[#allocation2 + $0x1f9] sm:$0xff]  ;;  %1626 = vst.msk [vmem:[#allocation2 + $0x590] sm:$0xff] %vm1447_vm2, %v1394_v17  ;;  %v1821_v34 = vld [vmem:[#allocation2 + $0x588] sm:$0xff]  ;;  %v4085_v6 = vpop.permute.xlu2 %4084 }
 0x29e   :  { %v3130_v29 = vpop.permute.xlu0 %3129  ;;  %v2099_v31 = vmax.f32 %v1707_v25, %v1903_v28  ;;  %1513 = vst.msk [vmem:[#allocation2 + $0x208] sm:$0xff] %vm1447_vm2, %v1055_v22  ;;  %7534 = vmatmul.msk.f32.gmra.mxu0 %vm249_vm1, %v120_v18  ;;  %v1708_v48 = vld [vmem:[#allocation2 + $0x200] sm:$0xff] }
 0x29f   :  { %2408 = vst.msk [vmem:[#allocation3 + $0x580] sm:$0xff] %vm1447_vm2, %v2212_v27  ;;  %7648 = vmatmul.msk.f32.gmra.mxu3 %vm249_vm1, %v234_v12  ;;  %v2548_v32 = vld [vmem:[#allocation3 + $0x1ec] ss:$2 sm:$0x3f]  ;;  %v3467_v35 = vpop.permute.xlu1 %3466  ;;  %v123_v1 = vld [vmem:[%s11145_s0 + $0x2a0] sm:$0xff] }
 0x2a0   :  { %2295 = vst.msk [vmem:[#allocation3 + $0x1f8] sm:$0xff] %vm1447_vm2, %v2099_v31  ;;  %v2550_v41 = vmax.f32 %v2544_v36, %v2548_v32 }
 0x2a1   :  { %3260 = vst.msk [vmem:[#allocation5 + $0x130] sm:$0xff] %vm3221_vm5, %v3130_v29 }
 0x2a2   :  { %v3656_v16 = vld [vmem:[#allocation4 + $0x14b] sm:$0xff]  ;;  %3597 = vst.msk [vmem:[#allocation5 + $0x130] sm:$0xff] %vm3558_vm6, %v3467_v35  ;;  %v1396_v40 = vpop.f32.mrf.mxu3  ;;  %v2552_v53 = vmax.f32 %v2550_v41, 0.0 }
 0x2a3   :  { %v3319_v37 = vld [vmem:[#allocation4 + $0x14a] sm:$0xff]  ;;  %3809 = vrot.lane.b32.xlu2 %v3656_v16, %s7990_s12  ;;  %3934 = vst.msk [vmem:[#allocation5 + $0x130] sm:$0xff] %vm3895_vm7, %v9359_v24  ;;  %v1397_v43 = vadd.f32 %v9303_v26, %v1396_v40  ;;  %v1057_v44 = vpop.f32.mrf.mxu0  ;;  %v3657_v20 = vld [vmem:[#allocation4 + $0x153] sm:$0xff] }
 0x2a4   :  { %v2982_v38 = vld [vmem:[#allocation4 + $0x149] sm:$0xff]  ;;  %3472 = vrot.lane.b32.xlu1 %v3319_v37, %s7993_s19  ;;  %v1058_v47 = vadd.f32 %v9303_v26, %v1057_v44  ;;  %2553 = vst.msk [vmem:[#allocation4 + $0x70] sm:$0xff] %vm1447_vm2, %v2551_v33  ;;  %v2983_v54 = vld [vmem:[#allocation4 + $0x151] sm:$0xff] }
 0x2a5   :  { %v2017_v46 = vld [vmem:[#allocation2 + $0x589] sm:$0xff]  ;;  %3135 = vrot.lane.b32.xlu0 %v2982_v38, %s7991_s13  ;;  %v1904_v50 = vld [vmem:[#allocation2 + $0x201] sm:$0xff]  ;;  %1627 = vst.msk [vmem:[#allocation2 + $0x598] sm:$0xff] %vm1447_vm2, %v1397_v43  ;;  %v3994_v10 = vld [vmem:[#allocation4 + $0x154] sm:$0xff]  ;;  %v3413_v27 = vpop.permute.xlu2 %3412 }
 0x2a6   :  { %v2213_v49 = vmax.f32 %v1821_v34, %v2017_v46  ;;  %v4141_v24 = vpop.permute.xlu0 %4140  ;;  %v2100_v51 = vmax.f32 %v1708_v48, %v1904_v50  ;;  %1514 = vst.msk [vmem:[#allocation2 + $0x210] sm:$0xff] %vm1447_vm2, %v1058_v47  ;;  %7535 = vmatmul.msk.f32.gmra.mxu0 %vm249_vm1, %v121_v45  ;;  %v3993_v55 = vld [vmem:[#allocation4 + $0x14c] sm:$0xff] }
 0x2a7   :  { %7791 = vmatmul.msk.f32.vlgmr.msrb.gmra.mxu3 %vm4346_vm9, %v5260_v52  ;;  %4271 = vst.msk [vmem:[#allocation5 + $0x130] sm:$0xff] %vm4232_vm8, %v4141_v24  ;;  %v1822_v56 = vld [vmem:[#allocation2 + $0x590] sm:$0xff]  ;;  %v9467_v60 = vpop.permute.xlu1 %3747  ;;  %v1709_v3 = vld [vmem:[#allocation2 + $0x208] sm:$0xff] }
 0x2a8   :  { %2409 = vst.msk [vmem:[#allocation3 + $0x588] sm:$0xff] %vm1447_vm2, %v2213_v49  ;;  %v3320_v39 = vld [vmem:[#allocation4 + $0x152] sm:$0xff]  ;;  %v124_v16 = vld [vmem:[%s11145_s0 + $0x2a8] sm:$0xff] }
 0x2a9   :  { %2296 = vst.msk [vmem:[#allocation3 + $0x200] sm:$0xff] %vm1447_vm2, %v2100_v51  ;;  %v125_v51 = vld [vmem:[%s11145_s0 + $0x2b0] sm:$0xff] }
 0x2aa   :  { %v1399_v57 = vpop.f32.mrf.mxu3  ;;  %2554 = vst.msk [vmem:[#allocation4 + $0x78] sm:$0x3f] %vm2441_vm3, %v2552_v53 }
 0x2ab   :  { %3137 = vrot.lane.b32.xlu2 %v2983_v54, %s7991_s13  ;;  %v1400_v61 = vadd.f32 %v9303_v26, %v1399_v57  ;;  %v1060_v62 = vpop.f32.mrf.mxu0  ;;  %2926 = vst.msk [vmem:[#allocation5 + $0x148] sm:$0xff] %vm1447_vm2, %v2870_v59  ;;  %v2843_v9 = vld [vmem:[#allocation4 + $0x70] sm:$0xff]  ;;  %v2780_v54 = vld [vmem:[#allocation3 + $0x578] ss:$2 sm:$0xff] }
 0x2ac   :  { %3811 = vrot.lane.b32.xlu1 %v3657_v20, %s7990_s12  ;;  %v2018_v0 = vld [vmem:[#allocation2 + $0x591] sm:$0xff]  ;;  %v1061_v2 = vadd.f32 %v9303_v26, %v1060_v62  ;;  %2899 = vst.msk [vmem:[#allocation5 + $0x70] sm:$0xff] %vm1447_vm2, %v2843_v9  ;;  %v2954_v31 = vld [vmem:[#allocation4 + $0x69] sm:$0xff] }
 0x2ad   :  { %4146 = vrot.lane.b32.xlu0 %v3993_v55, %s7992_s18  ;;  %v2214_v4 = vmax.f32 %v1822_v56, %v2018_v0  ;;  %v1905_v5 = vld [vmem:[#allocation2 + $0x209] sm:$0xff]  ;;  %1628 = vst.msk [vmem:[#allocation2 + $0x5a0] sm:$0xff] %vm1447_vm2, %v1400_v61  ;;  %v1823_v42 = vld [vmem:[#allocation2 + $0x598] sm:$0xff] }
 0x2ae   :  { %v2101_v7 = vmax.f32 %v1709_v3, %v1905_v5  ;;  %1515 = vst.msk [vmem:[#allocation2 + $0x218] sm:$0xff] %vm1447_vm2, %v1061_v2  ;;  %v3469_v8 = vpop.permute.xlu0 %3468  ;;  %7536 = vmatmul.msk.f32.gmra.mxu0 %vm249_vm1, %v122_v63  ;;  %v5261_v11 = vld [vmem:[#allocation5 + $0x12c] sm:$0xff]  ;;  %v3628_v13 = vld [vmem:[#allocation4 + $0x6b] sm:$0xff] }
 0x2af   :  { %2410 = vst.msk [vmem:[#allocation3 + $0x590] sm:$0xff] %vm1447_vm2, %v2214_v4  ;;  %7792 = vmatmul.msk.f32.gmra.mxu3 %vm4346_vm9, %v5261_v11  ;;  %v1710_v19 = vld [vmem:[#allocation2 + $0x210] sm:$0xff]  ;;  %v126_v4 = vld [vmem:[%s11145_s0 + $0x2b8] sm:$0xff] }
 0x2b0   :  { %2297 = vst.msk [vmem:[#allocation3 + $0x208] sm:$0xff] %vm1447_vm2, %v2101_v7  ;;  %v3291_v34 = vld [vmem:[#allocation4 + $0x6a] sm:$0xff] }
 0x2b1   :  { %3598 = vst.msk [vmem:[#allocation5 + $0x138] sm:$0xff] %vm3558_vm6, %v3469_v8  ;;  %v2955_v32 = vld [vmem:[#allocation4 + $0x71] sm:$0xff] }
 0x2b2   :  { %v1402_v14 = vpop.f32.mrf.mxu3  ;;  %v3965_v45 = vld [vmem:[#allocation4 + $0x6c] sm:$0xff]  ;;  %v3966_v46 = vld [vmem:[#allocation4 + $0x74] sm:$0xff] }
 0x2b3   :  { %4148 = vrot.lane.b32.xlu2 %v3994_v10, %s7992_s18  ;;  %v1403_v15 = vadd.f32 %v9303_v26, %v1402_v14  ;;  %v1063_v17 = vpop.f32.mrf.mxu0  ;;  %v3629_v49 = vld [vmem:[#allocation4 + $0x73] sm:$0xff] }
 0x2b4   :  { %3753 = vrot.lane.b32.xlu1 %v3628_v13, %s7990_s12  ;;  %v2019_v18 = vld [vmem:[#allocation2 + $0x599] sm:$0xff]  ;;  %v1064_v25 = vadd.f32 %v9303_v26, %v1063_v17 }
 0x2b5   :  { %3474 = vrot.lane.b32.xlu0 %v3320_v39, %s7993_s19  ;;  %v2215_v21 = vmax.f32 %v1823_v42, %v2019_v18  ;;  %v1906_v22 = vld [vmem:[#allocation2 + $0x211] sm:$0xff]  ;;  %v3076_v12 = vpop.permute.xlu1 %3075  ;;  %1629 = vst.msk [vmem:[#allocation2 + $0x5a8] sm:$0xff] %vm1447_vm2, %v1403_v15  ;;  %v1824_v29 = vld [vmem:[#allocation2 + $0x5a0] sm:$0xff] }
 0x2b6   :  { %v2102_v23 = vmax.f32 %v1710_v19, %v1906_v22  ;;  %3233 = vst.msk [vmem:[#allocation5 + $0x58] sm:$0xff] %vm3221_vm5, %v3076_v12  ;;  %7537 = vmatmul.msk.f32.gmra.mxu0 %vm249_vm1, %v123_v1  ;;  %v3411_v28 = vpop.permute.xlu0 %3410  ;;  %v1711_v41 = vld [vmem:[#allocation2 + $0x218] sm:$0xff]  ;;  %v2782_v10 = vld [vmem:[#allocation3 + $0x588] ss:$2 sm:$0x3f] }
 0x2b7   :  { %2411 = vst.msk [vmem:[#allocation3 + $0x598] sm:$0xff] %vm1447_vm2, %v2215_v21  ;;  %v3292_v63 = vld [vmem:[#allocation4 + $0x72] sm:$0xff] }
 0x2b8   :  { %2298 = vst.msk [vmem:[#allocation3 + $0x210] sm:$0xff] %vm1447_vm2, %v2102_v23  ;;  %v2556_v14 = vld [vmem:[#allocation3 + $0x1f8] ss:$2 sm:$0xff] }
 0x2b9   :  { %3570 = vst.msk [vmem:[#allocation5 + $0x58] sm:$0xff] %vm3558_vm6, %v3413_v27  ;;  %v4327_v27 = vld [vmem:[#allocation5 + $0x130] sm:$0xff] }
 0x2ba   :  { %1516 = vst.msk [vmem:[#allocation2 + $0x220] sm:$0xff] %vm1447_vm2, %v1064_v25  ;;  %v1405_v33 = vpop.f32.mrf.mxu3  ;;  %v127_v25 = vld [vmem:[%s11145_s0 + $0x2c0] sm:$0xff]  ;;  %7688 = vmatmul.msk.f32.gmra.mxu2 %vm4346_vm9, %v4327_v27 }
 0x2bb   :  { %3079 = vrot.lane.b32.xlu2 %v2954_v31, %s7991_s13  ;;  %3569 = vst.msk [vmem:[#allocation5 + $0x50] sm:$0xff] %vm3558_vm6, %v3411_v28  ;;  %v1406_v35 = vadd.f32 %v9303_v26, %v1405_v33  ;;  %v1066_v36 = vpop.f32.mrf.mxu0 }
 0x2bc   :  { %3081 = vrot.lane.b32.xlu1 %v2955_v32, %s7991_s13  ;;  %v2020_v37 = vld [vmem:[#allocation2 + $0x5a1] sm:$0xff]  ;;  %3906 = vst.msk [vmem:[#allocation5 + $0x50] sm:$0xff] %vm3895_vm7, %v9467_v60  ;;  %v1067_v38 = vadd.f32 %v9303_v26, %v1066_v36 }
 0x2bd   :  { %3416 = vrot.lane.b32.xlu0 %v3291_v34, %s7993_s19  ;;  %v2216_v40 = vmax.f32 %v1824_v29, %v2020_v37  ;;  %4243 = vst.msk [vmem:[#allocation5 + $0x50] sm:$0xff] %vm4232_vm8, %v4085_v6  ;;  %v1825_v48 = vld [vmem:[#allocation2 + $0x5a8] sm:$0xff] }
 0x2be   :  { %1630 = vst.msk [vmem:[#allocation2 + $0x5b0] sm:$0xff] %vm1447_vm2, %v1406_v35  ;;  %7538 = vmatmul.msk.f32.gmra.mxu0 %vm249_vm1, %v124_v16 }
 0x2bf   :  { %2412 = vst.msk [vmem:[#allocation3 + $0x5a0] sm:$0xff] %vm1447_vm2, %v2216_v40 }
 0x2c0   :  { %1517 = vst.msk [vmem:[#allocation2 + $0x228] sm:$0xff] %vm1447_vm2, %v1067_v38 }
 0x2c1   :  { %v1907_v43 = vld [vmem:[#allocation2 + $0x219] sm:$0xff] }
 0x2c2   :  { %v2103_v44 = vmax.f32 %v1711_v41, %v1907_v43  ;;  %v1408_v47 = vpop.f32.mrf.mxu3  ;;  %v1712_v57 = vld [vmem:[#allocation2 + $0x220] sm:$0xff]  ;;  %v2558_v43 = vld [vmem:[#allocation3 + $0x208] ss:$2 sm:$0x3f] }
 0x2c3   :  { %4090 = vrot.lane.b32.xlu2 %v3965_v45, %s7992_s18  ;;  %v1409_v50 = vadd.f32 %v9303_v26, %v1408_v47  ;;  %v1069_v24 = vpop.f32.mrf.mxu0 }
 0x2c4   :  { %4092 = vrot.lane.b32.xlu1 %v3966_v46, %s7992_s18  ;;  %2299 = vst.msk [vmem:[#allocation3 + $0x218] sm:$0xff] %vm1447_vm2, %v2103_v44  ;;  %v4299_v52 = vld [vmem:[#allocation5 + $0x50] sm:$0xff]  ;;  %v1070_v53 = vadd.f32 %v9303_v26, %v1069_v24  ;;  %v4617_v31 = vpop.f32.mrf.mxu2  ;;  %v4143_v44 = vpop.permute.xlu2 %4142 }
 0x2c5   :  { %3755 = vrot.lane.b32.xlu0 %v3629_v49, %s7990_s12  ;;  %v2021_v20 = vld [vmem:[#allocation2 + $0x5a9] sm:$0xff]  ;;  %7660 = vmatmul.msk.f32.gmra.mxu1 %vm4346_vm9, %v4299_v52  ;;  %1631 = vst.msk [vmem:[#allocation2 + $0x5b8] sm:$0xff] %vm1447_vm2, %v1409_v50  ;;  %v4618_v37 = vadd.f32 %v9369_v30, %v4617_v31 }
 0x2c6   :  { %v2217_v55 = vmax.f32 %v1825_v48, %v2021_v20  ;;  %1518 = vst.msk [vmem:[#allocation2 + $0x230] sm:$0xff] %vm1447_vm2, %v1070_v53  ;;  %7539 = vmatmul.msk.f32.gmra.mxu0 %vm249_vm1, %v125_v51  ;;  %v2784_v56 = vld [vmem:[#allocation3 + $0x594] ss:$2 sm:$0xff]  ;;  %v128_v52 = vld [vmem:[%s11145_s0 + $0x2c8] sm:$0xff] }
 0x2c7   :  { %v1908_v58 = vld [vmem:[#allocation2 + $0x221] sm:$0xff]  ;;  %v2787_v59 = vmax.f32 %v2780_v54, %v2784_v56  ;;  %v1826_v62 = vld [vmem:[#allocation2 + $0x5b0] sm:$0xff]  ;;  %4697 = vst.msk [vmem:[#allocation6 + $0x110] sm:$0xff] %vm4662_vm10, %v4618_v37 }
 0x2c8   :  { %2413 = vst.msk [vmem:[#allocation3 + $0x5a8] sm:$0xff] %vm1447_vm2, %v2217_v55  ;;  %v2104_v60 = vmax.f32 %v1712_v57, %v1908_v58  ;;  %v1713_v7 = vld [vmem:[#allocation2 + $0x228] sm:$0xff] }
 0x2c9   :  { %v2789_v61 = vmax.f32 %v2787_v59, 0.0 }
 0x2ca   :  { %2300 = vst.msk [vmem:[#allocation3 + $0x220] sm:$0xff] %vm1447_vm2, %v2104_v60  ;;  %v1411_v0 = vpop.f32.mrf.mxu3 }
 0x2cb   :  { %3418 = vrot.lane.b32.xlu2 %v3292_v63, %s7993_s19  ;;  %v1412_v2 = vadd.f32 %v9303_v26, %v1411_v0  ;;  %v1072_v3 = vpop.f32.mrf.mxu0  ;;  %2791 = vst.msk [vmem:[#allocation4 + $0x15e] sm:$0xff] %vm1447_vm2, %v2789_v61 }
 0x2cc   :  { %v2022_v5 = vld [vmem:[#allocation2 + $0x5b1] sm:$0xff]  ;;  %v1073_v6 = vadd.f32 %v9303_v26, %v1072_v3 }
 0x2cd   :  { %v2218_v8 = vmax.f32 %v1826_v62, %v2022_v5  ;;  %v1909_v9 = vld [vmem:[#allocation2 + $0x229] sm:$0xff]  ;;  %1632 = vst.msk [vmem:[#allocation2 + $0x5c0] sm:$0xff] %vm1447_vm2, %v1412_v2  ;;  %v1827_v13 = vld [vmem:[#allocation2 + $0x5b8] sm:$0xff] }
 0x2ce   :  { %v2105_v11 = vmax.f32 %v1713_v7, %v1909_v9  ;;  %1519 = vst.msk [vmem:[#allocation2 + $0x238] sm:$0xff] %vm1447_vm2, %v1073_v6  ;;  %7540 = vmatmul.msk.f32.gmra.mxu0 %vm249_vm1, %v126_v4  ;;  %v1714_v32 = vld [vmem:[#allocation2 + $0x230] sm:$0xff] }
 0x2cf   :  { %2414 = vst.msk [vmem:[#allocation3 + $0x5b0] sm:$0xff] %vm1447_vm2, %v2218_v8  ;;  %v2786_v39 = vld [vmem:[#allocation3 + $0x5a4] ss:$2 sm:$0x3f]  ;;  %v129_v7 = vld [vmem:[%s11145_s0 + $0x2d0] sm:$0xff]  ;;  %v3471_v8 = vpop.permute.xlu2 %3470 }
 0x2d0   :  { %2301 = vst.msk [vmem:[#allocation3 + $0x228] sm:$0xff] %vm1447_vm2, %v2105_v11  ;;  %v2788_v42 = vmax.f32 %v2782_v10, %v2786_v39 }
 0x2d1   :  { %v2560_v15 = vld [vmem:[#allocation3 + $0x214] ss:$2 sm:$0xff] }
 0x2d2   :  { %v1414_v17 = vpop.f32.mrf.mxu3  ;;  %v3321_v1 = vld [vmem:[#allocation4 + $0x15a] sm:$0xff]  ;;  %v2790_v21 = vmax.f32 %v2788_v42, 0.0  ;;  %v2563_v22 = vmax.f32 %v2556_v14, %v2560_v15 }
 0x2d3   :  { %v2984_v18 = vld [vmem:[#allocation4 + $0x159] sm:$0xff]  ;;  %v1415_v12 = vadd.f32 %v9303_v26, %v1414_v17  ;;  %3476 = vrot.lane.b32.xlu2 %v3321_v1, %s7993_s19  ;;  %v1075_v23 = vpop.f32.mrf.mxu0 }
 0x2d4   :  { %v3658_v19 = vld [vmem:[#allocation4 + $0x15b] sm:$0xff]  ;;  %3139 = vrot.lane.b32.xlu1 %v2984_v18, %s7991_s13  ;;  %v1076_v29 = vadd.f32 %v9303_v26, %v1075_v23  ;;  %2792 = vst.msk [vmem:[#allocation4 + $0x166] sm:$0x3f] %vm2441_vm3, %v2790_v21  ;;  %v2565_v35 = vmax.f32 %v2563_v22, 0.0 }
 0x2d5   :  { %v2023_v28 = vld [vmem:[#allocation2 + $0x5b9] sm:$0xff]  ;;  %3813 = vrot.lane.b32.xlu0 %v3658_v19, %s7990_s12  ;;  %v1910_v34 = vld [vmem:[#allocation2 + $0x231] sm:$0xff]  ;;  %1633 = vst.msk [vmem:[#allocation2 + $0x5c8] sm:$0xff] %vm1447_vm2, %v1415_v12 }
 0x2d6   :  { %v2219_v33 = vmax.f32 %v1827_v13, %v2023_v28  ;;  %v2106_v36 = vmax.f32 %v1714_v32, %v1910_v34  ;;  %1520 = vst.msk [vmem:[#allocation2 + $0x240] sm:$0xff] %vm1447_vm2, %v1076_v29  ;;  %7541 = vmatmul.msk.f32.gmra.mxu0 %vm249_vm1, %v127_v25  ;;  %v3995_v41 = vld [vmem:[#allocation4 + $0x15c] sm:$0xff]  ;;  %v4620_v29 = vpop.f32.mrf.mxu2 }
 0x2d7   :  { %v4533_v16 = vpop.f32.mrf.mxu1  ;;  %v2562_v38 = vld [vmem:[#allocation3 + $0x224] ss:$2 sm:$0x3f]  ;;  %2567 = vst.msk [vmem:[#allocation4 + $0x7e] sm:$0xff] %vm1447_vm2, %v2565_v35  ;;  %v1715_v54 = vld [vmem:[#allocation2 + $0x238] sm:$0xff]  ;;  %v4621_v32 = vadd.f32 %v9369_v30, %v4620_v29  ;;  %v2871_v35 = vld [vmem:[#allocation4 + $0x150] sm:$0xff] }
 0x2d8   :  { %2415 = vst.msk [vmem:[#allocation3 + $0x5b8] sm:$0xff] %vm1447_vm2, %v2219_v33  ;;  %v4534_v40 = vadd.f32 %v9369_v30, %v4533_v16  ;;  %v1828_v45 = vld [vmem:[#allocation2 + $0x5c0] sm:$0xff]  ;;  %v2564_v47 = vmax.f32 %v2558_v43, %v2562_v38  ;;  %v130_v25 = vld [vmem:[%s11145_s0 + $0x2d8] sm:$0xff] }
 0x2d9   :  { %2302 = vst.msk [vmem:[#allocation3 + $0x230] sm:$0xff] %vm1447_vm2, %v2106_v36 }
 0x2da   :  { %4669 = vst.msk [vmem:[#allocation6 + $0x30] sm:$0xff] %vm4662_vm10, %v4534_v40  ;;  %v1417_v46 = vpop.f32.mrf.mxu3  ;;  %v2566_v59 = vmax.f32 %v2564_v47, 0.0 }
 0x2db   :  { %v3806_v48 = vpop.permute.xlu1 %3805  ;;  %v1418_v49 = vadd.f32 %v9303_v26, %v1417_v46  ;;  %v3659_v50 = vld [vmem:[#allocation4 + $0x163] sm:$0xff]  ;;  %v1078_v51 = vpop.f32.mrf.mxu0  ;;  %4698 = vst.msk [vmem:[#allocation6 + $0x118] sm:$0xff] %vm4662_vm10, %v4621_v32 }
 0x2dc   :  { %4150 = vrot.lane.b32.xlu1 %v3995_v41, %s7992_s18  ;;  %v2985_v24 = vld [vmem:[#allocation4 + $0x161] sm:$0xff]  ;;  %3935 = vst.msk [vmem:[#allocation5 + $0x138] sm:$0xff] %vm3895_vm7, %v3806_v48  ;;  %3815 = vrot.lane.b32.xlu2 %v3659_v50, %s7990_s12  ;;  %v1079_v56 = vadd.f32 %v9303_v26, %v1078_v51  ;;  %v3752_v51 = vpop.permute.xlu2 %3751 }
 0x2dd   :  { %v2024_v53 = vld [vmem:[#allocation2 + $0x5c1] sm:$0xff]  ;;  %3141 = vrot.lane.b32.xlu0 %v2985_v24, %s7991_s13  ;;  %v1911_v55 = vld [vmem:[#allocation2 + $0x239] sm:$0xff]  ;;  %4272 = vst.msk [vmem:[#allocation5 + $0x138] sm:$0xff] %vm4232_vm8, %v4143_v44  ;;  %v3808_v57 = vpop.permute.xlu0 %3807 }
 0x2de   :  { %v2220_v20 = vmax.f32 %v1828_v45, %v2024_v53  ;;  %v2107_v58 = vmax.f32 %v1715_v54, %v1911_v55  ;;  %1634 = vst.msk [vmem:[#allocation2 + $0x5d0] sm:$0xff] %vm1447_vm2, %v1418_v49  ;;  %7542 = vmatmul.msk.f32.gmra.mxu0 %vm249_vm1, %v128_v52  ;;  %v3322_v61 = vld [vmem:[#allocation4 + $0x162] sm:$0xff]  ;;  %v3293_v18 = vld [vmem:[#allocation4 + $0x7a] sm:$0xff] }
 0x2df   :  { %1521 = vst.msk [vmem:[#allocation2 + $0x248] sm:$0xff] %vm1447_vm2, %v1079_v56  ;;  %v3996_v63 = vld [vmem:[#allocation4 + $0x164] sm:$0xff]  ;;  %v3630_v5 = vld [vmem:[#allocation4 + $0x7b] sm:$0xff] }
 0x2e0   :  { %2416 = vst.msk [vmem:[#allocation3 + $0x5c0] sm:$0xff] %vm1447_vm2, %v2220_v20  ;;  %v4536_v60 = vpop.f32.mrf.mxu1  ;;  %v1829_v2 = vld [vmem:[#allocation2 + $0x5c8] sm:$0xff]  ;;  %v1716_v14 = vld [vmem:[#allocation2 + $0x240] sm:$0xff] }
 0x2e1   :  { %2303 = vst.msk [vmem:[#allocation3 + $0x238] sm:$0xff] %vm1447_vm2, %v2107_v58  ;;  %v4537_v62 = vadd.f32 %v9369_v30, %v4536_v60  ;;  %v2956_v12 = vld [vmem:[#allocation4 + $0x79] sm:$0xff] }
 0x2e2   :  { %v1420_v0 = vpop.f32.mrf.mxu3  ;;  %2568 = vst.msk [vmem:[#allocation4 + $0x86] sm:$0x3f] %vm2441_vm3, %v2566_v59  ;;  %v131_v48 = vld [vmem:[%s11145_s0 + $0x2e0] sm:$0xff] }
 0x2e3   :  { %v3134_v3 = vpop.permute.xlu1 %3133  ;;  %4670 = vst.msk [vmem:[#allocation6 + $0x38] sm:$0xff] %vm4662_vm10, %v4537_v62  ;;  %v1421_v4 = vadd.f32 %v9303_v26, %v1420_v0  ;;  %v1081_v6 = vpop.f32.mrf.mxu0  ;;  %v3967_v50 = vld [vmem:[#allocation4 + $0x7c] sm:$0xff] }
 0x2e4   :  { %3478 = vrot.lane.b32.xlu1 %v3322_v61, %s7993_s19  ;;  %3262 = vst.msk [vmem:[#allocation5 + $0x140] sm:$0xff] %vm3221_vm5, %v3134_v3  ;;  %3757 = vrot.lane.b32.xlu2 %v3630_v5, %s7990_s12  ;;  %v5262_v9 = vld [vmem:[#allocation5 + $0x134] sm:$0xff]  ;;  %v1082_v39 = vadd.f32 %v9303_v26, %v1081_v6 }
 0x2e5   :  { %4152 = vrot.lane.b32.xlu0 %v3996_v63, %s7992_s18  ;;  %v4328_v10 = vld [vmem:[#allocation5 + $0x138] sm:$0xff]  ;;  %v2025_v11 = vld [vmem:[#allocation2 + $0x5c9] sm:$0xff]  ;;  %3599 = vst.msk [vmem:[#allocation5 + $0x140] sm:$0xff] %vm3558_vm6, %v3471_v8  ;;  %v3750_v42 = vpop.permute.xlu0 %3749  ;;  %7793 = vmatmul.msk.f32.gmra.mxu3 %vm4346_vm9, %v5262_v9 }
 0x2e6   :  { %7689 = vmatmul.msk.f32.gmra.mxu2 %vm4346_vm9, %v4328_v10  ;;  %v2221_v13 = vmax.f32 %v1829_v2, %v2025_v11  ;;  %3936 = vst.msk [vmem:[#allocation5 + $0x140] sm:$0xff] %vm3895_vm7, %v3808_v57  ;;  %7543 = vmatmul.msk.f32.gmra.mxu0 %vm249_vm1, %v129_v7  ;;  %v1912_v15 = vld [vmem:[#allocation2 + $0x241] sm:$0xff]  ;;  %v1830_v27 = vld [vmem:[#allocation2 + $0x5d0] sm:$0xff]  ;;  %v9648_v8 = vld [vmem:[%s11147_s2] ss:$0 sm:$0xff] }
 0x2e7   :  { %1635 = vst.msk [vmem:[#allocation2 + $0x5d8] sm:$0xff] %vm1447_vm2, %v1421_v4  ;;  %v2108_v17 = vmax.f32 %v1716_v14, %v1912_v15  ;;  %v1717_v36 = vld [vmem:[#allocation2 + $0x248] sm:$0xff]  ;;  %v2794_v2 = vld [vmem:[#allocation3 + $0x5b0] ss:$2 sm:$0xff] }
 0x2e8   :  { %2417 = vst.msk [vmem:[#allocation3 + $0x5c8] sm:$0xff] %vm1447_vm2, %v2221_v13  ;;  %v132_v63 = vld [vmem:[%s11145_s0 + $0x2e8] sm:$0xff]  ;;  %v2844_v14 = vld [vmem:[#allocation4 + $0x78] sm:$0xff] }
 0x2e9   :  { %1522 = vst.msk [vmem:[#allocation2 + $0x250] sm:$0xff] %vm1447_vm2, %v1082_v39  ;;  %v2957_v22 = vld [vmem:[#allocation4 + $0x81] sm:$0xff]  ;;  %v2570_v29 = vld [vmem:[#allocation3 + $0x230] ss:$2 sm:$0xff] }
 0x2ea   :  { %3907 = vst.msk [vmem:[#allocation5 + $0x58] sm:$0xff] %vm3895_vm7, %v3750_v42  ;;  %v1423_v1 = vpop.f32.mrf.mxu3  ;;  %v3631_v41 = vld [vmem:[#allocation4 + $0x83] sm:$0xff] }
 0x2eb   :  { %2304 = vst.msk [vmem:[#allocation3 + $0x240] sm:$0xff] %vm1447_vm2, %v2108_v17  ;;  %v4145_v19 = vpop.permute.xlu1 %4144  ;;  %v1424_v21 = vadd.f32 %v9303_v26, %v1423_v1  ;;  %v1084_v23 = vpop.f32.mrf.mxu0  ;;  %v3968_v46 = vld [vmem:[#allocation4 + $0x84] sm:$0xff] }
 0x2ec   :  { %3420 = vrot.lane.b32.xlu1 %v3293_v18, %s7993_s19  ;;  %4273 = vst.msk [vmem:[#allocation5 + $0x140] sm:$0xff] %vm4232_vm8, %v4145_v19  ;;  %3085 = vrot.lane.b32.xlu2 %v2957_v22, %s7991_s13  ;;  %v1085_v28 = vadd.f32 %v9303_v26, %v1084_v23  ;;  %v2845_v57 = vld [vmem:[#allocation4 + $0x80] sm:$0xff]  ;;  %v133_v18 = vld [vmem:[%s11145_s0 + $0x2f0] sm:$0xff] }
 0x2ed   :  { %3083 = vrot.lane.b32.xlu0 %v2956_v12, %s7991_s13  ;;  %1636 = vst.msk [vmem:[#allocation2 + $0x5e0] sm:$0xff] %vm1447_vm2, %v1424_v21  ;;  %v3078_v31 = vpop.permute.xlu0 %3077  ;;  %v3294_v0 = vld [vmem:[#allocation4 + $0x82] sm:$0xff] }
 0x2ee   :  { %v2026_v33 = vld [vmem:[#allocation2 + $0x5d1] sm:$0xff]  ;;  %1523 = vst.msk [vmem:[#allocation2 + $0x258] sm:$0xff] %vm1447_vm2, %v1085_v28  ;;  %7544 = vmatmul.msk.f32.gmra.mxu0 %vm249_vm1, %v130_v25 }
 0x2ef   :  { %v2222_v34 = vmax.f32 %v1830_v27, %v2026_v33  ;;  %3234 = vst.msk [vmem:[#allocation5 + $0x60] sm:$0xff] %vm3221_vm5, %v3078_v31  ;;  %v1831_v38 = vld [vmem:[#allocation2 + $0x5d8] sm:$0xff]  ;;  %v2796_v12 = vld [vmem:[#allocation3 + $0x5c0] ss:$2 sm:$0x3f] }
 0x2f0   :  { %v1913_v16 = vld [vmem:[#allocation2 + $0x249] sm:$0xff]  ;;  %2927 = vst.msk [vmem:[#allocation5 + $0x150] sm:$0xff] %vm1447_vm2, %v2871_v35 }
 0x2f1   :  { %2418 = vst.msk [vmem:[#allocation3 + $0x5d0] sm:$0xff] %vm1447_vm2, %v2222_v34  ;;  %v2109_v37 = vmax.f32 %v1717_v36, %v1913_v16  ;;  %v1718_v52 = vld [vmem:[#allocation2 + $0x250] sm:$0xff] }
 0x2f2   :  { %v1426_v40 = vpop.f32.mrf.mxu3  ;;  %2901 = vst.msk [vmem:[#allocation5 + $0x80] sm:$0xff] %vm1447_vm2, %v2845_v57 }
 0x2f3   :  { %2305 = vst.msk [vmem:[#allocation3 + $0x248] sm:$0xff] %vm1447_vm2, %v2109_v37  ;;  %v4087_v43 = vpop.permute.xlu1 %4086  ;;  %v5263_v44 = vld [vmem:[#allocation5 + $0x13c] sm:$0xff]  ;;  %v1427_v45 = vadd.f32 %v9303_v26, %v1426_v40  ;;  %v1087_v47 = vpop.f32.mrf.mxu0 }
 0x2f4   :  { %3759 = vrot.lane.b32.xlu1 %v3631_v41, %s7990_s12  ;;  %v2027_v49 = vld [vmem:[#allocation2 + $0x5d9] sm:$0xff]  ;;  %4244 = vst.msk [vmem:[#allocation5 + $0x58] sm:$0xff] %vm4232_vm8, %v4087_v43  ;;  %7794 = vmatmul.msk.f32.gmra.mxu3 %vm4346_vm9, %v5263_v44  ;;  %v1088_v24 = vadd.f32 %v9303_v26, %v1087_v47 }
 0x2f5   :  { %4096 = vrot.lane.b32.xlu2 %v3968_v46, %s7992_s18  ;;  %v2223_v53 = vmax.f32 %v1831_v38, %v2027_v49  ;;  %v1914_v54 = vld [vmem:[#allocation2 + $0x251] sm:$0xff]  ;;  %1637 = vst.msk [vmem:[#allocation2 + $0x5e8] sm:$0xff] %vm1447_vm2, %v1427_v45  ;;  %4094 = vrot.lane.b32.xlu0 %v3967_v50, %s7992_s18  ;;  %v1832_v58 = vld [vmem:[#allocation2 + $0x5e0] sm:$0xff]  ;;  %v4089_v7 = vpop.permute.xlu0 %4088 }
 0x2f6   :  { %v2110_v20 = vmax.f32 %v1718_v52, %v1914_v54  ;;  %1524 = vst.msk [vmem:[#allocation2 + $0x260] sm:$0xff] %vm1447_vm2, %v1088_v24  ;;  %7545 = vmatmul.msk.f32.gmra.mxu0 %vm249_vm1, %v131_v48  ;;  %v4623_v55 = vpop.f32.mrf.mxu2  ;;  %v2872_v26 = vld [vmem:[#allocation4 + $0x158] sm:$0xff]  ;;  %v9690_v54 = vld [vmem:[%s11149_s4] ss:$0 sm:$0xff] }
 0x2f7   :  { %2419 = vst.msk [vmem:[#allocation3 + $0x5d8] sm:$0xff] %vm1447_vm2, %v2223_v53  ;;  %v4624_v56 = vadd.f32 %v9369_v30, %v4623_v55  ;;  %v1719_v3 = vld [vmem:[#allocation2 + $0x258] sm:$0xff] }
 0x2f8   :  { %2306 = vst.msk [vmem:[#allocation3 + $0x250] sm:$0xff] %vm1447_vm2, %v2110_v20  ;;  %v134_v44 = vld [vmem:[%s11145_s0 + $0x2f8] sm:$0xff] }
 0x2f9   :  { %4699 = vst.msk [vmem:[#allocation6 + $0x120] sm:$0xff] %vm4662_vm10, %v4624_v56 }
 0x2fa   :  { %v1429_v59 = vpop.f32.mrf.mxu3  ;;  %2928 = vst.msk [vmem:[#allocation5 + $0x158] sm:$0xff] %vm1447_vm2, %v2872_v26 }
 0x2fb   :  { %v3415_v60 = vpop.permute.xlu1 %3414  ;;  %v4300_v61 = vld [vmem:[#allocation5 + $0x58] sm:$0xff]  ;;  %v1090_v62 = vpop.f32.mrf.mxu0  ;;  %v1430_v9 = vadd.f32 %v9648_v8, %v1429_v59  ;;  %2900 = vst.msk [vmem:[#allocation5 + $0x78] sm:$0xff] %vm1447_vm2, %v2844_v14 }
 0x2fc   :  { %v2028_v30 = vld [vmem:[#allocation2 + $0x5e1] sm:$0xff]  ;;  %3571 = vst.msk [vmem:[#allocation5 + $0x60] sm:$0xff] %vm3558_vm6, %v3415_v60  ;;  %7661 = vmatmul.msk.f32.gmra.mxu1 %vm4346_vm9, %v4300_v61  ;;  %v1091_v11 = vadd.f32 %v9648_v8, %v1090_v62 }
 0x2fd   :  { %v2224_v4 = vmax.f32 %v1832_v58, %v2028_v30  ;;  %v1915_v5 = vld [vmem:[#allocation2 + $0x259] sm:$0xff]  ;;  %v9642_v6 = vpop.permute.xlu2 %3809  ;;  %3908 = vst.msk [vmem:[#allocation5 + $0x60] sm:$0xff] %vm3895_vm7, %v3752_v51  ;;  %3422 = vrot.lane.b32.xlu0 %v3294_v0, %s7993_s19  ;;  %v1833_v23 = vld [vmem:[#allocation2 + $0x5e8] sm:$0xff] }
 0x2fe   :  { %v2111_v10 = vmax.f32 %v1719_v3, %v1915_v5  ;;  %4245 = vst.msk [vmem:[#allocation5 + $0x60] sm:$0xff] %vm4232_vm8, %v4089_v7  ;;  %7546 = vmatmul.msk.f32.gmra.mxu0 %vm249_vm1, %v132_v63  ;;  %v2798_v39 = vld [vmem:[#allocation3 + $0x5cc] ss:$2 sm:$0xff]  ;;  %v1720_v32 = vld [vmem:[#allocation2 + $0x260] sm:$0xff] }
 0x2ff   :  { %2420 = vst.msk [vmem:[#allocation3 + $0x5e0] sm:$0xff] %vm1447_vm2, %v2224_v4  ;;  %v2801_v42 = vmax.f32 %v2794_v2, %v2798_v39  ;;  %v135_v60 = vld [vmem:[%s11145_s0 + $0x300] sm:$0xff] }
 0x300   :  { %2307 = vst.msk [vmem:[#allocation3 + $0x258] sm:$0xff] %vm1447_vm2, %v2111_v10  ;;  %v2572_v39 = vld [vmem:[#allocation3 + $0x240] ss:$2 sm:$0x3f] }
 0x301   :  { %1638 = vst.msk [vmem:[#allocation2 + $0x5f0] sm:$0xff] %vm1447_vm2, %v1430_v9  ;;  %v2803_v13 = vmax.f32 %v2801_v42, 0.0 }
 0x302   :  { %1525 = vst.msk [vmem:[#allocation2 + $0x268] sm:$0xff] %vm1447_vm2, %v1091_v11  ;;  %v1432_v15 = vpop.f32.mrf.mxu3 }
 0x303   :  { %v1433_v17 = vadd.f32 %v9648_v8, %v1432_v15  ;;  %v1093_v1 = vpop.f32.mrf.mxu0  ;;  %2805 = vst.msk [vmem:[#allocation4 + $0x16c] sm:$0xff] %vm1447_vm2, %v2803_v13 }
 0x304   :  { %v1094_v19 = vadd.f32 %v9648_v8, %v1093_v1 }
 0x305   :  { %v3138_v21 = vpop.permute.xlu2 %3137  ;;  %v4301_v22 = vld [vmem:[#allocation5 + $0x60] sm:$0xff]  ;;  %1639 = vst.msk [vmem:[#allocation2 + $0x5f8] sm:$0xff] %vm1447_vm2, %v1433_v17 }
 0x306   :  { %3264 = vst.msk [vmem:[#allocation5 + $0x150] sm:$0xff] %vm3221_vm5, %v3138_v21  ;;  %7662 = vmatmul.msk.f32.gmra.mxu1 %vm4346_vm9, %v4301_v22  ;;  %7547 = vmatmul.msk.f32.gmra.mxu0 %vm249_vm1, %v133_v18  ;;  %v2800_v25 = vld [vmem:[#allocation3 + $0x5dc] ss:$2 sm:$0x3f] }
 0x307   :  { %1526 = vst.msk [vmem:[#allocation2 + $0x270] sm:$0xff] %vm1447_vm2, %v1094_v19  ;;  %v2802_v28 = vmax.f32 %v2796_v12, %v2800_v25  ;;  %v2574_v31 = vld [vmem:[#allocation3 + $0x24c] ss:$2 sm:$0xff] }
 0x308   :  { %v2029_v27 = vld [vmem:[#allocation2 + $0x5e9] sm:$0xff]  ;;  %v2577_v45 = vmax.f32 %v2570_v29, %v2574_v31  ;;  %v2873_v31 = vld [vmem:[#allocation4 + $0x160] sm:$0xff] }
 0x309   :  { %v1834_v33 = vld [vmem:[#allocation2 + $0x5f0] sm:$0xff]  ;;  %v2225_v34 = vmax.f32 %v1833_v23, %v2029_v27  ;;  %v1916_v35 = vld [vmem:[#allocation2 + $0x261] sm:$0xff]  ;;  %v2804_v48 = vmax.f32 %v2802_v28, 0.0  ;;  %2929 = vst.msk [vmem:[#allocation5 + $0x160] sm:$0xff] %vm1447_vm2, %v2873_v31 }
 0x30a   :  { %v2112_v36 = vmax.f32 %v1720_v32, %v1916_v35  ;;  %v1435_v16 = vpop.f32.mrf.mxu3  ;;  %v2986_v37 = vld [vmem:[#allocation4 + $0x169] sm:$0xff]  ;;  %v2579_v55 = vmax.f32 %v2577_v45, 0.0 }
 0x30b   :  { %v3660_v38 = vld [vmem:[#allocation4 + $0x16b] sm:$0xff]  ;;  %2421 = vst.msk [vmem:[#allocation3 + $0x5e8] sm:$0xff] %vm1447_vm2, %v2225_v34  ;;  %v1436_v41 = vadd.f32 %v9648_v8, %v1435_v16  ;;  %3143 = vrot.lane.b32.xlu2 %v2986_v37, %s7991_s13  ;;  %v1096_v43 = vpop.f32.mrf.mxu0 }
 0x30c   :  { %v3323_v40 = vld [vmem:[#allocation4 + $0x16a] sm:$0xff]  ;;  %3817 = vrot.lane.b32.xlu1 %v3660_v38, %s7990_s12  ;;  %2308 = vst.msk [vmem:[#allocation3 + $0x260] sm:$0xff] %vm1447_vm2, %v2112_v36  ;;  %v1097_v47 = vadd.f32 %v9648_v8, %v1096_v43  ;;  %v1835_v57 = vld [vmem:[#allocation2 + $0x5f8] sm:$0xff] }
 0x30d   :  { %v2030_v46 = vld [vmem:[#allocation2 + $0x5f1] sm:$0xff]  ;;  %3480 = vrot.lane.b32.xlu0 %v3323_v40, %s7993_s19  ;;  %v9681_v50 = vpop.permute.xlu2 %4148  ;;  %1640 = vst.msk [vmem:[#allocation2 + $0x600] sm:$0xff] %vm1447_vm2, %v1436_v41  ;;  %v1721_v24 = vld [vmem:[#allocation2 + $0x268] sm:$0xff] }
 0x30e   :  { %v2226_v49 = vmax.f32 %v1834_v33, %v2030_v46  ;;  %v1917_v51 = vld [vmem:[#allocation2 + $0x269] sm:$0xff]  ;;  %v4539_v52 = vpop.f32.mrf.mxu1  ;;  %1527 = vst.msk [vmem:[#allocation2 + $0x278] sm:$0xff] %vm1447_vm2, %v1097_v47  ;;  %7548 = vmatmul.msk.f32.gmra.mxu0 %vm249_vm1, %v134_v44 }
 0x30f   :  { %v2113_v53 = vmax.f32 %v1721_v24, %v1917_v51  ;;  %v4540_v20 = vadd.f32 %v9690_v54, %v4539_v52  ;;  %v3997_v56 = vld [vmem:[#allocation4 + $0x16c] sm:$0xff]  ;;  %2806 = vst.msk [vmem:[#allocation4 + $0x174] sm:$0x3f] %vm2441_vm3, %v2804_v48 }
 0x310   :  { %2422 = vst.msk [vmem:[#allocation3 + $0x5f0] sm:$0xff] %vm1447_vm2, %v2226_v49  ;;  %v1722_v62 = vld [vmem:[#allocation2 + $0x270] sm:$0xff]  ;;  %v136_v19 = vld [vmem:[%s11145_s0 + $0x308] sm:$0xff] }
 0x311   :  { %2309 = vst.msk [vmem:[#allocation3 + $0x268] sm:$0xff] %vm1447_vm2, %v2113_v53  ;;  %v4329_v29 = vld [vmem:[#allocation5 + $0x140] sm:$0xff]  ;;  %v137_v40 = vld [vmem:[%s11145_s0 + $0x310] sm:$0xff] }
 0x312   :  { %4671 = vst.msk [vmem:[#allocation6 + $0x40] sm:$0xff] %vm4662_vm10, %v4540_v20  ;;  %v1438_v26 = vpop.f32.mrf.mxu3  ;;  %7690 = vmatmul.msk.f32.gmra.mxu2 %vm4346_vm9, %v4329_v29  ;;  %v140_v29 = vld [vmem:[%s11145_s0 + $0x328] sm:$0xff] }
 0x313   :  { %v1439_v58 = vadd.f32 %v9648_v8, %v1438_v26  ;;  %4154 = vrot.lane.b32.xlu2 %v3997_v56, %s7992_s18  ;;  %v1099_v59 = vpop.f32.mrf.mxu0  ;;  %2581 = vst.msk [vmem:[#allocation4 + $0x8c] sm:$0xff] %vm1447_vm2, %v2579_v55  ;;  %v2576_v7 = vld [vmem:[#allocation3 + $0x25c] ss:$2 sm:$0x3f] }
 0x314   :  { %v2031_v61 = vld [vmem:[#allocation2 + $0x5f9] sm:$0xff]  ;;  %v1100_v9 = vadd.f32 %v9648_v8, %v1099_v59  ;;  %v2578_v17 = vmax.f32 %v2572_v39, %v2576_v7 }
 0x315   :  { %v2227_v63 = vmax.f32 %v1835_v57, %v2031_v61  ;;  %v1918_v30 = vld [vmem:[#allocation2 + $0x271] sm:$0xff]  ;;  %v3080_v0 = vpop.permute.xlu2 %3079  ;;  %1641 = vst.msk [vmem:[#allocation2 + $0x608] sm:$0xff] %vm1447_vm2, %v1439_v58  ;;  %v1836_v42 = vld [vmem:[#allocation2 + $0x600] sm:$0xff] }
 0x316   :  { %v3473_v2 = vpop.permute.xlu1 %3472  ;;  %v2114_v3 = vmax.f32 %v1722_v62, %v1918_v30  ;;  %3235 = vst.msk [vmem:[#allocation5 + $0x68] sm:$0xff] %vm3221_vm5, %v3080_v0  ;;  %7549 = vmatmul.msk.f32.gmra.mxu0 %vm249_vm1, %v135_v60  ;;  %v2987_v5 = vld [vmem:[#allocation4 + $0x171] sm:$0xff]  ;;  %v2580_v27 = vmax.f32 %v2578_v17, 0.0 }
 0x317   :  { %v3136_v4 = vpop.permute.xlu0 %3135  ;;  %2423 = vst.msk [vmem:[#allocation3 + $0x5f8] sm:$0xff] %vm1447_vm2, %v2227_v63  ;;  %3145 = vrot.lane.b32.xlu1 %v2987_v5, %s7991_s13  ;;  %v3324_v10 = vld [vmem:[#allocation4 + $0x172] sm:$0xff] }
 0x318   :  { %2310 = vst.msk [vmem:[#allocation3 + $0x270] sm:$0xff] %vm1447_vm2, %v2114_v3  ;;  %v1723_v33 = vld [vmem:[#allocation2 + $0x278] sm:$0xff] }
 0x319   :  { %3263 = vst.msk [vmem:[#allocation5 + $0x148] sm:$0xff] %vm3221_vm5, %v3136_v4  ;;  %v4542_v11 = vpop.f32.mrf.mxu1  ;;  %v138_v26 = vld [vmem:[%s11145_s0 + $0x318] sm:$0xff] }
 0x31a   :  { %3600 = vst.msk [vmem:[#allocation5 + $0x148] sm:$0xff] %vm3558_vm6, %v3473_v2  ;;  %v3632_v13 = vld [vmem:[#allocation4 + $0x8b] sm:$0xff]  ;;  %v4543_v14 = vadd.f32 %v9690_v54, %v4542_v11  ;;  %v1441_v15 = vpop.f32.mrf.mxu3  ;;  %v4626_v11 = vpop.f32.mrf.mxu2 }
 0x31b   :  { %3937 = vst.msk [vmem:[#allocation5 + $0x148] sm:$0xff] %vm3895_vm7, %v9642_v6  ;;  %3761 = vrot.lane.b32.xlu0 %v3632_v13, %s7990_s12  ;;  %v1442_v1 = vadd.f32 %v9648_v8, %v1441_v15  ;;  %3482 = vrot.lane.b32.xlu2 %v3324_v10, %s7993_s19  ;;  %v1102_v18 = vpop.f32.mrf.mxu0  ;;  %v2958_v28 = vld [vmem:[#allocation4 + $0x89] sm:$0xff]  ;;  %v139_v10 = vld [vmem:[%s11145_s0 + $0x320] sm:$0xff] }
 0x31c   :  { %v2032_v21 = vld [vmem:[#allocation2 + $0x601] sm:$0xff]  ;;  %1528 = vst.msk [vmem:[#allocation2 + $0x280] sm:$0xff] %vm1447_vm2, %v1100_v9  ;;  %v1103_v6 = vadd.f32 %v9648_v8, %v1102_v18  ;;  %v3295_v35 = vld [vmem:[#allocation4 + $0x8a] sm:$0xff] }
 0x31d   :  { %v2228_v22 = vmax.f32 %v1836_v42, %v2032_v21  ;;  %v9721_v12 = vpop.permute.xlu2 %4090  ;;  %4672 = vst.msk [vmem:[#allocation6 + $0x48] sm:$0xff] %vm4662_vm10, %v4543_v14  ;;  %v2846_v32 = vld [vmem:[#allocation4 + $0x88] sm:$0xff] }
 0x31e   :  { %v3812_v23 = vpop.permute.xlu1 %3811  ;;  %1642 = vst.msk [vmem:[#allocation2 + $0x610] sm:$0xff] %vm1447_vm2, %v1442_v1  ;;  %7550 = vmatmul.msk.f32.gmra.mxu0 %vm249_vm1, %v136_v19  ;;  %v1837_v36 = vld [vmem:[#allocation2 + $0x608] sm:$0xff]  ;;  %v4627_v19 = vadd.f32 %v9690_v54, %v4626_v11 }
 0x31f   :  { %v4147_v25 = vpop.permute.xlu0 %4146  ;;  %2424 = vst.msk [vmem:[#allocation3 + $0x600] sm:$0xff] %vm1447_vm2, %v2228_v22  ;;  %3087 = vrot.lane.b32.xlu1 %v2958_v28, %s7991_s13  ;;  %v3969_v48 = vld [vmem:[#allocation4 + $0x8c] sm:$0xff] }
 0x320   :  { %4274 = vst.msk [vmem:[#allocation5 + $0x148] sm:$0xff] %vm4232_vm8, %v4147_v25  ;;  %v2808_v42 = vld [vmem:[#allocation3 + $0x5e8] ss:$2 sm:$0xff] }
 0x321   :  { %1529 = vst.msk [vmem:[#allocation2 + $0x288] sm:$0xff] %vm1447_vm2, %v1103_v6 }
 0x322   :  { %2582 = vst.msk [vmem:[#allocation4 + $0x94] sm:$0x3f] %vm2441_vm3, %v2580_v27  ;;  %v1444_v34 = vpop.f32.mrf.mxu3 }
 0x323   :  { %v1919_v16 = vld [vmem:[#allocation2 + $0x279] sm:$0xff]  ;;  %v1445_v37 = vadd.f32 %v9648_v8, %v1444_v34  ;;  %3424 = vrot.lane.b32.xlu2 %v3295_v35, %s7993_s19  ;;  %v1105_v38 = vpop.f32.mrf.mxu0  ;;  %2902 = vst.msk [vmem:[#allocation5 + $0x88] sm:$0xff] %vm1447_vm2, %v2846_v32  ;;  %v7994_v35 = vmov 0.0  }
 0x324   :  { %v2115_v41 = vmax.f32 %v1723_v33, %v1919_v16  ;;  %v1724_v24 = vld [vmem:[#allocation2 + $0x280] sm:$0xff]  ;;  %v1106_v52 = vadd.f32 %v9648_v8, %v1105_v38  ;;  %4700 = vst.msk [vmem:[#allocation6 + $0x128] sm:$0xff] %vm4662_vm10, %v4627_v19 }
 0x325   :  { %v2033_v43 = vld [vmem:[#allocation2 + $0x609] sm:$0xff]  ;;  %v3419_v44 = vpop.permute.xlu2 %3418  ;;  %1643 = vst.msk [vmem:[#allocation2 + $0x618] sm:$0xff] %vm1447_vm2, %v1445_v37 }
 0x326   :  { %v3754_v45 = vpop.permute.xlu1 %3753  ;;  %2311 = vst.msk [vmem:[#allocation3 + $0x278] sm:$0xff] %vm1447_vm2, %v2115_v41  ;;  %v2229_v46 = vmax.f32 %v1837_v36, %v2033_v43  ;;  %7551 = vmatmul.msk.f32.gmra.mxu0 %vm249_vm1, %v137_v40  ;;  %v1838_v56 = vld [vmem:[#allocation2 + $0x610] sm:$0xff]  ;;  %v2810_v15 = vld [vmem:[#allocation3 + $0x5f8] ss:$2 sm:$0x3f] }
 0x327   :  { %v3475_v47 = vpop.permute.xlu0 %3474  ;;  %v5264_v49 = vld [vmem:[#allocation5 + $0x144] sm:$0xff]  ;;  %4098 = vrot.lane.b32.xlu1 %v3969_v48, %s7992_s18  ;;  %1530 = vst.msk [vmem:[#allocation2 + $0x290] sm:$0xff] %vm1447_vm2, %v1106_v52 }
 0x328   :  { %3601 = vst.msk [vmem:[#allocation5 + $0x150] sm:$0xff] %vm3558_vm6, %v3475_v47  ;;  %v1920_v51 = vld [vmem:[#allocation2 + $0x281] sm:$0xff]  ;;  %7795 = vmatmul.msk.f32.gmra.mxu3 %vm4346_vm9, %v5264_v49  ;;  %v4330_v55 = vld [vmem:[#allocation5 + $0x148] sm:$0xff] }
 0x329   :  { %2425 = vst.msk [vmem:[#allocation3 + $0x608] sm:$0xff] %vm1447_vm2, %v2229_v46  ;;  %v2116_v53 = vmax.f32 %v1724_v24, %v1920_v51  ;;  %v2959_v20 = vld [vmem:[#allocation4 + $0x91] sm:$0xff]  ;;  %7691 = vmatmul.msk.f32.gmra.mxu2 %vm4346_vm9, %v4330_v55  ;;  %v1725_v5 = vld [vmem:[#allocation2 + $0x288] sm:$0xff] }
 0x32a   :  { %3938 = vst.msk [vmem:[#allocation5 + $0x150] sm:$0xff] %vm3895_vm7, %v3812_v23  ;;  %3089 = vrot.lane.b32.xlu0 %v2959_v20, %s7991_s13  ;;  %v2847_v58 = vld [vmem:[#allocation4 + $0x90] sm:$0xff] }
 0x32b   :  { %4275 = vst.msk [vmem:[#allocation5 + $0x150] sm:$0xff] %vm4232_vm8, %v9681_v50  ;;  %v1108_v57 = vpop.f32.mrf.mxu0  ;;  %v3296_v2 = vld [vmem:[#allocation4 + $0x92] sm:$0xff] }
 0x32c   :  { %2312 = vst.msk [vmem:[#allocation3 + $0x280] sm:$0xff] %vm1447_vm2, %v2116_v53  ;;  %v1839_v59 = vld [vmem:[#allocation2 + $0x618] sm:$0x7f]  ;;  %v1109_v3 = vadd.f32 %v9648_v8, %v1108_v57  ;;  %v141_v48 = vld [vmem:[%s11145_s0 + $0x330] sm:$0xff] }
 0x32d   :  { %v2034_v60 = vld [vmem:[#allocation2 + $0x611] sm:$0xff]  ;;  %v2035_v61 = vld [vmem:[#allocation2 + $0x619] sm:$0x7f]  ;;  %v9758_v50 = vpop.permute.xlu2 %3476  ;;  %2903 = vst.msk [vmem:[#allocation5 + $0x90] sm:$0xff] %vm1447_vm2, %v2847_v58 }
 0x32e   :  { %v2230_v62 = vmax.f32 %v1838_v56, %v2034_v60  ;;  %v2231_v63 = vmax.f32 %v1839_v59, %v2035_v61  ;;  %v3082_v30 = vpop.permute.xlu1 %3081  ;;  %7552 = vmatmul.msk.f32.gmra.mxu0 %vm249_vm1, %v138_v26  ;;  %v1921_v7 = vld [vmem:[#allocation2 + $0x289] sm:$0xff]  ;;  %1531 = vst.msk [vmem:[#allocation2 + $0x298] sm:$0xff] %vm1447_vm2, %v1109_v3 }
 0x32f   :  { %3236 = vst.msk [vmem:[#allocation5 + $0x70] sm:$0xff] %vm3221_vm5, %v3082_v30  ;;  %v3417_v0 = vpop.permute.xlu0 %3416  ;;  %3426 = vrot.lane.b32.xlu1 %v3296_v2, %s7993_s19  ;;  %v2117_v39 = vmax.f32 %v1725_v5, %v1921_v7  ;;  %v1726_v31 = vld [vmem:[#allocation2 + $0x290] sm:$0xff] }
 0x330   :  { %2426 = vst.msk [vmem:[#allocation3 + $0x610] sm:$0xff] %vm1447_vm2, %v2230_v62  ;;  %v2584_v59 = vld [vmem:[#allocation3 + $0x268] ss:$2 sm:$0xff]  ;;  %v142_v62 = vld [vmem:[%s11145_s0 + $0x338] sm:$0xff] }
 0x331   :  { %2428 = vst.msk [vmem:[#allocation3 + $0x618] sm:$0x7f] %vm2427_vm11, %v2231_v63  ;;  %vm7096_vm11 = vcmask 1042304  }
 0x332   :  { %3573 = vst.msk [vmem:[#allocation5 + $0x70] sm:$0xff] %vm3558_vm6, %v3419_v44  ;;  %v5265_v4 = vld [vmem:[#allocation5 + $0x14c] sm:$0xff] }
 0x333   :  { %3572 = vst.msk [vmem:[#allocation5 + $0x68] sm:$0xff] %vm3558_vm6, %v3417_v0  ;;  %7796 = vmatmul.msk.f32.gmra.mxu3 %vm4346_vm9, %v5265_v4  ;;  %v1111_v9 = vpop.f32.mrf.mxu0  ;;  %v4331_v6 = vld [vmem:[#allocation5 + $0x150] sm:$0xff] }
 0x334   :  { %3909 = vst.msk [vmem:[#allocation5 + $0x68] sm:$0xff] %vm3895_vm7, %v3754_v45  ;;  %v1112_v14 = vadd.f32 %v9648_v8, %v1111_v9  ;;  %7692 = vmatmul.msk.f32.gmra.mxu2 %vm4346_vm9, %v4331_v6  ;;  %v2586_v30 = vld [vmem:[#allocation3 + $0x278] ss:$2 sm:$0x3f] }
 0x335   :  { %4246 = vst.msk [vmem:[#allocation5 + $0x68] sm:$0xff] %vm4232_vm8, %v9721_v12  ;;  %v1922_v32 = vld [vmem:[#allocation2 + $0x291] sm:$0xff] }
 0x336   :  { %v4093_v13 = vpop.permute.xlu1 %4092  ;;  %2313 = vst.msk [vmem:[#allocation3 + $0x288] sm:$0xff] %vm1447_vm2, %v2117_v39  ;;  %v9778_v1 = vpop.permute.xlu2 %3815  ;;  %7553 = vmatmul.msk.f32.gmra.mxu0 %vm249_vm1, %v139_v10  ;;  %v2118_v34 = vmax.f32 %v1726_v31, %v1922_v32  ;;  %v1727_v16 = vld [vmem:[#allocation2 + $0x298] sm:$0xff] }
 0x337   :  { %v3756_v17 = vpop.permute.xlu0 %3755  ;;  %v2812_v18 = vld [vmem:[#allocation3 + $0x604] ss:$2 sm:$0xff]  ;;  %1532 = vst.msk [vmem:[#allocation2 + $0x2a0] sm:$0xff] %vm1447_vm2, %v1112_v14 }
 0x338   :  { %3910 = vst.msk [vmem:[#allocation5 + $0x70] sm:$0xff] %vm3895_vm7, %v3756_v17  ;;  %v2814_v21 = vld [vmem:[#allocation3 + $0x614] ss:$2 sm:$0x3f]  ;;  %v2815_v22 = vmax.f32 %v2808_v42, %v2812_v18 }
 0x339   :  { %4247 = vst.msk [vmem:[#allocation5 + $0x70] sm:$0xff] %vm4232_vm8, %v4093_v13  ;;  %v2816_v12 = vmax.f32 %v2810_v15, %v2814_v21  ;;  %v2874_v13 = vld [vmem:[#allocation4 + $0x168] sm:$0xff]  ;;  %v143_v15 = vld [vmem:[%s11145_s0 + $0x340] sm:$0xff] }
 0x33a   :  { %v2817_v23 = vmax.f32 %v2815_v22, 0.0  ;;  %2821 = vst.msk [vmem:[#allocation4 + $0x188] sm:$0xff] %vm1447_vm2, %v7994_v35 }
 0x33b   :  { %v2818_v25 = vmax.f32 %v2816_v12, 0.0  ;;  %v1114_v28 = vpop.f32.mrf.mxu0  ;;  %2314 = vst.msk [vmem:[#allocation3 + $0x290] sm:$0xff] %vm1447_vm2, %v2118_v34 }
 0x33c   :  { %v4302_v27 = vld [vmem:[#allocation5 + $0x68] sm:$0xff]  ;;  %2819 = vst.msk [vmem:[#allocation4 + $0x17a] sm:$0xff] %vm1447_vm2, %v2817_v23  ;;  %v1115_v33 = vadd.f32 %v9648_v8, %v1114_v28 }
 0x33d   :  { %7663 = vmatmul.msk.f32.gmra.mxu1 %vm4346_vm9, %v4302_v27  ;;  %2820 = vst.msk [vmem:[#allocation4 + $0x182] sm:$0x3f] %vm2441_vm3, %v2818_v25  ;;  %v4629_v23 = vpop.f32.mrf.mxu2 }
 0x33e   :  { %1533 = vst.msk [vmem:[#allocation2 + $0x2a8] sm:$0xff] %vm1447_vm2, %v1115_v33  ;;  %v9796_v36 = vpop.permute.xlu2 %3757  ;;  %7554 = vmatmul.msk.f32.gmra.mxu0 %vm249_vm1, %v140_v29  ;;  %v1923_v37 = vld [vmem:[#allocation2 + $0x299] sm:$0xff]  ;;  %v4630_v27 = vadd.f32 %v9690_v54, %v4629_v23 }
 0x33f   :  { %2822 = vst.msk [vmem:[#allocation4 + $0x190] sm:$0xff] %vm1447_vm2, %v7994_v35  ;;  %v2119_v38 = vmax.f32 %v1727_v16, %v1923_v37  ;;  %v1728_v24 = vld [vmem:[#allocation2 + $0x2a0] sm:$0xff] }
 0x340   :  { %v4303_v40 = vld [vmem:[#allocation5 + $0x70] sm:$0xff]  ;;  %2823 = vst.msk [vmem:[#allocation4 + $0x198] sm:$0xff] %vm1447_vm2, %v7994_v35 }
 0x341   :  { %2824 = vst.msk [vmem:[#allocation4 + $0x1a0] sm:$0xff] %vm1447_vm2, %v7994_v35 }
 0x342   :  { %v4545_v41 = vpop.f32.mrf.mxu1  ;;  %2315 = vst.msk [vmem:[#allocation3 + $0x298] sm:$0xff] %vm1447_vm2, %v2119_v38  ;;  %v2588_v26 = vld [vmem:[#allocation3 + $0x284] ss:$2 sm:$0xff] }
 0x343   :  { %v3998_v43 = vld [vmem:[#allocation4 + $0x174] sm:$0xff]  ;;  %v4546_v45 = vadd.f32 %v9690_v54, %v4545_v41  ;;  %v1117_v47 = vpop.f32.mrf.mxu0  ;;  %2825 = vst.msk [vmem:[#allocation4 + $0x1a8] sm:$0xff] %vm1447_vm2, %v7994_v35  ;;  %v2591_v63 = vmax.f32 %v2584_v59, %v2588_v26 }
 0x344   :  { %v3661_v44 = vld [vmem:[#allocation4 + $0x173] sm:$0xff]  ;;  %v3662_v46 = vld [vmem:[#allocation4 + $0x17b] sm:$0xff]  ;;  %4156 = vrot.lane.b32.xlu1 %v3998_v43, %s7992_s18  ;;  %v1118_v49 = vadd.f32 %v9648_v8, %v1117_v47  ;;  %2826 = vst.msk [vmem:[#allocation4 + $0x1b0] sm:$0xff] %vm1447_vm2, %v7994_v35  ;;  %v3663_v10 = vld [vmem:[#allocation4 + $0x183] sm:$0xff] }
 0x345   :  { %3819 = vrot.lane.b32.xlu0 %v3661_v44, %s7990_s12  ;;  %7664 = vmatmul.msk.f32.gmra.mxu1 %vm4346_vm9, %v4303_v40  ;;  %v1924_v51 = vld [vmem:[#allocation2 + $0x2a1] sm:$0xff]  ;;  %4673 = vst.msk [vmem:[#allocation6 + $0x50] sm:$0xff] %vm4662_vm10, %v4546_v45  ;;  %v2988_v57 = vld [vmem:[#allocation4 + $0x179] sm:$0xff]  ;;  %v2593_v9 = vmax.f32 %v2591_v63, 0.0 }
 0x346   :  { %3821 = vrot.lane.b32.xlu2 %v3662_v46, %s7990_s12  ;;  %v3140_v52 = vpop.permute.xlu1 %3139  ;;  %v2120_v53 = vmax.f32 %v1728_v24, %v1924_v51  ;;  %1534 = vst.msk [vmem:[#allocation2 + $0x2b0] sm:$0xff] %vm1447_vm2, %v1118_v49  ;;  %v3086_v20 = vpop.permute.xlu2 %3085  ;;  %7555 = vmatmul.msk.f32.gmra.mxu0 %vm249_vm1, %v141_v48  ;;  %v3325_v56 = vld [vmem:[#allocation4 + $0x17a] sm:$0xff]  ;;  %v1729_v2 = vld [vmem:[#allocation2 + $0x2a8] sm:$0xff]  ;;  %v145_v49 = vld [vmem:[%s11145_s0 + $0x350] sm:$0xff] }
 0x347   :  { %v3814_v55 = vpop.permute.xlu0 %3813  ;;  %3238 = vst.msk [vmem:[#allocation5 + $0x80] sm:$0xff] %vm3221_vm5, %v3086_v20  ;;  %v2989_v58 = vld [vmem:[#allocation4 + $0x181] sm:$0xff]  ;;  %v2875_v24 = vld [vmem:[#allocation4 + $0x170] sm:$0xff]  ;;  %v146_v59 = vld [vmem:[%s11145_s0 + $0x358] sm:$0xff] }
 0x348   :  { %2316 = vst.msk [vmem:[#allocation3 + $0x2a0] sm:$0xff] %vm1447_vm2, %v2120_v53  ;;  %v3999_v11 = vld [vmem:[#allocation4 + $0x17c] sm:$0xff]  ;;  %v4000_v42 = vld [vmem:[#allocation4 + $0x184] sm:$0xff] }
 0x349   :  { %3265 = vst.msk [vmem:[#allocation5 + $0x158] sm:$0xff] %vm3221_vm5, %v3140_v52  ;;  %v2590_v60 = vld [vmem:[#allocation3 + $0x294] ss:$2 sm:$0x3f]  ;;  %v3326_v25 = vld [vmem:[#allocation4 + $0x182] sm:$0xff] }
 0x34a   :  { %3602 = vst.msk [vmem:[#allocation5 + $0x158] sm:$0xff] %vm3558_vm6, %v9758_v50  ;;  %v2592_v0 = vmax.f32 %v2586_v30, %v2590_v60 }
 0x34b   :  { %3939 = vst.msk [vmem:[#allocation5 + $0x158] sm:$0xff] %vm3895_vm7, %v3814_v55  ;;  %v1120_v61 = vpop.f32.mrf.mxu0 }
 0x34c   :  { %3484 = vrot.lane.b32.xlu1 %v3325_v56, %s7993_s19  ;;  %v1121_v50 = vadd.f32 %v9648_v8, %v1120_v61  ;;  %2827 = vst.msk [vmem:[#allocation4 + $0x1b8] sm:$0xff] %vm1447_vm2, %v7994_v35  ;;  %v2594_v39 = vmax.f32 %v2592_v0, 0.0 }
 0x34d   :  { %3147 = vrot.lane.b32.xlu0 %v2988_v57, %s7991_s13  ;;  %v1925_v3 = vld [vmem:[#allocation2 + $0x2a9] sm:$0xff]  ;;  %2828 = vst.msk [vmem:[#allocation4 + $0x1c0] sm:$0xff] %vm1447_vm2, %v7994_v35 }
 0x34e   :  { %3149 = vrot.lane.b32.xlu2 %v2989_v58, %s7991_s13  ;;  %v4151_v4 = vpop.permute.xlu1 %4150  ;;  %v2121_v5 = vmax.f32 %v1729_v2, %v1925_v3  ;;  %7556 = vmatmul.msk.f32.gmra.mxu0 %vm249_vm1, %v142_v62  ;;  %1535 = vst.msk [vmem:[#allocation2 + $0x2b8] sm:$0xff] %vm1447_vm2, %v1121_v50  ;;  %v1730_v19 = vld [vmem:[#allocation2 + $0x2b0] sm:$0xff]  ;;  %v147_v3 = vld [vmem:[%s11145_s0 + $0x360] sm:$0xff] }
 0x34f   :  { %v3142_v7 = vpop.permute.xlu0 %3141  ;;  %4276 = vst.msk [vmem:[#allocation5 + $0x158] sm:$0xff] %vm4232_vm8, %v4151_v4  ;;  %v4097_v35 = vpop.permute.xlu2 %4096  ;;  %v2876_v4 = vld [vmem:[#allocation4 + $0x178] sm:$0xff] }
 0x350   :  { %2317 = vst.msk [vmem:[#allocation3 + $0x2a8] sm:$0xff] %vm1447_vm2, %v2121_v5 }
 0x351   :  { %3266 = vst.msk [vmem:[#allocation5 + $0x160] sm:$0xff] %vm3221_vm5, %v3142_v7 }
 0x352   :  { %2595 = vst.msk [vmem:[#allocation4 + $0x9a] sm:$0xff] %vm1447_vm2, %v2593_v9 }
 0x353   :  { %v1123_v14 = vpop.f32.mrf.mxu0  ;;  %2596 = vst.msk [vmem:[#allocation4 + $0xa2] sm:$0x3f] %vm2441_vm3, %v2594_v39 }
 0x354   :  { %3823 = vrot.lane.b32.xlu1 %v3663_v10, %s7990_s12  ;;  %v1124_v17 = vadd.f32 %v9648_v8, %v1123_v14  ;;  %2930 = vst.msk [vmem:[#allocation5 + $0x168] sm:$0xff] %vm1447_vm2, %v2874_v13 }
 0x355   :  { %4158 = vrot.lane.b32.xlu0 %v3999_v11, %s7992_s18  ;;  %v1926_v21 = vld [vmem:[#allocation2 + $0x2b1] sm:$0xff]  ;;  %4701 = vst.msk [vmem:[#allocation6 + $0x130] sm:$0xff] %vm4662_vm10, %v4630_v27 }
 0x356   :  { %4160 = vrot.lane.b32.xlu2 %v4000_v42, %s7992_s18  ;;  %v3479_v18 = vpop.permute.xlu1 %3478  ;;  %1536 = vst.msk [vmem:[#allocation2 + $0x2c0] sm:$0xff] %vm1447_vm2, %v1124_v17  ;;  %7557 = vmatmul.msk.f32.gmra.mxu0 %vm249_vm1, %v143_v15  ;;  %v2122_v12 = vmax.f32 %v1730_v19, %v1926_v21  ;;  %v5266_v6 = vld [vmem:[#allocation5 + $0x154] sm:$0xff]  ;;  %v148_v19 = vld [vmem:[%s11145_s0 + $0x368] sm:$0xff] }
 0x357   :  { %v4153_v22 = vpop.permute.xlu0 %4152  ;;  %3603 = vst.msk [vmem:[#allocation5 + $0x160] sm:$0xff] %vm3558_vm6, %v3479_v18  ;;  %7797 = vmatmul.msk.f32.gmra.mxu3 %vm4346_vm9, %v5266_v6  ;;  %v1731_v34 = vld [vmem:[#allocation2 + $0x2b8] sm:$0xff]  ;;  %v4332_v41 = vld [vmem:[#allocation5 + $0x158] sm:$0xff] }
 0x358   :  { %3940 = vst.msk [vmem:[#allocation5 + $0x160] sm:$0xff] %vm3895_vm7, %v9778_v1  ;;  %v144_v1 = vld [vmem:[%s11145_s0 + $0x348] sm:$0xff]  ;;  %7693 = vmatmul.msk.f32.gmra.mxu2 %vm4346_vm9, %v4332_v41 }
 0x359   :  { %2318 = vst.msk [vmem:[#allocation3 + $0x2b0] sm:$0xff] %vm1447_vm2, %v2122_v12  ;;  %v2960_v28 = vld [vmem:[#allocation4 + $0x99] sm:$0xff] }
 0x35a   :  { %4277 = vst.msk [vmem:[#allocation5 + $0x160] sm:$0xff] %vm4232_vm8, %v4153_v22  ;;  %v3633_v29 = vld [vmem:[#allocation4 + $0x93] sm:$0xff]  ;;  %v2849_v43 = vld [vmem:[#allocation4 + $0xa0] sm:$0xff] }
 0x35b   :  { %v1126_v31 = vpop.f32.mrf.mxu0  ;;  %v2848_v33 = vld [vmem:[#allocation4 + $0x98] sm:$0xff]  ;;  %2905 = vst.msk [vmem:[#allocation5 + $0xa0] sm:$0xff] %vm1447_vm2, %v2849_v43  ;;  %v2598_v11 = vld [vmem:[#allocation3 + $0x2a0] ss:$2 sm:$0xff] }
 0x35c   :  { %3091 = vrot.lane.b32.xlu1 %v2960_v28, %s7991_s13  ;;  %v1127_v32 = vadd.f32 %v9648_v8, %v1126_v31  ;;  %2904 = vst.msk [vmem:[#allocation5 + $0x98] sm:$0xff] %vm1447_vm2, %v2848_v33  ;;  %v3971_v45 = vld [vmem:[#allocation4 + $0x9c] sm:$0xff]  ;;  %v3970_v46 = vld [vmem:[#allocation4 + $0x94] sm:$0xff] }
 0x35d   :  { %3486 = vrot.lane.b32.xlu0 %v3326_v25, %s7993_s19  ;;  %v1927_v16 = vld [vmem:[#allocation2 + $0x2b9] sm:$0xff]  ;;  %2931 = vst.msk [vmem:[#allocation5 + $0x170] sm:$0xff] %vm1447_vm2, %v2875_v24 }
 0x35e   :  { %3763 = vrot.lane.b32.xlu2 %v3633_v29, %s7990_s12  ;;  %v2123_v37 = vmax.f32 %v1731_v34, %v1927_v16  ;;  %1537 = vst.msk [vmem:[#allocation2 + $0x2c8] sm:$0xff] %vm1447_vm2, %v1127_v32  ;;  %v3421_v38 = vpop.permute.xlu1 %3420  ;;  %7558 = vmatmul.msk.f32.gmra.mxu0 %vm249_vm1, %v144_v1  ;;  %v3297_v47 = vld [vmem:[#allocation4 + $0x9a] sm:$0xff]  ;;  %v149_v34 = vld [vmem:[%s11145_s0 + $0x370] sm:$0xff] }
 0x35f   :  { %v3084_v40 = vpop.permute.xlu0 %3083  ;;  %v1732_v51 = vld [vmem:[#allocation2 + $0x2c0] sm:$0xff]  ;;  %2932 = vst.msk [vmem:[#allocation5 + $0x178] sm:$0xff] %vm1447_vm2, %v2876_v4 }
 0x360   :  { %3237 = vst.msk [vmem:[#allocation5 + $0x78] sm:$0xff] %vm3221_vm5, %v3084_v40  ;;  %v3634_v26 = vld [vmem:[#allocation4 + $0x9b] sm:$0xff] }
 0x361   :  { %2319 = vst.msk [vmem:[#allocation3 + $0x2b8] sm:$0xff] %vm1447_vm2, %v2123_v37  ;;  %v5267_v44 = vld [vmem:[#allocation5 + $0x15c] sm:$0xff] }
 0x362   :  { %3574 = vst.msk [vmem:[#allocation5 + $0x78] sm:$0xff] %vm3558_vm6, %v3421_v38  ;;  %7798 = vmatmul.msk.f32.gmra.mxu3 %vm4346_vm9, %v5267_v44 }
 0x363   :  { %3911 = vst.msk [vmem:[#allocation5 + $0x78] sm:$0xff] %vm3895_vm7, %v9796_v36  ;;  %v1129_v48 = vpop.f32.mrf.mxu0 }
 0x364   :  { %4102 = vrot.lane.b32.xlu1 %v3971_v45, %s7992_s18  ;;  %v1130_v36 = vadd.f32 %v9648_v8, %v1129_v48  ;;  %v4333_v45 = vld [vmem:[#allocation5 + $0x160] sm:$0xff] }
 0x365   :  { %4100 = vrot.lane.b32.xlu0 %v3970_v46, %s7992_s18  ;;  %v1928_v52 = vld [vmem:[#allocation2 + $0x2c1] sm:$0xff]  ;;  %v3144_v20 = vpop.permute.xlu2 %3143  ;;  %7694 = vmatmul.msk.f32.gmra.mxu2 %vm4346_vm9, %v4333_v45 }
 0x366   :  { %3428 = vrot.lane.b32.xlu2 %v3297_v47, %s7993_s19  ;;  %v2124_v53 = vmax.f32 %v1732_v51, %v1928_v52  ;;  %1538 = vst.msk [vmem:[#allocation2 + $0x2d0] sm:$0xff] %vm1447_vm2, %v1130_v36  ;;  %7559 = vmatmul.msk.f32.gmra.mxu0 %vm249_vm1, %v145_v49  ;;  %v1733_v61 = vld [vmem:[#allocation2 + $0x2c8] sm:$0xff]  ;;  %v3760_v0 = vpop.permute.xlu1 %3759  ;;  %v150_v51 = vld [vmem:[%s11145_s0 + $0x378] sm:$0xff] }
 0x367   :  { %3267 = vst.msk [vmem:[#allocation5 + $0x168] sm:$0xff] %vm3221_vm5, %v3144_v20  ;;  %v4095_v55 = vpop.permute.xlu0 %4094 }
 0x368   :  { %2320 = vst.msk [vmem:[#allocation3 + $0x2c0] sm:$0xff] %vm1447_vm2, %v2124_v53  ;;  %v2600_v25 = vld [vmem:[#allocation3 + $0x2b0] ss:$2 sm:$0x3f] }
 0x369   :  { %v4632_v56 = vpop.f32.mrf.mxu2  ;;  %4248 = vst.msk [vmem:[#allocation5 + $0x78] sm:$0xff] %vm4232_vm8, %v4095_v55 }
 0x36a   :  { %v4633_v57 = vadd.f32 %v9690_v54, %v4632_v56 }
 0x36b   :  { %v1132_v58 = vpop.f32.mrf.mxu0 }
 0x36c   :  { %4702 = vst.msk [vmem:[#allocation6 + $0x138] sm:$0xff] %vm4662_vm10, %v4633_v57  ;;  %v1133_v60 = vadd.f32 %v9648_v8, %v1132_v58 }
 0x36d   :  { %3765 = vrot.lane.b32.xlu0 %v3634_v26, %s7990_s12  ;;  %v1929_v62 = vld [vmem:[#allocation2 + $0x2c9] sm:$0xff]  ;;  %v4155_v27 = vpop.permute.xlu2 %4154  ;;  %v2877_v26 = vld [vmem:[#allocation4 + $0x180] sm:$0xff] }
 0x36e   :  { %v2125_v63 = vmax.f32 %v1733_v61, %v1929_v62  ;;  %1539 = vst.msk [vmem:[#allocation2 + $0x2d8] sm:$0xff] %vm1447_vm2, %v1133_v60  ;;  %7560 = vmatmul.msk.f32.gmra.mxu0 %vm249_vm1, %v146_v59  ;;  %v1734_v7 = vld [vmem:[#allocation2 + $0x2d0] sm:$0xff]  ;;  %v151_v62 = vld [vmem:[%s11145_s0 + $0x380] sm:$0xff] }
 0x36f   :  { %v3423_v30 = vpop.permute.xlu0 %3422  ;;  %2933 = vst.msk [vmem:[#allocation5 + $0x180] sm:$0xff] %vm1447_vm2, %v2877_v26 }
 0x370   :  { %2321 = vst.msk [vmem:[#allocation3 + $0x2c8] sm:$0xff] %vm1447_vm2, %v2125_v63  ;;  %v4304_v50 = vld [vmem:[#allocation5 + $0x78] sm:$0xff] }
 0x371   :  { %3575 = vst.msk [vmem:[#allocation5 + $0x80] sm:$0xff] %vm3558_vm6, %v3423_v30  ;;  %7665 = vmatmul.msk.f32.gmra.mxu1 %vm4346_vm9, %v4304_v50 }
 0x372   :  { %3912 = vst.msk [vmem:[#allocation5 + $0x80] sm:$0xff] %vm3895_vm7, %v3760_v0 }
 0x373   :  { %4249 = vst.msk [vmem:[#allocation5 + $0x80] sm:$0xff] %vm4232_vm8, %v4097_v35  ;;  %v1135_v2 = vpop.f32.mrf.mxu0 }
 0x374   :  { %v1136_v5 = vadd.f32 %v9648_v8, %v1135_v2 }
 0x375   :  { %v1930_v9 = vld [vmem:[#allocation2 + $0x2d1] sm:$0xff]  ;;  %v3483_v46 = vpop.permute.xlu2 %3482 }
 0x376   :  { %v2126_v10 = vmax.f32 %v1734_v7, %v1930_v9  ;;  %1540 = vst.msk [vmem:[#allocation2 + $0x2e0] sm:$0xff] %vm1447_vm2, %v1136_v5  ;;  %7561 = vmatmul.msk.f32.gmra.mxu0 %vm249_vm1, %v147_v3  ;;  %v1735_v22 = vld [vmem:[#allocation2 + $0x2d8] sm:$0xff]  ;;  %v152_v5 = vld [vmem:[%s11145_s0 + $0x388] sm:$0xff]  ;;  %v9973_v9 = vld [vmem:[%s11147_s2] ss:$0 sm:$0xff] }
 0x377   :  { %v2602_v39 = vld [vmem:[#allocation3 + $0x2bc] ss:$2 sm:$0xff] }
 0x378   :  { %2322 = vst.msk [vmem:[#allocation3 + $0x2d0] sm:$0xff] %vm1447_vm2, %v2126_v10  ;;  %v2605_v42 = vmax.f32 %v2598_v11, %v2602_v39 }
 0x379   :  { %v4548_v13 = vpop.f32.mrf.mxu1 }
 0x37a   :  { %v4549_v14 = vadd.f32 %v9690_v54, %v4548_v13  ;;  %v4305_v15 = vld [vmem:[#allocation5 + $0x80] sm:$0xff]  ;;  %v2607_v17 = vmax.f32 %v2605_v42, 0.0 }
 0x37b   :  { %7666 = vmatmul.msk.f32.gmra.mxu1 %vm4346_vm9, %v4305_v15  ;;  %v1138_v18 = vpop.f32.mrf.mxu0 }
 0x37c   :  { %4674 = vst.msk [vmem:[#allocation6 + $0x58] sm:$0xff] %vm4662_vm10, %v4549_v14  ;;  %v1139_v21 = vadd.f32 %v9648_v8, %v1138_v18 }
 0x37d   :  { %v1931_v12 = vld [vmem:[#allocation2 + $0x2d9] sm:$0xff]  ;;  %2609 = vst.msk [vmem:[#allocation4 + $0xa8] sm:$0xff] %vm1447_vm2, %v2607_v17  ;;  %v3425_v60 = vpop.permute.xlu2 %3424 }
 0x37e   :  { %v2127_v23 = vmax.f32 %v1735_v22, %v1931_v12  ;;  %1541 = vst.msk [vmem:[#allocation2 + $0x2e8] sm:$0xff] %vm1447_vm2, %v1139_v21  ;;  %7562 = vmatmul.msk.f32.gmra.mxu0 %vm249_vm1, %v148_v19  ;;  %v3818_v29 = vpop.permute.xlu1 %3817  ;;  %v1736_v41 = vld [vmem:[#allocation2 + $0x2e0] sm:$0xff] }
 0x37f   :  { %v3481_v6 = vpop.permute.xlu0 %3480  ;;  %v2604_v28 = vld [vmem:[#allocation3 + $0x2cc] ss:$2 sm:$0x3f] }
 0x380   :  { %3604 = vst.msk [vmem:[#allocation5 + $0x168] sm:$0xff] %vm3558_vm6, %v3481_v6  ;;  %v2606_v31 = vmax.f32 %v2600_v25, %v2604_v28 }
 0x381   :  { %2323 = vst.msk [vmem:[#allocation3 + $0x2d8] sm:$0xff] %vm1447_vm2, %v2127_v23 }
 0x382   :  { %3941 = vst.msk [vmem:[#allocation5 + $0x168] sm:$0xff] %vm3895_vm7, %v3818_v29  ;;  %v2608_v1 = vmax.f32 %v2606_v31, 0.0 }
 0x383   :  { %4278 = vst.msk [vmem:[#allocation5 + $0x168] sm:$0xff] %vm4232_vm8, %v4155_v27  ;;  %v4551_v32 = vpop.f32.mrf.mxu1  ;;  %v1141_v33 = vpop.f32.mrf.mxu0 }
 0x384   :  { %v4552_v35 = vadd.f32 %v9690_v54, %v4551_v32  ;;  %v1142_v16 = vadd.f32 %v9648_v8, %v1141_v33  ;;  %v2961_v37 = vld [vmem:[#allocation4 + $0xa1] sm:$0xff]  ;;  %2610 = vst.msk [vmem:[#allocation4 + $0xb0] sm:$0x3f] %vm2441_vm3, %v2608_v1 }
 0x385   :  { %v3635_v38 = vld [vmem:[#allocation4 + $0xa3] sm:$0xff]  ;;  %3093 = vrot.lane.b32.xlu2 %v2961_v37, %s7991_s13 }
 0x386   :  { %v3298_v40 = vld [vmem:[#allocation4 + $0xa2] sm:$0xff]  ;;  %3767 = vrot.lane.b32.xlu1 %v3635_v38, %s7990_s12  ;;  %4675 = vst.msk [vmem:[#allocation6 + $0x60] sm:$0xff] %vm4662_vm10, %v4552_v35  ;;  %7563 = vmatmul.msk.f32.gmra.mxu0 %vm249_vm1, %v149_v34 }
 0x387   :  { %v1932_v43 = vld [vmem:[#allocation2 + $0x2e1] sm:$0xff]  ;;  %3430 = vrot.lane.b32.xlu0 %v3298_v40, %s7993_s19  ;;  %1542 = vst.msk [vmem:[#allocation2 + $0x2f0] sm:$0xff] %vm1447_vm2, %v1142_v16 }
 0x388   :  { %v2128_v44 = vmax.f32 %v1736_v41, %v1932_v43  ;;  %v3972_v53 = vld [vmem:[#allocation4 + $0xa4] sm:$0xff] }
 0x389   :  { %v3146_v48 = vpop.permute.xlu1 %3145  ;;  %v2850_v20 = vld [vmem:[#allocation4 + $0xa8] sm:$0xff] }
 0x38a   :  { %2324 = vst.msk [vmem:[#allocation3 + $0x2e0] sm:$0xff] %vm1447_vm2, %v2128_v44  ;;  %v5268_v47 = vld [vmem:[#allocation5 + $0x164] sm:$0xff] }
 0x38b   :  { %7799 = vmatmul.msk.f32.gmra.mxu3 %vm4346_vm9, %v5268_v47  ;;  %3268 = vst.msk [vmem:[#allocation5 + $0x170] sm:$0xff] %vm3221_vm5, %v3146_v48  ;;  %v1144_v49 = vpop.f32.mrf.mxu0  ;;  %v3299_v24 = vld [vmem:[#allocation4 + $0xaa] sm:$0xff] }
 0x38c   :  { %v2962_v36 = vld [vmem:[#allocation4 + $0xa9] sm:$0xff]  ;;  %3605 = vst.msk [vmem:[#allocation5 + $0x170] sm:$0xff] %vm3558_vm6, %v3483_v46  ;;  %v1145_v52 = vadd.f32 %v9648_v8, %v1144_v49 }
 0x38d   :  { %4104 = vrot.lane.b32.xlu2 %v3972_v53, %s7992_s18  ;;  %2906 = vst.msk [vmem:[#allocation5 + $0xa8] sm:$0xff] %vm1447_vm2, %v2850_v20  ;;  %v1737_v55 = vld [vmem:[#allocation2 + $0x2e8] sm:$0xff]  ;;  %v3762_v58 = vpop.permute.xlu0 %3761  ;;  %v4334_v25 = vld [vmem:[#allocation5 + $0x168] sm:$0xff] }
 0x38e   :  { %3432 = vrot.lane.b32.xlu1 %v3299_v24, %s7993_s19  ;;  %v1933_v56 = vld [vmem:[#allocation2 + $0x2e9] sm:$0xff]  ;;  %1543 = vst.msk [vmem:[#allocation2 + $0x2f8] sm:$0xff] %vm1447_vm2, %v1145_v52  ;;  %7564 = vmatmul.msk.f32.gmra.mxu0 %vm249_vm1, %v150_v51 }
 0x38f   :  { %3095 = vrot.lane.b32.xlu0 %v2962_v36, %s7991_s13  ;;  %v2129_v57 = vmax.f32 %v1737_v55, %v1933_v56  ;;  %v3636_v30 = vld [vmem:[#allocation4 + $0xab] sm:$0xff]  ;;  %7695 = vmatmul.msk.f32.gmra.mxu2 %vm4346_vm9, %v4334_v25 }
 0x390   :  { %v1738_v50 = vld [vmem:[#allocation2 + $0x2f0] sm:$0xff] }
 0x391   :  { %2325 = vst.msk [vmem:[#allocation3 + $0x2e8] sm:$0xff] %vm1447_vm2, %v2129_v57  ;;  %v3088_v59 = vpop.permute.xlu1 %3087  ;;  %v3973_v2 = vld [vmem:[#allocation4 + $0xac] sm:$0xff]  ;;  %v2612_v35 = vld [vmem:[#allocation3 + $0x2d8] ss:$2 sm:$0xff] }
 0x392   :  { %3239 = vst.msk [vmem:[#allocation5 + $0x88] sm:$0xff] %vm3221_vm5, %v3088_v59 }
 0x393   :  { %v1147_v61 = vpop.f32.mrf.mxu0  ;;  %3576 = vst.msk [vmem:[#allocation5 + $0x88] sm:$0xff] %vm3558_vm6, %v3425_v60 }
 0x394   :  { %v1148_v63 = vadd.f32 %v9648_v8, %v1147_v61  ;;  %3913 = vst.msk [vmem:[#allocation5 + $0x88] sm:$0xff] %vm3895_vm7, %v3762_v58 }
 0x395   :  { %v1934_v0 = vld [vmem:[#allocation2 + $0x2f1] sm:$0xff]  ;;  %3769 = vrot.lane.b32.xlu2 %v3636_v30, %s7990_s12  ;;  %v4635_v18 = vpop.f32.mrf.mxu2 }
 0x396   :  { %v2130_v3 = vmax.f32 %v1738_v50, %v1934_v0  ;;  %1544 = vst.msk [vmem:[#allocation2 + $0x300] sm:$0xff] %vm1447_vm2, %v1148_v63  ;;  %7565 = vmatmul.msk.f32.gmra.mxu0 %vm249_vm1, %v151_v62  ;;  %v1739_v11 = vld [vmem:[#allocation2 + $0x2f8] sm:$0xff]  ;;  %v4636_v12 = vadd.f32 %v9690_v54, %v4635_v18  ;;  %v10017_v63 = vld [vmem:[%s11149_s4] ss:$0 sm:$0xff]  ;;  %v7701_v0 = vld [vmem:[%s11148_s3 + $0x30] sm:$0xff] }
 0x397   :  { %4106 = vrot.lane.b32.xlu0 %v3973_v2, %s7992_s18  ;;  %v7702_v50 = vld [vmem:[%s11148_s3 + $0x38] sm:$0x3f] }
 0x398   :  { %2326 = vst.msk [vmem:[#allocation3 + $0x2f0] sm:$0xff] %vm1447_vm2, %v2130_v3  ;;  %7703 = vmatpush.msk.msrb.mxu2 %vm4494_vm4, %v7702_v50 }
 0x399   :  { %v4099_v4 = vpop.permute.xlu1 %4098  ;;  %4703 = vst.msk [vmem:[#allocation6 + $0x140] sm:$0xff] %vm4662_vm10, %v4636_v12 }
 0x39a   :  { %4250 = vst.msk [vmem:[#allocation5 + $0x88] sm:$0xff] %vm4232_vm8, %v4099_v4  ;;  %4929 = vmatpush.msrb.mxu2 %v7701_v0 }
 0x39b   :  { %v1150_v8 = vpop.f32.mrf.mxu0 }
 0x39c   :  { %v3090_v7 = vpop.permute.xlu0 %3089  ;;  %v1151_v10 = vadd.f32 %v9973_v9, %v1150_v8 }
 0x39d   :  { %3240 = vst.msk [vmem:[#allocation5 + $0x90] sm:$0xff] %vm3221_vm5, %v3090_v7  ;;  %v1935_v39 = vld [vmem:[#allocation2 + $0x2f9] sm:$0xff] }
 0x39e   :  { %v2131_v42 = vmax.f32 %v1739_v11, %v1935_v39  ;;  %1545 = vst.msk [vmem:[#allocation2 + $0x308] sm:$0xff] %vm1447_vm2, %v1151_v10  ;;  %7566 = vmatmul.msk.f32.gmra.mxu0 %vm249_vm1, %v152_v5  ;;  %v1740_v21 = vld [vmem:[#allocation2 + $0x300] sm:$0xff]  ;;  %vm7072_vm1 = vcmask 648704  }
 0x39f   :  { %v2614_v49 = vld [vmem:[#allocation3 + $0x2e8] ss:$2 sm:$0x3f] }
 0x3a0   :  { %v9978_v13 = vpop.permute.xlu2 %3821  ;;  %2327 = vst.msk [vmem:[#allocation3 + $0x2f8] sm:$0xff] %vm1447_vm2, %v2131_v42 }
 0x3a1   :  { %v3427_v14 = vpop.permute.xlu1 %3426  ;;  %v4306_v15 = vld [vmem:[#allocation5 + $0x88] sm:$0xff] }
 0x3a2   :  { %3577 = vst.msk [vmem:[#allocation5 + $0x90] sm:$0xff] %vm3558_vm6, %v3427_v14  ;;  %7667 = vmatmul.msk.f32.gmra.mxu1 %vm4346_vm9, %v4306_v15 }
 0x3a3   :  { %v1153_v17 = vpop.f32.mrf.mxu0 }
 0x3a4   :  { %v1154_v19 = vadd.f32 %v9973_v9, %v1153_v17 }
 0x3a5   :  { %v1936_v22 = vld [vmem:[#allocation2 + $0x301] sm:$0xff] }
 0x3a6   :  { %v2132_v23 = vmax.f32 %v1740_v21, %v1936_v22  ;;  %1546 = vst.msk [vmem:[#allocation2 + $0x310] sm:$0xff] %vm1447_vm2, %v1154_v19  ;;  %v1741_v29 = vld [vmem:[#allocation2 + $0x308] sm:$0xff]  ;;  %v7699_v21 = vld [vmem:[%s11148_s3 + $0x20] sm:$0xff] }
 0x3a7   :  { %v7700_v19 = vld [vmem:[%s11148_s3 + $0x28] sm:$0xff] }
 0x3a8   :  { %v3150_v6 = vpop.permute.xlu2 %3149  ;;  %2328 = vst.msk [vmem:[#allocation3 + $0x300] sm:$0xff] %vm1447_vm2, %v2132_v23  ;;  %4930 = vmatpush.msrb.mxu2 %v7700_v19 }
 0x3a9   :  { %3270 = vst.msk [vmem:[#allocation5 + $0x180] sm:$0xff] %vm3221_vm5, %v3150_v6 }
 0x3aa   :  { %4931 = vmatpush.msrb.mxu2 %v7699_v21 }
 0x3ab   :  { %v1156_v27 = vpop.f32.mrf.mxu0 }
 0x3ac   :  { %v1157_v28 = vadd.f32 %v9973_v9, %v1156_v27  ;;  %v4638_v1 = vpop.f32.mrf.mxu2 }
 0x3ad   :  { %v1937_v31 = vld [vmem:[#allocation2 + $0x309] sm:$0xff]  ;;  %v4639_v34 = vadd.f32 %v9690_v54, %v4638_v1 }
 0x3ae   :  { %v2133_v32 = vmax.f32 %v1741_v29, %v1937_v31  ;;  %1547 = vst.msk [vmem:[#allocation2 + $0x318] sm:$0xff] %vm1447_vm2, %v1157_v28  ;;  %v1742_v43 = vld [vmem:[#allocation2 + $0x310] sm:$0xff] }
 0x3af   :  { %v2616_v16 = vld [vmem:[#allocation3 + $0x2f4] ss:$2 sm:$0xff]  ;;  %4704 = vst.msk [vmem:[#allocation6 + $0x148] sm:$0xff] %vm4662_vm10, %v4639_v34 }
 0x3b0   :  { %v9993_v33 = vpop.permute.xlu2 %4160  ;;  %2329 = vst.msk [vmem:[#allocation3 + $0x308] sm:$0xff] %vm1447_vm2, %v2133_v32  ;;  %v2619_v37 = vmax.f32 %v2612_v35, %v2616_v16 }
 0x3b2   :  { %v2621_v38 = vmax.f32 %v2619_v37, 0.0 }
 0x3b3   :  { %v1159_v40 = vpop.f32.mrf.mxu0 }
 0x3b4   :  { %v1160_v41 = vadd.f32 %v9973_v9, %v1159_v40  ;;  %2623 = vst.msk [vmem:[#allocation4 + $0xb6] sm:$0xff] %vm1447_vm2, %v2621_v38 }
 0x3b5   :  { %v1938_v44 = vld [vmem:[#allocation2 + $0x311] sm:$0xff] }
 0x3b6   :  { %v4157_v45 = vpop.permute.xlu1 %4156  ;;  %v2134_v47 = vmax.f32 %v1742_v43, %v1938_v44  ;;  %1548 = vst.msk [vmem:[#allocation2 + $0x320] sm:$0xff] %vm1447_vm2, %v1160_v41  ;;  %v1743_v58 = vld [vmem:[#allocation2 + $0x318] sm:$0xff] }
 0x3b7   :  { %v3820_v46 = vpop.permute.xlu0 %3819  ;;  %v2618_v24 = vld [vmem:[#allocation3 + $0x304] ss:$2 sm:$0x3f]  ;;  %v4641_v62 = vpop.f32.mrf.mxu2 }
 0x3b8   :  { %v3764_v48 = vpop.permute.xlu2 %3763  ;;  %2330 = vst.msk [vmem:[#allocation3 + $0x310] sm:$0xff] %vm1447_vm2, %v2134_v47  ;;  %v2620_v36 = vmax.f32 %v2614_v49, %v2618_v24  ;;  %v4642_v30 = vadd.f32 %v10017_v63, %v4641_v62 }
 0x3b9   :  { %3914 = vst.msk [vmem:[#allocation5 + $0x90] sm:$0xff] %vm3895_vm7, %v3764_v48 }
 0x3ba   :  { %v4554_v51 = vpop.f32.mrf.mxu1  ;;  %3942 = vst.msk [vmem:[#allocation5 + $0x170] sm:$0xff] %vm3895_vm7, %v3820_v46  ;;  %v2622_v53 = vmax.f32 %v2620_v36, 0.0 }
 0x3bb   :  { %v4555_v52 = vadd.f32 %v9690_v54, %v4554_v51  ;;  %4279 = vst.msk [vmem:[#allocation5 + $0x170] sm:$0xff] %vm4232_vm8, %v4157_v45  ;;  %v1162_v20 = vpop.f32.mrf.mxu0  ;;  %v3300_v55 = vld [vmem:[#allocation4 + $0xb2] sm:$0xff] }
 0x3bc   :  { %v2963_v56 = vld [vmem:[#allocation4 + $0xb1] sm:$0xff]  ;;  %v1163_v26 = vadd.f32 %v9973_v9, %v1162_v20  ;;  %3434 = vrot.lane.b32.xlu2 %v3300_v55, %s7993_s19  ;;  %2624 = vst.msk [vmem:[#allocation4 + $0xbe] sm:$0x3f] %vm2441_vm3, %v2622_v53 }
 0x3bd   :  { %v3637_v57 = vld [vmem:[#allocation4 + $0xb3] sm:$0xff]  ;;  %4676 = vst.msk [vmem:[#allocation6 + $0x68] sm:$0xff] %vm4662_vm10, %v4555_v52  ;;  %3097 = vrot.lane.b32.xlu1 %v2963_v56, %s7991_s13  ;;  %v1744_v14 = vld [vmem:[#allocation2 + $0x320] sm:$0xff] }
 0x3be   :  { %v1939_v59 = vld [vmem:[#allocation2 + $0x319] sm:$0xff]  ;;  %v3485_v60 = vpop.permute.xlu1 %3484  ;;  %3771 = vrot.lane.b32.xlu0 %v3637_v57, %s7990_s12  ;;  %1549 = vst.msk [vmem:[#allocation2 + $0x328] sm:$0xff] %vm1447_vm2, %v1163_v26  ;;  %v2851_v10 = vld [vmem:[#allocation4 + $0xb0] sm:$0xff] }
 0x3bf   :  { %v3148_v54 = vpop.permute.xlu0 %3147  ;;  %v2135_v61 = vmax.f32 %v1743_v58, %v1939_v59  ;;  %v3974_v7 = vld [vmem:[#allocation4 + $0xb4] sm:$0xff]  ;;  %4705 = vst.msk [vmem:[#allocation6 + $0x150] sm:$0xff] %vm4662_vm10, %v4642_v30  ;;  %v4713_v30 = vld [vmem:[#allocation5 + $0x16] sm:$0xff] }
 0x3c0   :  { %3269 = vst.msk [vmem:[#allocation5 + $0x178] sm:$0xff] %vm3221_vm5, %v3148_v54  ;;  %v3429_v34 = vpop.permute.xlu2 %3428  ;;  %v4712_v52 = vld [vmem:[#allocation5 + $0xe] sm:$0xff] }
 0x3c1   :  { %2331 = vst.msk [vmem:[#allocation3 + $0x318] sm:$0xff] %vm1447_vm2, %v2135_v61 }
 0x3c2   :  { %v4557_v2 = vpop.f32.mrf.mxu1  ;;  %3606 = vst.msk [vmem:[#allocation5 + $0x178] sm:$0xff] %vm3558_vm6, %v3485_v60  ;;  %v5269_v3 = vld [vmem:[#allocation5 + $0x16c] sm:$0xff] }
 0x3c3   :  { %v4335_v4 = vld [vmem:[#allocation5 + $0x170] sm:$0xff]  ;;  %v4558_v8 = vadd.f32 %v10017_v63, %v4557_v2  ;;  %3943 = vst.msk [vmem:[#allocation5 + $0x178] sm:$0xff] %vm3895_vm7, %v9978_v13  ;;  %7800 = vmatmul.msk.f32.gmra.mxu3 %vm4346_vm9, %v5269_v3  ;;  %v1165_v5 = vpop.f32.mrf.mxu0 }
 0x3c4   :  { %7696 = vmatmul.msk.f32.gmra.mxu2 %vm4346_vm9, %v4335_v4  ;;  %v1166_v11 = vadd.f32 %v9973_v9, %v1165_v5  ;;  %v2964_v39 = vld [vmem:[#allocation4 + $0xb9] sm:$0xff]  ;;  %2907 = vst.msk [vmem:[#allocation5 + $0xb0] sm:$0xff] %vm1447_vm2, %v2851_v10 }
 0x3c5   :  { %4677 = vst.msk [vmem:[#allocation6 + $0x70] sm:$0xff] %vm4662_vm10, %v4558_v8  ;;  %4108 = vrot.lane.b32.xlu1 %v3974_v7, %s7992_s18  ;;  %v3301_v42 = vld [vmem:[#allocation4 + $0xba] sm:$0xff]  ;;  %3099 = vrot.lane.b32.xlu2 %v2964_v39, %s7991_s13  ;;  %v1745_v27 = vld [vmem:[#allocation2 + $0x328] sm:$0xff] }
 0x3c6   :  { %v1940_v13 = vld [vmem:[#allocation2 + $0x321] sm:$0xff]  ;;  %v3824_v15 = vpop.permute.xlu1 %3823  ;;  %3436 = vrot.lane.b32.xlu0 %v3301_v42, %s7993_s19  ;;  %1550 = vst.msk [vmem:[#allocation2 + $0x330] sm:$0xff] %vm1447_vm2, %v1166_v11  ;;  %v2852_v23 = vld [vmem:[#allocation4 + $0xb8] sm:$0xff] }
 0x3c7   :  { %v4159_v17 = vpop.permute.xlu0 %4158  ;;  %v2136_v18 = vmax.f32 %v1744_v14, %v1940_v13  ;;  %v3638_v12 = vld [vmem:[#allocation4 + $0xbb] sm:$0xff]  ;;  %2908 = vst.msk [vmem:[#allocation5 + $0xb8] sm:$0xff] %vm1447_vm2, %v2852_v23  ;;  %v4714_v42 = vld [vmem:[#allocation5 + $0x1e] sm:$0xff] }
 0x3c8   :  { %4280 = vst.msk [vmem:[#allocation5 + $0x178] sm:$0xff] %vm4232_vm8, %v4159_v17  ;;  %v3975_v25 = vld [vmem:[#allocation4 + $0xbc] sm:$0xff] }
 0x3c9   :  { %2332 = vst.msk [vmem:[#allocation3 + $0x320] sm:$0xff] %vm1447_vm2, %v2136_v18  ;;  %v2626_v59 = vld [vmem:[#allocation3 + $0x310] ss:$2 sm:$0xff] }
 0x3cb   :  { %v1168_v22 = vpop.f32.mrf.mxu0 }
 0x3cc   :  { %v1169_v6 = vadd.f32 %v9973_v9, %v1168_v22 }
 0x3cd   :  { %3773 = vrot.lane.b32.xlu1 %v3638_v12, %s7990_s12  ;;  %v1941_v28 = vld [vmem:[#allocation2 + $0x329] sm:$0xff]  ;;  %4110 = vrot.lane.b32.xlu2 %v3975_v25, %s7992_s18 }
 0x3ce   :  { %v3092_v29 = vpop.permute.xlu1 %3091  ;;  %v2137_v1 = vmax.f32 %v1745_v27, %v1941_v28  ;;  %1551 = vst.msk [vmem:[#allocation2 + $0x338] sm:$0xff] %vm1447_vm2, %v1169_v6  ;;  %v1746_v38 = vld [vmem:[#allocation2 + $0x330] sm:$0xff] }
 0x3cf   :  { %v3487_v31 = vpop.permute.xlu0 %3486  ;;  %v4336_v32 = vld [vmem:[#allocation5 + $0x178] sm:$0xff]  ;;  %3241 = vst.msk [vmem:[#allocation5 + $0x98] sm:$0xff] %vm3221_vm5, %v3092_v29  ;;  %v4715_v29 = vld [vmem:[#allocation5 + $0x26] sm:$0xff] }
 0x3d0   :  { %7697 = vmatmul.msk.f32.gmra.mxu2 %vm4346_vm9, %v4336_v32  ;;  %2333 = vst.msk [vmem:[#allocation3 + $0x328] sm:$0xff] %vm1447_vm2, %v2137_v1  ;;  %v5270_v35 = vld [vmem:[#allocation5 + $0x174] sm:$0xff] }
 0x3d1   :  { %3578 = vst.msk [vmem:[#allocation5 + $0x98] sm:$0xff] %vm3558_vm6, %v3429_v34  ;;  %7801 = vmatmul.msk.f32.gmra.mxu3 %vm4346_vm9, %v5270_v35 }
 0x3d2   :  { %3607 = vst.msk [vmem:[#allocation5 + $0x180] sm:$0xff] %vm3558_vm6, %v3487_v31 }
 0x3d3   :  { %3944 = vst.msk [vmem:[#allocation5 + $0x180] sm:$0xff] %vm3895_vm7, %v3824_v15  ;;  %v1171_v16 = vpop.f32.mrf.mxu0 }
 0x3d4   :  { %4281 = vst.msk [vmem:[#allocation5 + $0x180] sm:$0xff] %vm4232_vm8, %v9993_v33  ;;  %v1172_v37 = vadd.f32 %v9973_v9, %v1171_v16 }
 0x3d5   :  { %v1942_v40 = vld [vmem:[#allocation2 + $0x331] sm:$0xff] }
 0x3d6   :  { %v2138_v43 = vmax.f32 %v1746_v38, %v1942_v40  ;;  %1552 = vst.msk [vmem:[#allocation2 + $0x340] sm:$0xff] %vm1447_vm2, %v1172_v37  ;;  %v1747_v47 = vld [vmem:[#allocation2 + $0x338] sm:$0xff]  ;;  %v4103_v51 = vpop.permute.xlu1 %4102 }
 0x3d7   :  { %v4101_v41 = vpop.permute.xlu0 %4100  ;;  %v2628_v7 = vld [vmem:[#allocation3 + $0x320] ss:$2 sm:$0x3f] }
 0x3d8   :  { %4251 = vst.msk [vmem:[#allocation5 + $0x90] sm:$0xff] %vm4232_vm8, %v4101_v41 }
 0x3d9   :  { %2334 = vst.msk [vmem:[#allocation3 + $0x330] sm:$0xff] %vm1447_vm2, %v2138_v43 }
 0x3db   :  { %v4337_v44 = vld [vmem:[#allocation5 + $0x180] sm:$0xff]  ;;  %v1174_v45 = vpop.f32.mrf.mxu0  ;;  %v4644_v55 = vpop.f32.mrf.mxu2 }
 0x3dc   :  { %7698 = vmatmul.msk.f32.gmra.mxu2 %vm4346_vm9, %v4337_v44  ;;  %v1175_v46 = vadd.f32 %v9973_v9, %v1174_v45  ;;  %v4645_v26 = vadd.f32 %v10017_v63, %v4644_v55  ;;  %v5271_v39 = vld [vmem:[#allocation5 + $0x17c] sm:$0xff]  ;;  %v4716_v45 = vld [vmem:[#allocation5 + $0x2e] sm:$0xff] }
 0x3dd   :  { %v1943_v33 = vld [vmem:[#allocation2 + $0x339] sm:$0xff]  ;;  %7802 = vmatmul.msk.f32.gmra.mxu3 %vm4346_vm9, %v5271_v39 }
 0x3de   :  { %v2139_v49 = vmax.f32 %v1747_v47, %v1943_v33  ;;  %1553 = vst.msk [vmem:[#allocation2 + $0x348] sm:$0xff] %vm1447_vm2, %v1175_v46  ;;  %v1748_v56 = vld [vmem:[#allocation2 + $0x340] sm:$0xff] }
 0x3df   :  { %v3766_v48 = vpop.permute.xlu0 %3765  ;;  %v4307_v24 = vld [vmem:[#allocation5 + $0x90] sm:$0xff]  ;;  %v3094_v36 = vpop.permute.xlu2 %3093  ;;  %4706 = vst.msk [vmem:[#allocation6 + $0x158] sm:$0xff] %vm4662_vm10, %v4645_v26 }
 0x3e0   :  { %3915 = vst.msk [vmem:[#allocation5 + $0x98] sm:$0xff] %vm3895_vm7, %v3766_v48  ;;  %7668 = vmatmul.msk.f32.gmra.mxu1 %vm4346_vm9, %v4307_v24 }
 0x3e1   :  { %2335 = vst.msk [vmem:[#allocation3 + $0x338] sm:$0xff] %vm1447_vm2, %v2139_v49 }
 0x3e2   :  { %4252 = vst.msk [vmem:[#allocation5 + $0x98] sm:$0xff] %vm4232_vm8, %v4103_v51 }
 0x3e3   :  { %3242 = vst.msk [vmem:[#allocation5 + $0xa0] sm:$0xff] %vm3221_vm5, %v3094_v36  ;;  %v1177_v53 = vpop.f32.mrf.mxu0 }
 0x3e4   :  { %7704 = vmatmul.msk.f32.vlgmr.msrb.gmra.mxu2 %vm4346_vm9, %v4712_v52  ;;  %v1178_v20 = vadd.f32 %v9973_v9, %v1177_v53  ;;  %v4717_v52 = vld [vmem:[#allocation5 + $0x36] sm:$0xff] }
 0x3e5   :  { %v1944_v57 = vld [vmem:[#allocation2 + $0x341] sm:$0xff] }
 0x3e6   :  { %v2140_v58 = vmax.f32 %v1748_v56, %v1944_v57  ;;  %1554 = vst.msk [vmem:[#allocation2 + $0x350] sm:$0xff] %vm1447_vm2, %v1178_v20  ;;  %v1749_v2 = vld [vmem:[#allocation2 + $0x348] sm:$0xff] }
 0x3e7   :  { %v4105_v23 = vpop.permute.xlu2 %4104 }
 0x3e8   :  { %v2630_v60 = vld [vmem:[#allocation3 + $0x32c] ss:$2 sm:$0xff]  ;;  %2336 = vst.msk [vmem:[#allocation3 + $0x340] sm:$0xff] %vm1447_vm2, %v2140_v58  ;;  %v4647_v55 = vpop.f32.mrf.mxu2 }
 0x3e9   :  { %v4308_v54 = vld [vmem:[#allocation5 + $0x98] sm:$0xff]  ;;  %v2633_v61 = vmax.f32 %v2626_v59, %v2630_v60  ;;  %v4648_v26 = vadd.f32 %v10017_v63, %v4647_v55 }
 0x3ea   :  { %7669 = vmatmul.msk.f32.gmra.mxu1 %vm4346_vm9, %v4308_v54  ;;  %v4718_v60 = vld [vmem:[#allocation5 + $0x3e] sm:$0xff] }
 0x3eb   :  { %v2635_v62 = vmax.f32 %v2633_v61, 0.0  ;;  %v1180_v50 = vpop.f32.mrf.mxu0  ;;  %4707 = vst.msk [vmem:[#allocation6 + $0x160] sm:$0xff] %vm4662_vm10, %v4648_v26 }
 0x3ec   :  { %7705 = vmatmul.msk.f32.gmra.mxu2 %vm4346_vm9, %v4713_v30  ;;  %v1181_v0 = vadd.f32 %v9973_v9, %v1180_v50 }
 0x3ed   :  { %2637 = vst.msk [vmem:[#allocation4 + $0xc4] sm:$0xff] %vm1447_vm2, %v2635_v62  ;;  %v1945_v3 = vld [vmem:[#allocation2 + $0x349] sm:$0xff] }
 0x3ee   :  { %v2141_v4 = vmax.f32 %v1749_v2, %v1945_v3  ;;  %v4560_v8 = vpop.f32.mrf.mxu1  ;;  %1555 = vst.msk [vmem:[#allocation2 + $0x358] sm:$0xff] %vm1447_vm2, %v1181_v0  ;;  %v1750_v21 = vld [vmem:[#allocation2 + $0x350] sm:$0xff] }
 0x3ef   :  { %v4561_v5 = vadd.f32 %v10017_v63, %v4560_v8  ;;  %v2632_v10 = vld [vmem:[#allocation3 + $0x33c] ss:$2 sm:$0x3f]  ;;  %v3770_v44 = vpop.permute.xlu2 %3769  ;;  %v4719_v2 = vld [vmem:[#allocation5 + $0x46] sm:$0xff] }
 0x3f0   :  { %2337 = vst.msk [vmem:[#allocation3 + $0x348] sm:$0xff] %vm1447_vm2, %v2141_v4  ;;  %v2634_v11 = vmax.f32 %v2628_v7, %v2632_v10 }
 0x3f1   :  { %4678 = vst.msk [vmem:[#allocation6 + $0x78] sm:$0xff] %vm4662_vm10, %v4561_v5 }
 0x3f2   :  { %v2636_v14 = vmax.f32 %v2634_v11, 0.0 }
 0x3f3   :  { %v1183_v13 = vpop.f32.mrf.mxu0 }
 0x3f4   :  { %v3639_v15 = vld [vmem:[#allocation4 + $0xc3] sm:$0xff]  ;;  %7706 = vmatmul.msk.f32.gmra.mxu2 %vm4346_vm9, %v4714_v42  ;;  %v1184_v19 = vadd.f32 %v9973_v9, %v1183_v13  ;;  %2638 = vst.msk [vmem:[#allocation4 + $0xcc] sm:$0x3f] %vm2441_vm3, %v2636_v14 }
 0x3f5   :  { %v3302_v17 = vld [vmem:[#allocation4 + $0xc2] sm:$0xff]  ;;  %3775 = vrot.lane.b32.xlu2 %v3639_v15, %s7990_s12  ;;  %v1946_v22 = vld [vmem:[#allocation2 + $0x351] sm:$0xff] }
 0x3f6   :  { %v2965_v18 = vld [vmem:[#allocation4 + $0xc1] sm:$0xff]  ;;  %3438 = vrot.lane.b32.xlu1 %v3302_v17, %s7993_s19  ;;  %v2142_v12 = vmax.f32 %v1750_v21, %v1946_v22  ;;  %1556 = vst.msk [vmem:[#allocation2 + $0x360] sm:$0xff] %vm1447_vm2, %v1184_v19  ;;  %v1751_v37 = vld [vmem:[#allocation2 + $0x358] sm:$0xff] }
 0x3f7   :  { %3101 = vrot.lane.b32.xlu0 %v2965_v18, %s7991_s13  ;;  %v2853_v34 = vld [vmem:[#allocation4 + $0xc0] sm:$0xff] }
 0x3f8   :  { %v3768_v6 = vpop.permute.xlu1 %3767  ;;  %2338 = vst.msk [vmem:[#allocation3 + $0x350] sm:$0xff] %vm1447_vm2, %v2142_v12  ;;  %v4563_v25 = vpop.f32.mrf.mxu1  ;;  %v3976_v16 = vld [vmem:[#allocation4 + $0xc4] sm:$0xff] }
 0x3f9   :  { %v3431_v27 = vpop.permute.xlu0 %3430  ;;  %v4564_v28 = vadd.f32 %v10017_v63, %v4563_v25  ;;  %2909 = vst.msk [vmem:[#allocation5 + $0xc0] sm:$0xff] %vm1447_vm2, %v2853_v34 }
 0x3fa   :  { %3579 = vst.msk [vmem:[#allocation5 + $0xa0] sm:$0xff] %vm3558_vm6, %v3431_v27  ;;  %v4721_v27 = vld [vmem:[#allocation5 + $0x56] sm:$0xff] }
 0x3fb   :  { %3916 = vst.msk [vmem:[#allocation5 + $0xa0] sm:$0xff] %vm3895_vm7, %v3768_v6  ;;  %v1186_v31 = vpop.f32.mrf.mxu0  ;;  %v3303_v1 = vld [vmem:[#allocation4 + $0xca] sm:$0xff] }
 0x3fc   :  { %4679 = vst.msk [vmem:[#allocation6 + $0x80] sm:$0xff] %vm4662_vm10, %v4564_v28  ;;  %v2966_v32 = vld [vmem:[#allocation4 + $0xc9] sm:$0xff]  ;;  %7707 = vmatmul.msk.f32.gmra.mxu2 %vm4346_vm9, %v4715_v29  ;;  %v1187_v35 = vadd.f32 %v9973_v9, %v1186_v31 }
 0x3fd   :  { %4253 = vst.msk [vmem:[#allocation5 + $0xa0] sm:$0xff] %vm4232_vm8, %v4105_v23  ;;  %3440 = vrot.lane.b32.xlu2 %v3303_v1, %s7993_s19  ;;  %v1947_v38 = vld [vmem:[#allocation2 + $0x359] sm:$0xff]  ;;  %v2854_v33 = vld [vmem:[#allocation4 + $0xc8] sm:$0xff] }
 0x3fe   :  { %3103 = vrot.lane.b32.xlu1 %v2966_v32, %s7991_s13  ;;  %v2143_v40 = vmax.f32 %v1751_v37, %v1947_v38  ;;  %1557 = vst.msk [vmem:[#allocation2 + $0x368] sm:$0xff] %vm1447_vm2, %v1187_v35  ;;  %v1752_v49 = vld [vmem:[#allocation2 + $0x360] sm:$0xff] }
 0x3ff   :  { %4112 = vrot.lane.b32.xlu0 %v3976_v16, %s7992_s18  ;;  %2910 = vst.msk [vmem:[#allocation5 + $0xc8] sm:$0xff] %vm1447_vm2, %v2854_v33  ;;  %v2640_v11 = vld [vmem:[#allocation3 + $0x348] ss:$2 sm:$0xff] }
 0x400   :  { %v3433_v41 = vpop.permute.xlu1 %3432  ;;  %2339 = vst.msk [vmem:[#allocation3 + $0x358] sm:$0xff] %vm1447_vm2, %v2143_v40  ;;  %v2658_v38 = vld [vmem:[#allocation3 + $0x39c] ss:$2 sm:$0xff] }
 0x401   :  { %v3096_v43 = vpop.permute.xlu0 %3095 }
 0x402   :  { %3243 = vst.msk [vmem:[#allocation5 + $0xa8] sm:$0xff] %vm3221_vm5, %v3096_v43 }
 0x403   :  { %3580 = vst.msk [vmem:[#allocation5 + $0xa8] sm:$0xff] %vm3558_vm6, %v3433_v41  ;;  %v1189_v47 = vpop.f32.mrf.mxu0  ;;  %v4722_v41 = vld [vmem:[#allocation5 + $0x5e] sm:$0xff] }
 0x404   :  { %3917 = vst.msk [vmem:[#allocation5 + $0xa8] sm:$0xff] %vm3895_vm7, %v3770_v44  ;;  %v4309_v46 = vld [vmem:[#allocation5 + $0xa0] sm:$0xff]  ;;  %7708 = vmatmul.msk.f32.gmra.mxu2 %vm4346_vm9, %v4716_v45  ;;  %v1190_v48 = vadd.f32 %v9973_v9, %v1189_v47 }
 0x405   :  { %7670 = vmatmul.msk.f32.gmra.mxu1 %vm4346_vm9, %v4309_v46  ;;  %v1948_v24 = vld [vmem:[#allocation2 + $0x361] sm:$0xff] }
 0x406   :  { %v2144_v36 = vmax.f32 %v1752_v49, %v1948_v24  ;;  %1558 = vst.msk [vmem:[#allocation2 + $0x370] sm:$0xff] %vm1447_vm2, %v1190_v48  ;;  %v1753_v56 = vld [vmem:[#allocation2 + $0x368] sm:$0xff] }
 0x407   :  { %v4723_v49 = vld [vmem:[#allocation5 + $0x66] sm:$0xff] }
 0x408   :  { %2340 = vst.msk [vmem:[#allocation3 + $0x360] sm:$0xff] %vm1447_vm2, %v2144_v36 }
 0x409   :  { %v4107_v51 = vpop.permute.xlu0 %4106 }
 0x40a   :  { %4254 = vst.msk [vmem:[#allocation5 + $0xa8] sm:$0xff] %vm4232_vm8, %v4107_v51 }
 0x40b   :  { %v1192_v53 = vpop.f32.mrf.mxu0 }
 0x40c   :  { %7709 = vmatmul.msk.f32.gmra.mxu2 %vm4346_vm9, %v4717_v52  ;;  %v1193_v20 = vadd.f32 %v9973_v9, %v1192_v53 }
 0x40d   :  { %v1949_v57 = vld [vmem:[#allocation2 + $0x369] sm:$0xff] }
 0x40e   :  { %v2145_v58 = vmax.f32 %v1753_v56, %v1949_v57  ;;  %1559 = vst.msk [vmem:[#allocation2 + $0x378] sm:$0xff] %vm1447_vm2, %v1193_v20  ;;  %v1754_v62 = vld [vmem:[#allocation2 + $0x370] sm:$0xff] }
 0x40f   :  { %v2642_v23 = vld [vmem:[#allocation3 + $0x358] ss:$2 sm:$0x3f] }
 0x410   :  { %2341 = vst.msk [vmem:[#allocation3 + $0x368] sm:$0xff] %vm1447_vm2, %v2145_v58  ;;  %v4724_v56 = vld [vmem:[#allocation5 + $0x6e] sm:$0xff] }
 0x411   :  { %v4310_v59 = vld [vmem:[#allocation5 + $0xa8] sm:$0xff] }
 0x412   :  { %7671 = vmatmul.msk.f32.gmra.mxu1 %vm4346_vm9, %v4310_v59  ;;  %v4650_v32 = vpop.f32.mrf.mxu2 }
 0x413   :  { %v1195_v54 = vpop.f32.mrf.mxu0  ;;  %v4651_v35 = vadd.f32 %v10017_v63, %v4650_v32  ;;  %v3984_v32 = vld [vmem:[#allocation4 + $0x104] sm:$0xff] }
 0x414   :  { %7710 = vmatmul.msk.f32.gmra.mxu2 %vm4346_vm9, %v4718_v60  ;;  %v1196_v61 = vadd.f32 %v9973_v9, %v1195_v54 }
 0x415   :  { %v1950_v30 = vld [vmem:[#allocation2 + $0x371] sm:$0xff]  ;;  %4708 = vst.msk [vmem:[#allocation6 + $0x168] sm:$0xff] %vm4662_vm10, %v4651_v35  ;;  %v3310_v35 = vld [vmem:[#allocation4 + $0x102] sm:$0xff] }
 0x416   :  { %v2146_v50 = vmax.f32 %v1754_v62, %v1950_v30  ;;  %1560 = vst.msk [vmem:[#allocation2 + $0x380] sm:$0xff] %vm1447_vm2, %v1196_v61  ;;  %v3435_v0 = vpop.permute.xlu2 %3434  ;;  %v1755_v8 = vld [vmem:[#allocation2 + $0x378] sm:$0xff]  ;;  %v3981_v30 = vld [vmem:[#allocation4 + $0xec] sm:$0xff] }
 0x417   :  { %v4725_v62 = vld [vmem:[#allocation5 + $0x76] sm:$0xff] }
 0x418   :  { %2342 = vst.msk [vmem:[#allocation3 + $0x370] sm:$0xff] %vm1447_vm2, %v2146_v50 }
 0x41b   :  { %v1198_v3 = vpop.f32.mrf.mxu0 }
 0x41c   :  { %7711 = vmatmul.msk.f32.gmra.mxu2 %vm4346_vm9, %v4719_v2  ;;  %v1199_v4 = vadd.f32 %v9973_v9, %v1198_v3  ;;  %v4720_v9 = vld [vmem:[#allocation5 + $0x4e] sm:$0xff]  ;;  %v4726_v3 = vld [vmem:[#allocation5 + $0x7e] sm:$0xff] }
 0x41d   :  { %v1951_v5 = vld [vmem:[#allocation2 + $0x379] sm:$0xff] }
 0x41e   :  { %v2147_v7 = vmax.f32 %v1755_v8, %v1951_v5  ;;  %1561 = vst.msk [vmem:[#allocation2 + $0x388] sm:$0xff] %vm1447_vm2, %v1199_v4  ;;  %v1756_v17 = vld [vmem:[#allocation2 + $0x380] sm:$0xff]  ;;  %v3645_v8 = vld [vmem:[#allocation4 + $0xf3] sm:$0xff] }
 0x41f   :  { %v3100_v10 = vpop.permute.xlu2 %3099  ;;  %v2644_v39 = vld [vmem:[#allocation3 + $0x364] ss:$2 sm:$0xff]  ;;  %v4566_v42 = vpop.f32.mrf.mxu1 }
 0x420   :  { %2343 = vst.msk [vmem:[#allocation3 + $0x378] sm:$0xff] %vm1447_vm2, %v2147_v7  ;;  %v2647_v14 = vmax.f32 %v2640_v11, %v2644_v39  ;;  %v4567_v13 = vadd.f32 %v10017_v63, %v4566_v42  ;;  %v3308_v5 = vld [vmem:[#allocation4 + $0xf2] sm:$0xff]  ;;  %v3309_v39 = vld [vmem:[#allocation4 + $0xfa] sm:$0xff] }
 0x421   :  { %3245 = vst.msk [vmem:[#allocation5 + $0xb8] sm:$0xff] %vm3221_vm5, %v3100_v10  ;;  %v2971_v7 = vld [vmem:[#allocation4 + $0xf1] sm:$0xff]  ;;  %v2972_v42 = vld [vmem:[#allocation4 + $0xf9] sm:$0xff] }
 0x422   :  { %v2649_v15 = vmax.f32 %v2647_v14, 0.0  ;;  %4680 = vst.msk [vmem:[#allocation6 + $0x88] sm:$0xff] %vm4662_vm10, %v4567_v13  ;;  %v4727_v10 = vld [vmem:[#allocation5 + $0x86] sm:$0xff] }
 0x423   :  { %v3982_v13 = vld [vmem:[#allocation4 + $0xf4] sm:$0xff] }
 0x424   :  { %7712 = vmatmul.msk.f32.gmra.mxu2 %vm4346_vm9, %v4720_v9  ;;  %2651 = vst.msk [vmem:[#allocation4 + $0xd2] sm:$0xff] %vm1447_vm2, %v2649_v15 }
 0x425   :  { %v1757_v18 = vld [vmem:[#allocation2 + $0x388] sm:$0xff] }
 0x426   :  { %v1952_v19 = vld [vmem:[#allocation2 + $0x381] sm:$0xff]  ;;  %v1953_v21 = vld [vmem:[#allocation2 + $0x389] sm:$0xff] }
 0x427   :  { %v2148_v22 = vmax.f32 %v1756_v17, %v1952_v19  ;;  %v2149_v12 = vmax.f32 %v1757_v18, %v1953_v21  ;;  %v2646_v6 = vld [vmem:[#allocation3 + $0x374] ss:$2 sm:$0x3f]  ;;  %v4111_v55 = vpop.permute.xlu2 %4110  ;;  %v2973_v18 = vld [vmem:[#allocation4 + $0x101] sm:$0xff] }
 0x428   :  { %v2648_v25 = vmax.f32 %v2642_v23, %v2646_v6  ;;  %v4728_v17 = vld [vmem:[#allocation5 + $0x8e] sm:$0xff]  ;;  %v5080_v6 = vld [vmem:[#allocation6] sm:$0xff] }
 0x429   :  { %2344 = vst.msk [vmem:[#allocation3 + $0x380] sm:$0xff] %vm1447_vm2, %v2148_v22  ;;  %v3983_v19 = vld [vmem:[#allocation4 + $0xfc] sm:$0xff] }
 0x42a   :  { %2345 = vst.msk [vmem:[#allocation3 + $0x388] sm:$0xff] %vm1447_vm2, %v2149_v12  ;;  %v2650_v28 = vmax.f32 %v2648_v25, 0.0  ;;  %v3646_v21 = vld [vmem:[#allocation4 + $0xfb] sm:$0xff] }
 0x42b   :  { %v2967_v29 = vld [vmem:[#allocation4 + $0xd1] sm:$0xff] }
 0x42c   :  { %v3977_v31 = vld [vmem:[#allocation4 + $0xcc] sm:$0xff]  ;;  %7713 = vmatmul.msk.f32.gmra.mxu2 %vm4346_vm9, %v4721_v27  ;;  %3105 = vrot.lane.b32.xlu2 %v2967_v29, %s7991_s13  ;;  %2652 = vst.msk [vmem:[#allocation4 + $0xda] sm:$0x3f] %vm2441_vm3, %v2650_v28  ;;  %vm7080_vm3 = vcmask 779904  }
 0x42d   :  { %v3640_v1 = vld [vmem:[#allocation4 + $0xcb] sm:$0xff]  ;;  %4114 = vrot.lane.b32.xlu1 %v3977_v31, %s7992_s18  ;;  %v7864_v31 = vld [vmem:[%s11148_s3 + $0x98] sm:$0x3f] }
 0x42e   :  { %3777 = vrot.lane.b32.xlu0 %v3640_v1, %s7990_s12  ;;  %v2855_v46 = vld [vmem:[#allocation4 + $0xd0] sm:$0xff]  ;;  %v4729_v1 = vld [vmem:[#allocation5 + $0x96] sm:$0xff]  ;;  %7865 = vmatpush.msk.msra.mxu2 %vm4494_vm4, %v7864_v31 }
 0x42f   :  { %v3098_v34 = vpop.permute.xlu1 %3097  ;;  %v3304_v47 = vld [vmem:[#allocation4 + $0xd2] sm:$0xff]  ;;  %2911 = vst.msk [vmem:[#allocation5 + $0xd0] sm:$0xff] %vm1447_vm2, %v2855_v46  ;;  %v3311_v46 = vld [vmem:[#allocation4 + $0x10a] sm:$0xff] }
 0x430   :  { %3244 = vst.msk [vmem:[#allocation5 + $0xb0] sm:$0xff] %vm3221_vm5, %v3098_v34  ;;  %v3772_v16 = vpop.permute.xlu0 %3771  ;;  %v3647_v34 = vld [vmem:[#allocation4 + $0x103] sm:$0xff] }
 0x431   :  { %3581 = vst.msk [vmem:[#allocation5 + $0xb0] sm:$0xff] %vm3558_vm6, %v3435_v0  ;;  %v2654_v37 = vld [vmem:[#allocation3 + $0x380] ss:$2 sm:$0xff] }
 0x432   :  { %3918 = vst.msk [vmem:[#allocation5 + $0xb0] sm:$0xff] %vm3895_vm7, %v3772_v16  ;;  %v2661_v40 = vmax.f32 %v2654_v37, %v2658_v38  ;;  %v5081_v37 = vld [vmem:[#allocation6 + $0x8] sm:$0xff] }
 0x433   :  { %v3978_v43 = vld [vmem:[#allocation4 + $0xd4] sm:$0xff] }
 0x434   :  { %v3641_v44 = vld [vmem:[#allocation4 + $0xd3] sm:$0xff]  ;;  %v2663_v45 = vmax.f32 %v2661_v40, 0.0  ;;  %7714 = vmatmul.msk.f32.gmra.mxu2 %vm4346_vm9, %v4722_v41  ;;  %4116 = vrot.lane.b32.xlu2 %v3978_v43, %s7992_s18 }
 0x435   :  { %3779 = vrot.lane.b32.xlu1 %v3641_v44, %s7990_s12  ;;  %v2856_v24 = vld [vmem:[#allocation4 + $0xd8] sm:$0xff]  ;;  %v4730_v44 = vld [vmem:[#allocation5 + $0x9e] sm:$0xff] }
 0x436   :  { %3442 = vrot.lane.b32.xlu0 %v3304_v47, %s7993_s19  ;;  %2665 = vst.msk [vmem:[#allocation4 + $0xe0] sm:$0xff] %vm1447_vm2, %v2663_v45  ;;  %v3648_v45 = vld [vmem:[#allocation4 + $0x10b] sm:$0xff] }
 0x437   :  { %v4109_v33 = vpop.permute.xlu1 %4108  ;;  %2912 = vst.msk [vmem:[#allocation5 + $0xd8] sm:$0xff] %vm1447_vm2, %v2856_v24  ;;  %v2974_v47 = vld [vmem:[#allocation4 + $0x109] sm:$0xff] }
 0x438   :  { %4255 = vst.msk [vmem:[#allocation5 + $0xb0] sm:$0xff] %vm4232_vm8, %v4109_v33  ;;  %v3437_v48 = vpop.permute.xlu0 %3436 }
 0x439   :  { %3582 = vst.msk [vmem:[#allocation5 + $0xb8] sm:$0xff] %vm3558_vm6, %v3437_v48  ;;  %v5082_v48 = vld [vmem:[#allocation6 + $0x10] sm:$0xff] }
 0x43c   :  { %7715 = vmatmul.msk.f32.gmra.mxu2 %vm4346_vm9, %v4723_v49 }
 0x43d   :  { %v3642_v36 = vld [vmem:[#allocation4 + $0xdb] sm:$0xff]  ;;  %v3980_v50 = vld [vmem:[#allocation4 + $0xe4] sm:$0xff] }
 0x43e   :  { %v3305_v51 = vld [vmem:[#allocation4 + $0xda] sm:$0xff]  ;;  %3781 = vrot.lane.b32.xlu2 %v3642_v36, %s7990_s12  ;;  %v3306_v26 = vld [vmem:[#allocation4 + $0xe2] sm:$0xff] }
 0x43f   :  { %v2968_v52 = vld [vmem:[#allocation4 + $0xd9] sm:$0xff]  ;;  %3444 = vrot.lane.b32.xlu1 %v3305_v51, %s7993_s19  ;;  %v3774_v53 = vpop.permute.xlu1 %3773  ;;  %v2969_v58 = vld [vmem:[#allocation4 + $0xe1] sm:$0xff]  ;;  %v2990_v36 = vld [vmem:[#allocation4 + $0x189] sm:$0xff] }
 0x440   :  { %3107 = vrot.lane.b32.xlu0 %v2968_v52, %s7991_s13  ;;  %v4311_v20 = vld [vmem:[#allocation5 + $0xb0] sm:$0xff]  ;;  %3919 = vst.msk [vmem:[#allocation5 + $0xb8] sm:$0xff] %vm3895_vm7, %v3774_v53  ;;  %v2857_v57 = vld [vmem:[#allocation4 + $0xe0] sm:$0xff]  ;;  %v4731_v51 = vld [vmem:[#allocation5 + $0xa6] sm:$0xff] }
 0x441   :  { %7672 = vmatmul.msk.f32.gmra.mxu1 %vm4346_vm9, %v4311_v20  ;;  %4256 = vst.msk [vmem:[#allocation5 + $0xb8] sm:$0xff] %vm4232_vm8, %v4111_v55  ;;  %v3979_v59 = vld [vmem:[#allocation4 + $0xdc] sm:$0xff]  ;;  %v3985_v52 = vld [vmem:[#allocation4 + $0x10c] sm:$0xff] }
 0x442   :  { %2913 = vst.msk [vmem:[#allocation5 + $0xe0] sm:$0xff] %vm1447_vm2, %v2857_v57  ;;  %v3643_v0 = vld [vmem:[#allocation4 + $0xe3] sm:$0xff] }
 0x443   :  { %v5083_v20 = vld [vmem:[#allocation6 + $0x18] sm:$0xff] }
 0x444   :  { %7716 = vmatmul.msk.f32.gmra.mxu2 %vm4346_vm9, %v4724_v56 }
 0x446   :  { %3446 = vrot.lane.b32.xlu2 %v3306_v26, %s7993_s19  ;;  %v4001_v26 = vld [vmem:[#allocation4 + $0x18c] sm:$0xff] }
 0x447   :  { %3109 = vrot.lane.b32.xlu1 %v2969_v58, %s7991_s13  ;;  %v4653_v60 = vpop.f32.mrf.mxu2  ;;  %v3327_v58 = vld [vmem:[#allocation4 + $0x18a] sm:$0xff] }
 0x448   :  { %4118 = vrot.lane.b32.xlu0 %v3979_v59, %s7992_s18  ;;  %v4654_v54 = vadd.f32 %v10017_v63, %v4653_v60  ;;  %v4312_v61 = vld [vmem:[#allocation5 + $0xb8] sm:$0xff]  ;;  %v4732_v59 = vld [vmem:[#allocation5 + $0xae] sm:$0xff]  ;;  %v3664_v60 = vld [vmem:[#allocation4 + $0x18b] sm:$0xff] }
 0x449   :  { %7673 = vmatmul.msk.f32.gmra.mxu1 %vm4346_vm9, %v4312_v61 }
 0x44a   :  { %4709 = vst.msk [vmem:[#allocation6 + $0x170] sm:$0xff] %vm4662_vm10, %v4654_v54 }
 0x44c   :  { %7717 = vmatmul.msk.f32.gmra.mxu2 %vm4346_vm9, %v4725_v62  ;;  %v5084_v62 = vld [vmem:[#allocation6 + $0x20] sm:$0xff] }
 0x44e   :  { %4122 = vrot.lane.b32.xlu2 %v3981_v30, %s7992_s18 }
 0x44f   :  { %4120 = vrot.lane.b32.xlu1 %v3980_v50, %s7992_s18  ;;  %v3776_v22 = vpop.permute.xlu2 %3775  ;;  %v4733_v50 = vld [vmem:[#allocation5 + $0xb6] sm:$0xff] }
 0x450   :  { %3783 = vrot.lane.b32.xlu0 %v3643_v0, %s7990_s12 }
 0x453   :  { %v4656_v2 = vpop.f32.mrf.mxu2 }
 0x454   :  { %v4657_v4 = vadd.f32 %v10017_v63, %v4656_v2  ;;  %7718 = vmatmul.msk.f32.gmra.mxu2 %vm4346_vm9, %v4726_v3 }
 0x456   :  { %4710 = vst.msk [vmem:[#allocation6 + $0x178] sm:$0xff] %vm4662_vm10, %v4657_v4  ;;  %3787 = vrot.lane.b32.xlu2 %v3645_v8, %s7990_s12  ;;  %v5085_v4 = vld [vmem:[#allocation6 + $0x28] sm:$0xff] }
 0x457   :  { %3450 = vrot.lane.b32.xlu1 %v3308_v5, %s7993_s19  ;;  %v3441_v40 = vpop.permute.xlu2 %3440 }
 0x458   :  { %3113 = vrot.lane.b32.xlu0 %v2971_v7, %s7991_s13 }
 0x45c   :  { %7719 = vmatmul.msk.f32.gmra.mxu2 %vm4346_vm9, %v4727_v10 }
 0x45d   :  { %v4569_v11 = vpop.f32.mrf.mxu1 }
 0x45e   :  { %v4570_v14 = vadd.f32 %v10017_v63, %v4569_v11  ;;  %3452 = vrot.lane.b32.xlu2 %v3309_v39, %s7993_s19  ;;  %v5086_v11 = vld [vmem:[#allocation6 + $0x30] sm:$0xff] }
 0x45f   :  { %3115 = vrot.lane.b32.xlu1 %v2972_v42, %s7991_s13  ;;  %v4659_v15 = vpop.f32.mrf.mxu2 }
 0x460   :  { %4124 = vrot.lane.b32.xlu0 %v3982_v13, %s7992_s18  ;;  %4681 = vst.msk [vmem:[#allocation6 + $0x90] sm:$0xff] %vm4662_vm10, %v4570_v14  ;;  %v4660_v9 = vadd.f32 %v10017_v63, %v4659_v15  ;;  %v5087_v13 = vld [vmem:[#allocation6 + $0x38] sm:$0xff] }
 0x462   :  { %4711 = vst.msk [vmem:[#allocation6 + $0x180] sm:$0xff] %vm4662_vm10, %v4660_v9 }
 0x464   :  { %7720 = vmatmul.msk.f32.gmra.mxu2 %vm4346_vm9, %v4728_v17 }
 0x466   :  { %3117 = vrot.lane.b32.xlu2 %v2973_v18, %s7991_s13 }
 0x467   :  { %4126 = vrot.lane.b32.xlu1 %v3983_v19, %s7992_s18  ;;  %v4572_v12 = vpop.f32.mrf.mxu1  ;;  %v4933_v23 = vpop.f32.mrf.mxu2 }
 0x468   :  { %3789 = vrot.lane.b32.xlu0 %v3646_v21, %s7990_s12  ;;  %v4573_v25 = vadd.f32 %v10017_v63, %v4572_v12  ;;  %v3439_v27 = vpop.permute.xlu1 %3438  ;;  %v5129_v28 = vadd.f32 %v5080_v6, %v4933_v23  ;;  %v5088_v21 = vld [vmem:[#allocation6 + $0x40] sm:$0xff] }
 0x469   :  { %v3102_v29 = vpop.permute.xlu0 %3101 }
 0x46a   :  { %4682 = vst.msk [vmem:[#allocation6 + $0x98] sm:$0xff] %vm4662_vm10, %v4573_v25 }
 0x46b   :  { %5178 = vst.msk [vmem:[#allocation6] sm:$0xff] %vm4662_vm10, %v5129_v28 }
 0x46c   :  { %3246 = vst.msk [vmem:[#allocation5 + $0xc0] sm:$0xff] %vm3221_vm5, %v3102_v29  ;;  %7721 = vmatmul.msk.f32.gmra.mxu2 %vm4346_vm9, %v4729_v1  ;;  %v5089_v29 = vld [vmem:[#allocation6 + $0x48] sm:$0xff] }
 0x46d   :  { %3583 = vst.msk [vmem:[#allocation5 + $0xc0] sm:$0xff] %vm3558_vm6, %v3439_v27 }
 0x46e   :  { %3920 = vst.msk [vmem:[#allocation5 + $0xc0] sm:$0xff] %vm3895_vm7, %v3776_v22  ;;  %4128 = vrot.lane.b32.xlu2 %v3984_v32, %s7992_s18 }
 0x46f   :  { %3791 = vrot.lane.b32.xlu1 %v3647_v34, %s7990_s12  ;;  %v4936_v16 = vpop.f32.mrf.mxu2 }
 0x470   :  { %3454 = vrot.lane.b32.xlu0 %v3310_v35, %s7993_s19  ;;  %v3104_v38 = vpop.permute.xlu1 %3103  ;;  %v5130_v41 = vadd.f32 %v5081_v37, %v4936_v16 }
 0x471   :  { %3247 = vst.msk [vmem:[#allocation5 + $0xc8] sm:$0xff] %vm3221_vm5, %v3104_v38  ;;  %v4113_v43 = vpop.permute.xlu0 %4112  ;;  %v5090_v38 = vld [vmem:[#allocation6 + $0x50] sm:$0xff] }
 0x472   :  { %3584 = vst.msk [vmem:[#allocation5 + $0xc8] sm:$0xff] %vm3558_vm6, %v3441_v40 }
 0x473   :  { %5179 = vst.msk [vmem:[#allocation6 + $0x8] sm:$0xff] %vm4662_vm10, %v5130_v41 }
 0x474   :  { %4257 = vst.msk [vmem:[#allocation5 + $0xc0] sm:$0xff] %vm4232_vm8, %v4113_v43  ;;  %7722 = vmatmul.msk.f32.gmra.mxu2 %vm4346_vm9, %v4730_v44 }
 0x476   :  { %3793 = vrot.lane.b32.xlu2 %v3648_v45, %s7990_s12 }
 0x477   :  { %3456 = vrot.lane.b32.xlu1 %v3311_v46, %s7993_s19  ;;  %v4939_v33 = vpop.f32.mrf.mxu2 }
 0x478   :  { %3119 = vrot.lane.b32.xlu0 %v2974_v47, %s7991_s13  ;;  %v5131_v49 = vadd.f32 %v5082_v48, %v4939_v33  ;;  %v5091_v33 = vld [vmem:[#allocation6 + $0x58] sm:$0xff] }
 0x47a   :  { %5180 = vst.msk [vmem:[#allocation6 + $0x10] sm:$0xff] %vm4662_vm10, %v5131_v49 }
 0x47b   :  { %v4313_v24 = vld [vmem:[#allocation5 + $0xc0] sm:$0xff] }
 0x47c   :  { %7674 = vmatmul.msk.f32.gmra.mxu1 %vm4346_vm9, %v4313_v24  ;;  %7723 = vmatmul.msk.f32.gmra.mxu2 %vm4346_vm9, %v4731_v51  ;;  %v4734_v7 = vld [vmem:[#allocation5 + $0xbe] sm:$0xff] }
 0x47e   :  { %3488 = vrot.lane.b32.xlu2 %v3327_v58, %s7993_s19 }
 0x47f   :  { %3151 = vrot.lane.b32.xlu1 %v2990_v36, %s7991_s13  ;;  %v4942_v53 = vpop.f32.mrf.mxu2 }
 0x480   :  { %4130 = vrot.lane.b32.xlu0 %v3985_v52, %s7992_s18  ;;  %v5132_v55 = vadd.f32 %v5083_v20, %v4942_v53 }
 0x482   :  { %v4575_v56 = vpop.f32.mrf.mxu1  ;;  %5181 = vst.msk [vmem:[#allocation6 + $0x18] sm:$0xff] %vm4662_vm10, %v5132_v55 }
 0x483   :  { %v4576_v57 = vadd.f32 %v10017_v63, %v4575_v56  ;;  %v5092_v56 = vld [vmem:[#allocation6 + $0x60] sm:$0xff] }
 0x484   :  { %7724 = vmatmul.msk.f32.gmra.mxu2 %vm4346_vm9, %v4732_v59 }
 0x485   :  { %4683 = vst.msk [vmem:[#allocation6 + $0xa0] sm:$0xff] %vm4662_vm10, %v4576_v57 }
 0x486   :  { %v3106_v54 = vpop.permute.xlu2 %3105 }
 0x487   :  { %4162 = vrot.lane.b32.xlu1 %v4001_v26, %s7992_s18  ;;  %v4945_v61 = vpop.f32.mrf.mxu2  ;;  %3248 = vst.msk [vmem:[#allocation5 + $0xd0] sm:$0xff] %vm3221_vm5, %v3106_v54  ;;  %v7863_v54 = vld [vmem:[%s11148_s3 + $0x90] sm:$0xff] }
 0x488   :  { %3825 = vrot.lane.b32.xlu0 %v3664_v60, %s7990_s12  ;;  %v5133_v30 = vadd.f32 %v5084_v62, %v4945_v61  ;;  %6474 = vmatpush.msra.mxu2 %v7863_v54  ;;  %v5093_v61 = vld [vmem:[#allocation6 + $0x68] sm:$0xff]  ;;  %v3666_v54 = vld [vmem:[#allocation4 + $0x19b] sm:$0xff] }
 0x48a   :  { %5182 = vst.msk [vmem:[#allocation6 + $0x20] sm:$0xff] %vm4662_vm10, %v5133_v30 }
 0x48c   :  { %7725 = vmatmul.msk.f32.gmra.mxu2 %vm4346_vm9, %v4733_v50 }
 0x48e   :  { %v4117_v2 = vpop.permute.xlu2 %4116 }
 0x48f   :  { %v4578_v0 = vpop.f32.mrf.mxu1  ;;  %v4948_v3 = vpop.f32.mrf.mxu2 }
 0x490   :  { %v4579_v8 = vadd.f32 %v10017_v63, %v4578_v0  ;;  %v5134_v5 = vadd.f32 %v5085_v4, %v4948_v3  ;;  %v2878_v0 = vld [vmem:[#allocation4 + $0x188] sm:$0xff] }
 0x491   :  { %2934 = vst.msk [vmem:[#allocation5 + $0x188] sm:$0xff] %vm1447_vm2, %v2878_v0  ;;  %v5228_v0 = vld [vmem:[#allocation5 + $0x24] sm:$0xff] }
 0x492   :  { %4684 = vst.msk [vmem:[#allocation6 + $0xa8] sm:$0xff] %vm4662_vm10, %v4579_v8  ;;  %v5094_v8 = vld [vmem:[#allocation6 + $0x70] sm:$0xff] }
 0x493   :  { %5183 = vst.msk [vmem:[#allocation6 + $0x28] sm:$0xff] %vm4662_vm10, %v5134_v5 }
 0x494   :  { %7726 = vmatmul.msk.f32.gmra.mxu2 %vm4346_vm9, %v4734_v7 }
 0x497   :  { %v4951_v10 = vpop.f32.mrf.mxu2 }
 0x498   :  { %v3782_v39 = vpop.permute.xlu2 %3781  ;;  %v5135_v42 = vadd.f32 %v5086_v11, %v4951_v10 }
 0x49a   :  { %5184 = vst.msk [vmem:[#allocation6 + $0x30] sm:$0xff] %vm4662_vm10, %v5135_v42  ;;  %v3328_v42 = vld [vmem:[#allocation4 + $0x192] sm:$0xff] }
 0x49b   :  { %3490 = vrot.lane.b32.xlu0 %v3328_v42, %s7993_s19  ;;  %v4747_v42 = vld [vmem:[#allocation5 + $0x126] sm:$0xff] }
 0x49f   :  { %v4954_v14 = vpop.f32.mrf.mxu2  ;;  %v4115_v17 = vpop.permute.xlu1 %4114 }
 0x4a0   :  { %v3447_v15 = vpop.permute.xlu2 %3446  ;;  %v5136_v9 = vadd.f32 %v5087_v13, %v4954_v14  ;;  %v3778_v18 = vpop.permute.xlu0 %3777  ;;  %v3665_v14 = vld [vmem:[#allocation4 + $0x193] sm:$0xff] }
 0x4a1   :  { %3921 = vst.msk [vmem:[#allocation5 + $0xc8] sm:$0xff] %vm3895_vm7, %v3778_v18  ;;  %3827 = vrot.lane.b32.xlu1 %v3665_v14, %s7990_s12  ;;  %v5230_v14 = vld [vmem:[#allocation5 + $0x34] sm:$0xff] }
 0x4a2   :  { %5185 = vst.msk [vmem:[#allocation6 + $0x38] sm:$0xff] %vm4662_vm10, %v5136_v9  ;;  %v5095_v9 = vld [vmem:[#allocation6 + $0x78] sm:$0xff] }
 0x4a3   :  { %4258 = vst.msk [vmem:[#allocation5 + $0xc8] sm:$0xff] %vm4232_vm8, %v4115_v17 }
 0x4a7   :  { %v4957_v19 = vpop.f32.mrf.mxu2  ;;  %v3780_v23 = vpop.permute.xlu1 %3779 }
 0x4a8   :  { %v4123_v22 = vpop.permute.xlu2 %4122  ;;  %v5137_v12 = vadd.f32 %v5088_v21, %v4957_v19  ;;  %v3443_v6 = vpop.permute.xlu0 %3442 }
 0x4a9   :  { %4262 = vst.msk [vmem:[#allocation5 + $0xe8] sm:$0xff] %vm4232_vm8, %v4123_v22 }
 0x4aa   :  { %3585 = vst.msk [vmem:[#allocation5 + $0xd0] sm:$0xff] %vm3558_vm6, %v3443_v6  ;;  %v4314_v25 = vld [vmem:[#allocation5 + $0xc8] sm:$0xff]  ;;  %v7810_v6 = vld [vmem:[%s11148_s3 + $0x78] sm:$0x3f] }
 0x4ab   :  { %5186 = vst.msk [vmem:[#allocation6 + $0x40] sm:$0xff] %vm4662_vm10, %v5137_v12  ;;  %v4735_v27 = vld [vmem:[#allocation5 + $0xc6] sm:$0xff]  ;;  %7675 = vmatmul.msk.f32.gmra.mxu1 %vm4346_vm9, %v4314_v25  ;;  %v2992_v12 = vld [vmem:[#allocation4 + $0x199] sm:$0xff] }
 0x4ac   :  { %3922 = vst.msk [vmem:[#allocation5 + $0xd0] sm:$0xff] %vm3895_vm7, %v3780_v23  ;;  %7727 = vmatmul.msk.f32.gmra.mxu2 %vm4346_vm9, %v4735_v27  ;;  %v3329_v23 = vld [vmem:[#allocation4 + $0x19a] sm:$0xff]  ;;  %3155 = vrot.lane.b32.xlu0 %v2992_v12, %s7991_s13  ;;  %v5096_v27 = vld [vmem:[#allocation6 + $0x80] sm:$0xff] }
 0x4ad   :  { %4259 = vst.msk [vmem:[#allocation5 + $0xd0] sm:$0xff] %vm4232_vm8, %v4117_v2  ;;  %3492 = vrot.lane.b32.xlu1 %v3329_v23, %s7993_s19  ;;  %7811 = vmatpush.msk.msra.mxu1 %vm4494_vm4, %v7810_v6  ;;  %vm7088_vm4 = vcmask 911104  }
 0x4af   :  { %v4960_v28 = vpop.f32.mrf.mxu2 }
 0x4b0   :  { %v3788_v31 = vpop.permute.xlu2 %3787  ;;  %v5138_v1 = vadd.f32 %v5089_v29, %v4960_v28  ;;  %v4318_v2 = vld [vmem:[#allocation5 + $0xe8] sm:$0xff] }
 0x4b1   :  { %v3445_v32 = vpop.permute.xlu1 %3444 }
 0x4b2   :  { %v3108_v34 = vpop.permute.xlu0 %3107  ;;  %5187 = vst.msk [vmem:[#allocation6 + $0x48] sm:$0xff] %vm4662_vm10, %v5138_v1 }
 0x4b3   :  { %3249 = vst.msk [vmem:[#allocation5 + $0xd8] sm:$0xff] %vm3221_vm5, %v3108_v34  ;;  %v2993_v34 = vld [vmem:[#allocation4 + $0x1a1] sm:$0xff] }
 0x4b4   :  { %3586 = vst.msk [vmem:[#allocation5 + $0xd8] sm:$0xff] %vm3558_vm6, %v3445_v32  ;;  %v4315_v35 = vld [vmem:[#allocation5 + $0xd0] sm:$0xff] }
 0x4b5   :  { %v4736_v16 = vld [vmem:[#allocation5 + $0xce] sm:$0xff]  ;;  %3923 = vst.msk [vmem:[#allocation5 + $0xd8] sm:$0xff] %vm3895_vm7, %v3782_v39  ;;  %7676 = vmatmul.msk.f32.gmra.mxu1 %vm4346_vm9, %v4315_v35  ;;  %3157 = vrot.lane.b32.xlu1 %v2993_v34, %s7991_s13  ;;  %v4751_v34 = vld [vmem:[#allocation5 + $0x146] sm:$0xff] }
 0x4b6   :  { %7728 = vmatmul.msk.f32.gmra.mxu2 %vm4346_vm9, %v4736_v16  ;;  %v4003_v32 = vld [vmem:[#allocation4 + $0x19c] sm:$0xff] }
 0x4b7   :  { %v4963_v37 = vpop.f32.mrf.mxu2  ;;  %4166 = vrot.lane.b32.xlu0 %v4003_v32, %s7992_s18 }
 0x4b8   :  { %v3453_v40 = vpop.permute.xlu2 %3452  ;;  %v5139_v41 = vadd.f32 %v5090_v38, %v4963_v37  ;;  %v5097_v38 = vld [vmem:[#allocation6 + $0x88] sm:$0xff] }
 0x4b9   :  { %v3110_v43 = vpop.permute.xlu1 %3109 }
 0x4ba   :  { %v4119_v44 = vpop.permute.xlu0 %4118  ;;  %3250 = vst.msk [vmem:[#allocation5 + $0xe0] sm:$0xff] %vm3221_vm5, %v3110_v43 }
 0x4bb   :  { %5188 = vst.msk [vmem:[#allocation6 + $0x50] sm:$0xff] %vm4662_vm10, %v5139_v41 }
 0x4bc   :  { %3587 = vst.msk [vmem:[#allocation5 + $0xe0] sm:$0xff] %vm3558_vm6, %v3447_v15 }
 0x4bd   :  { %4260 = vst.msk [vmem:[#allocation5 + $0xd8] sm:$0xff] %vm4232_vm8, %v4119_v44 }
 0x4be   :  { %v4581_v45 = vpop.f32.mrf.mxu1 }
 0x4bf   :  { %v4582_v46 = vadd.f32 %v10017_v63, %v4581_v45  ;;  %v4966_v47 = vpop.f32.mrf.mxu2  ;;  %v2991_v45 = vld [vmem:[#allocation4 + $0x191] sm:$0xff] }
 0x4c0   :  { %v3118_v48 = vpop.permute.xlu2 %3117  ;;  %v5140_v49 = vadd.f32 %v5091_v33, %v4966_v47  ;;  %v4004_v47 = vld [vmem:[#allocation4 + $0x1a4] sm:$0xff]  ;;  %3153 = vrot.lane.b32.xlu2 %v2991_v45, %s7991_s13 }
 0x4c1   :  { %4685 = vst.msk [vmem:[#allocation6 + $0xb0] sm:$0xff] %vm4662_vm10, %v4582_v46  ;;  %v4121_v24 = vpop.permute.xlu1 %4120  ;;  %v3667_v46 = vld [vmem:[#allocation4 + $0x1a3] sm:$0xff]  ;;  %4168 = vrot.lane.b32.xlu1 %v4004_v47, %s7992_s18 }
 0x4c2   :  { %3254 = vst.msk [vmem:[#allocation5 + $0x100] sm:$0xff] %vm3221_vm5, %v3118_v48  ;;  %v3784_v36 = vpop.permute.xlu0 %3783  ;;  %3831 = vrot.lane.b32.xlu0 %v3667_v46, %s7990_s12  ;;  %v5098_v48 = vld [vmem:[#allocation6 + $0x90] sm:$0xff]  ;;  %v5236_v46 = vld [vmem:[#allocation5 + $0x64] sm:$0xff] }
 0x4c3   :  { %3924 = vst.msk [vmem:[#allocation5 + $0xe0] sm:$0xff] %vm3895_vm7, %v3784_v36  ;;  %v4753_v45 = vld [vmem:[#allocation5 + $0x156] sm:$0xff] }
 0x4c4   :  { %5189 = vst.msk [vmem:[#allocation6 + $0x58] sm:$0xff] %vm4662_vm10, %v5140_v49  ;;  %v4316_v51 = vld [vmem:[#allocation5 + $0xd8] sm:$0xff] }
 0x4c5   :  { %4261 = vst.msk [vmem:[#allocation5 + $0xe0] sm:$0xff] %vm4232_vm8, %v4121_v24  ;;  %v4737_v52 = vld [vmem:[#allocation5 + $0xd6] sm:$0xff]  ;;  %7677 = vmatmul.msk.f32.gmra.mxu1 %vm4346_vm9, %v4316_v51 }
 0x4c6   :  { %7729 = vmatmul.msk.f32.gmra.mxu2 %vm4346_vm9, %v4737_v52  ;;  %v4584_v53 = vpop.f32.mrf.mxu1 }
 0x4c7   :  { %v4585_v20 = vadd.f32 %v10017_v63, %v4584_v53  ;;  %v4969_v55 = vpop.f32.mrf.mxu2  ;;  %v10325_v53 = vld [vmem:[%s11149_s4] ss:$0 sm:$0xff] }
 0x4c8   :  { %v5141_v57 = vadd.f32 %v5092_v56, %v4969_v55  ;;  %v4129_v13 = vpop.permute.xlu2 %4128  ;;  %v4002_v56 = vld [vmem:[#allocation4 + $0x194] sm:$0xff] }
 0x4c9   :  { %4686 = vst.msk [vmem:[#allocation6 + $0xb8] sm:$0xff] %vm4662_vm10, %v4585_v20  ;;  %v3451_v26 = vpop.permute.xlu1 %3450  ;;  %4164 = vrot.lane.b32.xlu2 %v4002_v56, %s7992_s18 }
 0x4ca   :  { %v3114_v58 = vpop.permute.xlu0 %3113  ;;  %5190 = vst.msk [vmem:[#allocation6 + $0x60] sm:$0xff] %vm4662_vm10, %v5141_v57 }
 0x4cb   :  { %3252 = vst.msk [vmem:[#allocation5 + $0xf0] sm:$0xff] %vm3221_vm5, %v3114_v58 }
 0x4cc   :  { %v4317_v59 = vld [vmem:[#allocation5 + $0xe0] sm:$0xff]  ;;  %3589 = vst.msk [vmem:[#allocation5 + $0xf0] sm:$0xff] %vm3558_vm6, %v3451_v26  ;;  %v5099_v26 = vld [vmem:[#allocation6 + $0x98] sm:$0xff] }
 0x4cd   :  { %v4738_v60 = vld [vmem:[#allocation5 + $0xde] sm:$0xff]  ;;  %3926 = vst.msk [vmem:[#allocation5 + $0xf0] sm:$0xff] %vm3895_vm7, %v3788_v31  ;;  %7678 = vmatmul.msk.f32.gmra.mxu1 %vm4346_vm9, %v4317_v59  ;;  %v4739_v3 = vld [vmem:[#allocation5 + $0xe6] sm:$0xff] }
 0x4ce   :  { %7730 = vmatmul.msk.f32.gmra.mxu2 %vm4346_vm9, %v4738_v60  ;;  %v5227_v60 = vld [vmem:[#allocation5 + $0x1c] sm:$0xff] }
 0x4cf   :  { %v4972_v63 = vpop.f32.mrf.mxu2 }
 0x4d0   :  { %v5142_v62 = vadd.f32 %v5093_v61, %v4972_v63  ;;  %v3794_v1 = vpop.permute.xlu2 %3793  ;;  %v5103_v23 = vld [vmem:[#allocation6 + $0xb8] sm:$0xff] }
 0x4d1   :  { %v3116_v30 = vpop.permute.xlu1 %3115  ;;  %3829 = vrot.lane.b32.xlu2 %v3666_v54, %s7990_s12 }
 0x4d2   :  { %v4125_v50 = vpop.permute.xlu0 %4124  ;;  %3253 = vst.msk [vmem:[#allocation5 + $0xf8] sm:$0xff] %vm3221_vm5, %v3116_v30 }
 0x4d3   :  { %5191 = vst.msk [vmem:[#allocation6 + $0x68] sm:$0xff] %vm4662_vm10, %v5142_v62  ;;  %v5100_v62 = vld [vmem:[#allocation6 + $0xa0] sm:$0xff] }
 0x4d4   :  { %3590 = vst.msk [vmem:[#allocation5 + $0xf8] sm:$0xff] %vm3558_vm6, %v3453_v40 }
 0x4d5   :  { %4263 = vst.msk [vmem:[#allocation5 + $0xf0] sm:$0xff] %vm4232_vm8, %v4125_v50  ;;  %7679 = vmatmul.msk.f32.gmra.mxu1 %vm4346_vm9, %v4318_v2  ;;  %v4745_v50 = vld [vmem:[#allocation5 + $0x116] sm:$0xff] }
 0x4d6   :  { %7731 = vmatmul.msk.f32.gmra.mxu2 %vm4346_vm9, %v4739_v3  ;;  %v3330_v2 = vld [vmem:[#allocation4 + $0x1a2] sm:$0xff] }
 0x4d7   :  { %v4975_v4 = vpop.f32.mrf.mxu2 }
 0x4d8   :  { %v5143_v5 = vadd.f32 %v5094_v8, %v4975_v4  ;;  %v3489_v44 = vpop.permute.xlu2 %3488  ;;  %v5101_v4 = vld [vmem:[#allocation6 + $0xa8] sm:$0xff] }
 0x4d9   :  { %v4127_v7 = vpop.permute.xlu1 %4126  ;;  %3494 = vrot.lane.b32.xlu2 %v3330_v2, %s7993_s19  ;;  %v2881_v2 = vld [vmem:[#allocation4 + $0x1a0] sm:$0xff] }
 0x4da   :  { %v3790_v10 = vpop.permute.xlu0 %3789  ;;  %5192 = vst.msk [vmem:[#allocation6 + $0x70] sm:$0xff] %vm4662_vm10, %v5143_v5  ;;  %v4746_v5 = vld [vmem:[#allocation5 + $0x11e] sm:$0xff] }
 0x4db   :  { %3927 = vst.msk [vmem:[#allocation5 + $0xf8] sm:$0xff] %vm3895_vm7, %v3790_v10 }
 0x4dc   :  { %4264 = vst.msk [vmem:[#allocation5 + $0xf8] sm:$0xff] %vm4232_vm8, %v4127_v7  ;;  %v4319_v11 = vld [vmem:[#allocation5 + $0xf0] sm:$0xff] }
 0x4dd   :  { %v4740_v39 = vld [vmem:[#allocation5 + $0xee] sm:$0xff]  ;;  %7680 = vmatmul.msk.f32.gmra.mxu1 %vm4346_vm9, %v4319_v11  ;;  %2937 = vst.msk [vmem:[#allocation5 + $0x1a0] sm:$0xff] %vm1447_vm2, %v2881_v2 }
 0x4de   :  { %7732 = vmatmul.msk.f32.gmra.mxu2 %vm4346_vm9, %v4740_v39  ;;  %v5229_v7 = vld [vmem:[#allocation5 + $0x2c] sm:$0xff] }
 0x4df   :  { %v4978_v15 = vpop.f32.mrf.mxu2  ;;  %v5102_v11 = vld [vmem:[#allocation6 + $0xb0] sm:$0xff] }
 0x4e0   :  { %v5144_v17 = vadd.f32 %v5095_v9, %v4978_v15  ;;  %v5231_v15 = vld [vmem:[#allocation5 + $0x3c] sm:$0xff]  ;;  %v7809_v9 = vld [vmem:[%s11148_s3 + $0x70] sm:$0xff] }
 0x4e1   :  { %v3792_v18 = vpop.permute.xlu1 %3791  ;;  %5959 = vmatpush.msra.mxu1 %v7809_v9 }
 0x4e2   :  { %v3455_v19 = vpop.permute.xlu0 %3454  ;;  %5193 = vst.msk [vmem:[#allocation6 + $0x78] sm:$0xff] %vm4662_vm10, %v5144_v17 }
 0x4e3   :  { %3591 = vst.msk [vmem:[#allocation5 + $0x100] sm:$0xff] %vm3558_vm6, %v3455_v19  ;;  %v4320_v21 = vld [vmem:[#allocation5 + $0xf8] sm:$0xff]  ;;  %v5232_v19 = vld [vmem:[#allocation5 + $0x44] sm:$0xff] }
 0x4e4   :  { %v4741_v22 = vld [vmem:[#allocation5 + $0xf6] sm:$0xff]  ;;  %3928 = vst.msk [vmem:[#allocation5 + $0x100] sm:$0xff] %vm3895_vm7, %v3792_v18 }
 0x4e5   :  { %4265 = vst.msk [vmem:[#allocation5 + $0x100] sm:$0xff] %vm4232_vm8, %v4129_v13  ;;  %7681 = vmatmul.msk.f32.gmra.mxu1 %vm4346_vm9, %v4320_v21  ;;  %v4748_v13 = vld [vmem:[#allocation5 + $0x12e] sm:$0xff]  ;;  %v4749_v18 = vld [vmem:[#allocation5 + $0x136] sm:$0xff] }
 0x4e6   :  { %7733 = vmatmul.msk.f32.gmra.mxu2 %vm4346_vm9, %v4741_v22  ;;  %v7862_v22 = vld [vmem:[%s11148_s3 + $0x88] sm:$0xff] }
 0x4e7   :  { %v4981_v25 = vpop.f32.mrf.mxu2  ;;  %6475 = vmatpush.msra.mxu2 %v7862_v22  ;;  %v7808_v22 = vld [vmem:[%s11148_s3 + $0x68] sm:$0xff] }
 0x4e8   :  { %v5145_v28 = vadd.f32 %v5096_v27, %v4981_v25  ;;  %v4750_v25 = vld [vmem:[#allocation5 + $0x13e] sm:$0xff]  ;;  %v5233_v27 = vld [vmem:[#allocation5 + $0x4c] sm:$0xff]  ;;  %5960 = vmatpush.msra.mxu1 %v7808_v22 }
 0x4e9   :  { %v3457_v29 = vpop.permute.xlu1 %3456  ;;  %v5116_v22 = vld [vmem:[#allocation6 + $0x120] sm:$0xff] }
 0x4ea   :  { %v3120_v31 = vpop.permute.xlu0 %3119  ;;  %5194 = vst.msk [vmem:[#allocation6 + $0x80] sm:$0xff] %vm4662_vm10, %v5145_v28 }
 0x4eb   :  { %3255 = vst.msk [vmem:[#allocation5 + $0x108] sm:$0xff] %vm3221_vm5, %v3120_v31 }
 0x4ec   :  { %3592 = vst.msk [vmem:[#allocation5 + $0x108] sm:$0xff] %vm3558_vm6, %v3457_v29  ;;  %v4321_v35 = vld [vmem:[#allocation5 + $0x100] sm:$0xff] }
 0x4ed   :  { %v4742_v16 = vld [vmem:[#allocation5 + $0xfe] sm:$0xff]  ;;  %3929 = vst.msk [vmem:[#allocation5 + $0x108] sm:$0xff] %vm3895_vm7, %v3794_v1  ;;  %7682 = vmatmul.msk.f32.gmra.mxu1 %vm4346_vm9, %v4321_v35  ;;  %v5234_v35 = vld [vmem:[#allocation5 + $0x54] sm:$0xff] }
 0x4ee   :  { %7734 = vmatmul.msk.f32.gmra.mxu2 %vm4346_vm9, %v4742_v16  ;;  %v4752_v16 = vld [vmem:[#allocation5 + $0x14e] sm:$0xff] }
 0x4ef   :  { %v4984_v37 = vpop.f32.mrf.mxu2 }
 0x4f0   :  { %v5146_v40 = vadd.f32 %v5097_v38, %v4984_v37  ;;  %v5235_v37 = vld [vmem:[#allocation5 + $0x5c] sm:$0xff] }
 0x4f1   :  { %v3152_v43 = vpop.permute.xlu1 %3151 }
 0x4f2   :  { %v4131_v41 = vpop.permute.xlu0 %4130  ;;  %5195 = vst.msk [vmem:[#allocation6 + $0x88] sm:$0xff] %vm4662_vm10, %v5146_v40 }
 0x4f3   :  { %4266 = vst.msk [vmem:[#allocation5 + $0x108] sm:$0xff] %vm4232_vm8, %v4131_v41 }
 0x4f4   :  { %3271 = vst.msk [vmem:[#allocation5 + $0x188] sm:$0xff] %vm3221_vm5, %v3152_v43 }
 0x4f5   :  { %3608 = vst.msk [vmem:[#allocation5 + $0x188] sm:$0xff] %vm3558_vm6, %v3489_v44 }
 0x4f7   :  { %v4987_v33 = vpop.f32.mrf.mxu2 }
 0x4f8   :  { %v5147_v49 = vadd.f32 %v5098_v48, %v4987_v33  ;;  %v2879_v48 = vld [vmem:[#allocation4 + $0x190] sm:$0xff] }
 0x4f9   :  { %v4587_v24 = vpop.f32.mrf.mxu1  ;;  %v4163_v55 = vpop.permute.xlu1 %4162  ;;  %2935 = vst.msk [vmem:[#allocation5 + $0x190] sm:$0xff] %vm1447_vm2, %v2879_v48 }
 0x4fa   :  { %v3826_v36 = vpop.permute.xlu0 %3825  ;;  %v4322_v51 = vld [vmem:[#allocation5 + $0x108] sm:$0xff]  ;;  %v4588_v20 = vadd.f32 %v10325_v53, %v4587_v24  ;;  %5196 = vst.msk [vmem:[#allocation6 + $0x90] sm:$0xff] %vm4662_vm10, %v5147_v49 }
 0x4fb   :  { %v4743_v52 = vld [vmem:[#allocation5 + $0x106] sm:$0xff]  ;;  %3945 = vst.msk [vmem:[#allocation5 + $0x188] sm:$0xff] %vm3895_vm7, %v3826_v36  ;;  %7683 = vmatmul.msk.f32.gmra.mxu1 %vm4346_vm9, %v4322_v51  ;;  %v4744_v59 = vld [vmem:[#allocation5 + $0x10e] sm:$0xff] }
 0x4fc   :  { %7735 = vmatmul.msk.f32.gmra.mxu2 %vm4346_vm9, %v4743_v52  ;;  %4687 = vst.msk [vmem:[#allocation6 + $0xc0] sm:$0xff] %vm4662_vm10, %v4588_v20  ;;  %v4754_v20 = vld [vmem:[#allocation5 + $0x15e] sm:$0xff] }
 0x4fd   :  { %4282 = vst.msk [vmem:[#allocation5 + $0x188] sm:$0xff] %vm4232_vm8, %v4163_v55  ;;  %v5237_v55 = vld [vmem:[#allocation5 + $0x6c] sm:$0xff] }
 0x4ff   :  { %v4990_v57 = vpop.f32.mrf.mxu2 }
 0x500   :  { %v5148_v58 = vadd.f32 %v5099_v26, %v4990_v57 }
 0x502   :  { %5197 = vst.msk [vmem:[#allocation6 + $0x98] sm:$0xff] %vm4662_vm10, %v5148_v58  ;;  %v2880_v58 = vld [vmem:[#allocation4 + $0x198] sm:$0xff] }
 0x503   :  { %7758 = vmatmul.msk.f32.vlgmr.msrb.gmra.mxu1 %vm4346_vm9, %v5227_v60  ;;  %v5104_v1 = vld [vmem:[#allocation6 + $0xc0] sm:$0xff]  ;;  %2936 = vst.msk [vmem:[#allocation5 + $0x198] sm:$0xff] %vm1447_vm2, %v2880_v58 }
 0x504   :  { %7736 = vmatmul.msk.f32.gmra.mxu2 %vm4346_vm9, %v4744_v59  ;;  %v5272_v63 = vld [vmem:[#allocation5 + $0x184] sm:$0xff] }
 0x505   :  { %7803 = vmatmul.msk.f32.gmra.mxu3 %vm4346_vm9, %v5272_v63 }
 0x507   :  { %v4993_v61 = vpop.f32.mrf.mxu2 }
 0x508   :  { %v5149_v30 = vadd.f32 %v5100_v62, %v4993_v61  ;;  %v4755_v62 = vld [vmem:[#allocation5 + $0x166] sm:$0xff] }
 0x50a   :  { %5198 = vst.msk [vmem:[#allocation6 + $0xa0] sm:$0xff] %vm4662_vm10, %v5149_v30  ;;  %v5238_v30 = vld [vmem:[#allocation5 + $0x74] sm:$0xff] }
 0x50b   :  { %7759 = vmatmul.msk.f32.gmra.mxu1 %vm4346_vm9, %v5228_v0 }
 0x50c   :  { %7737 = vmatmul.msk.f32.gmra.mxu2 %vm4346_vm9, %v4745_v50 }
 0x50d   :  { %v3491_v51 = vpop.permute.xlu0 %3490 }
 0x50f   :  { %v4996_v3 = vpop.f32.mrf.mxu2 }
 0x510   :  { %v5150_v8 = vadd.f32 %v5101_v4, %v4996_v3 }
 0x512   :  { %5199 = vst.msk [vmem:[#allocation6 + $0xa8] sm:$0xff] %vm4662_vm10, %v5150_v8 }
 0x513   :  { %7760 = vmatmul.msk.f32.gmra.mxu1 %vm4346_vm9, %v5229_v7  ;;  %v3828_v56 = vpop.permute.xlu1 %3827 }
 0x514   :  { %7738 = vmatmul.msk.f32.gmra.mxu2 %vm4346_vm9, %v4746_v5 }
 0x517   :  { %v4999_v10 = vpop.f32.mrf.mxu2 }
 0x518   :  { %v5151_v39 = vadd.f32 %v5102_v11, %v4999_v10 }
 0x51a   :  { %5200 = vst.msk [vmem:[#allocation6 + $0xb0] sm:$0xff] %vm4662_vm10, %v5151_v39  ;;  %v3154_v49 = vpop.permute.xlu2 %3153  ;;  %v4756_v39 = vld [vmem:[#allocation5 + $0x16e] sm:$0xff] }
 0x51b   :  { %7761 = vmatmul.msk.f32.gmra.mxu1 %vm4346_vm9, %v5230_v14  ;;  %3272 = vst.msk [vmem:[#allocation5 + $0x190] sm:$0xff] %vm3221_vm5, %v3154_v49  ;;  %v5243_v49 = vld [vmem:[#allocation5 + $0x9c] sm:$0xff] }
 0x51c   :  { %7739 = vmatmul.msk.f32.gmra.mxu2 %vm4346_vm9, %v4747_v42  ;;  %3609 = vst.msk [vmem:[#allocation5 + $0x190] sm:$0xff] %vm3558_vm6, %v3491_v51  ;;  %v5239_v42 = vld [vmem:[#allocation5 + $0x7c] sm:$0xff] }
 0x51d   :  { %3946 = vst.msk [vmem:[#allocation5 + $0x190] sm:$0xff] %vm3895_vm7, %v3828_v56  ;;  %v6257_v56 = vld [vmem:[#allocation5 + $0x38] sm:$0xff] }
 0x51e   :  { %v3156_v63 = vpop.permute.xlu0 %3155 }
 0x51f   :  { %3273 = vst.msk [vmem:[#allocation5 + $0x198] sm:$0xff] %vm3221_vm5, %v3156_v63  ;;  %v3493_v50 = vpop.permute.xlu1 %3492 }
 0x520   :  { %3610 = vst.msk [vmem:[#allocation5 + $0x198] sm:$0xff] %vm3558_vm6, %v3493_v50  ;;  %v5114_v50 = vld [vmem:[#allocation6 + $0x110] sm:$0xff] }
 0x523   :  { %7762 = vmatmul.msk.f32.gmra.mxu1 %vm4346_vm9, %v5231_v15  ;;  %v4165_v59 = vpop.permute.xlu2 %4164 }
 0x524   :  { %7740 = vmatmul.msk.f32.gmra.mxu2 %vm4346_vm9, %v4748_v13  ;;  %4283 = vst.msk [vmem:[#allocation5 + $0x190] sm:$0xff] %vm4232_vm8, %v4165_v59  ;;  %v5547_v59 = vpop.f32.mrf.mxu3 }
 0x527   :  { %v3158_v14 = vpop.permute.xlu1 %3157 }
 0x528   :  { %v4590_v17 = vpop.f32.mrf.mxu1  ;;  %3274 = vst.msk [vmem:[#allocation5 + $0x1a0] sm:$0xff] %vm3221_vm5, %v3158_v14 }
 0x529   :  { %v4591_v21 = vadd.f32 %v10325_v53, %v4590_v17  ;;  %v4167_v10 = vpop.permute.xlu0 %4166 }
 0x52b   :  { %7763 = vmatmul.msk.f32.gmra.mxu1 %vm4346_vm9, %v5232_v19  ;;  %4688 = vst.msk [vmem:[#allocation6 + $0xc8] sm:$0xff] %vm4662_vm10, %v4591_v21  ;;  %v3830_v4 = vpop.permute.xlu2 %3829  ;;  %v5273_v8 = vld [vmem:[#allocation5 + $0x18c] sm:$0xff] }
 0x52c   :  { %7741 = vmatmul.msk.f32.gmra.mxu2 %vm4346_vm9, %v4749_v18  ;;  %3947 = vst.msk [vmem:[#allocation5 + $0x198] sm:$0xff] %vm3895_vm7, %v3830_v4  ;;  %7804 = vmatmul.msk.f32.gmra.mxu3 %vm4346_vm9, %v5273_v8  ;;  %v5550_v2 = vpop.f32.mrf.mxu3  ;;  %v5598_v4 = vld [vmem:[#allocation6 + $0x18] sm:$0xff] }
 0x52d   :  { %4284 = vst.msk [vmem:[#allocation5 + $0x198] sm:$0xff] %vm4232_vm8, %v4167_v10 }
 0x52f   :  { %v5002_v12 = vpop.f32.mrf.mxu2 }
 0x530   :  { %v5152_v6 = vadd.f32 %v5103_v23, %v5002_v12  ;;  %v4757_v23 = vld [vmem:[#allocation5 + $0x176] sm:$0xff] }
 0x532   :  { %5201 = vst.msk [vmem:[#allocation6 + $0xb8] sm:$0xff] %vm4662_vm10, %v5152_v6  ;;  %v4593_v28 = vpop.f32.mrf.mxu1  ;;  %v5105_v43 = vld [vmem:[#allocation6 + $0xc8] sm:$0xff] }
 0x533   :  { %7764 = vmatmul.msk.f32.gmra.mxu1 %vm4346_vm9, %v5233_v27  ;;  %v4594_v29 = vadd.f32 %v10325_v53, %v4593_v28  ;;  %v3495_v9 = vpop.permute.xlu2 %3494  ;;  %v5240_v6 = vld [vmem:[#allocation5 + $0x84] sm:$0xff]  ;;  %v7861_v28 = vld [vmem:[%s11148_s3 + $0x80] sm:$0xff] }
 0x534   :  { %7742 = vmatmul.msk.f32.gmra.mxu2 %vm4346_vm9, %v4750_v25  ;;  %3611 = vst.msk [vmem:[#allocation5 + $0x1a0] sm:$0xff] %vm3558_vm6, %v3495_v9  ;;  %v3832_v19 = vpop.permute.xlu0 %3831  ;;  %v5274_v21 = vld [vmem:[#allocation5 + $0x194] sm:$0xff]  ;;  %v4169_v25 = vpop.permute.xlu1 %4168  ;;  %v5599_v9 = vld [vmem:[#allocation6 + $0x20] sm:$0xff] }
 0x535   :  { %4689 = vst.msk [vmem:[#allocation6 + $0xd0] sm:$0xff] %vm4662_vm10, %v4594_v29  ;;  %7805 = vmatmul.msk.f32.gmra.mxu3 %vm4346_vm9, %v5274_v21  ;;  %6476 = vmatpush.msra.mxu2 %v7861_v28 }
 0x536   :  { %3948 = vst.msk [vmem:[#allocation5 + $0x1a0] sm:$0xff] %vm3895_vm7, %v3832_v19  ;;  %v6260_v19 = vld [vmem:[#allocation5 + $0x50] sm:$0xff] }
 0x537   :  { %4285 = vst.msk [vmem:[#allocation5 + $0x1a0] sm:$0xff] %vm4232_vm8, %v4169_v25 }
 0x539   :  { %v5005_v31 = vpop.f32.mrf.mxu2 }
 0x53a   :  { %v5153_v32 = vadd.f32 %v5104_v1, %v5005_v31 }
 0x53b   :  { %7765 = vmatmul.msk.f32.gmra.mxu1 %vm4346_vm9, %v5234_v35  ;;  %v5241_v35 = vld [vmem:[#allocation5 + $0x8c] sm:$0xff] }
 0x53c   :  { %7743 = vmatmul.msk.f32.gmra.mxu2 %vm4346_vm9, %v4751_v34  ;;  %5202 = vst.msk [vmem:[#allocation6 + $0xc0] sm:$0xff] %vm4662_vm10, %v5153_v32  ;;  %v5106_v36 = vld [vmem:[#allocation6 + $0xd0] sm:$0xff]  ;;  %v4758_v34 = vld [vmem:[#allocation5 + $0x17e] sm:$0xff] }
 0x542   :  { %v4596_v38 = vpop.f32.mrf.mxu1 }
 0x543   :  { %7766 = vmatmul.msk.f32.gmra.mxu1 %vm4346_vm9, %v5235_v37  ;;  %v4597_v40 = vadd.f32 %v10325_v53, %v4596_v38 }
 0x544   :  { %7744 = vmatmul.msk.f32.gmra.mxu2 %vm4346_vm9, %v4752_v16  ;;  %v5275_v16 = vld [vmem:[#allocation5 + $0x19c] sm:$0xff] }
 0x545   :  { %4690 = vst.msk [vmem:[#allocation6 + $0xd8] sm:$0xff] %vm4662_vm10, %v4597_v40  ;;  %7806 = vmatmul.msk.f32.gmra.mxu3 %vm4346_vm9, %v5275_v16  ;;  %v4759_v40 = vld [vmem:[#allocation5 + $0x186] sm:$0xff] }
 0x549   :  { %v5008_v41 = vpop.f32.mrf.mxu2 }
 0x54a   :  { %v5154_v44 = vadd.f32 %v5105_v43, %v5008_v41  ;;  %v4599_v47 = vpop.f32.mrf.mxu1  ;;  %v5242_v41 = vld [vmem:[#allocation5 + $0x94] sm:$0xff] }
 0x54b   :  { %7767 = vmatmul.msk.f32.gmra.mxu1 %vm4346_vm9, %v5236_v46  ;;  %v4600_v33 = vadd.f32 %v10325_v53, %v4599_v47  ;;  %v5595_v47 = vld [vmem:[#allocation6] sm:$0xff] }
 0x54c   :  { %7745 = vmatmul.msk.f32.gmra.mxu2 %vm4346_vm9, %v4753_v45  ;;  %5203 = vst.msk [vmem:[#allocation6 + $0xc8] sm:$0xff] %vm4662_vm10, %v5154_v44  ;;  %v5107_v54 = vld [vmem:[#allocation6 + $0xd8] sm:$0xff] }
 0x54d   :  { %4691 = vst.msk [vmem:[#allocation6 + $0xe0] sm:$0xff] %vm4662_vm10, %v4600_v33  ;;  %v4760_v33 = vld [vmem:[#allocation5 + $0x18e] sm:$0xff] }
 0x551   :  { %v5011_v24 = vpop.f32.mrf.mxu2 }
 0x552   :  { %v5155_v52 = vadd.f32 %v5106_v36, %v5011_v24  ;;  %v4602_v57 = vpop.f32.mrf.mxu1 }
 0x553   :  { %7768 = vmatmul.msk.f32.gmra.mxu1 %vm4346_vm9, %v5237_v55  ;;  %v4603_v26 = vadd.f32 %v10325_v53, %v4602_v57  ;;  %v5244_v55 = vld [vmem:[#allocation5 + $0xa4] sm:$0xff] }
 0x554   :  { %7746 = vmatmul.msk.f32.gmra.mxu2 %vm4346_vm9, %v4754_v20  ;;  %5204 = vst.msk [vmem:[#allocation6 + $0xd0] sm:$0xff] %vm4662_vm10, %v5155_v52  ;;  %v5108_v7 = vld [vmem:[#allocation6 + $0xe0] sm:$0xff]  ;;  %v5596_v52 = vld [vmem:[#allocation6 + $0x8] sm:$0xff] }
 0x555   :  { %4692 = vst.msk [vmem:[#allocation6 + $0xe8] sm:$0xff] %vm4662_vm10, %v4603_v26 }
 0x559   :  { %v5014_v60 = vpop.f32.mrf.mxu2 }
 0x55a   :  { %v5156_v61 = vadd.f32 %v5107_v54, %v5014_v60  ;;  %v4605_v0 = vpop.f32.mrf.mxu1  ;;  %v5597_v54 = vld [vmem:[#allocation6 + $0x10] sm:$0xff] }
 0x55b   :  { %7769 = vmatmul.msk.f32.gmra.mxu1 %vm4346_vm9, %v5238_v30  ;;  %v4606_v3 = vadd.f32 %v10325_v53, %v4605_v0 }
 0x55c   :  { %7747 = vmatmul.msk.f32.gmra.mxu2 %vm4346_vm9, %v4755_v62  ;;  %5205 = vst.msk [vmem:[#allocation6 + $0xd8] sm:$0xff] %vm4662_vm10, %v5156_v61  ;;  %v5109_v18 = vld [vmem:[#allocation6 + $0xe8] sm:$0xff]  ;;  %v6258_v62 = vld [vmem:[#allocation5 + $0x40] sm:$0xff] }
 0x55d   :  { %4693 = vst.msk [vmem:[#allocation6 + $0xf0] sm:$0xff] %vm4662_vm10, %v4606_v3  ;;  %v5245_v61 = vld [vmem:[#allocation5 + $0xac] sm:$0xff] }
 0x561   :  { %v5017_v5 = vpop.f32.mrf.mxu2 }
 0x562   :  { %v5157_v11 = vadd.f32 %v5108_v7, %v5017_v5  ;;  %v4608_v13 = vpop.f32.mrf.mxu1  ;;  %v5246_v5 = vld [vmem:[#allocation5 + $0xb4] sm:$0xff]  ;;  %v6259_v7 = vld [vmem:[#allocation5 + $0x48] sm:$0xff] }
 0x563   :  { %7770 = vmatmul.msk.f32.gmra.mxu1 %vm4346_vm9, %v5239_v42  ;;  %v4609_v15 = vadd.f32 %v10325_v53, %v4608_v13  ;;  %v5553_v13 = vpop.f32.mrf.mxu3 }
 0x564   :  { %7748 = vmatmul.msk.f32.gmra.mxu2 %vm4346_vm9, %v4756_v39  ;;  %5206 = vst.msk [vmem:[#allocation6 + $0xe0] sm:$0xff] %vm4662_vm10, %v5157_v11  ;;  %v5110_v1 = vld [vmem:[#allocation6 + $0xf0] sm:$0xff]  ;;  %v5115_v11 = vld [vmem:[#allocation6 + $0x118] sm:$0xff] }
 0x565   :  { %4694 = vst.msk [vmem:[#allocation6 + $0xf8] sm:$0xff] %vm4662_vm10, %v4609_v15 }
 0x569   :  { %v5020_v17 = vpop.f32.mrf.mxu2 }
 0x56a   :  { %v5158_v12 = vadd.f32 %v5109_v18, %v5020_v17  ;;  %v4611_v27 = vpop.f32.mrf.mxu1  ;;  %v5247_v18 = vld [vmem:[#allocation5 + $0xbc] sm:$0xff] }
 0x56b   :  { %7771 = vmatmul.msk.f32.gmra.mxu1 %vm4346_vm9, %v5240_v6  ;;  %v4612_v29 = vadd.f32 %v10325_v53, %v4611_v27  ;;  %v5600_v27 = vld [vmem:[#allocation6 + $0x28] sm:$0xff] }
 0x56c   :  { %7749 = vmatmul.msk.f32.gmra.mxu2 %vm4346_vm9, %v4757_v23  ;;  %5207 = vst.msk [vmem:[#allocation6 + $0xe8] sm:$0xff] %vm4662_vm10, %v5158_v12  ;;  %v5111_v44 = vld [vmem:[#allocation6 + $0xf8] sm:$0xff] }
 0x56d   :  { %4695 = vst.msk [vmem:[#allocation6 + $0x100] sm:$0xff] %vm4662_vm10, %v4612_v29  ;;  %v5556_v29 = vpop.f32.mrf.mxu3 }
 0x571   :  { %v5023_v31 = vpop.f32.mrf.mxu2 }
 0x572   :  { %v5159_v32 = vadd.f32 %v5110_v1, %v5023_v31  ;;  %v5248_v31 = vld [vmem:[#allocation5 + $0xc4] sm:$0xff]  ;;  %v6261_v1 = vld [vmem:[#allocation5 + $0x58] sm:$0xff] }
 0x573   :  { %7772 = vmatmul.msk.f32.gmra.mxu1 %vm4346_vm9, %v5241_v35  ;;  %v5117_v35 = vld [vmem:[#allocation6 + $0x128] sm:$0xff] }
 0x574   :  { %7750 = vmatmul.msk.f32.gmra.mxu2 %vm4346_vm9, %v4758_v34  ;;  %5208 = vst.msk [vmem:[#allocation6 + $0xf0] sm:$0xff] %vm4662_vm10, %v5159_v32  ;;  %v5112_v24 = vld [vmem:[#allocation6 + $0x100] sm:$0xff]  ;;  %v7807_v32 = vld [vmem:[%s11148_s3 + $0x60] sm:$0xff]  ;;  %s7995_s3 = smov 48  }
 0x575   :  { %5961 = vmatpush.msra.mxu1 %v7807_v32 }
 0x578   :  { %v4614_v37 = vpop.f32.mrf.mxu1 }
 0x579   :  { %v4615_v38 = vadd.f32 %v10325_v53, %v4614_v37 }
 0x57b   :  { %4696 = vst.msk [vmem:[#allocation6 + $0x108] sm:$0xff] %vm4662_vm10, %v4615_v38  ;;  %7773 = vmatmul.msk.f32.gmra.mxu1 %vm4346_vm9, %v5242_v41  ;;  %v5601_v41 = vld [vmem:[#allocation6 + $0x30] sm:$0xff] }
 0x57c   :  { %7751 = vmatmul.msk.f32.gmra.mxu2 %vm4346_vm9, %v4759_v40 }
 0x57f   :  { %v5026_v43 = vpop.f32.mrf.mxu2 }
 0x580   :  { %v5160_v45 = vadd.f32 %v5111_v44, %v5026_v43  ;;  %v5448_v46 = vpop.f32.mrf.mxu1  ;;  %v5559_v44 = vpop.f32.mrf.mxu3 }
 0x581   :  { %v5644_v48 = vadd.f32 %v5595_v47, %v5448_v46  ;;  %v6262_v46 = vld [vmem:[#allocation5 + $0x60] sm:$0xff] }
 0x582   :  { %5209 = vst.msk [vmem:[#allocation6 + $0xf8] sm:$0xff] %vm4662_vm10, %v5160_v45  ;;  %v5113_v26 = vld [vmem:[#allocation6 + $0x108] sm:$0xff] }
 0x583   :  { %5693 = vst.msk [vmem:[#allocation6] sm:$0xff] %vm4662_vm10, %v5644_v48  ;;  %7774 = vmatmul.msk.f32.gmra.mxu1 %vm4346_vm9, %v5243_v49  ;;  %v5249_v45 = vld [vmem:[#allocation5 + $0xcc] sm:$0xff] }
 0x584   :  { %7752 = vmatmul.msk.f32.gmra.mxu2 %vm4346_vm9, %v4760_v33  ;;  %v5118_v33 = vld [vmem:[#allocation6 + $0x130] sm:$0xff] }
 0x587   :  { %v5029_v53 = vpop.f32.mrf.mxu2 }
 0x588   :  { %v5161_v36 = vadd.f32 %v5112_v24, %v5029_v53  ;;  %v5451_v51 = vpop.f32.mrf.mxu1 }
 0x589   :  { %v5645_v20 = vadd.f32 %v5596_v52, %v5451_v51  ;;  %v5562_v52 = vpop.f32.mrf.mxu3 }
 0x58a   :  { %5210 = vst.msk [vmem:[#allocation6 + $0x100] sm:$0xff] %vm4662_vm10, %v5161_v36  ;;  %v5602_v36 = vld [vmem:[#allocation6 + $0x38] sm:$0xff] }
 0x58b   :  { %5694 = vst.msk [vmem:[#allocation6 + $0x8] sm:$0xff] %vm4662_vm10, %v5645_v20  ;;  %7775 = vmatmul.msk.f32.gmra.mxu1 %vm4346_vm9, %v5244_v55  ;;  %v5250_v20 = vld [vmem:[#allocation5 + $0xd4] sm:$0xff]  ;;  %v6263_v55 = vld [vmem:[#allocation5 + $0x68] sm:$0xff] }
 0x58c   :  { %7866 = vmatmul.msk.f32.vlgmr.msra.gmra.mxu2 %vm4346_vm9, %v6257_v56 }
 0x58f   :  { %v5032_v57 = vpop.f32.mrf.mxu2 }
 0x590   :  { %v5162_v58 = vadd.f32 %v5113_v26, %v5032_v57  ;;  %v5454_v60 = vpop.f32.mrf.mxu1  ;;  %v5119_v57 = vld [vmem:[#allocation6 + $0x138] sm:$0xff] }
 0x591   :  { %v5646_v63 = vadd.f32 %v5597_v54, %v5454_v60  ;;  %v5603_v54 = vld [vmem:[#allocation6 + $0x40] sm:$0xff] }
 0x592   :  { %5211 = vst.msk [vmem:[#allocation6 + $0x108] sm:$0xff] %vm4662_vm10, %v5162_v58 }
 0x593   :  { %5695 = vst.msk [vmem:[#allocation6 + $0x10] sm:$0xff] %vm4662_vm10, %v5646_v63  ;;  %7776 = vmatmul.msk.f32.gmra.mxu1 %vm4346_vm9, %v5245_v61  ;;  %v5565_v61 = vpop.f32.mrf.mxu3 }
 0x594   :  { %7867 = vmatmul.msk.f32.gmra.mxu2 %vm4346_vm9, %v6258_v62  ;;  %v5251_v62 = vld [vmem:[#allocation5 + $0xdc] sm:$0xff] }
 0x597   :  { %v5035_v30 = vpop.f32.mrf.mxu2 }
 0x598   :  { %v5163_v0 = vadd.f32 %v5114_v50, %v5035_v30  ;;  %v5457_v3 = vpop.f32.mrf.mxu1  ;;  %v6264_v30 = vld [vmem:[#allocation5 + $0x70] sm:$0xff] }
 0x599   :  { %v5647_v8 = vadd.f32 %v5598_v4, %v5457_v3  ;;  %v5628_v39 = vld [vmem:[#allocation6 + $0x108] sm:$0xff] }
 0x59a   :  { %5212 = vst.msk [vmem:[#allocation6 + $0x110] sm:$0xff] %vm4662_vm10, %v5163_v0  ;;  %v5677_v14 = vadd.f32 %v5628_v39, %v5547_v59  ;;  %v5120_v0 = vld [vmem:[#allocation6 + $0x140] sm:$0xff]  ;;  %v6265_v39 = vld [vmem:[#allocation5 + $0x78] sm:$0xff] }
 0x59b   :  { %5696 = vst.msk [vmem:[#allocation6 + $0x18] sm:$0xff] %vm4662_vm10, %v5647_v8  ;;  %7777 = vmatmul.msk.f32.gmra.mxu1 %vm4346_vm9, %v5246_v5  ;;  %v5604_v5 = vld [vmem:[#allocation6 + $0x48] sm:$0xff] }
 0x59c   :  { %7868 = vmatmul.msk.f32.gmra.mxu2 %vm4346_vm9, %v6259_v7  ;;  %5726 = vst.msk [vmem:[#allocation6 + $0x108] sm:$0xff] %vm4662_vm10, %v5677_v14  ;;  %v5121_v14 = vld [vmem:[#allocation6 + $0x148] sm:$0xff] }
 0x59f   :  { %v5038_v10 = vpop.f32.mrf.mxu2 }
 0x5a0   :  { %v5164_v42 = vadd.f32 %v5115_v11, %v5038_v10  ;;  %v5460_v15 = vpop.f32.mrf.mxu1  ;;  %v5568_v10 = vpop.f32.mrf.mxu3  ;;  %v5252_v11 = vld [vmem:[#allocation5 + $0xe4] sm:$0xff] }
 0x5a1   :  { %v5648_v17 = vadd.f32 %v5599_v9, %v5460_v15  ;;  %v5629_v12 = vld [vmem:[#allocation6 + $0x110] sm:$0xff] }
 0x5a2   :  { %5213 = vst.msk [vmem:[#allocation6 + $0x118] sm:$0xff] %vm4662_vm10, %v5164_v42  ;;  %v5678_v6 = vadd.f32 %v5629_v12, %v5550_v2  ;;  %v6266_v12 = vld [vmem:[#allocation5 + $0x80] sm:$0xff] }
 0x5a3   :  { %5697 = vst.msk [vmem:[#allocation6 + $0x20] sm:$0xff] %vm4662_vm10, %v5648_v17  ;;  %7778 = vmatmul.msk.f32.gmra.mxu1 %vm4346_vm9, %v5247_v18  ;;  %v5605_v18 = vld [vmem:[#allocation6 + $0x50] sm:$0xff] }
 0x5a4   :  { %7869 = vmatmul.msk.f32.gmra.mxu2 %vm4346_vm9, %v6260_v19  ;;  %5727 = vst.msk [vmem:[#allocation6 + $0x110] sm:$0xff] %vm4662_vm10, %v5678_v6  ;;  %v5122_v6 = vld [vmem:[#allocation6 + $0x150] sm:$0xff] }
 0x5a7   :  { %v5041_v21 = vpop.f32.mrf.mxu2 }
 0x5a8   :  { %v5165_v23 = vadd.f32 %v5116_v22, %v5041_v21  ;;  %v5463_v25 = vpop.f32.mrf.mxu1  ;;  %v5571_v21 = vpop.f32.mrf.mxu3  ;;  %v5253_v22 = vld [vmem:[#allocation5 + $0xec] sm:$0xff] }
 0x5a9   :  { %v5649_v28 = vadd.f32 %v5600_v27, %v5463_v25  ;;  %v5630_v16 = vld [vmem:[#allocation6 + $0x118] sm:$0xff] }
 0x5aa   :  { %5214 = vst.msk [vmem:[#allocation6 + $0x120] sm:$0xff] %vm4662_vm10, %v5165_v23  ;;  %v5679_v38 = vadd.f32 %v5630_v16, %v5553_v13 }
 0x5ab   :  { %5698 = vst.msk [vmem:[#allocation6 + $0x28] sm:$0xff] %vm4662_vm10, %v5649_v28  ;;  %7779 = vmatmul.msk.f32.gmra.mxu1 %vm4346_vm9, %v5248_v31  ;;  %v5606_v31 = vld [vmem:[#allocation6 + $0x58] sm:$0xff] }
 0x5ac   :  { %7870 = vmatmul.msk.f32.gmra.mxu2 %vm4346_vm9, %v6261_v1  ;;  %5728 = vst.msk [vmem:[#allocation6 + $0x118] sm:$0xff] %vm4662_vm10, %v5679_v38 }
 0x5af   :  { %v5044_v34 = vpop.f32.mrf.mxu2 }
 0x5b0   :  { %v5166_v37 = vadd.f32 %v5117_v35, %v5044_v34  ;;  %v5466_v40 = vpop.f32.mrf.mxu1  ;;  %v5574_v32 = vpop.f32.mrf.mxu3  ;;  %v5254_v34 = vld [vmem:[#allocation5 + $0xf4] sm:$0xff]  ;;  %v6267_v35 = vld [vmem:[#allocation5 + $0x88] sm:$0xff] }
 0x5b1   :  { %v5650_v43 = vadd.f32 %v5601_v41, %v5466_v40  ;;  %v5631_v48 = vld [vmem:[#allocation6 + $0x120] sm:$0xff] }
 0x5b2   :  { %5215 = vst.msk [vmem:[#allocation6 + $0x128] sm:$0xff] %vm4662_vm10, %v5166_v37  ;;  %v5680_v53 = vadd.f32 %v5631_v48, %v5556_v29  ;;  %v5123_v37 = vld [vmem:[#allocation6 + $0x158] sm:$0xff] }
 0x5b3   :  { %5699 = vst.msk [vmem:[#allocation6 + $0x30] sm:$0xff] %vm4662_vm10, %v5650_v43  ;;  %7780 = vmatmul.msk.f32.gmra.mxu1 %vm4346_vm9, %v5249_v45 }
 0x5b4   :  { %7871 = vmatmul.msk.f32.gmra.mxu2 %vm4346_vm9, %v6262_v46  ;;  %5729 = vst.msk [vmem:[#allocation6 + $0x120] sm:$0xff] %vm4662_vm10, %v5680_v53 }
 0x5b7   :  { %v5047_v47 = vpop.f32.mrf.mxu2 }
 0x5b8   :  { %v5167_v49 = vadd.f32 %v5118_v33, %v5047_v47  ;;  %v5469_v24 = vpop.f32.mrf.mxu1  ;;  %v5577_v46 = vpop.f32.mrf.mxu3  ;;  %v5255_v47 = vld [vmem:[#allocation5 + $0xfc] sm:$0xff]  ;;  %v6268_v33 = vld [vmem:[#allocation5 + $0x90] sm:$0xff] }
 0x5b9   :  { %v5651_v51 = vadd.f32 %v5602_v36, %v5469_v24  ;;  %v5632_v26 = vld [vmem:[#allocation6 + $0x128] sm:$0xff] }
 0x5ba   :  { %5216 = vst.msk [vmem:[#allocation6 + $0x130] sm:$0xff] %vm4662_vm10, %v5167_v49  ;;  %v5681_v59 = vadd.f32 %v5632_v26, %v5559_v44  ;;  %v5607_v44 = vld [vmem:[#allocation6 + $0x60] sm:$0xff] }
 0x5bb   :  { %5700 = vst.msk [vmem:[#allocation6 + $0x38] sm:$0xff] %vm4662_vm10, %v5651_v51  ;;  %7781 = vmatmul.msk.f32.gmra.mxu1 %vm4346_vm9, %v5250_v20  ;;  %v5124_v49 = vld [vmem:[#allocation6 + $0x160] sm:$0xff] }
 0x5bc   :  { %7872 = vmatmul.msk.f32.gmra.mxu2 %vm4346_vm9, %v6263_v55  ;;  %5730 = vst.msk [vmem:[#allocation6 + $0x128] sm:$0xff] %vm4662_vm10, %v5681_v59 }
 0x5bf   :  { %v5050_v56 = vpop.f32.mrf.mxu2 }
 0x5c0   :  { %v5168_v58 = vadd.f32 %v5119_v57, %v5050_v56  ;;  %v5472_v60 = vpop.f32.mrf.mxu1  ;;  %v5580_v55 = vpop.f32.mrf.mxu3  ;;  %v5256_v56 = vld [vmem:[#allocation5 + $0x104] sm:$0xff]  ;;  %v6269_v57 = vld [vmem:[#allocation5 + $0x98] sm:$0xff] }
 0x5c1   :  { %v5652_v63 = vadd.f32 %v5603_v54, %v5472_v60  ;;  %v5633_v2 = vld [vmem:[#allocation6 + $0x130] sm:$0xff] }
 0x5c2   :  { %5217 = vst.msk [vmem:[#allocation6 + $0x138] sm:$0xff] %vm4662_vm10, %v5168_v58  ;;  %v5682_v4 = vadd.f32 %v5633_v2, %v5562_v52  ;;  %v5608_v52 = vld [vmem:[#allocation6 + $0x68] sm:$0xff] }
 0x5c3   :  { %5701 = vst.msk [vmem:[#allocation6 + $0x40] sm:$0xff] %vm4662_vm10, %v5652_v63  ;;  %7782 = vmatmul.msk.f32.gmra.mxu1 %vm4346_vm9, %v5251_v62  ;;  %v5125_v58 = vld [vmem:[#allocation6 + $0x168] sm:$0xff] }
 0x5c4   :  { %7873 = vmatmul.msk.f32.gmra.mxu2 %vm4346_vm9, %v6264_v30  ;;  %5731 = vst.msk [vmem:[#allocation6 + $0x130] sm:$0xff] %vm4662_vm10, %v5682_v4 }
 0x5c7   :  { %v5053_v50 = vpop.f32.mrf.mxu2 }
 0x5c8   :  { %v5169_v3 = vadd.f32 %v5120_v0, %v5053_v50  ;;  %v5475_v8 = vpop.f32.mrf.mxu1  ;;  %v5583_v30 = vpop.f32.mrf.mxu3  ;;  %v5257_v50 = vld [vmem:[#allocation5 + $0x10c] sm:$0xff]  ;;  %v6270_v0 = vld [vmem:[#allocation5 + $0xa0] sm:$0xff] }
 0x5c9   :  { %v5653_v7 = vadd.f32 %v5604_v5, %v5475_v8  ;;  %v5634_v13 = vld [vmem:[#allocation6 + $0x138] sm:$0xff] }
 0x5ca   :  { %5218 = vst.msk [vmem:[#allocation6 + $0x140] sm:$0xff] %vm4662_vm10, %v5169_v3  ;;  %v5683_v9 = vadd.f32 %v5634_v13, %v5565_v61  ;;  %v5609_v61 = vld [vmem:[#allocation6 + $0x70] sm:$0xff] }
 0x5cb   :  { %5702 = vst.msk [vmem:[#allocation6 + $0x48] sm:$0xff] %vm4662_vm10, %v5653_v7  ;;  %7783 = vmatmul.msk.f32.gmra.mxu1 %vm4346_vm9, %v5252_v11  ;;  %v5126_v3 = vld [vmem:[#allocation6 + $0x170] sm:$0xff] }
 0x5cc   :  { %7874 = vmatmul.msk.f32.gmra.mxu2 %vm4346_vm9, %v6265_v39  ;;  %5732 = vst.msk [vmem:[#allocation6 + $0x138] sm:$0xff] %vm4662_vm10, %v5683_v9  ;;  %v5258_v39 = vld [vmem:[#allocation5 + $0x114] sm:$0xff] }
 0x5cf   :  { %v5056_v42 = vpop.f32.mrf.mxu2 }
 0x5d0   :  { %v5170_v15 = vadd.f32 %v5121_v14, %v5056_v42  ;;  %v5478_v17 = vpop.f32.mrf.mxu1  ;;  %v6271_v42 = vld [vmem:[#allocation5 + $0xa8] sm:$0xff]  ;;  %v5586_v14 = vpop.f32.mrf.mxu3 }
 0x5d1   :  { %v5654_v19 = vadd.f32 %v5605_v18, %v5478_v17  ;;  %v5635_v25 = vld [vmem:[#allocation6 + $0x140] sm:$0xff] }
 0x5d2   :  { %5219 = vst.msk [vmem:[#allocation6 + $0x148] sm:$0xff] %vm4662_vm10, %v5170_v15  ;;  %v5684_v28 = vadd.f32 %v5635_v25, %v5568_v10  ;;  %v5610_v10 = vld [vmem:[#allocation6 + $0x78] sm:$0xff]  ;;  %v6272_v25 = vld [vmem:[#allocation5 + $0xb0] sm:$0xff] }
 0x5d3   :  { %5703 = vst.msk [vmem:[#allocation6 + $0x50] sm:$0xff] %vm4662_vm10, %v5654_v19  ;;  %7784 = vmatmul.msk.f32.gmra.mxu1 %vm4346_vm9, %v5253_v22  ;;  %v5127_v15 = vld [vmem:[#allocation6 + $0x178] sm:$0xff] }
 0x5d4   :  { %7875 = vmatmul.msk.f32.gmra.mxu2 %vm4346_vm9, %v6266_v12  ;;  %5733 = vst.msk [vmem:[#allocation6 + $0x140] sm:$0xff] %vm4662_vm10, %v5684_v28 }
 0x5d7   :  { %v5059_v23 = vpop.f32.mrf.mxu2 }
 0x5d8   :  { %v5171_v27 = vadd.f32 %v5122_v6, %v5059_v23  ;;  %v5481_v29 = vpop.f32.mrf.mxu1  ;;  %v5259_v6 = vld [vmem:[#allocation5 + $0x11c] sm:$0xff] }
 0x5d9   :  { %v5655_v1 = vadd.f32 %v5606_v31, %v5481_v29  ;;  %v5636_v38 = vld [vmem:[#allocation6 + $0x148] sm:$0xff]  ;;  %v5128_v29 = vld [vmem:[#allocation6 + $0x180] sm:$0xff] }
 0x5da   :  { %5220 = vst.msk [vmem:[#allocation6 + $0x150] sm:$0xff] %vm4662_vm10, %v5171_v27  ;;  %v5685_v41 = vadd.f32 %v5636_v38, %v5571_v21  ;;  %v5611_v21 = vld [vmem:[#allocation6 + $0x80] sm:$0xff]  ;;  %v5589_v27 = vpop.f32.mrf.mxu3  ;;  %v6273_v38 = vld [vmem:[#allocation5 + $0xb8] sm:$0xff] }
 0x5db   :  { %5704 = vst.msk [vmem:[#allocation6 + $0x58] sm:$0xff] %vm4662_vm10, %v5655_v1  ;;  %7785 = vmatmul.msk.f32.gmra.mxu1 %vm4346_vm9, %v5254_v34 }
 0x5dc   :  { %7876 = vmatmul.msk.f32.gmra.mxu2 %vm4346_vm9, %v6267_v35  ;;  %5734 = vst.msk [vmem:[#allocation6 + $0x148] sm:$0xff] %vm4662_vm10, %v5685_v41 }
 0x5df   :  { %v5062_v16 = vpop.f32.mrf.mxu2 }
 0x5e0   :  { %v5172_v40 = vadd.f32 %v5123_v37, %v5062_v16  ;;  %v5484_v43 = vpop.f32.mrf.mxu1  ;;  %v5742_v37 = vld [vmem:[#allocation5 + $0x2a] sm:$0xff] }
 0x5e1   :  { %v5656_v45 = vadd.f32 %v5607_v44, %v5484_v43  ;;  %v5637_v53 = vld [vmem:[#allocation6 + $0x150] sm:$0xff] }
 0x5e2   :  { %5221 = vst.msk [vmem:[#allocation6 + $0x158] sm:$0xff] %vm4662_vm10, %v5172_v40  ;;  %v5686_v36 = vadd.f32 %v5637_v53, %v5574_v32  ;;  %v5612_v32 = vld [vmem:[#allocation6 + $0x88] sm:$0xff]  ;;  %v5592_v40 = vpop.f32.mrf.mxu3  ;;  %v5613_v43 = vld [vmem:[#allocation6 + $0x90] sm:$0xff] }
 0x5e3   :  { %5705 = vst.msk [vmem:[#allocation6 + $0x60] sm:$0xff] %vm4662_vm10, %v5656_v45  ;;  %7786 = vmatmul.msk.f32.gmra.mxu1 %vm4346_vm9, %v5255_v47  ;;  %v5743_v47 = vld [vmem:[#allocation5 + $0x32] sm:$0xff] }
 0x5e4   :  { %7877 = vmatmul.msk.f32.gmra.mxu2 %vm4346_vm9, %v6268_v33  ;;  %5735 = vst.msk [vmem:[#allocation6 + $0x150] sm:$0xff] %vm4662_vm10, %v5686_v36  ;;  %v6274_v33 = vld [vmem:[#allocation5 + $0xc0] sm:$0xff]  ;;  %v6275_v36 = vld [vmem:[#allocation5 + $0xc8] sm:$0xff] }
 0x5e7   :  { %v5065_v48 = vpop.f32.mrf.mxu2 }
 0x5e8   :  { %v5173_v24 = vadd.f32 %v5124_v49, %v5065_v48  ;;  %v5487_v51 = vpop.f32.mrf.mxu1  ;;  %v5614_v49 = vld [vmem:[#allocation6 + $0x98] sm:$0xff] }
 0x5e9   :  { %v5657_v20 = vadd.f32 %v5608_v52, %v5487_v51  ;;  %v5638_v59 = vld [vmem:[#allocation6 + $0x158] sm:$0xff]  ;;  %v5615_v52 = vld [vmem:[#allocation6 + $0xa0] sm:$0xff] }
 0x5ea   :  { %5222 = vst.msk [vmem:[#allocation6 + $0x160] sm:$0xff] %vm4662_vm10, %v5173_v24  ;;  %v5687_v54 = vadd.f32 %v5638_v59, %v5577_v46  ;;  %v5744_v24 = vld [vmem:[#allocation5 + $0x3a] sm:$0xff] }
 0x5eb   :  { %5706 = vst.msk [vmem:[#allocation6 + $0x68] sm:$0xff] %vm4662_vm10, %v5657_v20  ;;  %7787 = vmatmul.msk.f32.gmra.mxu1 %vm4346_vm9, %v5256_v56  ;;  %v6276_v56 = vld [vmem:[#allocation5 + $0xd0] sm:$0xff] }
 0x5ec   :  { %7878 = vmatmul.msk.f32.gmra.mxu2 %vm4346_vm9, %v6269_v57  ;;  %5736 = vst.msk [vmem:[#allocation6 + $0x158] sm:$0xff] %vm4662_vm10, %v5687_v54  ;;  %v6277_v54 = vld [vmem:[#allocation5 + $0xd8] sm:$0xff] }
 0x5ef   :  { %v5068_v26 = vpop.f32.mrf.mxu2 }
 0x5f0   :  { %v5174_v60 = vadd.f32 %v5125_v58, %v5068_v26  ;;  %v5490_v63 = vpop.f32.mrf.mxu1  ;;  %v5616_v58 = vld [vmem:[#allocation6 + $0xa8] sm:$0xff] }
 0x5f1   :  { %v5658_v62 = vadd.f32 %v5609_v61, %v5490_v63  ;;  %v5639_v4 = vld [vmem:[#allocation6 + $0x160] sm:$0xff] }
 0x5f2   :  { %5223 = vst.msk [vmem:[#allocation6 + $0x168] sm:$0xff] %vm4662_vm10, %v5174_v60  ;;  %v5688_v5 = vadd.f32 %v5639_v4, %v5580_v55  ;;  %v5745_v55 = vld [vmem:[#allocation5 + $0x42] sm:$0xff]  ;;  %v5746_v60 = vld [vmem:[#allocation5 + $0x4a] sm:$0xff] }
 0x5f3   :  { %5707 = vst.msk [vmem:[#allocation6 + $0x70] sm:$0xff] %vm4662_vm10, %v5658_v62  ;;  %7788 = vmatmul.msk.f32.gmra.mxu1 %vm4346_vm9, %v5257_v50  ;;  %v5617_v62 = vld [vmem:[#allocation6 + $0xb0] sm:$0xff] }
 0x5f4   :  { %7879 = vmatmul.msk.f32.gmra.mxu2 %vm4346_vm9, %v6270_v0  ;;  %5737 = vst.msk [vmem:[#allocation6 + $0x160] sm:$0xff] %vm4662_vm10, %v5688_v5  ;;  %v5747_v50 = vld [vmem:[#allocation5 + $0x52] sm:$0xff]  ;;  %v6278_v0 = vld [vmem:[#allocation5 + $0xe0] sm:$0xff] }
 0x5f5   :  { %v5748_v5 = vld [vmem:[#allocation5 + $0x5a] sm:$0xff] }
 0x5f7   :  { %v5071_v2 = vpop.f32.mrf.mxu2 }
 0x5f8   :  { %v5175_v8 = vadd.f32 %v5126_v3, %v5071_v2  ;;  %v5493_v7 = vpop.f32.mrf.mxu1  ;;  %v5618_v3 = vld [vmem:[#allocation6 + $0xb8] sm:$0xff] }
 0x5f9   :  { %v5659_v11 = vadd.f32 %v5610_v10, %v5493_v7  ;;  %v5640_v9 = vld [vmem:[#allocation6 + $0x168] sm:$0xff] }
 0x5fa   :  { %5224 = vst.msk [vmem:[#allocation6 + $0x170] sm:$0xff] %vm4662_vm10, %v5175_v8  ;;  %v5689_v18 = vadd.f32 %v5640_v9, %v5583_v30  ;;  %v6279_v7 = vld [vmem:[#allocation5 + $0xe8] sm:$0xff] }
 0x5fb   :  { %5708 = vst.msk [vmem:[#allocation6 + $0x78] sm:$0xff] %vm4662_vm10, %v5659_v11  ;;  %7789 = vmatmul.msk.f32.gmra.mxu1 %vm4346_vm9, %v5258_v39  ;;  %v5619_v11 = vld [vmem:[#allocation6 + $0xc0] sm:$0xff]  ;;  %v5620_v9 = vld [vmem:[#allocation6 + $0xc8] sm:$0xff] }
 0x5fc   :  { %7880 = vmatmul.msk.f32.gmra.mxu2 %vm4346_vm9, %v6271_v42  ;;  %5738 = vst.msk [vmem:[#allocation6 + $0x168] sm:$0xff] %vm4662_vm10, %v5689_v18  ;;  %v5749_v42 = vld [vmem:[#allocation5 + $0x62] sm:$0xff]  ;;  %v5750_v18 = vld [vmem:[#allocation5 + $0x6a] sm:$0xff] }
 0x5ff   :  { %v5074_v13 = vpop.f32.mrf.mxu2 }
 0x600   :  { %v5176_v17 = vadd.f32 %v5127_v15, %v5074_v13  ;;  %v5496_v19 = vpop.f32.mrf.mxu1 }
 0x601   :  { %v5641_v22 = vld [vmem:[#allocation6 + $0x170] sm:$0xff]  ;;  %v5660_v12 = vadd.f32 %v5611_v21, %v5496_v19  ;;  %v6281_v19 = vld [vmem:[#allocation5 + $0xf8] sm:$0xff] }
 0x602   :  { %5225 = vst.msk [vmem:[#allocation6 + $0x178] sm:$0xff] %vm4662_vm10, %v5176_v17  ;;  %v5690_v23 = vadd.f32 %v5641_v22, %v5586_v14  ;;  %v6280_v14 = vld [vmem:[#allocation5 + $0xf0] sm:$0xff] }
 0x603   :  { %5709 = vst.msk [vmem:[#allocation6 + $0x80] sm:$0xff] %vm4662_vm10, %v5660_v12  ;;  %7790 = vmatmul.msk.f32.gmra.mxu1 %vm4346_vm9, %v5259_v6  ;;  %v5621_v12 = vld [vmem:[#allocation6 + $0xd0] sm:$0xff] }
 0x604   :  { %7881 = vmatmul.msk.f32.gmra.mxu2 %vm4346_vm9, %v6272_v25  ;;  %5739 = vst.msk [vmem:[#allocation6 + $0x170] sm:$0xff] %vm4662_vm10, %v5690_v23  ;;  %v5751_v6 = vld [vmem:[#allocation5 + $0x72] sm:$0xff]  ;;  %v6282_v25 = vld [vmem:[#allocation5 + $0x100] sm:$0xff] }
 0x607   :  { %v5077_v28 = vpop.f32.mrf.mxu2 }
 0x608   :  { %v5177_v31 = vadd.f32 %v5128_v29, %v5077_v28  ;;  %v5499_v1 = vpop.f32.mrf.mxu1  ;;  %v5622_v29 = vld [vmem:[#allocation6 + $0xd8] sm:$0xff] }
 0x609   :  { %v5642_v34 = vld [vmem:[#allocation6 + $0x178] sm:$0xff]  ;;  %v5661_v35 = vadd.f32 %v5612_v32, %v5499_v1  ;;  %v6283_v32 = vld [vmem:[#allocation5 + $0x108] sm:$0xff] }
 0x60a   :  { %5226 = vst.msk [vmem:[#allocation6 + $0x180] sm:$0xff] %vm4662_vm10, %v5177_v31  ;;  %v5691_v16 = vadd.f32 %v5642_v34, %v5589_v27  ;;  %v5752_v1 = vld [vmem:[#allocation5 + $0x7a] sm:$0xff] }
 0x60b   :  { %5710 = vst.msk [vmem:[#allocation6 + $0x88] sm:$0xff] %vm4662_vm10, %v5661_v35  ;;  %7812 = vmatmul.msk.f32.vlgmr.msra.gmra.mxu1 %vm4346_vm9, %v5742_v37  ;;  %v5623_v35 = vld [vmem:[#allocation6 + $0xe0] sm:$0xff] }
 0x60c   :  { %7882 = vmatmul.msk.f32.gmra.mxu2 %vm4346_vm9, %v6273_v38  ;;  %5740 = vst.msk [vmem:[#allocation6 + $0x178] sm:$0xff] %vm4662_vm10, %v5691_v16  ;;  %v5753_v38 = vld [vmem:[#allocation5 + $0x82] sm:$0xff] }
 0x60f   :  { %v10530_v57 = vpop.f32.mrf.mxu2 }
 0x610   :  { %v5502_v41 = vpop.f32.mrf.mxu1 }
 0x611   :  { %v5643_v44 = vld [vmem:[#allocation6 + $0x180] sm:$0xff]  ;;  %v5662_v45 = vadd.f32 %v5613_v43, %v5502_v41  ;;  %v5624_v43 = vld [vmem:[#allocation6 + $0xe8] sm:$0xff] }
 0x612   :  { %v5692_v46 = vadd.f32 %v5643_v44, %v5592_v40  ;;  %v6284_v40 = vld [vmem:[#allocation5 + $0x110] sm:$0xff] }
 0x613   :  { %5711 = vst.msk [vmem:[#allocation6 + $0x90] sm:$0xff] %vm4662_vm10, %v5662_v45  ;;  %7813 = vmatmul.msk.f32.gmra.mxu1 %vm4346_vm9, %v5743_v47  ;;  %v5754_v45 = vld [vmem:[#allocation5 + $0x8a] sm:$0xff] }
 0x614   :  { %7883 = vmatmul.msk.f32.gmra.mxu2 %vm4346_vm9, %v6274_v33  ;;  %5741 = vst.msk [vmem:[#allocation6 + $0x180] sm:$0xff] %vm4662_vm10, %v5692_v46  ;;  %v6285_v46 = vld [vmem:[#allocation5 + $0x118] sm:$0xff] }
 0x617   :  { %v10535_v63 = vpop.f32.mrf.mxu2 }
 0x618   :  { %v5505_v48 = vpop.f32.mrf.mxu1 }
 0x619   :  { %v5663_v53 = vadd.f32 %v5614_v49, %v5505_v48  ;;  %v5625_v48 = vld [vmem:[#allocation6 + $0xf0] sm:$0xff] }
 0x61b   :  { %5712 = vst.msk [vmem:[#allocation6 + $0x98] sm:$0xff] %vm4662_vm10, %v5663_v53  ;;  %7814 = vmatmul.msk.f32.gmra.mxu1 %vm4346_vm9, %v5744_v24  ;;  %v5755_v53 = vld [vmem:[#allocation5 + $0x92] sm:$0xff]  ;;  %v6286_v24 = vld [vmem:[#allocation5 + $0x120] sm:$0xff] }
 0x61c   :  { %7884 = vmatmul.msk.f32.gmra.mxu2 %vm4346_vm9, %v6275_v36 }
 0x61f   :  { %v10540_v4 = vpop.f32.mrf.mxu2 }
 0x620   :  { %v5508_v51 = vpop.f32.mrf.mxu1 }
 0x621   :  { %v5664_v20 = vadd.f32 %v5615_v52, %v5508_v51  ;;  %v5626_v52 = vld [vmem:[#allocation6 + $0xf8] sm:$0xff] }
 0x623   :  { %5713 = vst.msk [vmem:[#allocation6 + $0xa0] sm:$0xff] %vm4662_vm10, %v5664_v20  ;;  %7815 = vmatmul.msk.f32.gmra.mxu1 %vm4346_vm9, %v5745_v55  ;;  %v5756_v55 = vld [vmem:[#allocation5 + $0x9a] sm:$0xff] }
 0x624   :  { %7885 = vmatmul.msk.f32.gmra.mxu2 %vm4346_vm9, %v6276_v56  ;;  %v6287_v56 = vld [vmem:[#allocation5 + $0x128] sm:$0xff] }
 0x627   :  { %v10545_v13 = vpop.f32.mrf.mxu2 }
 0x628   :  { %v5511_v26 = vpop.f32.mrf.mxu1 }
 0x629   :  { %v5665_v59 = vadd.f32 %v5616_v58, %v5511_v26 }
 0x62b   :  { %5714 = vst.msk [vmem:[#allocation6 + $0xa8] sm:$0xff] %vm4662_vm10, %v5665_v59  ;;  %7816 = vmatmul.msk.f32.gmra.mxu1 %vm4346_vm9, %v5746_v60  ;;  %v5627_v59 = vld [vmem:[#allocation6 + $0x100] sm:$0xff] }
 0x62c   :  { %7886 = vmatmul.msk.f32.gmra.mxu2 %vm4346_vm9, %v6277_v54  ;;  %v5757_v54 = vld [vmem:[#allocation5 + $0xa2] sm:$0xff] }
 0x62f   :  { %v10553_v21 = vpop.f32.mrf.mxu2 }
 0x630   :  { %v5514_v61 = vpop.f32.mrf.mxu1 }
 0x631   :  { %v5666_v30 = vadd.f32 %v5617_v62, %v5514_v61  ;;  %v6288_v61 = vld [vmem:[#allocation5 + $0x130] sm:$0xff] }
 0x633   :  { %5715 = vst.msk [vmem:[#allocation6 + $0xb0] sm:$0xff] %vm4662_vm10, %v5666_v30  ;;  %7817 = vmatmul.msk.f32.gmra.mxu1 %vm4346_vm9, %v5747_v50  ;;  %v6110_v30 = vld [vmem:[#allocation6] sm:$0xff] }
 0x634   :  { %7887 = vmatmul.msk.f32.gmra.mxu2 %vm4346_vm9, %v6278_v0 }
 0x637   :  { %v10558_v27 = vpop.f32.mrf.mxu2 }
 0x638   :  { %v5517_v2 = vpop.f32.mrf.mxu1 }
 0x639   :  { %v5667_v8 = vadd.f32 %v5618_v3, %v5517_v2  ;;  %v5758_v2 = vld [vmem:[#allocation5 + $0xaa] sm:$0xff]  ;;  %v6289_v3 = vld [vmem:[#allocation5 + $0x138] sm:$0xff] }
 0x63b   :  { %5716 = vst.msk [vmem:[#allocation6 + $0xb8] sm:$0xff] %vm4662_vm10, %v5667_v8  ;;  %7818 = vmatmul.msk.f32.gmra.mxu1 %vm4346_vm9, %v5748_v5  ;;  %v6111_v5 = vld [vmem:[#allocation6 + $0x8] sm:$0xff] }
 0x63c   :  { %7888 = vmatmul.msk.f32.gmra.mxu2 %vm4346_vm9, %v6279_v7 }
 0x63f   :  { %v10563_v16 = vpop.f32.mrf.mxu2 }
 0x640   :  { %v5520_v10 = vpop.f32.mrf.mxu1 }
 0x641   :  { %v5668_v39 = vadd.f32 %v5619_v11, %v5520_v10  ;;  %v5759_v11 = vld [vmem:[#allocation5 + $0xb2] sm:$0xff] }
 0x643   :  { %5717 = vst.msk [vmem:[#allocation6 + $0xc0] sm:$0xff] %vm4662_vm10, %v5668_v39  ;;  %7819 = vmatmul.msk.f32.gmra.mxu1 %vm4346_vm9, %v5749_v42  ;;  %v6290_v39 = vld [vmem:[#allocation5 + $0x140] sm:$0xff] }
 0x644   :  { %7889 = vmatmul.msk.f32.gmra.mxu2 %vm4346_vm9, %v6280_v14 }
 0x647   :  { %v10568_v47 = vpop.f32.mrf.mxu2 }
 0x648   :  { %v5523_v15 = vpop.f32.mrf.mxu1 }
 0x649   :  { %v5669_v17 = vadd.f32 %v5620_v9, %v5523_v15  ;;  %v6112_v9 = vld [vmem:[#allocation6 + $0x10] sm:$0xff] }
 0x64b   :  { %5718 = vst.msk [vmem:[#allocation6 + $0xc8] sm:$0xff] %vm4662_vm10, %v5669_v17  ;;  %7820 = vmatmul.msk.f32.gmra.mxu1 %vm4346_vm9, %v5750_v18 }
 0x64c   :  { %7890 = vmatmul.msk.f32.gmra.mxu2 %vm4346_vm9, %v6281_v19  ;;  %v5760_v19 = vld [vmem:[#allocation5 + $0xba] sm:$0xff] }
 0x64f   :  { %v10576_v36 = vpop.f32.mrf.mxu2 }
 0x650   :  { %v5526_v22 = vpop.f32.mrf.mxu1 }
 0x651   :  { %v5670_v23 = vadd.f32 %v5621_v12, %v5526_v22  ;;  %v6291_v22 = vld [vmem:[#allocation5 + $0x148] sm:$0xff] }
 0x653   :  { %5719 = vst.msk [vmem:[#allocation6 + $0xd0] sm:$0xff] %vm4662_vm10, %v5670_v23  ;;  %7821 = vmatmul.msk.f32.gmra.mxu1 %vm4346_vm9, %v5751_v6  ;;  %v6113_v6 = vld [vmem:[#allocation6 + $0x18] sm:$0xff] }
 0x654   :  { %7891 = vmatmul.msk.f32.gmra.mxu2 %vm4346_vm9, %v6282_v25 }
 0x657   :  { %v10581_v26 = vpop.f32.mrf.mxu2 }
 0x658   :  { %v5529_v28 = vpop.f32.mrf.mxu1 }
 0x659   :  { %v5671_v31 = vadd.f32 %v5622_v29, %v5529_v28  ;;  %v5761_v29 = vld [vmem:[#allocation5 + $0xc2] sm:$0xff] }
 0x65b   :  { %5720 = vst.msk [vmem:[#allocation6 + $0xd8] sm:$0xff] %vm4662_vm10, %v5671_v31  ;;  %7822 = vmatmul.msk.f32.gmra.mxu1 %vm4346_vm9, %v5752_v1  ;;  %v6292_v31 = vld [vmem:[#allocation5 + $0x150] sm:$0xff] }
 0x65c   :  { %7892 = vmatmul.msk.f32.gmra.mxu2 %vm4346_vm9, %v6283_v32 }
 0x65f   :  { %v10586_v50 = vpop.f32.mrf.mxu2 }
 0x660   :  { %v5532_v34 = vpop.f32.mrf.mxu1 }
 0x661   :  { %v5672_v37 = vadd.f32 %v5623_v35, %v5532_v34 }
 0x663   :  { %5721 = vst.msk [vmem:[#allocation6 + $0xe0] sm:$0xff] %vm4662_vm10, %v5672_v37  ;;  %7823 = vmatmul.msk.f32.gmra.mxu1 %vm4346_vm9, %v5753_v38  ;;  %v6114_v38 = vld [vmem:[#allocation6 + $0x20] sm:$0xff] }
 0x664   :  { %7893 = vmatmul.msk.f32.gmra.mxu2 %vm4346_vm9, %v6284_v40 }
 0x667   :  { %v10591_v42 = vpop.f32.mrf.mxu2 }
 0x668   :  { %v5535_v41 = vpop.f32.mrf.mxu1 }
 0x669   :  { %v5673_v44 = vadd.f32 %v5624_v43, %v5535_v41  ;;  %v6293_v43 = vld [vmem:[#allocation5 + $0x158] sm:$0xff] }
 0x66b   :  { %5722 = vst.msk [vmem:[#allocation6 + $0xe8] sm:$0xff] %vm4662_vm10, %v5673_v44  ;;  %7824 = vmatmul.msk.f32.gmra.mxu1 %vm4346_vm9, %v5754_v45 }
 0x66c   :  { %7894 = vmatmul.msk.f32.gmra.mxu2 %vm4346_vm9, %v6285_v46 }
 0x670   :  { %v5538_v33 = vpop.f32.mrf.mxu1 }
 0x671   :  { %v5674_v49 = vadd.f32 %v5625_v48, %v5538_v33 }
 0x673   :  { %5723 = vst.msk [vmem:[#allocation6 + $0xf0] sm:$0xff] %vm4662_vm10, %v5674_v49  ;;  %7825 = vmatmul.msk.f32.gmra.mxu1 %vm4346_vm9, %v5755_v53  ;;  %v6115_v49 = vld [vmem:[#allocation6 + $0x28] sm:$0xff] }
 0x674   :  { %7895 = vmatmul.msk.f32.gmra.mxu2 %vm4346_vm9, %v6286_v24 }
 0x678   :  { %v5541_v51 = vpop.f32.mrf.mxu1 }
 0x679   :  { %v5675_v20 = vadd.f32 %v5626_v52, %v5541_v51  ;;  %v6294_v52 = vld [vmem:[#allocation5 + $0x160] sm:$0xff] }
 0x67b   :  { %5724 = vst.msk [vmem:[#allocation6 + $0xf8] sm:$0xff] %vm4662_vm10, %v5675_v20  ;;  %7826 = vmatmul.msk.f32.gmra.mxu1 %vm4346_vm9, %v5756_v55 }
 0x67c   :  { %7896 = vmatmul.msk.f32.gmra.mxu2 %vm4346_vm9, %v6287_v56 }
 0x680   :  { %v5544_v58 = vpop.f32.mrf.mxu1 }
 0x681   :  { %v5676_v60 = vadd.f32 %v5627_v59, %v5544_v58 }
 0x683   :  { %5725 = vst.msk [vmem:[#allocation6 + $0x100] sm:$0xff] %vm4662_vm10, %v5676_v60  ;;  %7827 = vmatmul.msk.f32.gmra.mxu1 %vm4346_vm9, %v5757_v54  ;;  %v6116_v60 = vld [vmem:[#allocation6 + $0x30] sm:$0xff] }
 0x684   :  { %7897 = vmatmul.msk.f32.gmra.mxu2 %vm4346_vm9, %v6288_v61 }
 0x688   :  { %v5963_v62 = vpop.f32.mrf.mxu1 }
 0x689   :  { %v6159_v0 = vadd.f32 %v6110_v30, %v5963_v62  ;;  %v5764_v62 = vld [vmem:[#allocation5 + $0xda] sm:$0xff]  ;;  %v6295_v30 = vld [vmem:[#allocation5 + $0x168] sm:$0xff] }
 0x68b   :  { %6208 = vst.msk [vmem:[#allocation6] sm:$0xff] %vm4662_vm10, %v6159_v0  ;;  %7828 = vmatmul.msk.f32.gmra.mxu1 %vm4346_vm9, %v5758_v2 }
 0x68c   :  { %7898 = vmatmul.msk.f32.gmra.mxu2 %vm4346_vm9, %v6289_v3 }
 0x690   :  { %v5966_v8 = vpop.f32.mrf.mxu1 }
 0x691   :  { %v6160_v7 = vadd.f32 %v6111_v5, %v5966_v8 }
 0x692   :  { %v6625_v10 = vld [vmem:[#allocation6] sm:$0xff] }
 0x693   :  { %v6674_v14 = vadd.f32 %v6625_v10, %v10530_v57  ;;  %6209 = vst.msk [vmem:[#allocation6 + $0x8] sm:$0xff] %vm4662_vm10, %v6160_v7  ;;  %7829 = vmatmul.msk.f32.gmra.mxu1 %vm4346_vm9, %v5759_v11  ;;  %v10602_v57 = vpop.f32.mrf.mxu2  ;;  %v6117_v7 = vld [vmem:[#allocation6 + $0x38] sm:$0xff] }
 0x694   :  { %7899 = vmatmul.msk.f32.gmra.mxu2 %vm4346_vm9, %v6290_v39  ;;  %v5765_v39 = vld [vmem:[#allocation5 + $0xe2] sm:$0xff] }
 0x695   :  { %6723 = vst.msk [vmem:[#allocation6] sm:$0xff] %vm4662_vm10, %v6674_v14  ;;  %v6296_v14 = vld [vmem:[#allocation5 + $0x170] sm:$0xff] }
 0x698   :  { %v5969_v15 = vpop.f32.mrf.mxu1 }
 0x699   :  { %v6161_v17 = vadd.f32 %v6112_v9, %v5969_v15 }
 0x69a   :  { %v6626_v18 = vld [vmem:[#allocation6 + $0x8] sm:$0xff] }
 0x69b   :  { %v6675_v12 = vadd.f32 %v6626_v18, %v10535_v63  ;;  %6210 = vst.msk [vmem:[#allocation6 + $0x10] sm:$0xff] %vm4662_vm10, %v6161_v17  ;;  %7830 = vmatmul.msk.f32.gmra.mxu1 %vm4346_vm9, %v5760_v19  ;;  %v10610_v35 = vpop.f32.mrf.mxu2 }
 0x69c   :  { %7900 = vmatmul.msk.f32.gmra.mxu2 %vm4346_vm9, %v6291_v22  ;;  %v6772_v63 = vld [vmem:[#allocation6] sm:$0xff] }
 0x69d   :  { %6724 = vst.msk [vmem:[#allocation6 + $0x8] sm:$0xff] %vm4662_vm10, %v6675_v12 }
 0x6a0   :  { %v5972_v23 = vpop.f32.mrf.mxu1 }
 0x6a1   :  { %v6162_v25 = vadd.f32 %v6113_v6, %v5972_v23  ;;  %v6118_v6 = vld [vmem:[#allocation6 + $0x40] sm:$0xff] }
 0x6a2   :  { %v6627_v28 = vld [vmem:[#allocation6 + $0x10] sm:$0xff] }
 0x6a3   :  { %v6676_v1 = vadd.f32 %v6627_v28, %v10540_v4  ;;  %6211 = vst.msk [vmem:[#allocation6 + $0x18] sm:$0xff] %vm4662_vm10, %v6162_v25  ;;  %7831 = vmatmul.msk.f32.gmra.mxu1 %vm4346_vm9, %v5761_v29  ;;  %v5762_v4 = vld [vmem:[#allocation5 + $0xca] sm:$0xff]  ;;  %v10619_v53 = vpop.f32.mrf.mxu2 }
 0x6a4   :  { %7901 = vmatmul.msk.f32.gmra.mxu2 %vm4346_vm9, %v6292_v31  ;;  %v6821_v32 = vld [vmem:[#allocation6 + $0x1] sm:$0xff]  ;;  %v5766_v29 = vld [vmem:[#allocation5 + $0xea] sm:$0xff]  ;;  %v6297_v31 = vld [vmem:[#allocation5 + $0x178] sm:$0xff] }
 0x6a5   :  { %v6870_v34 = vmax.f32 %v6772_v63, %v6821_v32  ;;  %6725 = vst.msk [vmem:[#allocation6 + $0x10] sm:$0xff] %vm4662_vm10, %v6676_v1  ;;  %v6773_v45 = vld [vmem:[#allocation6 + $0x8] sm:$0xff] }
 0x6a7   :  { %6919 = vst.msk [vmem:[#allocation7] sm:$0xff] %vm4662_vm10, %v6870_v34 }
 0x6a8   :  { %v5975_v37 = vpop.f32.mrf.mxu1 }
 0x6a9   :  { %v6163_v40 = vadd.f32 %v6114_v38, %v5975_v37 }
 0x6aa   :  { %v6628_v41 = vld [vmem:[#allocation6 + $0x18] sm:$0xff] }
 0x6ab   :  { %v6677_v44 = vadd.f32 %v6628_v41, %v10545_v13  ;;  %6212 = vst.msk [vmem:[#allocation6 + $0x20] sm:$0xff] %vm4662_vm10, %v6163_v40  ;;  %7832 = vmatmul.msk.f32.gmra.mxu1 %vm4346_vm9, %v5762_v4  ;;  %v5763_v13 = vld [vmem:[#allocation5 + $0xd2] sm:$0xff]  ;;  %v6119_v40 = vld [vmem:[#allocation6 + $0x48] sm:$0xff] }
 0x6ac   :  { %7902 = vmatmul.msk.f32.gmra.mxu2 %vm4346_vm9, %v6293_v43  ;;  %v6822_v46 = vld [vmem:[#allocation6 + $0x9] sm:$0xff]  ;;  %v6298_v43 = vld [vmem:[#allocation5 + $0x180] sm:$0xff] }
 0x6ad   :  { %v6871_v33 = vmax.f32 %v6773_v45, %v6822_v46  ;;  %6726 = vst.msk [vmem:[#allocation6 + $0x18] sm:$0xff] %vm4662_vm10, %v6677_v44  ;;  %v6774_v55 = vld [vmem:[#allocation6 + $0x10] sm:$0xff] }
 0x6af   :  { %6920 = vst.msk [vmem:[#allocation7 + $0x8] sm:$0xff] %vm4662_vm10, %v6871_v33 }
 0x6b0   :  { %v5978_v48 = vpop.f32.mrf.mxu1 }
 0x6b1   :  { %v6164_v24 = vadd.f32 %v6115_v49, %v5978_v48  ;;  %v6120_v49 = vld [vmem:[#allocation6 + $0x50] sm:$0xff] }
 0x6b2   :  { %v6629_v51 = vld [vmem:[#allocation6 + $0x20] sm:$0xff] }
 0x6b3   :  { %v6678_v20 = vadd.f32 %v6629_v51, %v10553_v21  ;;  %6213 = vst.msk [vmem:[#allocation6 + $0x28] sm:$0xff] %vm4662_vm10, %v6164_v24  ;;  %7833 = vmatmul.msk.f32.gmra.mxu1 %vm4346_vm9, %v5763_v13  ;;  %v10627_v21 = vpop.f32.mrf.mxu2 }
 0x6b4   :  { %7903 = vmatmul.msk.f32.gmra.mxu2 %vm4346_vm9, %v6294_v52  ;;  %v6823_v56 = vld [vmem:[#allocation6 + $0x11] sm:$0xff]  ;;  %v6299_v52 = vld [vmem:[#allocation5 + $0x188] sm:$0xff] }
 0x6b5   :  { %v6872_v58 = vmax.f32 %v6774_v55, %v6823_v56  ;;  %6727 = vst.msk [vmem:[#allocation6 + $0x20] sm:$0xff] %vm4662_vm10, %v6678_v20  ;;  %v6775_v2 = vld [vmem:[#allocation6 + $0x18] sm:$0xff] }
 0x6b6   :  { %v6969_v15 = vld [vmem:[#allocation7] ss:$2 sm:$0x1f] }
 0x6b7   :  { %6921 = vst.msk [vmem:[#allocation7 + $0x10] sm:$0xff] %vm4662_vm10, %v6872_v58 }
 0x6b8   :  { %v5981_v59 = vpop.f32.mrf.mxu1 }
 0x6b9   :  { %v6165_v54 = vadd.f32 %v6116_v60, %v5981_v59  ;;  %v6121_v60 = vld [vmem:[#allocation6 + $0x58] sm:$0xff] }
 0x6ba   :  { %v6630_v61 = vld [vmem:[#allocation6 + $0x28] sm:$0xff] }
 0x6bb   :  { %v6679_v0 = vadd.f32 %v6630_v61, %v10558_v27  ;;  %6214 = vst.msk [vmem:[#allocation6 + $0x30] sm:$0xff] %vm4662_vm10, %v6165_v54  ;;  %7834 = vmatmul.msk.f32.gmra.mxu1 %vm4346_vm9, %v5764_v62  ;;  %v10639_v19 = vpop.f32.mrf.mxu2  ;;  %v5769_v62 = vld [vmem:[#allocation5 + $0x102] sm:$0xff] }
 0x6bc   :  { %7904 = vmatmul.msk.f32.gmra.mxu2 %vm4346_vm9, %v6295_v30  ;;  %v6824_v3 = vld [vmem:[#allocation6 + $0x19] sm:$0xff]  ;;  %v6300_v30 = vld [vmem:[#allocation5 + $0x190] sm:$0xff] }
 0x6bd   :  { %v6873_v8 = vmax.f32 %v6775_v2, %v6824_v3  ;;  %6728 = vst.msk [vmem:[#allocation6 + $0x28] sm:$0xff] %vm4662_vm10, %v6679_v0  ;;  %v6776_v9 = vld [vmem:[#allocation6 + $0x20] sm:$0xff] }
 0x6be   :  { %v6971_v18 = vld [vmem:[#allocation7 + $0xe] ss:$2 sm:$0x1f] }
 0x6bf   :  { %6922 = vst.msk [vmem:[#allocation7 + $0x18] sm:$0xff] %vm4662_vm10, %v6873_v8  ;;  %v6972_v12 = vmax.f32 %v6969_v15, %v6971_v18  ;;  %v5770_v15 = vld [vmem:[#allocation5 + $0x10a] sm:$0xff] }
 0x6c0   :  { %v5984_v5 = vpop.f32.mrf.mxu1 }
 0x6c1   :  { %v6166_v10 = vadd.f32 %v6117_v7, %v5984_v5  ;;  %v6973_v23 = vmax.f32 %v6972_v12, 0.0 }
 0x6c2   :  { %v6631_v11 = vld [vmem:[#allocation6 + $0x30] sm:$0xff] }
 0x6c3   :  { %v6680_v27 = vadd.f32 %v6631_v11, %v10563_v16  ;;  %6215 = vst.msk [vmem:[#allocation6 + $0x38] sm:$0xff] %vm4662_vm10, %v6166_v10  ;;  %7835 = vmatmul.msk.f32.gmra.mxu1 %vm4346_vm9, %v5765_v39  ;;  %v10649_v37 = vpop.f32.mrf.mxu2 }
 0x6c4   :  { %7905 = vmatmul.msk.f32.gmra.mxu2 %vm4346_vm9, %v6296_v14  ;;  %v6825_v17 = vld [vmem:[#allocation6 + $0x21] sm:$0xff]  ;;  %6975 = vst.msk [vmem:[#allocation8] sm:$0x1f] %vm6974_vm12, %v6973_v23 }
 0x6c5   :  { %v6874_v22 = vmax.f32 %v6776_v9, %v6825_v17  ;;  %6729 = vst.msk [vmem:[#allocation6 + $0x30] sm:$0xff] %vm4662_vm10, %v6680_v27  ;;  %v6777_v63 = vld [vmem:[#allocation6 + $0x28] sm:$0xff]  ;;  %v6122_v14 = vld [vmem:[#allocation6 + $0x60] sm:$0xff] }
 0x6c6   :  { %v6123_v23 = vld [vmem:[#allocation6 + $0x68] sm:$0xff] }
 0x6c7   :  { %6923 = vst.msk [vmem:[#allocation7 + $0x20] sm:$0xff] %vm4662_vm10, %v6874_v22 }
 0x6c8   :  { %v5987_v16 = vpop.f32.mrf.mxu1 }
 0x6c9   :  { %v6167_v25 = vadd.f32 %v6118_v6, %v5987_v16 }
 0x6ca   :  { %v6632_v28 = vld [vmem:[#allocation6 + $0x38] sm:$0xff] }
 0x6cb   :  { %v6681_v1 = vadd.f32 %v6632_v28, %v10568_v47  ;;  %6216 = vst.msk [vmem:[#allocation6 + $0x40] sm:$0xff] %vm4662_vm10, %v6167_v25  ;;  %7836 = vmatmul.msk.f32.gmra.mxu1 %vm4346_vm9, %v5766_v29  ;;  %v5767_v47 = vld [vmem:[#allocation5 + $0xf2] sm:$0xff]  ;;  %v10658_v24 = vpop.f32.mrf.mxu2 }
 0x6cc   :  { %7906 = vmatmul.msk.f32.gmra.mxu2 %vm4346_vm9, %v6297_v31  ;;  %v6826_v32 = vld [vmem:[#allocation6 + $0x29] sm:$0xff]  ;;  %v5771_v25 = vld [vmem:[#allocation5 + $0x112] sm:$0xff] }
 0x6cd   :  { %v6875_v34 = vmax.f32 %v6777_v63, %v6826_v32  ;;  %6730 = vst.msk [vmem:[#allocation6 + $0x38] sm:$0xff] %vm4662_vm10, %v6681_v1  ;;  %v6778_v45 = vld [vmem:[#allocation6 + $0x30] sm:$0xff] }
 0x6ce   :  { %v6977_v2 = vld [vmem:[#allocation7 + $0x1c] ss:$2 sm:$0x1f]  ;;  %v6124_v63 = vld [vmem:[#allocation6 + $0x70] sm:$0xff] }
 0x6cf   :  { %6924 = vst.msk [vmem:[#allocation7 + $0x28] sm:$0xff] %vm4662_vm10, %v6875_v34 }
 0x6d0   :  { %v5990_v38 = vpop.f32.mrf.mxu1 }
 0x6d1   :  { %v6168_v41 = vadd.f32 %v6119_v40, %v5990_v38  ;;  %v5772_v38 = vld [vmem:[#allocation5 + $0x11a] sm:$0xff] }
 0x6d2   :  { %v6633_v4 = vld [vmem:[#allocation6 + $0x40] sm:$0xff] }
 0x6d3   :  { %v6682_v44 = vadd.f32 %v6633_v4, %v10576_v36  ;;  %6217 = vst.msk [vmem:[#allocation6 + $0x48] sm:$0xff] %vm4662_vm10, %v6168_v41  ;;  %7837 = vmatmul.msk.f32.gmra.mxu1 %vm4346_vm9, %v5767_v47  ;;  %v5768_v36 = vld [vmem:[#allocation5 + $0xfa] sm:$0xff] }
 0x6d4   :  { %7907 = vmatmul.msk.f32.gmra.mxu2 %vm4346_vm9, %v6298_v43  ;;  %v6827_v46 = vld [vmem:[#allocation6 + $0x31] sm:$0xff] }
 0x6d5   :  { %v6876_v33 = vmax.f32 %v6778_v45, %v6827_v46  ;;  %6731 = vst.msk [vmem:[#allocation6 + $0x40] sm:$0xff] %vm4662_vm10, %v6682_v44  ;;  %v6779_v55 = vld [vmem:[#allocation6 + $0x38] sm:$0xff] }
 0x6d7   :  { %6925 = vst.msk [vmem:[#allocation7 + $0x30] sm:$0xff] %vm4662_vm10, %v6876_v33 }
 0x6d8   :  { %v5993_v48 = vpop.f32.mrf.mxu1 }
 0x6d9   :  { %v6169_v51 = vadd.f32 %v6120_v49, %v5993_v48  ;;  %v6125_v48 = vld [vmem:[#allocation6 + $0x78] sm:$0xff] }
 0x6da   :  { %v6634_v13 = vld [vmem:[#allocation6 + $0x48] sm:$0xff] }
 0x6db   :  { %v6683_v20 = vadd.f32 %v6634_v13, %v10581_v26  ;;  %6218 = vst.msk [vmem:[#allocation6 + $0x50] sm:$0xff] %vm4662_vm10, %v6169_v51  ;;  %7838 = vmatmul.msk.f32.gmra.mxu1 %vm4346_vm9, %v5768_v36  ;;  %v10666_v26 = vpop.f32.mrf.mxu2  ;;  %v5773_v51 = vld [vmem:[#allocation5 + $0x122] sm:$0xff] }
 0x6dc   :  { %7908 = vmatmul.msk.f32.gmra.mxu2 %vm4346_vm9, %v6299_v52  ;;  %v6828_v56 = vld [vmem:[#allocation6 + $0x39] sm:$0xff] }
 0x6dd   :  { %v6877_v58 = vmax.f32 %v6779_v55, %v6828_v56  ;;  %6732 = vst.msk [vmem:[#allocation6 + $0x48] sm:$0xff] %vm4662_vm10, %v6683_v20  ;;  %v6780_v3 = vld [vmem:[#allocation6 + $0x40] sm:$0xff] }
 0x6de   :  { %v6979_v5 = vld [vmem:[#allocation7 + $0x2a] ss:$2 sm:$0x1f]  ;;  %v6126_v56 = vld [vmem:[#allocation6 + $0x80] sm:$0xff] }
 0x6df   :  { %6926 = vst.msk [vmem:[#allocation7 + $0x38] sm:$0xff] %vm4662_vm10, %v6877_v58  ;;  %v6980_v10 = vmax.f32 %v6977_v2, %v6979_v5  ;;  %v6127_v2 = vld [vmem:[#allocation6 + $0x88] sm:$0xff]  ;;  %v5775_v5 = vld [vmem:[#allocation5 + $0x132] sm:$0xff] }
 0x6e0   :  { %v5996_v59 = vpop.f32.mrf.mxu1 }
 0x6e1   :  { %v6170_v54 = vadd.f32 %v6121_v60, %v5996_v59  ;;  %v6981_v11 = vmax.f32 %v6980_v10, 0.0 }
 0x6e2   :  { %v6635_v61 = vld [vmem:[#allocation6 + $0x50] sm:$0xff] }
 0x6e3   :  { %v6684_v0 = vadd.f32 %v6635_v61, %v10586_v50  ;;  %6219 = vst.msk [vmem:[#allocation6 + $0x58] sm:$0xff] %vm4662_vm10, %v6170_v54  ;;  %7839 = vmatmul.msk.f32.gmra.mxu1 %vm4346_vm9, %v5769_v62  ;;  %v10690_v46 = vpop.f32.mrf.mxu2  ;;  %v5774_v54 = vld [vmem:[#allocation5 + $0x12a] sm:$0xff] }
 0x6e4   :  { %7909 = vmatmul.msk.f32.gmra.mxu2 %vm4346_vm9, %v6300_v30  ;;  %v6829_v8 = vld [vmem:[#allocation6 + $0x41] sm:$0xff]  ;;  %6982 = vst.msk [vmem:[#allocation8 + $0x5] sm:$0x1f] %vm6974_vm12, %v6981_v11 }
 0x6e5   :  { %v6878_v7 = vmax.f32 %v6780_v3, %v6829_v8  ;;  %6733 = vst.msk [vmem:[#allocation6 + $0x50] sm:$0xff] %vm4662_vm10, %v6684_v0  ;;  %v6781_v17 = vld [vmem:[#allocation6 + $0x48] sm:$0xff] }
 0x6e7   :  { %6927 = vst.msk [vmem:[#allocation7 + $0x40] sm:$0xff] %vm4662_vm10, %v6878_v7 }
 0x6e8   :  { %v5999_v39 = vpop.f32.mrf.mxu1 }
 0x6e9   :  { %v6171_v50 = vadd.f32 %v6122_v14, %v5999_v39 }
 0x6ea   :  { %v6636_v27 = vld [vmem:[#allocation6 + $0x58] sm:$0xff] }
 0x6eb   :  { %v6685_v9 = vadd.f32 %v6636_v27, %v10591_v42  ;;  %6220 = vst.msk [vmem:[#allocation6 + $0x60] sm:$0xff] %vm4662_vm10, %v6171_v50  ;;  %7840 = vmatmul.msk.f32.gmra.mxu1 %vm4346_vm9, %v5770_v15  ;;  %v10698_v59 = vpop.f32.mrf.mxu2  ;;  %v6128_v50 = vld [vmem:[#allocation6 + $0x90] sm:$0xff] }
 0x6ec   :  { %v6830_v18 = vld [vmem:[#allocation6 + $0x49] sm:$0xff] }
 0x6ed   :  { %v6879_v22 = vmax.f32 %v6781_v17, %v6830_v18  ;;  %6734 = vst.msk [vmem:[#allocation6 + $0x58] sm:$0xff] %vm4662_vm10, %v6685_v9  ;;  %v6782_v42 = vld [vmem:[#allocation6 + $0x50] sm:$0xff]  ;;  %v5776_v9 = vld [vmem:[#allocation5 + $0x13a] sm:$0xff] }
 0x6ef   :  { %6928 = vst.msk [vmem:[#allocation7 + $0x48] sm:$0xff] %vm4662_vm10, %v6879_v22 }
 0x6f0   :  { %v6002_v12 = vpop.f32.mrf.mxu1 }
 0x6f1   :  { %v6172_v16 = vadd.f32 %v6123_v23, %v6002_v12 }
 0x6f2   :  { %v6637_v6 = vld [vmem:[#allocation6 + $0x60] sm:$0xff] }
 0x6f3   :  { %v6686_v28 = vadd.f32 %v6637_v6, %v10602_v57  ;;  %6221 = vst.msk [vmem:[#allocation6 + $0x68] sm:$0xff] %vm4662_vm10, %v6172_v16  ;;  %7841 = vmatmul.msk.f32.gmra.mxu1 %vm4346_vm9, %v5771_v25  ;;  %v6984_v57 = vld [vmem:[#allocation7 + $0x38] ss:$2 sm:$0x1f] }
 0x6f4   :  { %v6831_v29 = vld [vmem:[#allocation6 + $0x51] sm:$0xff] }
 0x6f5   :  { %v6880_v31 = vmax.f32 %v6782_v42, %v6831_v29  ;;  %6735 = vst.msk [vmem:[#allocation6 + $0x60] sm:$0xff] %vm4662_vm10, %v6686_v28  ;;  %v6783_v41 = vld [vmem:[#allocation6 + $0x58] sm:$0xff] }
 0x6f6   :  { %v6986_v47 = vld [vmem:[#allocation7 + $0x46] ss:$2 sm:$0x1f]  ;;  %v6129_v42 = vld [vmem:[#allocation6 + $0x98] sm:$0xff] }
 0x6f7   :  { %6929 = vst.msk [vmem:[#allocation7 + $0x50] sm:$0xff] %vm4662_vm10, %v6880_v31  ;;  %v6987_v44 = vmax.f32 %v6984_v57, %v6986_v47  ;;  %v5777_v31 = vld [vmem:[#allocation5 + $0x142] sm:$0xff]  ;;  %v5778_v47 = vld [vmem:[#allocation5 + $0x14a] sm:$0xff] }
 0x6f8   :  { %v6005_v1 = vpop.f32.mrf.mxu1  ;;  %v6130_v57 = vld [vmem:[#allocation6 + $0xa0] sm:$0xff] }
 0x6f9   :  { %v6173_v32 = vadd.f32 %v6124_v63, %v6005_v1  ;;  %v6988_v45 = vmax.f32 %v6987_v44, 0.0  ;;  %v6131_v44 = vld [vmem:[#allocation6 + $0xa8] sm:$0xff] }
 0x6fa   :  { %v6638_v34 = vld [vmem:[#allocation6 + $0x68] sm:$0xff] }
 0x6fb   :  { %v6687_v40 = vadd.f32 %v6638_v34, %v10610_v35  ;;  %6222 = vst.msk [vmem:[#allocation6 + $0x70] sm:$0xff] %vm4662_vm10, %v6173_v32  ;;  %7842 = vmatmul.msk.f32.gmra.mxu1 %vm4346_vm9, %v5772_v38 }
 0x6fc   :  { %v6832_v4 = vld [vmem:[#allocation6 + $0x59] sm:$0xff]  ;;  %6989 = vst.msk [vmem:[#allocation8 + $0xa] sm:$0x1f] %vm6974_vm12, %v6988_v45 }
 0x6fd   :  { %v6881_v43 = vmax.f32 %v6783_v41, %v6832_v4  ;;  %6736 = vst.msk [vmem:[#allocation6 + $0x68] sm:$0xff] %vm4662_vm10, %v6687_v40  ;;  %v6784_v36 = vld [vmem:[#allocation6 + $0x60] sm:$0xff] }
 0x6ff   :  { %6930 = vst.msk [vmem:[#allocation7 + $0x58] sm:$0xff] %vm4662_vm10, %v6881_v43 }
 0x700   :  { %v6008_v33 = vpop.f32.mrf.mxu1 }
 0x701   :  { %v6174_v35 = vadd.f32 %v6125_v48, %v6008_v33 }
 0x702   :  { %v6639_v49 = vld [vmem:[#allocation6 + $0x70] sm:$0xff] }
 0x703   :  { %v6688_v13 = vadd.f32 %v6639_v49, %v10619_v53  ;;  %6223 = vst.msk [vmem:[#allocation6 + $0x78] sm:$0xff] %vm4662_vm10, %v6174_v35  ;;  %7843 = vmatmul.msk.f32.gmra.mxu1 %vm4346_vm9, %v5773_v51  ;;  %v5779_v35 = vld [vmem:[#allocation5 + $0x152] sm:$0xff] }
 0x704   :  { %v6833_v52 = vld [vmem:[#allocation6 + $0x61] sm:$0xff] }
 0x705   :  { %v6882_v20 = vmax.f32 %v6784_v36, %v6833_v52  ;;  %6737 = vst.msk [vmem:[#allocation6 + $0x70] sm:$0xff] %vm4662_vm10, %v6688_v13  ;;  %v6785_v61 = vld [vmem:[#allocation6 + $0x68] sm:$0xff] }
 0x706   :  { %v6991_v17 = vld [vmem:[#allocation7 + $0x54] ss:$2 sm:$0x1f] }
 0x707   :  { %6931 = vst.msk [vmem:[#allocation7 + $0x60] sm:$0xff] %vm4662_vm10, %v6882_v20  ;;  %v6132_v20 = vld [vmem:[#allocation6 + $0xb0] sm:$0xff] }
 0x708   :  { %v6011_v55 = vpop.f32.mrf.mxu1 }
 0x709   :  { %v6175_v58 = vadd.f32 %v6126_v56, %v6011_v55 }
 0x70a   :  { %v6640_v60 = vld [vmem:[#allocation6 + $0x78] sm:$0xff] }
 0x70b   :  { %v6689_v53 = vadd.f32 %v6640_v60, %v10627_v21  ;;  %6224 = vst.msk [vmem:[#allocation6 + $0x80] sm:$0xff] %vm4662_vm10, %v6175_v58  ;;  %7844 = vmatmul.msk.f32.gmra.mxu1 %vm4346_vm9, %v5774_v54  ;;  %v10708_v21 = vpop.f32.mrf.mxu2  ;;  %v5780_v58 = vld [vmem:[#allocation5 + $0x15a] sm:$0xff] }
 0x70c   :  { %v6834_v62 = vld [vmem:[#allocation6 + $0x69] sm:$0xff] }
 0x70d   :  { %v6883_v30 = vmax.f32 %v6785_v61, %v6834_v62  ;;  %6738 = vst.msk [vmem:[#allocation6 + $0x78] sm:$0xff] %vm4662_vm10, %v6689_v53  ;;  %v6786_v10 = vld [vmem:[#allocation6 + $0x70] sm:$0xff]  ;;  %v6133_v53 = vld [vmem:[#allocation6 + $0xb8] sm:$0xff] }
 0x70f   :  { %6932 = vst.msk [vmem:[#allocation7 + $0x68] sm:$0xff] %vm4662_vm10, %v6883_v30  ;;  %v5781_v30 = vld [vmem:[#allocation5 + $0x162] sm:$0xff] }
 0x710   :  { %v6014_v0 = vpop.f32.mrf.mxu1 }
 0x711   :  { %v6176_v3 = vadd.f32 %v6127_v2, %v6014_v0 }
 0x712   :  { %v6641_v8 = vld [vmem:[#allocation6 + $0x80] sm:$0xff] }
 0x713   :  { %v6690_v7 = vadd.f32 %v6641_v8, %v10639_v19  ;;  %6225 = vst.msk [vmem:[#allocation6 + $0x88] sm:$0xff] %vm4662_vm10, %v6176_v3  ;;  %7845 = vmatmul.msk.f32.gmra.mxu1 %vm4346_vm9, %v5775_v5  ;;  %v10716_v6 = vpop.f32.mrf.mxu2  ;;  %v6134_v3 = vld [vmem:[#allocation6 + $0xc0] sm:$0xff] }
 0x714   :  { %v6835_v11 = vld [vmem:[#allocation6 + $0x71] sm:$0xff] }
 0x715   :  { %v6884_v39 = vmax.f32 %v6786_v10, %v6835_v11  ;;  %6739 = vst.msk [vmem:[#allocation6 + $0x80] sm:$0xff] %vm4662_vm10, %v6690_v7  ;;  %v6787_v18 = vld [vmem:[#allocation6 + $0x78] sm:$0xff]  ;;  %v5782_v7 = vld [vmem:[#allocation5 + $0x16a] sm:$0xff] }
 0x716   :  { %v6993_v12 = vld [vmem:[#allocation7 + $0x62] ss:$2 sm:$0x1f] }
 0x717   :  { %6933 = vst.msk [vmem:[#allocation7 + $0x70] sm:$0xff] %vm4662_vm10, %v6884_v39  ;;  %v6994_v16 = vmax.f32 %v6991_v17, %v6993_v12  ;;  %v6135_v39 = vld [vmem:[#allocation6 + $0xc8] sm:$0xff]  ;;  %v5784_v12 = vld [vmem:[#allocation5 + $0x17a] sm:$0xff] }
 0x718   :  { %v6017_v14 = vpop.f32.mrf.mxu1 }
 0x719   :  { %v6177_v27 = vadd.f32 %v6128_v50, %v6017_v14  ;;  %v6995_v25 = vmax.f32 %v6994_v16, 0.0  ;;  %v6301_v16 = vld [vmem:[#allocation5 + $0x198] sm:$0xff] }
 0x71a   :  { %v6642_v15 = vld [vmem:[#allocation6 + $0x88] sm:$0xff]  ;;  %7910 = vmatmul.msk.f32.gmra.mxu2 %vm4346_vm9, %v6301_v16 }
 0x71b   :  { %v6691_v19 = vadd.f32 %v6642_v15, %v10649_v37  ;;  %6226 = vst.msk [vmem:[#allocation6 + $0x90] sm:$0xff] %vm4662_vm10, %v6177_v27  ;;  %7846 = vmatmul.msk.f32.gmra.mxu1 %vm4346_vm9, %v5776_v9  ;;  %v6550_v38 = vpop.f32.mrf.mxu2  ;;  %v5783_v27 = vld [vmem:[#allocation5 + $0x172] sm:$0xff]  ;;  %v6143_v16 = vld [vmem:[#allocation6 + $0x108] sm:$0xff] }
 0x71c   :  { %v6836_v22 = vld [vmem:[#allocation6 + $0x79] sm:$0xff]  ;;  %6996 = vst.msk [vmem:[#allocation8 + $0xf] sm:$0x1f] %vm6974_vm12, %v6995_v25 }
 0x71d   :  { %v6885_v23 = vmax.f32 %v6787_v18, %v6836_v22  ;;  %6740 = vst.msk [vmem:[#allocation6 + $0x88] sm:$0xff] %vm4662_vm10, %v6691_v19  ;;  %v6788_v63 = vld [vmem:[#allocation6 + $0x80] sm:$0xff]  ;;  %v6136_v19 = vld [vmem:[#allocation6 + $0xd0] sm:$0xff]  ;;  %v6137_v25 = vld [vmem:[#allocation6 + $0xd8] sm:$0xff] }
 0x71f   :  { %6934 = vst.msk [vmem:[#allocation7 + $0x78] sm:$0xff] %vm4662_vm10, %v6885_v23 }
 0x720   :  { %v6020_v28 = vpop.f32.mrf.mxu1 }
 0x721   :  { %v6178_v37 = vadd.f32 %v6129_v42, %v6020_v28 }
 0x722   :  { %v6643_v29 = vld [vmem:[#allocation6 + $0x90] sm:$0xff] }
 0x723   :  { %v6692_v1 = vadd.f32 %v6643_v29, %v10658_v24  ;;  %6227 = vst.msk [vmem:[#allocation6 + $0x98] sm:$0xff] %vm4662_vm10, %v6178_v37  ;;  %7847 = vmatmul.msk.f32.gmra.mxu1 %vm4346_vm9, %v5777_v31  ;;  %v6553_v33 = vpop.f32.mrf.mxu2  ;;  %v5785_v37 = vld [vmem:[#allocation5 + $0x182] sm:$0xff] }
 0x724   :  { %v6837_v32 = vld [vmem:[#allocation6 + $0x81] sm:$0xff] }
 0x725   :  { %v6886_v34 = vmax.f32 %v6788_v63, %v6837_v32  ;;  %6741 = vst.msk [vmem:[#allocation6 + $0x90] sm:$0xff] %vm4662_vm10, %v6692_v1 }
 0x726   :  { %v6998_v51 = vld [vmem:[#allocation7 + $0x70] ss:$2 sm:$0x1f] }
 0x727   :  { %6935 = vst.msk [vmem:[#allocation7 + $0x80] sm:$0xff] %vm4662_vm10, %v6886_v34  ;;  %v6302_v34 = vld [vmem:[#allocation5 + $0x1a0] sm:$0xff] }
 0x728   :  { %v6023_v40 = vpop.f32.mrf.mxu1  ;;  %7911 = vmatmul.msk.f32.gmra.mxu2 %vm4346_vm9, %v6302_v34 }
 0x729   :  { %v6179_v41 = vadd.f32 %v6130_v57, %v6023_v40  ;;  %v6138_v40 = vld [vmem:[#allocation6 + $0xe0] sm:$0xff] }
 0x72a   :  { %v6644_v4 = vld [vmem:[#allocation6 + $0x98] sm:$0xff] }
 0x72b   :  { %v6693_v43 = vadd.f32 %v6644_v4, %v10666_v26  ;;  %6228 = vst.msk [vmem:[#allocation6 + $0xa0] sm:$0xff] %vm4662_vm10, %v6179_v41  ;;  %7848 = vmatmul.msk.f32.gmra.mxu1 %vm4346_vm9, %v5778_v47  ;;  %v5786_v4 = vld [vmem:[#allocation5 + $0x18a] sm:$0xff] }
 0x72d   :  { %6742 = vst.msk [vmem:[#allocation6 + $0x98] sm:$0xff] %vm4662_vm10, %v6693_v43 }
 0x72e   :  { %v7000_v26 = vld [vmem:[#allocation7 + $0x7e] ss:$2 sm:$0x1f] }
 0x72f   :  { %v7001_v13 = vmax.f32 %v6998_v51, %v7000_v26  ;;  %v5787_v51 = vld [vmem:[#allocation5 + $0x192] sm:$0xff] }
 0x730   :  { %v6026_v24 = vpop.f32.mrf.mxu1 }
 0x731   :  { %v6180_v45 = vadd.f32 %v6131_v44, %v6026_v24  ;;  %v7002_v36 = vmax.f32 %v7001_v13, 0.0 }
 0x732   :  { %v6645_v48 = vld [vmem:[#allocation6 + $0xa0] sm:$0xff] }
 0x733   :  { %v6694_v49 = vadd.f32 %v6645_v48, %v10690_v46  ;;  %6229 = vst.msk [vmem:[#allocation6 + $0xa8] sm:$0xff] %vm4662_vm10, %v6180_v45  ;;  %7849 = vmatmul.msk.f32.gmra.mxu1 %vm4346_vm9, %v5779_v35  ;;  %v6556_v46 = vpop.f32.mrf.mxu2  ;;  %v6139_v48 = vld [vmem:[#allocation6 + $0xe8] sm:$0xff] }
 0x734   :  { %7003 = vst.msk [vmem:[#allocation8 + $0x14] sm:$0x1f] %vm6974_vm12, %v7002_v36 }
 0x735   :  { %6743 = vst.msk [vmem:[#allocation6 + $0xa0] sm:$0xff] %vm4662_vm10, %v6694_v49 }
 0x738   :  { %v6029_v52 = vpop.f32.mrf.mxu1 }
 0x739   :  { %v6181_v55 = vadd.f32 %v6132_v20, %v6029_v52 }
 0x73a   :  { %v6646_v56 = vld [vmem:[#allocation6 + $0xa8] sm:$0xff] }
 0x73b   :  { %v6695_v60 = vadd.f32 %v6646_v56, %v10698_v59  ;;  %6230 = vst.msk [vmem:[#allocation6 + $0xb0] sm:$0xff] %vm4662_vm10, %v6181_v55  ;;  %7850 = vmatmul.msk.f32.gmra.mxu1 %vm4346_vm9, %v5780_v58  ;;  %v6559_v59 = vpop.f32.mrf.mxu2  ;;  %v6140_v56 = vld [vmem:[#allocation6 + $0xf0] sm:$0xff]  ;;  %v5788_v58 = vld [vmem:[#allocation5 + $0x19a] sm:$0xff] }
 0x73d   :  { %6744 = vst.msk [vmem:[#allocation6 + $0xa8] sm:$0xff] %vm4662_vm10, %v6695_v60 }
 0x740   :  { %v6032_v54 = vpop.f32.mrf.mxu1 }
 0x741   :  { %v6182_v61 = vadd.f32 %v6133_v53, %v6032_v54 }
 0x742   :  { %v6647_v62 = vld [vmem:[#allocation6 + $0xb0] sm:$0xff] }
 0x743   :  { %v6696_v0 = vadd.f32 %v6647_v62, %v10708_v21  ;;  %6231 = vst.msk [vmem:[#allocation6 + $0xb8] sm:$0xff] %vm4662_vm10, %v6182_v61  ;;  %7851 = vmatmul.msk.f32.gmra.mxu1 %vm4346_vm9, %v5781_v30  ;;  %v6562_v21 = vpop.f32.mrf.mxu2 }
 0x745   :  { %6745 = vst.msk [vmem:[#allocation6 + $0xb0] sm:$0xff] %vm4662_vm10, %v6696_v0  ;;  %v6141_v0 = vld [vmem:[#allocation6 + $0xf8] sm:$0xff] }
 0x748   :  { %v6035_v2 = vpop.f32.mrf.mxu1 }
 0x749   :  { %v6183_v8 = vadd.f32 %v6134_v3, %v6035_v2 }
 0x74a   :  { %v6648_v5 = vld [vmem:[#allocation6 + $0xb8] sm:$0xff] }
 0x74b   :  { %v6697_v10 = vadd.f32 %v6648_v5, %v10716_v6  ;;  %6232 = vst.msk [vmem:[#allocation6 + $0xc0] sm:$0xff] %vm4662_vm10, %v6183_v8  ;;  %7852 = vmatmul.msk.f32.gmra.mxu1 %vm4346_vm9, %v5782_v7  ;;  %v6565_v18 = vpop.f32.mrf.mxu2 }
 0x74d   :  { %6746 = vst.msk [vmem:[#allocation6 + $0xb8] sm:$0xff] %vm4662_vm10, %v6697_v10 }
 0x750   :  { %v6038_v11 = vpop.f32.mrf.mxu1 }
 0x751   :  { %v6184_v14 = vadd.f32 %v6135_v39, %v6038_v11 }
 0x752   :  { %v6649_v50 = vld [vmem:[#allocation6 + $0xc0] sm:$0xff] }
 0x753   :  { %v6698_v15 = vadd.f32 %v6649_v50, %v6550_v38  ;;  %6233 = vst.msk [vmem:[#allocation6 + $0xc8] sm:$0xff] %vm4662_vm10, %v6184_v14  ;;  %7853 = vmatmul.msk.f32.gmra.mxu1 %vm4346_vm9, %v5783_v27  ;;  %v6568_v31 = vpop.f32.mrf.mxu2  ;;  %v6142_v14 = vld [vmem:[#allocation6 + $0x100] sm:$0xff] }
 0x755   :  { %6747 = vst.msk [vmem:[#allocation6 + $0xc0] sm:$0xff] %vm4662_vm10, %v6698_v15 }
 0x758   :  { %v6041_v9 = vpop.f32.mrf.mxu1 }
 0x759   :  { %v6185_v17 = vadd.f32 %v6136_v19, %v6041_v9 }
 0x75a   :  { %v6650_v22 = vld [vmem:[#allocation6 + $0xc8] sm:$0xff] }
 0x75b   :  { %v6699_v23 = vadd.f32 %v6650_v22, %v6553_v33  ;;  %6234 = vst.msk [vmem:[#allocation6 + $0xd0] sm:$0xff] %vm4662_vm10, %v6185_v17  ;;  %7854 = vmatmul.msk.f32.gmra.mxu1 %vm4346_vm9, %v5784_v12  ;;  %v6571_v45 = vpop.f32.mrf.mxu2 }
 0x75c   :  { %v6796_v1 = vld [vmem:[#allocation6 + $0xc0] sm:$0xff] }
 0x75d   :  { %6748 = vst.msk [vmem:[#allocation6 + $0xc8] sm:$0xff] %vm4662_vm10, %v6699_v23 }
 0x760   :  { %v6044_v6 = vpop.f32.mrf.mxu1 }
 0x761   :  { %v6186_v28 = vadd.f32 %v6137_v25, %v6044_v6 }
 0x762   :  { %v6651_v42 = vld [vmem:[#allocation6 + $0xd0] sm:$0xff] }
 0x763   :  { %v6700_v29 = vadd.f32 %v6651_v42, %v6556_v46  ;;  %6235 = vst.msk [vmem:[#allocation6 + $0xd8] sm:$0xff] %vm4662_vm10, %v6186_v28  ;;  %7855 = vmatmul.msk.f32.gmra.mxu1 %vm4346_vm9, %v5785_v37  ;;  %v6574_v20 = vpop.f32.mrf.mxu2 }
 0x764   :  { %v6845_v63 = vld [vmem:[#allocation6 + $0xc1] sm:$0xff] }
 0x765   :  { %v6894_v32 = vmax.f32 %v6796_v1, %v6845_v63  ;;  %6749 = vst.msk [vmem:[#allocation6 + $0xd0] sm:$0xff] %vm4662_vm10, %v6700_v29  ;;  %v6797_v43 = vld [vmem:[#allocation6 + $0xc8] sm:$0xff] }
 0x767   :  { %6943 = vst.msk [vmem:[#allocation7 + $0xc0] sm:$0xff] %vm4662_vm10, %v6894_v32 }
 0x768   :  { %v6047_v38 = vpop.f32.mrf.mxu1 }
 0x769   :  { %v6187_v57 = vadd.f32 %v6138_v40, %v6047_v38  ;;  %v6144_v38 = vld [vmem:[#allocation6 + $0x110] sm:$0xff] }
 0x76a   :  { %v6652_v41 = vld [vmem:[#allocation6 + $0xd8] sm:$0xff] }
 0x76b   :  { %v6701_v47 = vadd.f32 %v6652_v41, %v6559_v59  ;;  %6236 = vst.msk [vmem:[#allocation6 + $0xe0] sm:$0xff] %vm4662_vm10, %v6187_v57  ;;  %7856 = vmatmul.msk.f32.gmra.mxu1 %vm4346_vm9, %v5786_v4  ;;  %v6577_v2 = vpop.f32.mrf.mxu2 }
 0x76c   :  { %v6846_v24 = vld [vmem:[#allocation6 + $0xc9] sm:$0xff] }
 0x76d   :  { %v6895_v44 = vmax.f32 %v6797_v43, %v6846_v24  ;;  %6750 = vst.msk [vmem:[#allocation6 + $0xd8] sm:$0xff] %vm4662_vm10, %v6701_v47  ;;  %v6798_v13 = vld [vmem:[#allocation6 + $0xd0] sm:$0xff] }
 0x76f   :  { %6944 = vst.msk [vmem:[#allocation7 + $0xc8] sm:$0xff] %vm4662_vm10, %v6895_v44 }
 0x770   :  { %v6050_v33 = vpop.f32.mrf.mxu1 }
 0x771   :  { %v6188_v35 = vadd.f32 %v6139_v48, %v6050_v33 }
 0x772   :  { %v6653_v49 = vld [vmem:[#allocation6 + $0xe0] sm:$0xff] }
 0x773   :  { %v6702_v26 = vadd.f32 %v6653_v49, %v6562_v21  ;;  %6237 = vst.msk [vmem:[#allocation6 + $0xe8] sm:$0xff] %vm4662_vm10, %v6188_v35  ;;  %7857 = vmatmul.msk.f32.gmra.mxu1 %vm4346_vm9, %v5787_v51  ;;  %v6580_v17 = vpop.f32.mrf.mxu2  ;;  %v6145_v49 = vld [vmem:[#allocation6 + $0x118] sm:$0xff] }
 0x774   :  { %v6847_v36 = vld [vmem:[#allocation6 + $0xd1] sm:$0xff] }
 0x775   :  { %v6896_v52 = vmax.f32 %v6798_v13, %v6847_v36  ;;  %6751 = vst.msk [vmem:[#allocation6 + $0xe0] sm:$0xff] %vm4662_vm10, %v6702_v26  ;;  %v6799_v53 = vld [vmem:[#allocation6 + $0xd8] sm:$0xff] }
 0x776   :  { %v7005_v21 = vld [vmem:[#allocation7 + $0xc4] ss:$2 sm:$0x1f] }
 0x777   :  { %6945 = vst.msk [vmem:[#allocation7 + $0xd0] sm:$0xff] %vm4662_vm10, %v6896_v52 }
 0x778   :  { %v6053_v55 = vpop.f32.mrf.mxu1 }
 0x779   :  { %v6189_v60 = vadd.f32 %v6140_v56, %v6053_v55 }
 0x77a   :  { %v6654_v46 = vld [vmem:[#allocation6 + $0xe8] sm:$0xff] }
 0x77b   :  { %v6703_v54 = vadd.f32 %v6654_v46, %v6565_v18  ;;  %6238 = vst.msk [vmem:[#allocation6 + $0xf0] sm:$0xff] %vm4662_vm10, %v6189_v60  ;;  %7858 = vmatmul.msk.f32.gmra.mxu1 %vm4346_vm9, %v5788_v58  ;;  %v6583_v32 = vpop.f32.mrf.mxu2  ;;  %v6146_v60 = vld [vmem:[#allocation6 + $0x120] sm:$0xff] }
 0x77c   :  { %v6848_v61 = vld [vmem:[#allocation6 + $0xd9] sm:$0xff] }
 0x77d   :  { %v6897_v62 = vmax.f32 %v6799_v53, %v6848_v61  ;;  %6752 = vst.msk [vmem:[#allocation6 + $0xe8] sm:$0xff] %vm4662_vm10, %v6703_v54  ;;  %v6800_v5 = vld [vmem:[#allocation6 + $0xe0] sm:$0xff] }
 0x77f   :  { %6946 = vst.msk [vmem:[#allocation7 + $0xd8] sm:$0xff] %vm4662_vm10, %v6897_v62 }
 0x780   :  { %v6056_v30 = vpop.f32.mrf.mxu1 }
 0x781   :  { %v6190_v59 = vadd.f32 %v6141_v0, %v6056_v30 }
 0x782   :  { %v6655_v3 = vld [vmem:[#allocation6 + $0xf0] sm:$0xff] }
 0x783   :  { %v6704_v8 = vadd.f32 %v6655_v3, %v6568_v31  ;;  %6239 = vst.msk [vmem:[#allocation6 + $0xf8] sm:$0xff] %vm4662_vm10, %v6190_v59  ;;  %v6586_v48 = vpop.f32.mrf.mxu2 }
 0x784   :  { %v6849_v7 = vld [vmem:[#allocation6 + $0xe1] sm:$0xff] }
 0x785   :  { %v6898_v10 = vmax.f32 %v6800_v5, %v6849_v7  ;;  %6753 = vst.msk [vmem:[#allocation6 + $0xf0] sm:$0xff] %vm4662_vm10, %v6704_v8  ;;  %v6801_v18 = vld [vmem:[#allocation6 + $0xe8] sm:$0xff] }
 0x786   :  { %v7007_v11 = vld [vmem:[#allocation7 + $0xd2] ss:$2 sm:$0x1f]  ;;  %v6147_v5 = vld [vmem:[#allocation6 + $0x128] sm:$0xff] }
 0x787   :  { %6947 = vst.msk [vmem:[#allocation7 + $0xe0] sm:$0xff] %vm4662_vm10, %v6898_v10  ;;  %v7008_v50 = vmax.f32 %v7005_v21, %v7007_v11 }
 0x788   :  { %v6059_v39 = vpop.f32.mrf.mxu1 }
 0x789   :  { %v6191_v27 = vadd.f32 %v6142_v14, %v6059_v39  ;;  %v7009_v9 = vmax.f32 %v7008_v50, 0.0 }
 0x78a   :  { %v6656_v15 = vld [vmem:[#allocation6 + $0xf8] sm:$0xff] }
 0x78b   :  { %v6705_v19 = vadd.f32 %v6656_v15, %v6571_v45  ;;  %6240 = vst.msk [vmem:[#allocation6 + $0x100] sm:$0xff] %vm4662_vm10, %v6191_v27  ;;  %v6589_v54 = vpop.f32.mrf.mxu2 }
 0x78c   :  { %v6850_v22 = vld [vmem:[#allocation6 + $0xe9] sm:$0xff]  ;;  %7010 = vst.msk [vmem:[#allocation8 + $0x19] sm:$0x1f] %vm6974_vm12, %v7009_v9 }
 0x78d   :  { %v6899_v12 = vmax.f32 %v6801_v18, %v6850_v22  ;;  %6754 = vst.msk [vmem:[#allocation6 + $0xf8] sm:$0xff] %vm4662_vm10, %v6705_v19  ;;  %v6802_v37 = vld [vmem:[#allocation6 + $0xf0] sm:$0xff] }
 0x78e   :  { %v6148_v19 = vld [vmem:[#allocation6 + $0x130] sm:$0xff] }
 0x78f   :  { %6948 = vst.msk [vmem:[#allocation7 + $0xe8] sm:$0xff] %vm4662_vm10, %v6899_v12 }
 0x790   :  { %v6062_v23 = vpop.f32.mrf.mxu1 }
 0x791   :  { %v6192_v6 = vadd.f32 %v6143_v16, %v6062_v23 }
 0x792   :  { %v6657_v25 = vld [vmem:[#allocation6 + $0x100] sm:$0xff] }
 0x793   :  { %v6706_v28 = vadd.f32 %v6657_v25, %v6574_v20  ;;  %6241 = vst.msk [vmem:[#allocation6 + $0x108] sm:$0xff] %vm4662_vm10, %v6192_v6  ;;  %v7059_v42 = vld [vmem:[#allocation8 + $0x3] ss:$25 sm:$0x3]  ;;  %v6592_v39 = vpop.f32.mrf.mxu2 }
 0x794   :  { %v6851_v29 = vld [vmem:[#allocation6 + $0xf1] sm:$0xff]  ;;  %7061 = vrot.lane.b32.xlu1 %v7059_v42, %s7995_s3  ;;  %v7039_v40 = vld [vmem:[#allocation8] ss:$25 sm:$0x3] }
 0x795   :  { %v7051_v31 = vld [vmem:[#allocation8 + $0x2] ss:$25 sm:$0x3]  ;;  %v6900_v1 = vmax.f32 %v6802_v37, %v6851_v29  ;;  %6755 = vst.msk [vmem:[#allocation6 + $0x100] sm:$0xff] %vm4662_vm10, %v6706_v28  ;;  %v6803_v47 = vld [vmem:[#allocation6 + $0xf8] sm:$0xff] }
 0x796   :  { %7053 = vrot.lane.b32.xlu0 %v7051_v31, %s7996_s30  ;;  %v7043_v63 = vld [vmem:[#allocation8 + $0x1] ss:$25 sm:$0x3]  ;;  %7041 = vst.msk [vmem:[#allocation9] sm:$0x3] %vm7040_vm13, %v7039_v40  ;;  %v6149_v37 = vld [vmem:[#allocation6 + $0x138] sm:$0xff] }
 0x797   :  { %7045 = vrot.lane.b32.xlu2 %v7043_v63, %s7997_s14  ;;  %6949 = vst.msk [vmem:[#allocation7 + $0xf0] sm:$0xff] %vm4662_vm10, %v6900_v1  ;;  %v7067_v44 = vld [vmem:[#allocation8 + $0x4] ss:$25 sm:$0x3] }
 0x798   :  { %v6065_v34 = vpop.f32.mrf.mxu1  ;;  %v7012_v45 = vld [vmem:[#allocation7 + $0xe0] ss:$2 sm:$0x1f] }
 0x799   :  { %v6193_v57 = vadd.f32 %v6144_v38, %v6065_v34 }
 0x79a   :  { %v6658_v41 = vld [vmem:[#allocation6 + $0x108] sm:$0xff] }
 0x79b   :  { %v6707_v4 = vadd.f32 %v6658_v41, %v6577_v2  ;;  %6242 = vst.msk [vmem:[#allocation6 + $0x110] sm:$0xff] %vm4662_vm10, %v6193_v57  ;;  %v6595_v6 = vpop.f32.mrf.mxu2 }
 0x79c   :  { %v6852_v43 = vld [vmem:[#allocation6 + $0xf9] sm:$0xff] }
 0x79d   :  { %v6901_v24 = vmax.f32 %v6803_v47, %v6852_v43  ;;  %6756 = vst.msk [vmem:[#allocation6 + $0x108] sm:$0xff] %vm4662_vm10, %v6707_v4  ;;  %v6804_v20 = vld [vmem:[#allocation6 + $0x100] sm:$0xff] }
 0x79e   :  { %v7014_v33 = vld [vmem:[#allocation7 + $0xee] ss:$2 sm:$0x1f]  ;;  %v6150_v4 = vld [vmem:[#allocation6 + $0x140] sm:$0xff] }
 0x79f   :  { %7069 = vrot.lane.b32.xlu2 %v7067_v44, %s7998_s15  ;;  %6950 = vst.msk [vmem:[#allocation7 + $0xf8] sm:$0xff] %vm4662_vm10, %v6901_v24  ;;  %v7015_v51 = vmax.f32 %v7012_v45, %v7014_v33 }
 0x7a0   :  { %v6068_v35 = vpop.f32.mrf.mxu1 }
 0x7a1   :  { %v6194_v26 = vadd.f32 %v6145_v49, %v6068_v35  ;;  %v7016_v36 = vmax.f32 %v7015_v51, 0.0 }
 0x7a2   :  { %v6659_v13 = vld [vmem:[#allocation6 + $0x110] sm:$0xff] }
 0x7a3   :  { %v6708_v52 = vadd.f32 %v6659_v13, %v6580_v17  ;;  %6243 = vst.msk [vmem:[#allocation6 + $0x118] sm:$0xff] %vm4662_vm10, %v6194_v26  ;;  %v6598_v57 = vpop.f32.mrf.mxu2  ;;  %v6151_v26 = vld [vmem:[#allocation6 + $0x148] sm:$0xff] }
 0x7a4   :  { %v6853_v55 = vld [vmem:[#allocation6 + $0x101] sm:$0xff]  ;;  %7017 = vst.msk [vmem:[#allocation8 + $0x1e] sm:$0x1f] %vm6974_vm12, %v7016_v36 }
 0x7a5   :  { %v6902_v56 = vmax.f32 %v6804_v20, %v6853_v55  ;;  %6757 = vst.msk [vmem:[#allocation6 + $0x110] sm:$0xff] %vm4662_vm10, %v6708_v52  ;;  %v6805_v30 = vld [vmem:[#allocation6 + $0x108] sm:$0xff] }
 0x7a7   :  { %6951 = vst.msk [vmem:[#allocation7 + $0x100] sm:$0xff] %vm4662_vm10, %v6902_v56 }
 0x7a8   :  { %v6071_v58 = vpop.f32.mrf.mxu1 }
 0x7a9   :  { %v6195_v46 = vadd.f32 %v6146_v60, %v6071_v58 }
 0x7aa   :  { %v6660_v53 = vld [vmem:[#allocation6 + $0x118] sm:$0xff] }
 0x7ab   :  { %v6709_v61 = vadd.f32 %v6660_v53, %v6583_v32  ;;  %6244 = vst.msk [vmem:[#allocation6 + $0x120] sm:$0xff] %vm4662_vm10, %v6195_v46  ;;  %v7083_v62 = vld [vmem:[#allocation8 + $0x6] ss:$25 sm:$0x3]  ;;  %v6601_v36 = vpop.f32.mrf.mxu2 }
 0x7ac   :  { %v6854_v0 = vld [vmem:[#allocation6 + $0x109] sm:$0xff]  ;;  %7085 = vrot.lane.b32.xlu1 %v7083_v62, %s7999_s16  ;;  %v7099_v7 = vld [vmem:[#allocation8 + $0x8] ss:$25 sm:$0x3] }
 0x7ad   :  { %v7075_v59 = vld [vmem:[#allocation8 + $0x5] ss:$25 sm:$0x3]  ;;  %v6903_v2 = vmax.f32 %v6805_v30, %v6854_v0  ;;  %6758 = vst.msk [vmem:[#allocation6 + $0x118] sm:$0xff] %vm4662_vm10, %v6709_v61 }
 0x7ae   :  { %7077 = vrot.lane.b32.xlu0 %v7075_v59, %s8000_s17  ;;  %v7091_v3 = vld [vmem:[#allocation8 + $0x7] ss:$25 sm:$0x3]  ;;  %7100 = vst.msk [vmem:[#allocation9 + $0x8] sm:$0x3] %vm7040_vm13, %v7099_v7 }
 0x7af   :  { %7093 = vrot.lane.b32.xlu2 %v7091_v3, %s8001_s20  ;;  %6952 = vst.msk [vmem:[#allocation7 + $0x108] sm:$0xff] %vm4662_vm10, %v6903_v2  ;;  %v6806_v14 = vld [vmem:[#allocation6 + $0x110] sm:$0xff]  ;;  %v7019_v25 = vld [vmem:[#allocation7 + $0xfc] ss:$2 sm:$0x1f] }
 0x7b0   :  { %v6074_v8 = vpop.f32.mrf.mxu1  ;;  %v7102_v27 = vld [vmem:[#allocation8 + $0x9] ss:$25 sm:$0x3] }
 0x7b1   :  { %v6196_v10 = vadd.f32 %v6147_v5, %v6074_v8  ;;  %v7224_v61 = vld [vmem:[%s11150_s5 + $0x78] sm:$0xff] }
 0x7b2   :  { %v6661_v21 = vld [vmem:[#allocation6 + $0x120] sm:$0xff]  ;;  %v6152_v30 = vld [vmem:[#allocation6 + $0x150] sm:$0xff]  ;;  %7266 = vmatpush.msra.mxu3 %v7224_v61  ;;  %v7213_v61 = vld [vmem:[%s11150_s5 + $0x20] sm:$0xff] }
 0x7b3   :  { %v6710_v11 = vadd.f32 %v6661_v21, %v6586_v48  ;;  %6245 = vst.msk [vmem:[#allocation6 + $0x128] sm:$0xff] %vm4662_vm10, %v6196_v10  ;;  %v6604_v5 = vpop.f32.mrf.mxu2 }
 0x7b4   :  { %v6855_v50 = vld [vmem:[#allocation6 + $0x111] sm:$0xff] }
 0x7b5   :  { %v6904_v15 = vmax.f32 %v6806_v14, %v6855_v50  ;;  %6759 = vst.msk [vmem:[#allocation6 + $0x120] sm:$0xff] %vm4662_vm10, %v6710_v11  ;;  %v6807_v12 = vld [vmem:[#allocation6 + $0x118] sm:$0xff] }
 0x7b6   :  { %7104 = vrot.lane.b32.xlu0 %v7102_v27, %s7997_s14 }
 0x7b7   :  { %6953 = vst.msk [vmem:[#allocation7 + $0x110] sm:$0xff] %vm4662_vm10, %v6904_v15 }
 0x7b8   :  { %v6077_v9 = vpop.f32.mrf.mxu1 }
 0x7b9   :  { %v6197_v17 = vadd.f32 %v6148_v19, %v6077_v9  ;;  %v7223_v9 = vld [vmem:[%s11150_s5 + $0x70] sm:$0xff]  ;;  %v7222_v19 = vld [vmem:[%s11150_s5 + $0x68] sm:$0xff] }
 0x7ba   :  { %v6662_v18 = vld [vmem:[#allocation6 + $0x128] sm:$0xff]  ;;  %7267 = vmatpush.msra.mxu3 %v7223_v9 }
 0x7bb   :  { %v6711_v22 = vadd.f32 %v6662_v18, %v6589_v54  ;;  %6246 = vst.msk [vmem:[#allocation6 + $0x130] sm:$0xff] %vm4662_vm10, %v6197_v17 }
 0x7bc   :  { %v6856_v23 = vld [vmem:[#allocation6 + $0x119] sm:$0xff]  ;;  %7268 = vmatpush.msra.mxu3 %v7222_v19 }
 0x7bd   :  { %v6905_v16 = vmax.f32 %v6807_v12, %v6856_v23  ;;  %6760 = vst.msk [vmem:[#allocation6 + $0x128] sm:$0xff] %vm4662_vm10, %v6711_v22  ;;  %v6808_v34 = vld [vmem:[#allocation6 + $0x120] sm:$0xff] }
 0x7be   :  { %v7021_v28 = vld [vmem:[#allocation7 + $0x10a] ss:$2 sm:$0x1f] }
 0x7bf   :  { %6954 = vst.msk [vmem:[#allocation7 + $0x118] sm:$0xff] %vm4662_vm10, %v6905_v16  ;;  %v7022_v29 = vmax.f32 %v7019_v25, %v7021_v28  ;;  %v6607_v16 = vpop.f32.mrf.mxu2  ;;  %v6154_v28 = vld [vmem:[#allocation6 + $0x160] sm:$0xff] }
 0x7c0   :  { %v6080_v42 = vpop.f32.mrf.mxu1 }
 0x7c1   :  { %v6198_v31 = vadd.f32 %v6149_v37, %v6080_v42  ;;  %v7023_v63 = vmax.f32 %v7022_v29, 0.0  ;;  %v7220_v29 = vld [vmem:[%s11150_s5 + $0x58] sm:$0xff] }
 0x7c2   :  { %v6663_v1 = vld [vmem:[#allocation6 + $0x130] sm:$0xff] }
 0x7c3   :  { %v6712_v32 = vadd.f32 %v6663_v1, %v6592_v39  ;;  %6247 = vst.msk [vmem:[#allocation6 + $0x138] sm:$0xff] %vm4662_vm10, %v6198_v31  ;;  %v6153_v39 = vld [vmem:[#allocation6 + $0x158] sm:$0xff] }
 0x7c4   :  { %v6857_v38 = vld [vmem:[#allocation6 + $0x121] sm:$0xff]  ;;  %7024 = vst.msk [vmem:[#allocation8 + $0x23] sm:$0x1f] %vm6974_vm12, %v7023_v63 }
 0x7c5   :  { %v6906_v40 = vmax.f32 %v6808_v34, %v6857_v38  ;;  %6761 = vst.msk [vmem:[#allocation6 + $0x130] sm:$0xff] %vm4662_vm10, %v6712_v32  ;;  %v6809_v45 = vld [vmem:[#allocation6 + $0x128] sm:$0xff] }
 0x7c6   :  { %v7219_v38 = vld [vmem:[%s11150_s5 + $0x50] sm:$0xff] }
 0x7c7   :  { %6955 = vst.msk [vmem:[#allocation7 + $0x120] sm:$0xff] %vm4662_vm10, %v6906_v40 }
 0x7c8   :  { %v6083_v41 = vpop.f32.mrf.mxu1 }
 0x7c9   :  { %v6199_v47 = vadd.f32 %v6150_v4, %v6083_v41 }
 0x7ca   :  { %v6664_v43 = vld [vmem:[#allocation6 + $0x138] sm:$0xff] }
 0x7cb   :  { %v6713_v24 = vadd.f32 %v6664_v43, %v6595_v6  ;;  %6248 = vst.msk [vmem:[#allocation6 + $0x140] sm:$0xff] %vm4662_vm10, %v6199_v47  ;;  %v7109_v44 = vld [vmem:[#allocation8 + $0xa] ss:$25 sm:$0x3]  ;;  %v6155_v47 = vld [vmem:[#allocation6 + $0x168] sm:$0xff] }
 0x7cc   :  { %v6858_v33 = vld [vmem:[#allocation6 + $0x129] sm:$0xff]  ;;  %7111 = vrot.lane.b32.xlu1 %v7109_v44, %s7996_s30  ;;  %v7123_v48 = vld [vmem:[#allocation8 + $0xc] ss:$25 sm:$0x3] }
 0x7cd   :  { %v6907_v35 = vmax.f32 %v6809_v45, %v6858_v33  ;;  %6762 = vst.msk [vmem:[#allocation6 + $0x138] sm:$0xff] %vm4662_vm10, %v6713_v24  ;;  %7125 = vrot.lane.b32.xlu0 %v7123_v48, %s7998_s15  ;;  %v7116_v49 = vld [vmem:[#allocation8 + $0xb] ss:$25 sm:$0x3]  ;;  %v7218_v45 = vld [vmem:[%s11150_s5 + $0x48] sm:$0xff] }
 0x7ce   :  { %7118 = vrot.lane.b32.xlu2 %v7116_v49, %s7995_s3  ;;  %v7130_v55 = vld [vmem:[#allocation8 + $0xd] ss:$25 sm:$0x3]  ;;  %v7137_v46 = vld [vmem:[#allocation8 + $0xe] ss:$25 sm:$0x3] }
 0x7cf   :  { %6956 = vst.msk [vmem:[#allocation7 + $0x128] sm:$0xff] %vm4662_vm10, %v6907_v35  ;;  %v6810_v56 = vld [vmem:[#allocation6 + $0x130] sm:$0xff]  ;;  %v7026_v54 = vld [vmem:[#allocation7 + $0x118] ss:$2 sm:$0x1f]  ;;  %v7221_v6 = vld [vmem:[%s11150_s5 + $0x60] sm:$0xff] }
 0x7d0   :  { %v6086_v51 = vpop.f32.mrf.mxu1  ;;  %7269 = vmatpush.msra.mxu3 %v7221_v6  ;;  %v7217_v33 = vld [vmem:[%s11150_s5 + $0x40] sm:$0xff]  ;;  %v7216_v48 = vld [vmem:[%s11150_s5 + $0x38] sm:$0xff]  ;;  %v7238_v6 = vld [vmem:[%s11150_s5 + $0xe8] sm:$0xff] }
 0x7d1   :  { %v6200_v13 = vadd.f32 %v6151_v26, %v6086_v51  ;;  %v7215_v26 = vld [vmem:[%s11150_s5 + $0x30] sm:$0xff] }
 0x7d2   :  { %v6665_v52 = vld [vmem:[#allocation6 + $0x140] sm:$0xff]  ;;  %7270 = vmatpush.msra.mxu3 %v7220_v29 }
 0x7d3   :  { %v6714_v20 = vadd.f32 %v6665_v52, %v6598_v57  ;;  %6249 = vst.msk [vmem:[#allocation6 + $0x148] sm:$0xff] %vm4662_vm10, %v6200_v13  ;;  %v6610_v57 = vpop.f32.mrf.mxu2 }
 0x7d4   :  { %v6859_v58 = vld [vmem:[#allocation6 + $0x131] sm:$0xff]  ;;  %7132 = vrot.lane.b32.xlu1 %v7130_v55, %s8000_s17  ;;  %7271 = vmatpush.msra.mxu3 %v7219_v38  ;;  %v7230_v38 = vld [vmem:[%s11150_s5 + $0xa8] sm:$0xff] }
 0x7d5   :  { %v6908_v60 = vmax.f32 %v6810_v56, %v6859_v58  ;;  %6763 = vst.msk [vmem:[#allocation6 + $0x140] sm:$0xff] %vm4662_vm10, %v6714_v20  ;;  %v6811_v7 = vld [vmem:[#allocation6 + $0x138] sm:$0xff] }
 0x7d6   :  { %7139 = vrot.lane.b32.xlu2 %v7137_v46, %s7999_s16  ;;  %v7028_v53 = vld [vmem:[#allocation7 + $0x126] ss:$2 sm:$0x1f]  ;;  %7272 = vmatpush.msra.mxu3 %v7218_v45 }
 0x7d7   :  { %6957 = vst.msk [vmem:[#allocation7 + $0x130] sm:$0xff] %vm4662_vm10, %v6908_v60  ;;  %v7029_v0 = vmax.f32 %v7026_v54, %v7028_v53  ;;  %v7214_v60 = vld [vmem:[%s11150_s5 + $0x28] sm:$0xff]  ;;  %v7256_v45 = vld [vmem:[%s11150_s5 + $0x178] sm:$0xff] }
 0x7d8   :  { %v6089_v62 = vpop.f32.mrf.mxu1  ;;  %7273 = vmatpush.msra.mxu3 %v7217_v33  ;;  %v7255_v33 = vld [vmem:[%s11150_s5 + $0x170] sm:$0xff] }
 0x7d9   :  { %v6201_v59 = vadd.f32 %v6152_v30, %v6089_v62  ;;  %v7030_v3 = vmax.f32 %v7029_v0, 0.0  ;;  %v7212_v30 = vld [vmem:[%s11150_s5 + $0x18] sm:$0xff]  ;;  %v7211_v0 = vld [vmem:[%s11150_s5 + $0x10] sm:$0xff] }
 0x7da   :  { %v6666_v2 = vld [vmem:[#allocation6 + $0x148] sm:$0xff]  ;;  %7274 = vmatpush.msra.mxu3 %v7216_v48  ;;  %v7254_v48 = vld [vmem:[%s11150_s5 + $0x168] sm:$0xff] }
 0x7db   :  { %v6715_v8 = vadd.f32 %v6666_v2, %v6601_v36  ;;  %6250 = vst.msk [vmem:[#allocation6 + $0x150] sm:$0xff] %vm4662_vm10, %v6201_v59  ;;  %v6156_v36 = vld [vmem:[#allocation6 + $0x170] sm:$0xff]  ;;  %v6613_v52 = vpop.f32.mrf.mxu2 }
 0x7dc   :  { %v6860_v10 = vld [vmem:[#allocation6 + $0x139] sm:$0xff]  ;;  %7031 = vst.msk [vmem:[#allocation8 + $0x28] sm:$0x1f] %vm6974_vm12, %v7030_v3  ;;  %7275 = vmatpush.msra.mxu3 %v7215_v26  ;;  %v7252_v26 = vld [vmem:[%s11150_s5 + $0x158] sm:$0xff] }
 0x7dd   :  { %v6909_v21 = vmax.f32 %v6811_v7, %v6860_v10  ;;  %6764 = vst.msk [vmem:[#allocation6 + $0x148] sm:$0xff] %vm4662_vm10, %v6715_v8  ;;  %v6812_v17 = vld [vmem:[#allocation6 + $0x140] sm:$0xff]  ;;  %v7209_v7 = vld [vmem:[%s11150_s5] sm:$0xff] }
 0x7de   :  { %7276 = vmatpush.msra.mxu3 %v7214_v60  ;;  %v7210_v3 = vld [vmem:[%s11150_s5 + $0x8] sm:$0xff]  ;;  %v7247_v60 = vld [vmem:[%s11150_s5 + $0x130] sm:$0xff] }
 0x7df   :  { %6958 = vst.msk [vmem:[#allocation7 + $0x138] sm:$0xff] %vm4662_vm10, %v6909_v21  ;;  %v2994_v21 = vld [vmem:[#allocation4 + $0x1a9] sm:$0xff] }
 0x7e0   :  { %v6092_v11 = vpop.f32.mrf.mxu1  ;;  %7277 = vmatpush.msra.mxu3 %v7213_v61 }
 0x7e1   :  { %v6202_v14 = vadd.f32 %v6153_v39, %v6092_v11  ;;  %v3668_v11 = vld [vmem:[#allocation4 + $0x1ab] sm:$0xff] }
 0x7e2   :  { %v6667_v50 = vld [vmem:[#allocation6 + $0x150] sm:$0xff]  ;;  %7278 = vmatpush.msra.mxu3 %v7212_v30 }
 0x7e3   :  { %v6716_v27 = vadd.f32 %v6667_v50, %v6604_v5  ;;  %6251 = vst.msk [vmem:[#allocation6 + $0x158] sm:$0xff] %vm4662_vm10, %v6202_v14  ;;  %v7154_v15 = vld [vmem:[#allocation8 + $0x11] ss:$25 sm:$0x3]  ;;  %v3331_v5 = vld [vmem:[#allocation4 + $0x1aa] sm:$0xff]  ;;  %v3332_v50 = vld [vmem:[#allocation4 + $0x1b2] sm:$0xff] }
 0x7e4   :  { %v6861_v18 = vld [vmem:[#allocation6 + $0x141] sm:$0xff]  ;;  %7156 = vrot.lane.b32.xlu1 %v7154_v15, %s7997_s14  ;;  %v7144_v22 = vld [vmem:[#allocation8 + $0xf] ss:$25 sm:$0x3]  ;;  %7279 = vmatpush.msra.mxu3 %v7211_v0  ;;  %v2995_v39 = vld [vmem:[#allocation4 + $0x1b1] sm:$0xff] }
 0x7e5   :  { %v6910_v12 = vmax.f32 %v6812_v17, %v6861_v18  ;;  %6765 = vst.msk [vmem:[#allocation6 + $0x150] sm:$0xff] %vm4662_vm10, %v6716_v27  ;;  %7146 = vrot.lane.b32.xlu0 %v7144_v22, %s8001_s20  ;;  %v7161_v23 = vld [vmem:[#allocation8 + $0x12] ss:$25 sm:$0x3]  ;;  %v6813_v1 = vld [vmem:[#allocation6 + $0x148] sm:$0xff]  ;;  %v2996_v17 = vld [vmem:[#allocation4 + $0x1b9] sm:$0xff] }
 0x7e6   :  { %7163 = vrot.lane.b32.xlu2 %v7161_v23, %s7996_s30  ;;  %v7151_v42 = vld [vmem:[#allocation8 + $0x10] ss:$25 sm:$0x3]  ;;  %v7168_v34 = vld [vmem:[#allocation8 + $0x13] ss:$25 sm:$0x3]  ;;  %7280 = vmatpush.msra.mxu3 %v7210_v3 }
 0x7e7   :  { %6959 = vst.msk [vmem:[#allocation7 + $0x140] sm:$0xff] %vm4662_vm10, %v6910_v12  ;;  %v7033_v35 = vld [vmem:[#allocation7 + $0x134] ss:$2 sm:$0x1f]  ;;  %v4006_v27 = vld [vmem:[#allocation4 + $0x1b4] sm:$0xff]  ;;  %s8002_s30 = smov [#allocation10]  }
 0x7e8   :  { %v6095_v25 = vpop.f32.mrf.mxu1  ;;  %7152 = vst.msk [vmem:[#allocation9 + $0x10] sm:$0x3] %vm7040_vm13, %v7151_v42  ;;  %7281 = vmatpush.msra.mxu3 %v7209_v7  ;;  %v4005_v14 = vld [vmem:[#allocation4 + $0x1ac] sm:$0xff]  ;;  %v3670_v22 = vld [vmem:[#allocation4 + $0x1bb] sm:$0xff] }
 0x7e9   :  { %v6203_v37 = vadd.f32 %v6154_v28, %v6095_v25  ;;  %v3669_v15 = vld [vmem:[#allocation4 + $0x1b3] sm:$0xff]  ;;  %v7237_v25 = vld [vmem:[%s11150_s5 + $0xe0] sm:$0xff]  ;;  %v7258_v7 = vld [vmem:[%s11150_s5 + $0x188] sm:$0xff] }
 0x7ea   :  { %v6668_v31 = vld [vmem:[#allocation6 + $0x158] sm:$0xff]  ;;  %v7240_v12 = vld [vmem:[%s11150_s5 + $0xf8] sm:$0xff]  ;;  %v7239_v23 = vld [vmem:[%s11150_s5 + $0xf0] sm:$0xff] }
 0x7eb   :  { %v6717_v63 = vadd.f32 %v6668_v31, %v6607_v16  ;;  %6252 = vst.msk [vmem:[#allocation6 + $0x160] sm:$0xff] %vm4662_vm10, %v6203_v37  ;;  %7286 = vmatpush.msrb.mxu3 %v7240_v12  ;;  %v3333_v16 = vld [vmem:[#allocation4 + $0x1ba] sm:$0xff]  ;;  %v7235_v31 = vld [vmem:[%s11150_s5 + $0xd0] sm:$0xff] }
 0x7ec   :  { %v6862_v32 = vld [vmem:[#allocation6 + $0x149] sm:$0xff]  ;;  %v4007_v42 = vld [vmem:[#allocation4 + $0x1bc] sm:$0xff] }
 0x7ed   :  { %v6911_v40 = vmax.f32 %v6813_v1, %v6862_v32  ;;  %6766 = vst.msk [vmem:[#allocation6 + $0x158] sm:$0xff] %vm4662_vm10, %v6717_v63  ;;  %7170 = vrot.lane.b32.xlu0 %v7168_v34, %s7995_s3  ;;  %7287 = vmatpush.msrb.mxu3 %v7239_v23  ;;  %v7236_v37 = vld [vmem:[%s11150_s5 + $0xd8] sm:$0xff]  ;;  %v7234_v1 = vld [vmem:[%s11150_s5 + $0xc8] sm:$0xff]  ;;  %v7233_v63 = vld [vmem:[%s11150_s5 + $0xc0] sm:$0xff] }
 0x7ee   :  { %v7232_v32 = vld [vmem:[%s11150_s5 + $0xb8] sm:$0xff]  ;;  %v7231_v34 = vld [vmem:[%s11150_s5 + $0xb0] sm:$0xff] }
 0x7ef   :  { %6960 = vst.msk [vmem:[#allocation7 + $0x148] sm:$0xff] %vm4662_vm10, %v6911_v40  ;;  %7288 = vmatpush.msrb.mxu3 %v7238_v6  ;;  %v7229_v40 = vld [vmem:[%s11150_s5 + $0xa0] sm:$0xff]  ;;  %v7244_v0 = vld [vmem:[%s11150_s5 + $0x118] sm:$0xff] }
 0x7f0   :  { %v6098_v4 = vpop.f32.mrf.mxu1 }
 0x7f1   :  { %v7046_v41 = vpop.permute.xlu2 %7045  ;;  %v6204_v43 = vadd.f32 %v6155_v47, %v6098_v4  ;;  %7289 = vmatpush.msrb.mxu3 %v7237_v25  ;;  %v7226_v4 = vld [vmem:[%s11150_s5 + $0x88] sm:$0xff] }
 0x7f2   :  { %7049 = vst.msk [vmem:[#allocation9] sm:$0x3] %vm7048_vm14, %v7046_v41  ;;  %v6669_v24 = vld [vmem:[#allocation6 + $0x160] sm:$0xff]  ;;  %v7227_v41 = vld [vmem:[%s11150_s5 + $0x90] sm:$0xff] }
 0x7f3   :  { %6253 = vst.msk [vmem:[#allocation6 + $0x168] sm:$0xff] %vm4662_vm10, %v6204_v43  ;;  %v6718_v44 = vadd.f32 %v6669_v24, %v6610_v57  ;;  %7290 = vmatpush.msrb.mxu3 %v7236_v37  ;;  %v7228_v57 = vld [vmem:[%s11150_s5 + $0x98] sm:$0xff]  ;;  %v7225_v24 = vld [vmem:[%s11150_s5 + $0x80] sm:$0xff] }
 0x7f5   :  { %6767 = vst.msk [vmem:[#allocation6 + $0x160] sm:$0xff] %vm4662_vm10, %v6718_v44  ;;  %7291 = vmatpush.msrb.mxu3 %v7235_v31 }
 0x7f6   :  { %v7035_v49 = vld [vmem:[#allocation7 + $0x142] ss:$2 sm:$0x1f] }
 0x7f7   :  { %v7036_v51 = vmax.f32 %v7033_v35, %v7035_v49  ;;  %7292 = vmatpush.msrb.mxu3 %v7234_v1  ;;  %v7253_v35 = vld [vmem:[%s11150_s5 + $0x160] sm:$0xff]  ;;  %v7361_v1 = vld [vmem:[%s11152_s7 + $0x70] sm:$0xff] }
 0x7f8   :  { %v6101_v13 = vpop.f32.mrf.mxu1 }
 0x7f9   :  { %v7037_v20 = vmax.f32 %v7036_v51, 0.0  ;;  %v6205_v55 = vadd.f32 %v6156_v36, %v6101_v13  ;;  %v7070_v8 = vpop.permute.xlu2 %7069  ;;  %7293 = vmatpush.msrb.mxu3 %v7233_v63  ;;  %v7251_v13 = vld [vmem:[%s11150_s5 + $0x150] sm:$0xff]  ;;  %v7250_v36 = vld [vmem:[%s11150_s5 + $0x148] sm:$0xff] }
 0x7fa   :  { %v6670_v56 = vld [vmem:[#allocation6 + $0x168] sm:$0xff]  ;;  %v7360_v63 = vld [vmem:[%s11152_s7 + $0x68] sm:$0xff] }
 0x7fb   :  { %7038 = vst.msk [vmem:[#allocation8 + $0x2d] sm:$0x1f] %vm6974_vm12, %v7037_v20  ;;  %v6719_v58 = vadd.f32 %v6670_v56, %v6613_v52  ;;  %7294 = vmatpush.msrb.mxu3 %v7232_v32  ;;  %v7249_v56 = vld [vmem:[%s11150_s5 + $0x140] sm:$0xff] }
 0x7fc   :  { %6254 = vst.msk [vmem:[#allocation6 + $0x170] sm:$0xff] %vm4662_vm10, %v6205_v55  ;;  %v7359_v32 = vld [vmem:[%s11152_s7 + $0x60] sm:$0xff] }
 0x7fd   :  { %6768 = vst.msk [vmem:[#allocation6 + $0x168] sm:$0xff] %vm4662_vm10, %v6719_v58  ;;  %7295 = vmatpush.msrb.mxu3 %v7231_v34  ;;  %v7248_v58 = vld [vmem:[%s11150_s5 + $0x138] sm:$0xff] }
 0x7fe   :  { %v7358_v34 = vld [vmem:[%s11152_s7 + $0x58] sm:$0xff] }
 0x7ff   :  { %7296 = vmatpush.msrb.mxu3 %v7230_v38  ;;  %v7357_v38 = vld [vmem:[%s11152_s7 + $0x50] sm:$0xff] }
 0x801   :  { %7297 = vmatpush.msrb.mxu3 %v7229_v40  ;;  %v7356_v40 = vld [vmem:[%s11152_s7 + $0x48] sm:$0xff] }
 0x802   :  { %v7203_v46 = vld [vmem:[#allocation8 + $0x18] ss:$25 sm:$0x3]  ;;  %v7175_v54 = vld [vmem:[#allocation8 + $0x14] ss:$25 sm:$0x3] }
 0x803   :  { %7204 = vst.msk [vmem:[#allocation9 + $0x18] sm:$0x3] %vm7040_vm13, %v7203_v46  ;;  %7177 = vrot.lane.b32.xlu1 %v7175_v54, %s7998_s15  ;;  %v7189_v53 = vld [vmem:[#allocation8 + $0x16] ss:$25 sm:$0x3]  ;;  %7298 = vmatpush.msrb.mxu3 %v7228_v57 }
 0x804   :  { %7191 = vrot.lane.b32.xlu0 %v7189_v53, %s7999_s16  ;;  %v7182_v62 = vld [vmem:[#allocation8 + $0x15] ss:$25 sm:$0x3]  ;;  %v7196_v10 = vld [vmem:[#allocation8 + $0x17] ss:$25 sm:$0x3] }
 0x805   :  { %7184 = vrot.lane.b32.xlu2 %v7182_v62, %s8000_s17  ;;  %7299 = vmatpush.msrb.mxu3 %v7227_v41  ;;  %v7246_v46 = vld [vmem:[%s11150_s5 + $0x128] sm:$0xff]  ;;  %v7245_v62 = vld [vmem:[%s11150_s5 + $0x120] sm:$0xff]  ;;  %v7354_v41 = vld [vmem:[%s11152_s7 + $0x38] sm:$0xff] }
 0x806   :  { %v7062_v59 = vpop.permute.xlu1 %7061  ;;  %v2882_v54 = vld [vmem:[#allocation4 + $0x1a8] sm:$0xff]  ;;  %v7355_v57 = vld [vmem:[%s11152_s7 + $0x40] sm:$0xff] }
 0x807   :  { %7300 = vmatpush.msrb.mxu3 %v7226_v4  ;;  %2938 = vst.msk [vmem:[#allocation5 + $0x1a8] sm:$0xff] %vm1447_vm2, %v2882_v54  ;;  %v7353_v4 = vld [vmem:[%s11152_s7 + $0x30] sm:$0xff] }
 0x808   :  { %v7054_v2 = vpop.permute.xlu0 %7053 }
 0x809   :  { %7057 = vst.msk [vmem:[#allocation9] sm:$0x3] %vm7056_vm15, %v7054_v2  ;;  %v7094_v18 = vpop.permute.xlu2 %7093  ;;  %7301 = vmatpush.msrb.mxu3 %v7225_v24  ;;  %v7242_v2 = vld [vmem:[%s11150_s5 + $0x108] sm:$0xff]  ;;  %v7350_v24 = vld [vmem:[%s11152_s7 + $0x18] sm:$0xff] }
 0x80a   :  { %7065 = vst.msk [vmem:[#allocation9] sm:$0x3] %vm7064_vm0, %v7062_v59  ;;  %v7243_v59 = vld [vmem:[%s11150_s5 + $0x110] sm:$0xff] }
 0x80b   :  { %7073 = vst.msk [vmem:[#allocation9] sm:$0x3] %vm7072_vm1, %v7070_v8  ;;  %7198 = vrot.lane.b32.xlu1 %v7196_v10, %s8001_s20  ;;  %v7241_v8 = vld [vmem:[%s11150_s5 + $0x100] sm:$0xff] }
 0x80c   :  { %3496 = vrot.lane.b32.xlu0 %v3331_v5, %s7993_s19  ;;  %v2883_v5 = vld [vmem:[#allocation4 + $0x1b0] sm:$0xff]  ;;  %v7257_v10 = vld [vmem:[%s11150_s5 + $0x180] sm:$0xff] }
 0x80d   :  { %3159 = vrot.lane.b32.xlu2 %v2994_v21, %s7991_s13  ;;  %2939 = vst.msk [vmem:[#allocation5 + $0x1b0] sm:$0xff] %vm1447_vm2, %v2883_v5  ;;  %v2884_v21 = vld [vmem:[#allocation4 + $0x1b8] sm:$0xff] }
 0x80e   :  { %2940 = vst.msk [vmem:[#allocation5 + $0x1b8] sm:$0xff] %vm1447_vm2, %v2884_v21  ;;  %vm7366_vm2 = vcmask 982016   ;;  %v7398_v5 = vld [vmem:[%s11154_s9 + $0x38] sm:$0xff]  ;;  %v7396_v21 = vld [vmem:[%s11154_s9 + $0x28] sm:$0xff] }
 0x813   :  { %3833 = vrot.lane.b32.xlu1 %v3668_v11, %s7990_s12 }
 0x814   :  { %3161 = vrot.lane.b32.xlu0 %v2995_v39, %s7991_s13 }
 0x815   :  { %4170 = vrot.lane.b32.xlu2 %v4005_v14, %s7992_s18 }
 0x81b   :  { %3498 = vrot.lane.b32.xlu1 %v3332_v50, %s7993_s19 }
 0x81c   :  { %4172 = vrot.lane.b32.xlu0 %v4006_v27, %s7992_s18 }
 0x81d   :  { %3835 = vrot.lane.b32.xlu2 %v3669_v15, %s7990_s12 }
 0x81e   :  { %v7086_v9 = vpop.permute.xlu1 %7085 }
 0x820   :  { %v7078_v19 = vpop.permute.xlu0 %7077 }
 0x821   :  { %7081 = vst.msk [vmem:[#allocation9] sm:$0x3] %vm7080_vm3, %v7078_v19 }
 0x822   :  { %7089 = vst.msk [vmem:[#allocation9] sm:$0x3] %vm7088_vm4, %v7086_v9 }
 0x823   :  { %7097 = vst.msk [vmem:[#allocation9] sm:$0x3] %vm7096_vm11, %v7094_v18  ;;  %3163 = vrot.lane.b32.xlu1 %v2996_v17, %s7991_s13 }
 0x824   :  { %3837 = vrot.lane.b32.xlu0 %v3670_v22, %s7990_s12  ;;  %v7208_v22 = vld [vmem:[#allocation9 + $0x18] sm:$0x3] }
 0x825   :  { %3500 = vrot.lane.b32.xlu2 %v3333_v16, %s7993_s19 }
 0x828   :  { %v7105_v28 = vpop.permute.xlu0 %7104  ;;  %v7119_v47 = vpop.permute.xlu2 %7118 }
 0x829   :  { %7107 = vst.msk [vmem:[#allocation9 + $0x8] sm:$0x3] %vm7048_vm14, %v7105_v28 }
 0x82a   :  { %v7205_v29 = vld [vmem:[#allocation9] sm:$0x3] }
 0x82b   :  { %7282 = vmatmul.f32.vlgmr.msra.gmra.mxu3 %v7205_v29  ;;  %4174 = vrot.lane.b32.xlu1 %v4007_v42, %s7992_s18 }
 0x82c   :  { %7306 = vmatpush.msra.mxu3 %v7256_v45 }
 0x82e   :  { %7307 = vmatpush.msra.mxu3 %v7255_v33  ;;  %v7348_v33 = vld [vmem:[%s11152_s7 + $0x8] sm:$0xff] }
 0x830   :  { %7308 = vmatpush.msra.mxu3 %v7254_v48  ;;  %v7140_v51 = vpop.permute.xlu2 %7139  ;;  %v7347_v48 = vld [vmem:[%s11152_s7] sm:$0xff] }
 0x832   :  { %7309 = vmatpush.msra.mxu3 %v7253_v35 }
 0x834   :  { %7310 = vmatpush.msra.mxu3 %v7252_v26 }
 0x836   :  { %7311 = vmatpush.msra.mxu3 %v7251_v13 }
 0x838   :  { %7312 = vmatpush.msra.mxu3 %v7250_v36  ;;  %v6157_v36 = vld [vmem:[#allocation6 + $0x178] sm:$0xff] }
 0x83a   :  { %7313 = vmatpush.msra.mxu3 %v7249_v56 }
 0x83c   :  { %7314 = vmatpush.msra.mxu3 %v7248_v58 }
 0x83e   :  { %v7112_v43 = vpop.permute.xlu1 %7111  ;;  %7315 = vmatpush.msra.mxu3 %v7247_v60 }
 0x83f   :  { %7114 = vst.msk [vmem:[#allocation9 + $0x8] sm:$0x3] %vm7056_vm15, %v7112_v43  ;;  %v7126_v44 = vpop.permute.xlu0 %7125  ;;  %v7351_v43 = vld [vmem:[%s11152_s7 + $0x20] sm:$0xff] }
 0x840   :  { %7121 = vst.msk [vmem:[#allocation9 + $0x8] sm:$0x3] %vm7064_vm0, %v7119_v47  ;;  %v7164_v20 = vpop.permute.xlu2 %7163  ;;  %7316 = vmatpush.msra.mxu3 %v7246_v46  ;;  %v7352_v47 = vld [vmem:[%s11152_s7 + $0x28] sm:$0xff]  ;;  %v6671_v46 = vld [vmem:[#allocation6 + $0x170] sm:$0xff] }
 0x841   :  { %7128 = vst.msk [vmem:[#allocation9 + $0x8] sm:$0x3] %vm7072_vm1, %v7126_v44  ;;  %v7349_v44 = vld [vmem:[%s11152_s7 + $0x10] sm:$0xff] }
 0x842   :  { %7317 = vmatpush.msra.mxu3 %v7245_v62  ;;  %v6158_v62 = vld [vmem:[#allocation6 + $0x180] sm:$0xff] }
 0x844   :  { %7318 = vmatpush.msra.mxu3 %v7244_v0  ;;  %v7401_v0 = vld [vmem:[%s11154_s9 + $0x50] sm:$0xf] }
 0x846   :  { %v7133_v49 = vpop.permute.xlu1 %7132  ;;  %7319 = vmatpush.msra.mxu3 %v7243_v59  ;;  %v7400_v59 = vld [vmem:[%s11154_s9 + $0x48] sm:$0xff] }
 0x847   :  { %7135 = vst.msk [vmem:[#allocation9 + $0x8] sm:$0x3] %vm7080_vm3, %v7133_v49  ;;  %v7952_v49 = vld [vmem:[%s11151_s6] ss:$0 sm:$0xff]  ;;  %s7441_s6 = sshll.u32 %s8002_s30, 4  ;;  %s7442_s6 = int_to_ptr.vmem [resolvable:$true] %s7441_s6 }
 0x848   :  { %7142 = vst.msk [vmem:[#allocation9 + $0x8] sm:$0x3] %vm7088_vm4, %v7140_v51  ;;  %7320 = vmatpush.msra.mxu3 %v7242_v2  ;;  %v7399_v2 = vld [vmem:[%s11154_s9 + $0x40] sm:$0xff] }
 0x84a   :  { %7321 = vmatpush.msra.mxu3 %v7241_v8 }
 0x856   :  { %v7157_v52 = vpop.permute.xlu1 %7156 }
 0x857   :  { %7159 = vst.msk [vmem:[#allocation9 + $0x10] sm:$0x3] %vm7048_vm14, %v7157_v52  ;;  %v7147_v55 = vpop.permute.xlu0 %7146 }
 0x858   :  { %7166 = vst.msk [vmem:[#allocation9 + $0x10] sm:$0x3] %vm7056_vm15, %v7164_v20 }
 0x859   :  { %7149 = vst.msk [vmem:[#allocation9 + $0x8] sm:$0x3] %vm7096_vm11, %v7147_v55 }
 0x85f   :  { %v7171_v53 = vpop.permute.xlu0 %7170  ;;  %v7185_v61 = vpop.permute.xlu2 %7184 }
 0x860   :  { %7173 = vst.msk [vmem:[#allocation9 + $0x10] sm:$0x3] %vm7064_vm0, %v7171_v53  ;;  %v7206_v30 = vld [vmem:[#allocation9 + $0x8] sm:$0x3] }
 0x861   :  { %7302 = vmatmul.f32.vlgmr.msrb.gmra.mxu3 %v7206_v30 }
 0x862   :  { %7340 = vmatpush.msrb.mxu3 %v7258_v7 }
 0x864   :  { %7341 = vmatpush.msrb.mxu3 %v7257_v10  ;;  %v7397_v10 = vld [vmem:[%s11154_s9 + $0x30] sm:$0xff] }
 0x867   :  { %v3160_v3 = vpop.permute.xlu2 %3159 }
 0x868   :  { %3275 = vst.msk [vmem:[#allocation5 + $0x1a8] sm:$0xff] %vm3221_vm5, %v3160_v3 }
 0x86f   :  { %v4171_v27 = vpop.permute.xlu2 %4170 }
 0x875   :  { %v7178_v11 = vpop.permute.xlu1 %7177 }
 0x876   :  { %7180 = vst.msk [vmem:[#allocation9 + $0x10] sm:$0x3] %vm7072_vm1, %v7178_v11  ;;  %v7192_v39 = vpop.permute.xlu0 %7191  ;;  %v7395_v11 = vld [vmem:[%s11154_s9 + $0x20] sm:$0xff] }
 0x877   :  { %7187 = vst.msk [vmem:[#allocation9 + $0x10] sm:$0x3] %vm7080_vm3, %v7185_v61  ;;  %v3836_v17 = vpop.permute.xlu2 %3835 }
 0x878   :  { %7194 = vst.msk [vmem:[#allocation9 + $0x10] sm:$0x3] %vm7088_vm4, %v7192_v39  ;;  %v7394_v39 = vld [vmem:[%s11154_s9 + $0x18] sm:$0xff] }
 0x87d   :  { %v7199_v14 = vpop.permute.xlu1 %7198 }
 0x87e   :  { %7201 = vst.msk [vmem:[#allocation9 + $0x10] sm:$0x3] %vm7096_vm11, %v7199_v14  ;;  %v3497_v50 = vpop.permute.xlu0 %3496 }
 0x87f   :  { %3612 = vst.msk [vmem:[#allocation5 + $0x1a8] sm:$0xff] %vm3558_vm6, %v3497_v50  ;;  %v3501_v6 = vpop.permute.xlu2 %3500 }
 0x885   :  { %v3834_v15 = vpop.permute.xlu1 %3833  ;;  %v7207_v9 = vld [vmem:[#allocation9 + $0x10] sm:$0x3] }
 0x886   :  { %3949 = vst.msk [vmem:[#allocation5 + $0x1a8] sm:$0xff] %vm3895_vm7, %v3834_v15  ;;  %7322 = vmatmul.f32.vlgmr.msra.gmra.mxu3 %v7207_v9  ;;  %v3162_v19 = vpop.permute.xlu0 %3161  ;;  %v7393_v15 = vld [vmem:[%s11154_s9 + $0x10] sm:$0xff]  ;;  %v7392_v9 = vld [vmem:[%s11154_s9 + $0x8] sm:$0xff] }
 0x887   :  { %4286 = vst.msk [vmem:[#allocation5 + $0x1a8] sm:$0xff] %vm4232_vm8, %v4171_v27  ;;  %7371 = vmatpush.msra.mxu3 %v7361_v1 }
 0x888   :  { %3276 = vst.msk [vmem:[#allocation5 + $0x1b0] sm:$0xff] %vm3221_vm5, %v3162_v19  ;;  %v7391_v19 = vld [vmem:[%s11154_s9] sm:$0xff]  ;;  %s7443_s9 = sshll.u32 %s11156_s11, 4  ;;  %s7444_s9 = int_to_ptr.hbm [resolvable:$true] %s7443_s9 }
 0x889   :  { %7372 = vmatpush.msra.mxu3 %v7360_v63 }
 0x88b   :  { %7373 = vmatpush.msra.mxu3 %v7359_v32 }
 0x88d   :  { %v3499_v18 = vpop.permute.xlu1 %3498  ;;  %7374 = vmatpush.msra.mxu3 %v7358_v34 }
 0x88e   :  { %3613 = vst.msk [vmem:[#allocation5 + $0x1b0] sm:$0xff] %vm3558_vm6, %v3499_v18  ;;  %7915 = vmatmul.msk.f32.vlgmr.msrb.gmra.mxu3 %vm4662_vm10, %v7208_v22  ;;  %v4173_v12 = vpop.permute.xlu0 %4172  ;;  %v5789_v23 = vld [vmem:[#allocation5 + $0x1a2] sm:$0xff] }
 0x88f   :  { %v6303_v16 = vld [vmem:[#allocation5 + $0x1a8] sm:$0xff]  ;;  %3950 = vst.msk [vmem:[#allocation5 + $0x1b0] sm:$0xff] %vm3895_vm7, %v3836_v17  ;;  %7859 = vmatmul.msk.f32.gmra.mxu1 %vm4346_vm9, %v5789_v23  ;;  %7375 = vmatpush.msra.mxu3 %v7357_v38  ;;  %v7953_v17 = vld [vmem:[%s11153_s8] ss:$0 sm:$0xff] }
 0x890   :  { %7912 = vmatmul.msk.f32.gmra.mxu2 %vm4346_vm9, %v6303_v16  ;;  %4287 = vst.msk [vmem:[#allocation5 + $0x1b0] sm:$0xff] %vm4232_vm8, %v4173_v12  ;;  %v7954_v23 = vld [vmem:[%s11155_s10] ss:$0 sm:$0xff] }
 0x891   :  { %7376 = vmatpush.msra.mxu3 %v7356_v40 }
 0x893   :  { %7377 = vmatpush.msra.mxu3 %v7355_v57 }
 0x895   :  { %v3164_v25 = vpop.permute.xlu1 %3163  ;;  %7378 = vmatpush.msra.mxu3 %v7354_v41 }
 0x896   :  { %3277 = vst.msk [vmem:[#allocation5 + $0x1b8] sm:$0xff] %vm3221_vm5, %v3164_v25  ;;  %v3838_v28 = vpop.permute.xlu0 %3837  ;;  %vm7410_vm5 = vcmask 1043456  }
 0x897   :  { %v5790_v42 = vld [vmem:[#allocation5 + $0x1aa] sm:$0xff]  ;;  %3614 = vst.msk [vmem:[#allocation5 + $0x1b8] sm:$0xff] %vm3558_vm6, %v3501_v6  ;;  %7379 = vmatpush.msra.mxu3 %v7353_v4  ;;  %vm7406_vm6 = vcmask 687104  }
 0x898   :  { %v6304_v37 = vld [vmem:[#allocation5 + $0x1b0] sm:$0xff]  ;;  %7860 = vmatmul.msk.f32.gmra.mxu1 %vm4346_vm9, %v5790_v42  ;;  %3951 = vst.msk [vmem:[#allocation5 + $0x1b8] sm:$0xff] %vm3895_vm7, %v3838_v28  ;;  %vm7434_vm7 = vcmask 74752  }
 0x899   :  { %7913 = vmatmul.msk.f32.gmra.mxu2 %vm4346_vm9, %v6304_v37  ;;  %7380 = vmatpush.msra.mxu3 %v7352_v47 }
 0x89b   :  { %7381 = vmatpush.msra.mxu3 %v7351_v43 }
 0x89d   :  { %v4175_v29 = vpop.permute.xlu1 %4174  ;;  %7382 = vmatpush.msra.mxu3 %v7350_v24 }
 0x89e   :  { %4288 = vst.msk [vmem:[#allocation5 + $0x1b8] sm:$0xff] %vm4232_vm8, %v4175_v29 }
 0x89f   :  { %7383 = vmatpush.msra.mxu3 %v7349_v44 }
 0x8a1   :  { %7384 = vmatpush.msra.mxu3 %v7348_v33 }
 0x8a3   :  { %7385 = vmatpush.msra.mxu3 %v7347_v48 }
 0x8a5   :  { %v6305_v31 = vld [vmem:[#allocation5 + $0x1b8] sm:$0xff]  ;;  %7917 = vmatpush.msk.msrb.mxu3 %vm7410_vm5, %v7401_v0 }
 0x8a6   :  { %7914 = vmatmul.msk.f32.gmra.mxu2 %vm4346_vm9, %v6305_v31 }
 0x8a7   :  { %7420 = vmatpush.msrb.mxu3 %v7400_v59 }
 0x8a9   :  { %7421 = vmatpush.msrb.mxu3 %v7399_v2 }
 0x8ab   :  { %7422 = vmatpush.msrb.mxu3 %v7398_v5 }
 0x8ad   :  { %7423 = vmatpush.msrb.mxu3 %v7397_v10 }
 0x8ae   :  { %v7283_v45 = vpop.f32.mrf.mxu3 }
 0x8af   :  { %v7284_v26 = vadd.f32 %v7952_v49, %v7283_v45  ;;  %7424 = vmatpush.msrb.mxu3 %v7396_v21 }
 0x8b1   :  { %7425 = vmatpush.msrb.mxu3 %v7395_v11 }
 0x8b3   :  { %7426 = vmatpush.msrb.mxu3 %v7394_v39 }
 0x8b5   :  { %7427 = vmatpush.msrb.mxu3 %v7393_v15 }
 0x8b7   :  { %7428 = vmatpush.msrb.mxu3 %v7392_v9 }
 0x8b9   :  { %7429 = vmatpush.msrb.mxu3 %v7391_v19 }
 0x8e4   :  { %v7303_v35 = vpop.f32.mrf.mxu3 }
 0x8e5   :  { %v7304_v20 = vadd.f32 %v7303_v35, %v7284_v26 }
 0x909   :  { %v7323_v51 = vpop.f32.mrf.mxu3 }
 0x90a   :  { %v7324_v55 = vadd.f32 %v7323_v51, %v7304_v20 }
 0x90c   :  { %v6104_v13 = vpop.f32.mrf.mxu1 }
 0x90d   :  { %v6206_v52 = vadd.f32 %v6157_v36, %v6104_v13 }
 0x90f   :  { %6255 = vst.msk [vmem:[#allocation6 + $0x178] sm:$0xff] %vm4662_vm10, %v6206_v52 }
 0x911   :  { %v7343_v56 = vpop.f32.mrf.mxu3 }
 0x912   :  { %v7344_v58 = vadd.f32 %v7343_v56, %v7324_v55 }
 0x913   :  { %v6616_v60 = vpop.f32.mrf.mxu2 }
 0x914   :  { %v6720_v54 = vadd.f32 %v6671_v46, %v6616_v60  ;;  %v7346_v53 = vmax.f32 %v7344_v58, 0.0 }
 0x915   :  { %v6107_v61 = vpop.f32.mrf.mxu1 }
 0x916   :  { %6769 = vst.msk [vmem:[#allocation6 + $0x170] sm:$0xff] %vm4662_vm10, %v6720_v54  ;;  %v6207_v30 = vadd.f32 %v6158_v62, %v6107_v61  ;;  %7916 = vmatmul.msk.f32.vlgmr.msra.gmra.mxu3 %vm7366_vm2, %v7346_v53  ;;  %v6672_v8 = vld [vmem:[#allocation6 + $0x178] sm:$0xff] }
 0x918   :  { %6256 = vst.msk [vmem:[#allocation6 + $0x180] sm:$0xff] %vm4662_vm10, %v6207_v30 }
 0x91c   :  { %v6619_v3 = vpop.f32.mrf.mxu2 }
 0x91d   :  { %v6721_v7 = vadd.f32 %v6672_v8, %v6619_v3 }
 0x91f   :  { %6770 = vst.msk [vmem:[#allocation6 + $0x178] sm:$0xff] %vm4662_vm10, %v6721_v7  ;;  %v6673_v50 = vld [vmem:[#allocation6 + $0x180] sm:$0xff] }
 0x929   :  { %v6622_v14 = vpop.f32.mrf.mxu2 }
 0x92a   :  { %v6722_v27 = vadd.f32 %v6673_v50, %v6622_v14 }
 0x92c   :  { %6771 = vst.msk [vmem:[#allocation6 + $0x180] sm:$0xff] %vm4662_vm10, %v6722_v27 }
 0x999   :  { %v7387_v18 = vpop.f32.mrf.mxu3 }
 0x99a   :  { %v7388_v22 = vadd.f32 %v7953_v17, %v7387_v18 }
 0x99c   :  { %v7390_v12 = vmax.f32 %v7388_v22, 0.0 }
 0x99e   :  { %7918 = vmatmul.msk.f32.vlgmr.msrb.gmra.mxu3 %vm7406_vm6, %v7390_v12 }
 0xa21   :  { %v7431_v16 = vpop.f32.mrf.mxu3 }
 0xa22   :  { %v7432_v6 = vadd.f32 %v7954_v23, %v7431_v16 }
 0xa24   :  { %7435 = vst.msk [vmem:[#allocation10] sm:$0x3] %vm7434_vm7, %v7432_v6 }
 0xa25   :  { %7446 = dma.vmem_to_hbm [thread:$0]  %s7442_s6, 32, %s7444_s9, [#allocation11]  }
 0xa26   :  { %7988 = dma.done.wait [#allocation11], 32  }
 0xa27   :  { %7989 = vsyncadd [#allocation11], 4294967264 }
 0xa28   :  { %7451 = vsyncpa [#allocation11], 1 }

</bundles_post_ra>
